<compile_context>
chip_gen: v5e
topology: v5e:2x2
jax: 0.10.0
libtpu: 0.0.40
codegen_flags: <defaults>
</compile_context>

<pallas_src>
import math

import jax
import jax.numpy as jnp
from jax.experimental import pallas as pl
from jax.experimental.pallas import tpu as pltpu

EPS = 1e-5   # nn.BatchNorm2d default


def _vmem_limit(bytes_needed):
    """Scoped-VMEM budget: 3x margin for compiler temporaries, >=16 MiB,
    stays under v7x's 64 MiB physical VMEM."""
    return int(min(max(3 * bytes_needed, 16 * 1024 * 1024), 60 * 1024 * 1024))


# ---------------------------------------------------------------------------
# Kernel 1: 3x3 conv (stride 1, pad 1) on a block of B images as ONE big-K
# MXU matmul over an in-VMEM bf16 im2col buffer.  Optionally fuses the
# previous layer's BN+ReLU onto the input, and emits per-step BatchNorm
# partial statistics (f32 sum / sum-of-squares) of the conv output.
# ---------------------------------------------------------------------------
def _make_conv_kernel(B, H, W, Cin, Cout, pre_norm_relu):
    HW = H * W
    M = B * HW

    def kernel(*refs):
        i = 0
        x_ref = refs[i]; i += 1            # (B, H, W, Cin)  bf16 image block
        w_ref = refs[i]; i += 1            # (9*Cin, Cout)   bf16 flattened taps
        if pre_norm_relu:
            scale_ref = refs[i]; i += 1    # (1, Cin) f32  BN scale of prev layer
            shift_ref = refs[i]; i += 1    # (1, Cin) f32  BN shift of prev layer
        y_ref = refs[i]; i += 1            # (1, B*HW, Cout) bf16 conv output
        stats_ref = refs[i]; i += 1        # (1, 2, Cout)    f32 [sum, sum-of-sq]
        xpad = refs[i]; i += 1             # VMEM (B, H+2, W+2, Cin) bf16
        col = refs[i]                      # VMEM (B*HW, 9*Cin)      bf16

        # -- Input staging (optionally with the previous layer's BN + ReLU) --
        if pre_norm_relu:
            xf = x_ref[...].astype(jnp.float32)
            s = scale_ref[...].reshape(1, 1, 1, Cin)
            b = shift_ref[...].reshape(1, 1, 1, Cin)
            xin = jnp.maximum(xf * s + b, 0.0).astype(jnp.bfloat16)
        else:
            xin = x_ref[...]                                   # already bf16

        # Zero ONLY the padding border every step (interior is fully rewritten
        # below, so this stays correct when the grid is split across cores).
        zrow = jnp.zeros((B, 1, W + 2, Cin), jnp.bfloat16)
        zcol = jnp.zeros((B, H, 1, Cin), jnp.bfloat16)
        xpad[:, 0:1, :, :] = zrow
        xpad[:, H + 1:H + 2, :, :] = zrow
        xpad[:, 1:H + 1, 0:1, :] = zcol
        xpad[:, 1:H + 1, W + 1:W + 2, :] = zcol
        xpad[:, 1:H + 1, 1:W + 1, :] = xin

        # -- im2col: 9 shifted bf16 taps written into one (M, 9*Cin) buffer --
        # TODO(synk): odd-k column offsets (k*Cin with Cin=64) are 64-lane
        # masked stores; pairing taps into 128-lane writes was skipped.
        for dy in range(3):
            for dx in range(3):
                k = dy * 3 + dx
                tap = xpad[:, dy:dy + H, dx:dx + W, :].reshape(M, Cin)
                col[:, k * Cin:(k + 1) * Cin] = tap

        # -- single big-K matmul: (M, 9*Cin) x (9*Cin, Cout), f32 accumulate --
        acc = jnp.dot(col[...], w_ref[...], preferred_element_type=jnp.float32)

        y_ref[0] = acc.astype(jnp.bfloat16)
        ssum = jnp.sum(acc, axis=0, keepdims=True)             # (1, Cout) f32
        ssq = jnp.sum(acc * acc, axis=0, keepdims=True)        # (1, Cout) f32
        stats_ref[0] = jnp.concatenate([ssum, ssq], axis=0)    # (2, Cout)

    return kernel


def _pick_image_block(N, HW, row_cap=2048):
    """Images per grid step: amortize per-step overhead, but keep >= 2 grid
    steps so the pipeline / v7x megacore has width."""
    max_b = max(1, min(8, row_cap // max(HW, 1)))
    best = 1
    for b in range(1, min(max_b, N) + 1):
        if N % b == 0 and (N // b >= 2 or N == 1):
            best = b
    return best


def _conv_bn_stats(x_nhwc_bf16, w_flat, scale=None, shift=None):
    """3x3 / stride-1 / pad-1 conv of every image (bias-free; see BN note).
    Returns the conv output (G, B*HW, Cout) in bf16 and per-step BN partial
    stats (G, 2, Cout) in f32.  If scale/shift are given, the previous layer's
    BN+ReLU is applied to the input inside the kernel."""
    N, H, W, Cin = x_nhwc_bf16.shape
    Cout = w_flat.shape[-1]
    HW = H * W
    B = _pick_image_block(N, HW)
    G = N // B
    pre = scale is not None
    # TODO(synk): very large spatial sizes (e.g. 224x224) should additionally be
    # split along H with halo rows; typical SplitFed inputs fit a whole image.

    args = [x_nhwc_bf16, w_flat]
    in_specs = [
        pl.BlockSpec((B, H, W, Cin), lambda n: (n, 0, 0, 0)),
        pl.BlockSpec((9 * Cin, Cout), lambda n: (0, 0)),     # resident across steps
    ]
    if pre:
        args += [scale, shift]
        in_specs += [pl.BlockSpec((1, Cin), lambda n: (0, 0)),
                     pl.BlockSpec((1, Cin), lambda n: (0, 0))]

    block_bytes = (B * H * W * Cin * 2 + 9 * Cin * Cout * 2
                   + (2 * Cin * 4 if pre else 0)
                   + B * HW * Cout * 2 + 2 * Cout * 4)
    scratch_bytes = (B * (H + 2) * (W + 2) * Cin * 2 + B * HW * 9 * Cin * 2)
    temp_bytes = B * HW * Cout * 4 + B * HW * Cin * 4        # f32 acc + BN-fold temps
    vmem_limit = _vmem_limit(2 * block_bytes + scratch_bytes + temp_bytes)

    y, stats = pl.pallas_call(
        _make_conv_kernel(B, H, W, Cin, Cout, pre),
        grid=(G,),
        in_specs=in_specs,
        out_specs=(pl.BlockSpec((1, B * HW, Cout), lambda n: (n, 0, 0)),
                   pl.BlockSpec((1, 2, Cout), lambda n: (n, 0, 0))),
        out_shape=(jax.ShapeDtypeStruct((G, B * HW, Cout), jnp.bfloat16),
                   jax.ShapeDtypeStruct((G, 2, Cout), jnp.float32)),
        scratch_shapes=[pltpu.VMEM((B, H + 2, W + 2, Cin), jnp.bfloat16),
                        pltpu.VMEM((B * HW, 9 * Cin), jnp.bfloat16)],
        compiler_params=pltpu.CompilerParams(
            dimension_semantics=("parallel",),   # image blocks are independent
            vmem_limit_bytes=vmem_limit),
    )(*args)
    return y, stats


# ---------------------------------------------------------------------------
# Kernel 2: BN2 (as y*scale+shift) + residual + ReLU, row-tiled, lane-dense.
# ---------------------------------------------------------------------------
def _final_kernel(y_ref, res_ref, scale_ref, shift_ref, out_ref):
    y = y_ref[...].astype(jnp.float32)
    r = res_ref[...].astype(jnp.float32)
    out_ref[...] = jnp.maximum(y * scale_ref[...] + shift_ref[...] + r, 0.0)


def _pick_packing(rows, C, l_cap=2048):
    """Largest p with rows % p == 0 and (p*C) % 128 == 0 and p*C <= l_cap, so
    the kernel's last dim is a wide multiple of 128 (unmasked full-lane vst)."""
    best = 1
    p = 1
    while p <= rows and p * C <= l_cap:
        if rows % p == 0 and (p * C) % 128 == 0:
            best = p
        p += 1
    return best


def _pick_row_block(rows, cap):
    """Largest multiple-of-8 divisor of `rows` that is <= cap (whole array if none)."""
    best = rows
    t = 8
    while t <= min(rows, cap):
        if rows % t == 0:
            best = t
        t += 8
    return best


def _bn_residual_relu(y_bf16, res_bf16, scale, shift):
    """relu(y * scale + shift + res).  y/res are (rows, C) bf16; output f32."""
    rows, C = y_bf16.shape
    p = _pick_packing(rows, C)
    L = p * C
    R = rows // p
    yv = y_bf16.reshape(R, L)
    rv = res_bf16.reshape(R, L)
    sc = jnp.tile(scale.astype(jnp.float32), p).reshape(1, L)
    sh = jnp.tile(shift.astype(jnp.float32), p).reshape(1, L)

    row_cap = max(8, (1 << 20) // (L * 4))        # keep blocks ~<= 1 MiB / array
    TR = _pick_row_block(R, row_cap)
    block_bytes = TR * L * (2 + 2 + 4) + 2 * L * 4
    vmem_limit = _vmem_limit(2 * block_bytes)

    out = pl.pallas_call(
        _final_kernel,
        grid=(R // TR,),
        in_specs=[pl.BlockSpec((TR, L), lambda i: (i, 0)),
                  pl.BlockSpec((TR, L), lambda i: (i, 0)),
                  pl.BlockSpec((1, L), lambda i: (0, 0)),
                  pl.BlockSpec((1, L), lambda i: (0, 0))],
        out_specs=pl.BlockSpec((TR, L), lambda i: (i, 0)),
        out_shape=jax.ShapeDtypeStruct((R, L), jnp.float32),
        compiler_params=pltpu.CompilerParams(
            dimension_semantics=("parallel",),
            vmem_limit_bytes=vmem_limit),
    )(yv, rv, sc, sh)
    return out.reshape(rows, C)


# ---------------------------------------------------------------------------
# Tiny plain-JAX BatchNorm finalize (operates on (G, 2, C) partial stats).
# ---------------------------------------------------------------------------
def _bn_affine(stats, gamma, beta, count):
    """Training-mode BatchNorm as an affine: bn(x) = x*scale + shift, from f32
    sum / sum-of-squares accumulators (biased variance)."""
    s = jnp.sum(stats, axis=0)                   # (2, C)
    mean = s[0] / count
    var = jnp.maximum(s[1] / count - mean * mean, 0.0)
    scale = gamma * jax.lax.rsqrt(var + EPS)
    shift = beta - mean * scale
    return scale, shift


# ---------------------------------------------------------------------------
# Forward pass (matches Baseblock.forward with stride=1, dim_change=None)
# ---------------------------------------------------------------------------
def baseblock_forward(params, x_nchw):
    N, C, H, W = x_nchw.shape
    planes = params["w1"].shape[-1]
    assert C == params["w1"].shape[2], "input channels must match conv1"
    assert C == planes, "identity residual requires input_planes == planes"
    assert W % 8 == 0, "W must be a multiple of 8 for the in-kernel row-collapse views"
    # TODO(synk): stride != 1 and the dim_change (downsample) branch of Baseblock
    # are not implemented; the default config is stride=1, dim_change=None.

    count = N * H * W
    x_bf16 = jnp.transpose(x_nchw, (0, 2, 3, 1)).astype(jnp.bfloat16)    # NHWC bf16
    w1 = params["w1"].reshape(9 * C, planes).astype(jnp.bfloat16)
    w2 = params["w2"].reshape(9 * planes, planes).astype(jnp.bfloat16)

    # conv1 (bias dropped: a per-channel constant before training-mode BN is
    # cancelled by the mean subtraction) + BN1 partial statistics.
    y1, st1 = _conv_bn_stats(x_bf16, w1)
    scale1, shift1 = _bn_affine(st1, params["g1"], params["be1"], count)

    # conv2 with BN1 + ReLU folded into its input staging.
    y2, st2 = _conv_bn_stats(y1.reshape(N, H, W, planes), w2,
                             scale1.reshape(1, planes), shift1.reshape(1, planes))
    scale2, shift2 = _bn_affine(st2, params["g2"], params["be2"], count)

    # BN2 + residual + ReLU (lane-dense, row-tiled elementwise kernel; bf16 inputs).
    out = _bn_residual_relu(y2.reshape(count, planes),
                            x_bf16.reshape(count, C), scale2, shift2)
    out = out.reshape(N, H, W, planes)
    return jnp.transpose(out, (0, 3, 1, 2))
    # TODO(synk): BatchNorm running-mean/var buffers are not updated (the
    # training-mode forward output does not depend on them).
    # TODO(synk): a channel-as-sublane in-kernel layout would remove the NCHW<->NHWC
    # wrapper transposes and the 64-lane masked conv-output store; not done here.


# ---------------------------------------------------------------------------
# Parameters (synthetic, HWIO conv weights).  BN gamma/beta are randomized so
# the sanity check exercises the affine path; conv biases are kept only in the
# reference to show they cancel under train-mode BN.
# ---------------------------------------------------------------------------
def init_params(key, planes):
    ks = jax.random.split(key, 8)
    fan_in = 9 * planes
    std = math.sqrt(2.0 / fan_in)
    bound = 1.0 / math.sqrt(fan_in)
    return dict(
        w1=jax.random.normal(ks[0], (3, 3, planes, planes), jnp.float32) * std,
        w2=jax.random.normal(ks[1], (3, 3, planes, planes), jnp.float32) * std,
        b1=jax.random.uniform(ks[2], (planes,), jnp.float32, -bound, bound),
        b2=jax.random.uniform(ks[3], (planes,), jnp.float32, -bound, bound),
        g1=1.0 + 0.1 * jax.random.normal(ks[4], (planes,), jnp.float32),
        g2=1.0 + 0.1 * jax.random.normal(ks[5], (planes,), jnp.float32),
        be1=0.1 * jax.random.normal(ks[6], (planes,), jnp.float32),
        be2=0.1 * jax.random.normal(ks[7], (planes,), jnp.float32),
    )


# ---------------------------------------------------------------------------
# Pure-JAX reference (sanity check only): mirrors Baseblock.forward with
# training-mode BN, f32 HIGHEST-precision convolutions and the conv biases.
# ---------------------------------------------------------------------------
def _bn_train_ref(x, gamma, beta):
    mean = jnp.mean(x, axis=(0, 1, 2), keepdims=True)
    var = jnp.mean(jnp.square(x - mean), axis=(0, 1, 2), keepdims=True)
    return ((x - mean) * jax.lax.rsqrt(var + EPS) * gamma.reshape(1, 1, 1, -1)
            + beta.reshape(1, 1, 1, -1))


def reference_forward(params, x_nchw):
    x = jnp.transpose(x_nchw, (0, 2, 3, 1))
    dn = ("NHWC", "HWIO", "NHWC")
    hi = jax.lax.Precision.HIGHEST
    c1 = jax.lax.conv_general_dilated(x, params["w1"], (1, 1), [(1, 1), (1, 1)],
                                      dimension_numbers=dn, precision=hi)
    c1 = c1 + params["b1"].reshape(1, 1, 1, -1)
    a = jax.nn.relu(_bn_train_ref(c1, params["g1"], params["be1"]))
    c2 = jax.lax.conv_general_dilated(a, params["w2"], (1, 1), [(1, 1), (1, 1)],
                                      dimension_numbers=dn, precision=hi)
    c2 = c2 + params["b2"].reshape(1, 1, 1, -1)
    o = jax.nn.relu(_bn_train_ref(c2, params["g2"], params["be2"]) + x)
    return jnp.transpose(o, (0, 3, 1, 2))


if __name__ == "__main__":
    key = jax.random.PRNGKey(0)
    kx, kp = jax.random.split(key)
    planes = 64
    # NCHW input; input_planes == planes so the identity residual is valid.
    x = jax.random.normal(kx, (2, planes, 16, 16), jnp.float32)
    params = init_params(kp, planes)

    out = jax.jit(baseblock_forward)(params, x)
    out = jax.block_until_ready(out)
    assert out.shape == (2, planes, 16, 16), out.shape

    ref = reference_forward(params, x)
    max_err = float(jnp.max(jnp.abs(out - ref)))
    # Tolerance accounts for bf16 MXU inputs, bf16 activation storage and the
    # bf16 residual vs. the f32 HIGHEST-precision reference; real bugs
    # (missing tap, wrong BN) produce O(1) errors.
    if max_err > 0.15:
        raise AssertionError(f"kernel/reference mismatch, max abs err = {max_err}")
    print("KERNEL_OK")
</pallas_src>

<mosaic_0001>
module attributes {stable_mosaic.version = 11 : i64} {
  func.func @kernel(%arg0: i32, %arg1: memref<1x16x16x64xbf16, #tpu.memory_space<vmem>>, %arg2: memref<576x64xbf16, #tpu.memory_space<vmem>>, %arg3: memref<1x256x64xbf16, #tpu.memory_space<vmem>>, %arg4: memref<1x2x64xf32, #tpu.memory_space<vmem>>, %arg5: memref<1x18x18x64xbf16, #tpu.memory_space<vmem>>, %arg6: memref<256x576xbf16, #tpu.memory_space<vmem>>) attributes {dimension_semantics = [#tpu.dimension_semantics<parallel>], iteration_bounds = array<i64: 2>, scalar_prefetch = 0 : i64, scratch_operands = 2 : i64, tpu.core_type = #tpu.core_type<tc>, window_params = [{transform_indices = @transform_0, window_bounds = array<i64: 1, 16, 16, 64>}, {pipeline_mode = #tpu.pipeline_mode<synchronous>, transform_indices = @transform_1, window_bounds = array<i64: 576, 64>}, {transform_indices = @transform_2, window_bounds = array<i64: 1, 256, 64>}, {transform_indices = @transform_3, window_bounds = array<i64: 1, 2, 64>}]} {
    %c0 = arith.constant 0 : index
    %c0_0 = arith.constant 0 : index
    %c0_1 = arith.constant 0 : index
    %c0_2 = arith.constant 0 : index
    %0 = vector.load %arg1[%c0, %c0_0, %c0_1, %c0_2] : memref<1x16x16x64xbf16, #tpu.memory_space<vmem>>, vector<1x16x16x64xbf16>
    %cst = arith.constant 0.000000e+00 : bf16
    %1 = vector.broadcast %cst : bf16 to vector<1x1x18x64xbf16>
    %cst_3 = arith.constant 0.000000e+00 : bf16
    %2 = vector.broadcast %cst_3 : bf16 to vector<1x16x1x64xbf16>
    %c0_4 = arith.constant 0 : index
    %c0_5 = arith.constant 0 : index
    %c0_6 = arith.constant 0 : index
    %c0_7 = arith.constant 0 : index
    %3 = vector.load %arg5[%c0_4, %c0_5, %c0_6, %c0_7] : memref<1x18x18x64xbf16, #tpu.memory_space<vmem>>, vector<1x1x18x64xbf16>
    tpu.vector_store %arg5[%c0_4, %c0_5, %c0_6, %c0_7], %1 {strides = array<i32>} : memref<1x18x18x64xbf16, #tpu.memory_space<vmem>>, vector<1x1x18x64xbf16>,
    %c0_8 = arith.constant 0 : index
    %c17 = arith.constant 17 : index
    %c0_9 = arith.constant 0 : index
    %c0_10 = arith.constant 0 : index
    %4 = vector.load %arg5[%c0_8, %c17, %c0_9, %c0_10] : memref<1x18x18x64xbf16, #tpu.memory_space<vmem>>, vector<1x1x18x64xbf16>
    tpu.vector_store %arg5[%c0_8, %c17, %c0_9, %c0_10], %1 {strides = array<i32>} : memref<1x18x18x64xbf16, #tpu.memory_space<vmem>>, vector<1x1x18x64xbf16>,
    %c0_11 = arith.constant 0 : index
    %c1 = arith.constant 1 : index
    %c0_12 = arith.constant 0 : index
    %c0_13 = arith.constant 0 : index
    %5 = vector.load %arg5[%c0_11, %c1, %c0_12, %c0_13] : memref<1x18x18x64xbf16, #tpu.memory_space<vmem>>, vector<1x16x1x64xbf16>
    tpu.vector_store %arg5[%c0_11, %c1, %c0_12, %c0_13], %2 {strides = array<i32>} : memref<1x18x18x64xbf16, #tpu.memory_space<vmem>>, vector<1x16x1x64xbf16>,
    %c0_14 = arith.constant 0 : index
    %c1_15 = arith.constant 1 : index
    %c17_16 = arith.constant 17 : index
    %c0_17 = arith.constant 0 : index
    %6 = vector.load %arg5[%c0_14, %c1_15, %c17_16, %c0_17] : memref<1x18x18x64xbf16, #tpu.memory_space<vmem>>, vector<1x16x1x64xbf16>
    tpu.vector_store %arg5[%c0_14, %c1_15, %c17_16, %c0_17], %2 {strides = array<i32>} : memref<1x18x18x64xbf16, #tpu.memory_space<vmem>>, vector<1x16x1x64xbf16>,
    %c0_18 = arith.constant 0 : index
    %c1_19 = arith.constant 1 : index
    %c1_20 = arith.constant 1 : index
    %c0_21 = arith.constant 0 : index
    %7 = vector.load %arg5[%c0_18, %c1_19, %c1_20, %c0_21] : memref<1x18x18x64xbf16, #tpu.memory_space<vmem>>, vector<1x16x16x64xbf16>
    tpu.vector_store %arg5[%c0_18, %c1_19, %c1_20, %c0_21], %0 {strides = array<i32>} : memref<1x18x18x64xbf16, #tpu.memory_space<vmem>>, vector<1x16x16x64xbf16>,
    %c0_22 = arith.constant 0 : index
    %c0_23 = arith.constant 0 : index
    %c0_24 = arith.constant 0 : index
    %c0_25 = arith.constant 0 : index
    %8 = vector.load %arg5[%c0_22, %c0_23, %c0_24, %c0_25] : memref<1x18x18x64xbf16, #tpu.memory_space<vmem>>, vector<1x16x16x64xbf16>
    %9 = vector.shape_cast %8 : vector<1x16x16x64xbf16> to vector<256x64xbf16>
    %c0_26 = arith.constant 0 : index
    %c0_27 = arith.constant 0 : index
    %10 = vector.load %arg6[%c0_26, %c0_27] : memref<256x576xbf16, #tpu.memory_space<vmem>>, vector<256x64xbf16>
    tpu.vector_store %arg6[%c0_26, %c0_27], %9 {strides = array<i32>} : memref<256x576xbf16, #tpu.memory_space<vmem>>, vector<256x64xbf16>,
    %c0_28 = arith.constant 0 : index
    %c0_29 = arith.constant 0 : index
    %c1_30 = arith.constant 1 : index
    %c0_31 = arith.constant 0 : index
    %11 = vector.load %arg5[%c0_28, %c0_29, %c1_30, %c0_31] : memref<1x18x18x64xbf16, #tpu.memory_space<vmem>>, vector<1x16x16x64xbf16>
    %12 = vector.shape_cast %11 : vector<1x16x16x64xbf16> to vector<256x64xbf16>
    %c0_32 = arith.constant 0 : index
    %c64 = arith.constant 64 : index
    %13 = vector.load %arg6[%c0_32, %c64] : memref<256x576xbf16, #tpu.memory_space<vmem>>, vector<256x64xbf16>
    tpu.vector_store %arg6[%c0_32, %c64], %12 {strides = array<i32>} : memref<256x576xbf16, #tpu.memory_space<vmem>>, vector<256x64xbf16>,
    %c0_33 = arith.constant 0 : index
    %c0_34 = arith.constant 0 : index
    %c2 = arith.constant 2 : index
    %c0_35 = arith.constant 0 : index
    %14 = vector.load %arg5[%c0_33, %c0_34, %c2, %c0_35] : memref<1x18x18x64xbf16, #tpu.memory_space<vmem>>, vector<1x16x16x64xbf16>
    %15 = vector.shape_cast %14 : vector<1x16x16x64xbf16> to vector<256x64xbf16>
    %c0_36 = arith.constant 0 : index
    %c128 = arith.constant 128 : index
    %16 = vector.load %arg6[%c0_36, %c128] : memref<256x576xbf16, #tpu.memory_space<vmem>>, vector<256x64xbf16>
    tpu.vector_store %arg6[%c0_36, %c128], %15 {strides = array<i32>} : memref<256x576xbf16, #tpu.memory_space<vmem>>, vector<256x64xbf16>,
    %c0_37 = arith.constant 0 : index
    %c1_38 = arith.constant 1 : index
    %c0_39 = arith.constant 0 : index
    %c0_40 = arith.constant 0 : index
    %17 = vector.load %arg5[%c0_37, %c1_38, %c0_39, %c0_40] : memref<1x18x18x64xbf16, #tpu.memory_space<vmem>>, vector<1x16x16x64xbf16>
    %18 = vector.shape_cast %17 : vector<1x16x16x64xbf16> to vector<256x64xbf16>
    %c0_41 = arith.constant 0 : index
    %c192 = arith.constant 192 : index
    %19 = vector.load %arg6[%c0_41, %c192] : memref<256x576xbf16, #tpu.memory_space<vmem>>, vector<256x64xbf16>
    tpu.vector_store %arg6[%c0_41, %c192], %18 {strides = array<i32>} : memref<256x576xbf16, #tpu.memory_space<vmem>>, vector<256x64xbf16>,
    %c0_42 = arith.constant 0 : index
    %c1_43 = arith.constant 1 : index
    %c1_44 = arith.constant 1 : index
    %c0_45 = arith.constant 0 : index
    %20 = vector.load %arg5[%c0_42, %c1_43, %c1_44, %c0_45] : memref<1x18x18x64xbf16, #tpu.memory_space<vmem>>, vector<1x16x16x64xbf16>
    %21 = vector.shape_cast %20 : vector<1x16x16x64xbf16> to vector<256x64xbf16>
    %c0_46 = arith.constant 0 : index
    %c256 = arith.constant 256 : index
    %22 = vector.load %arg6[%c0_46, %c256] : memref<256x576xbf16, #tpu.memory_space<vmem>>, vector<256x64xbf16>
    tpu.vector_store %arg6[%c0_46, %c256], %21 {strides = array<i32>} : memref<256x576xbf16, #tpu.memory_space<vmem>>, vector<256x64xbf16>,
    %c0_47 = arith.constant 0 : index
    %c1_48 = arith.constant 1 : index
    %c2_49 = arith.constant 2 : index
    %c0_50 = arith.constant 0 : index
    %23 = vector.load %arg5[%c0_47, %c1_48, %c2_49, %c0_50] : memref<1x18x18x64xbf16, #tpu.memory_space<vmem>>, vector<1x16x16x64xbf16>
    %24 = vector.shape_cast %23 : vector<1x16x16x64xbf16> to vector<256x64xbf16>
    %c0_51 = arith.constant 0 : index
    %c320 = arith.constant 320 : index
    %25 = vector.load %arg6[%c0_51, %c320] : memref<256x576xbf16, #tpu.memory_space<vmem>>, vector<256x64xbf16>
    tpu.vector_store %arg6[%c0_51, %c320], %24 {strides = array<i32>} : memref<256x576xbf16, #tpu.memory_space<vmem>>, vector<256x64xbf16>,
    %c0_52 = arith.constant 0 : index
    %c2_53 = arith.constant 2 : index
    %c0_54 = arith.constant 0 : index
    %c0_55 = arith.constant 0 : index
    %26 = vector.load %arg5[%c0_52, %c2_53, %c0_54, %c0_55] : memref<1x18x18x64xbf16, #tpu.memory_space<vmem>>, vector<1x16x16x64xbf16>
    %27 = vector.shape_cast %26 : vector<1x16x16x64xbf16> to vector<256x64xbf16>
    %c0_56 = arith.constant 0 : index
    %c384 = arith.constant 384 : index
    %28 = vector.load %arg6[%c0_56, %c384] : memref<256x576xbf16, #tpu.memory_space<vmem>>, vector<256x64xbf16>
    tpu.vector_store %arg6[%c0_56, %c384], %27 {strides = array<i32>} : memref<256x576xbf16, #tpu.memory_space<vmem>>, vector<256x64xbf16>,
    %c0_57 = arith.constant 0 : index
    %c2_58 = arith.constant 2 : index
    %c1_59 = arith.constant 1 : index
    %c0_60 = arith.constant 0 : index
    %29 = vector.load %arg5[%c0_57, %c2_58, %c1_59, %c0_60] : memref<1x18x18x64xbf16, #tpu.memory_space<vmem>>, vector<1x16x16x64xbf16>
    %30 = vector.shape_cast %29 : vector<1x16x16x64xbf16> to vector<256x64xbf16>
    %c0_61 = arith.constant 0 : index
    %c448 = arith.constant 448 : index
    %31 = vector.load %arg6[%c0_61, %c448] : memref<256x576xbf16, #tpu.memory_space<vmem>>, vector<256x64xbf16>
    tpu.vector_store %arg6[%c0_61, %c448], %30 {strides = array<i32>} : memref<256x576xbf16, #tpu.memory_space<vmem>>, vector<256x64xbf16>,
    %c0_62 = arith.constant 0 : index
    %c2_63 = arith.constant 2 : index
    %c2_64 = arith.constant 2 : index
    %c0_65 = arith.constant 0 : index
    %32 = vector.load %arg5[%c0_62, %c2_63, %c2_64, %c0_65] : memref<1x18x18x64xbf16, #tpu.memory_space<vmem>>, vector<1x16x16x64xbf16>
    %33 = vector.shape_cast %32 : vector<1x16x16x64xbf16> to vector<256x64xbf16>
    %c0_66 = arith.constant 0 : index
    %c512 = arith.constant 512 : index
    %34 = vector.load %arg6[%c0_66, %c512] : memref<256x576xbf16, #tpu.memory_space<vmem>>, vector<256x64xbf16>
    tpu.vector_store %arg6[%c0_66, %c512], %33 {strides = array<i32>} : memref<256x576xbf16, #tpu.memory_space<vmem>>, vector<256x64xbf16>,
    %c0_67 = arith.constant 0 : index
    %c0_68 = arith.constant 0 : index
    %35 = vector.load %arg6[%c0_67, %c0_68] : memref<256x576xbf16, #tpu.memory_space<vmem>>, vector<256x576xbf16>
    %c0_69 = arith.constant 0 : index
    %c0_70 = arith.constant 0 : index
    %36 = vector.load %arg2[%c0_69, %c0_70] : memref<576x64xbf16, #tpu.memory_space<vmem>>, vector<576x64xbf16>
    %cst_71 = arith.constant dense<0.000000e+00> : vector<256x64xf32>
    %37 = tpu.matmul %35, %36, %cst_71 {dimension_numbers = #tpu.dot_dimension_numbers<[1], [0], [0], [1], [0, 0, 1, 1], [], []>} : vector<256x576xbf16>, vector<576x64xbf16>, vector<256x64xf32> -> vector<256x64xf32>
    %38 = arith.truncf %37 : vector<256x64xf32> to vector<256x64xbf16>
    %c0_72 = arith.constant 0 : index
    %c0_73 = arith.constant 0 : index
    %c0_74 = arith.constant 0 : index
    %39 = vector.load %arg3[%c0_72, %c0_73, %c0_74] : memref<1x256x64xbf16, #tpu.memory_space<vmem>>, vector<1x256x64xbf16>
    %40 = vector.shape_cast %39 : vector<1x256x64xbf16> to vector<256x64xbf16>
    %41 = vector.shape_cast %38 : vector<256x64xbf16> to vector<1x256x64xbf16>
    tpu.vector_store %arg3[%c0_72, %c0_73, %c0_74], %41 {strides = array<i32>} : memref<1x256x64xbf16, #tpu.memory_space<vmem>>, vector<1x256x64xbf16>,
    %cst_75 = arith.constant dense<0.000000e+00> : vector<64xf32>
    %42 = vector.multi_reduction <add>, %37, %cst_75 [0] : vector<256x64xf32> to vector<64xf32>
    %43 = vector.shape_cast %42 : vector<64xf32> to vector<1x64xf32>
    %44 = arith.mulf %37, %37 : vector<256x64xf32>
    %cst_76 = arith.constant dense<0.000000e+00> : vector<64xf32>
    %45 = vector.multi_reduction <add>, %44, %cst_76 [0] : vector<256x64xf32> to vector<64xf32>
    %46 = vector.shape_cast %45 : vector<64xf32> to vector<1x64xf32>
    %47 = tpu.concatenate %43, %46 in 0 : vector<1x64xf32>, vector<1x64xf32> -> vector<2x64xf32>
    %c0_77 = arith.constant 0 : index
    %c0_78 = arith.constant 0 : index
    %c0_79 = arith.constant 0 : index
    %48 = vector.load %arg4[%c0_77, %c0_78, %c0_79] : memref<1x2x64xf32, #tpu.memory_space<vmem>>, vector<1x2x64xf32>
    %49 = vector.shape_cast %48 : vector<1x2x64xf32> to vector<2x64xf32>
    %50 = vector.shape_cast %47 : vector<2x64xf32> to vector<1x2x64xf32>
    tpu.vector_store %arg4[%c0_77, %c0_78, %c0_79], %50 {strides = array<i32>} : memref<1x2x64xf32, #tpu.memory_space<vmem>>, vector<1x2x64xf32>,
    return
  }
  func.func @transform_0(%arg0: i32) -> (i32, i32, i32, i32) {
    %c0_i32 = arith.constant 0 : i32
    %c0_i32_0 = arith.constant 0 : i32
    %c0_i32_1 = arith.constant 0 : i32
    %c0_i32_2 = arith.constant 0 : i32
    return %arg0, %c0_i32, %c0_i32_0, %c0_i32_1 : i32, i32, i32, i32
  }
  func.func @transform_1(%arg0: i32) -> (i32, i32) {
    %c0_i32 = arith.constant 0 : i32
    %c0_i32_0 = arith.constant 0 : i32
    %c0_i32_1 = arith.constant 0 : i32
    return %c0_i32, %c0_i32_0 : i32, i32
  }
  func.func @transform_2(%arg0: i32) -> (i32, i32, i32) {
    %c0_i32 = arith.constant 0 : i32
    %c0_i32_0 = arith.constant 0 : i32
    %c0_i32_1 = arith.constant 0 : i32
    return %arg0, %c0_i32, %c0_i32_0 : i32, i32, i32
  }
  func.func @transform_3(%arg0: i32) -> (i32, i32, i32) {
    %c0_i32 = arith.constant 0 : i32
    %c0_i32_0 = arith.constant 0 : i32
    %c0_i32_1 = arith.constant 0 : i32
    return %arg0, %c0_i32, %c0_i32_0 : i32, i32, i32
  }
}

module attributes {stable_mosaic.version = 11 : i64} {
  func.func @kernel(%arg0: i32, %arg1: memref<1x16x16x64xbf16, #tpu.memory_space<vmem>>, %arg2: memref<576x64xbf16, #tpu.memory_space<vmem>>, %arg3: memref<1x64xf32, #tpu.memory_space<vmem>>, %arg4: memref<1x64xf32, #tpu.memory_space<vmem>>, %arg5: memref<1x256x64xbf16, #tpu.memory_space<vmem>>, %arg6: memref<1x2x64xf32, #tpu.memory_space<vmem>>, %arg7: memref<1x18x18x64xbf16, #tpu.memory_space<vmem>>, %arg8: memref<256x576xbf16, #tpu.memory_space<vmem>>) attributes {dimension_semantics = [#tpu.dimension_semantics<parallel>], iteration_bounds = array<i64: 2>, scalar_prefetch = 0 : i64, scratch_operands = 2 : i64, tpu.core_type = #tpu.core_type<tc>, window_params = [{transform_indices = @transform_0, window_bounds = array<i64: 1, 16, 16, 64>}, {pipeline_mode = #tpu.pipeline_mode<synchronous>, transform_indices = @transform_1, window_bounds = array<i64: 576, 64>}, {pipeline_mode = #tpu.pipeline_mode<synchronous>, transform_indices = @transform_2, window_bounds = array<i64: 1, 64>}, {pipeline_mode = #tpu.pipeline_mode<synchronous>, transform_indices = @transform_3, window_bounds = array<i64: 1, 64>}, {transform_indices = @transform_4, window_bounds = array<i64: 1, 256, 64>}, {transform_indices = @transform_5, window_bounds = array<i64: 1, 2, 64>}]} {
    %c0 = arith.constant 0 : index
    %c0_0 = arith.constant 0 : index
    %c0_1 = arith.constant 0 : index
    %c0_2 = arith.constant 0 : index
    %0 = vector.load %arg1[%c0, %c0_0, %c0_1, %c0_2] : memref<1x16x16x64xbf16, #tpu.memory_space<vmem>>, vector<1x16x16x64xbf16>
    %1 = arith.extf %0 : vector<1x16x16x64xbf16> to vector<1x16x16x64xf32>
    %c0_3 = arith.constant 0 : index
    %c0_4 = arith.constant 0 : index
    %2 = vector.load %arg3[%c0_3, %c0_4] : memref<1x64xf32, #tpu.memory_space<vmem>>, vector<1x64xf32>
    %3 = vector.shape_cast %2 : vector<1x64xf32> to vector<1x1x1x64xf32>
    %c0_5 = arith.constant 0 : index
    %c0_6 = arith.constant 0 : index
    %4 = vector.load %arg4[%c0_5, %c0_6] : memref<1x64xf32, #tpu.memory_space<vmem>>, vector<1x64xf32>
    %5 = vector.shape_cast %4 : vector<1x64xf32> to vector<1x1x1x64xf32>
    %6 = vector.broadcast %3 : vector<1x1x1x64xf32> to vector<1x16x16x64xf32>
    %7 = arith.mulf %1, %6 : vector<1x16x16x64xf32>
    %8 = vector.broadcast %5 : vector<1x1x1x64xf32> to vector<1x16x16x64xf32>
    %9 = arith.addf %7, %8 : vector<1x16x16x64xf32>
    %cst = arith.constant 0.000000e+00 : f32
    %10 = vector.broadcast %cst : f32 to vector<1x16x16x64xf32>
    %11 = arith.maximumf %9, %10 : vector<1x16x16x64xf32>
    %12 = arith.truncf %11 : vector<1x16x16x64xf32> to vector<1x16x16x64xbf16>
    %cst_7 = arith.constant 0.000000e+00 : bf16
    %13 = vector.broadcast %cst_7 : bf16 to vector<1x1x18x64xbf16>
    %cst_8 = arith.constant 0.000000e+00 : bf16
    %14 = vector.broadcast %cst_8 : bf16 to vector<1x16x1x64xbf16>
    %c0_9 = arith.constant 0 : index
    %c0_10 = arith.constant 0 : index
    %c0_11 = arith.constant 0 : index
    %c0_12 = arith.constant 0 : index
    %15 = vector.load %arg7[%c0_9, %c0_10, %c0_11, %c0_12] : memref<1x18x18x64xbf16, #tpu.memory_space<vmem>>, vector<1x1x18x64xbf16>
    tpu.vector_store %arg7[%c0_9, %c0_10, %c0_11, %c0_12], %13 {strides = array<i32>} : memref<1x18x18x64xbf16, #tpu.memory_space<vmem>>, vector<1x1x18x64xbf16>,
    %c0_13 = arith.constant 0 : index
    %c17 = arith.constant 17 : index
    %c0_14 = arith.constant 0 : index
    %c0_15 = arith.constant 0 : index
    %16 = vector.load %arg7[%c0_13, %c17, %c0_14, %c0_15] : memref<1x18x18x64xbf16, #tpu.memory_space<vmem>>, vector<1x1x18x64xbf16>
    tpu.vector_store %arg7[%c0_13, %c17, %c0_14, %c0_15], %13 {strides = array<i32>} : memref<1x18x18x64xbf16, #tpu.memory_space<vmem>>, vector<1x1x18x64xbf16>,
    %c0_16 = arith.constant 0 : index
    %c1 = arith.constant 1 : index
    %c0_17 = arith.constant 0 : index
    %c0_18 = arith.constant 0 : index
    %17 = vector.load %arg7[%c0_16, %c1, %c0_17, %c0_18] : memref<1x18x18x64xbf16, #tpu.memory_space<vmem>>, vector<1x16x1x64xbf16>
    tpu.vector_store %arg7[%c0_16, %c1, %c0_17, %c0_18], %14 {strides = array<i32>} : memref<1x18x18x64xbf16, #tpu.memory_space<vmem>>, vector<1x16x1x64xbf16>,
    %c0_19 = arith.constant 0 : index
    %c1_20 = arith.constant 1 : index
    %c17_21 = arith.constant 17 : index
    %c0_22 = arith.constant 0 : index
    %18 = vector.load %arg7[%c0_19, %c1_20, %c17_21, %c0_22] : memref<1x18x18x64xbf16, #tpu.memory_space<vmem>>, vector<1x16x1x64xbf16>
    tpu.vector_store %arg7[%c0_19, %c1_20, %c17_21, %c0_22], %14 {strides = array<i32>} : memref<1x18x18x64xbf16, #tpu.memory_space<vmem>>, vector<1x16x1x64xbf16>,
    %c0_23 = arith.constant 0 : index
    %c1_24 = arith.constant 1 : index
    %c1_25 = arith.constant 1 : index
    %c0_26 = arith.constant 0 : index
    %19 = vector.load %arg7[%c0_23, %c1_24, %c1_25, %c0_26] : memref<1x18x18x64xbf16, #tpu.memory_space<vmem>>, vector<1x16x16x64xbf16>
    tpu.vector_store %arg7[%c0_23, %c1_24, %c1_25, %c0_26], %12 {strides = array<i32>} : memref<1x18x18x64xbf16, #tpu.memory_space<vmem>>, vector<1x16x16x64xbf16>,
    %c0_27 = arith.constant 0 : index
    %c0_28 = arith.constant 0 : index
    %c0_29 = arith.constant 0 : index
    %c0_30 = arith.constant 0 : index
    %20 = vector.load %arg7[%c0_27, %c0_28, %c0_29, %c0_30] : memref<1x18x18x64xbf16, #tpu.memory_space<vmem>>, vector<1x16x16x64xbf16>
    %21 = vector.shape_cast %20 : vector<1x16x16x64xbf16> to vector<256x64xbf16>
    %c0_31 = arith.constant 0 : index
    %c0_32 = arith.constant 0 : index
    %22 = vector.load %arg8[%c0_31, %c0_32] : memref<256x576xbf16, #tpu.memory_space<vmem>>, vector<256x64xbf16>
    tpu.vector_store %arg8[%c0_31, %c0_32], %21 {strides = array<i32>} : memref<256x576xbf16, #tpu.memory_space<vmem>>, vector<256x64xbf16>,
    %c0_33 = arith.constant 0 : index
    %c0_34 = arith.constant 0 : index
    %c1_35 = arith.constant 1 : index
    %c0_36 = arith.constant 0 : index
    %23 = vector.load %arg7[%c0_33, %c0_34, %c1_35, %c0_36] : memref<1x18x18x64xbf16, #tpu.memory_space<vmem>>, vector<1x16x16x64xbf16>
    %24 = vector.shape_cast %23 : vector<1x16x16x64xbf16> to vector<256x64xbf16>
    %c0_37 = arith.constant 0 : index
    %c64 = arith.constant 64 : index
    %25 = vector.load %arg8[%c0_37, %c64] : memref<256x576xbf16, #tpu.memory_space<vmem>>, vector<256x64xbf16>
    tpu.vector_store %arg8[%c0_37, %c64], %24 {strides = array<i32>} : memref<256x576xbf16, #tpu.memory_space<vmem>>, vector<256x64xbf16>,
    %c0_38 = arith.constant 0 : index
    %c0_39 = arith.constant 0 : index
    %c2 = arith.constant 2 : index
    %c0_40 = arith.constant 0 : index
    %26 = vector.load %arg7[%c0_38, %c0_39, %c2, %c0_40] : memref<1x18x18x64xbf16, #tpu.memory_space<vmem>>, vector<1x16x16x64xbf16>
    %27 = vector.shape_cast %26 : vector<1x16x16x64xbf16> to vector<256x64xbf16>
    %c0_41 = arith.constant 0 : index
    %c128 = arith.constant 128 : index
    %28 = vector.load %arg8[%c0_41, %c128] : memref<256x576xbf16, #tpu.memory_space<vmem>>, vector<256x64xbf16>
    tpu.vector_store %arg8[%c0_41, %c128], %27 {strides = array<i32>} : memref<256x576xbf16, #tpu.memory_space<vmem>>, vector<256x64xbf16>,
    %c0_42 = arith.constant 0 : index
    %c1_43 = arith.constant 1 : index
    %c0_44 = arith.constant 0 : index
    %c0_45 = arith.constant 0 : index
    %29 = vector.load %arg7[%c0_42, %c1_43, %c0_44, %c0_45] : memref<1x18x18x64xbf16, #tpu.memory_space<vmem>>, vector<1x16x16x64xbf16>
    %30 = vector.shape_cast %29 : vector<1x16x16x64xbf16> to vector<256x64xbf16>
    %c0_46 = arith.constant 0 : index
    %c192 = arith.constant 192 : index
    %31 = vector.load %arg8[%c0_46, %c192] : memref<256x576xbf16, #tpu.memory_space<vmem>>, vector<256x64xbf16>
    tpu.vector_store %arg8[%c0_46, %c192], %30 {strides = array<i32>} : memref<256x576xbf16, #tpu.memory_space<vmem>>, vector<256x64xbf16>,
    %c0_47 = arith.constant 0 : index
    %c1_48 = arith.constant 1 : index
    %c1_49 = arith.constant 1 : index
    %c0_50 = arith.constant 0 : index
    %32 = vector.load %arg7[%c0_47, %c1_48, %c1_49, %c0_50] : memref<1x18x18x64xbf16, #tpu.memory_space<vmem>>, vector<1x16x16x64xbf16>
    %33 = vector.shape_cast %32 : vector<1x16x16x64xbf16> to vector<256x64xbf16>
    %c0_51 = arith.constant 0 : index
    %c256 = arith.constant 256 : index
    %34 = vector.load %arg8[%c0_51, %c256] : memref<256x576xbf16, #tpu.memory_space<vmem>>, vector<256x64xbf16>
    tpu.vector_store %arg8[%c0_51, %c256], %33 {strides = array<i32>} : memref<256x576xbf16, #tpu.memory_space<vmem>>, vector<256x64xbf16>,
    %c0_52 = arith.constant 0 : index
    %c1_53 = arith.constant 1 : index
    %c2_54 = arith.constant 2 : index
    %c0_55 = arith.constant 0 : index
    %35 = vector.load %arg7[%c0_52, %c1_53, %c2_54, %c0_55] : memref<1x18x18x64xbf16, #tpu.memory_space<vmem>>, vector<1x16x16x64xbf16>
    %36 = vector.shape_cast %35 : vector<1x16x16x64xbf16> to vector<256x64xbf16>
    %c0_56 = arith.constant 0 : index
    %c320 = arith.constant 320 : index
    %37 = vector.load %arg8[%c0_56, %c320] : memref<256x576xbf16, #tpu.memory_space<vmem>>, vector<256x64xbf16>
    tpu.vector_store %arg8[%c0_56, %c320], %36 {strides = array<i32>} : memref<256x576xbf16, #tpu.memory_space<vmem>>, vector<256x64xbf16>,
    %c0_57 = arith.constant 0 : index
    %c2_58 = arith.constant 2 : index
    %c0_59 = arith.constant 0 : index
    %c0_60 = arith.constant 0 : index
    %38 = vector.load %arg7[%c0_57, %c2_58, %c0_59, %c0_60] : memref<1x18x18x64xbf16, #tpu.memory_space<vmem>>, vector<1x16x16x64xbf16>
    %39 = vector.shape_cast %38 : vector<1x16x16x64xbf16> to vector<256x64xbf16>
    %c0_61 = arith.constant 0 : index
    %c384 = arith.constant 384 : index
    %40 = vector.load %arg8[%c0_61, %c384] : memref<256x576xbf16, #tpu.memory_space<vmem>>, vector<256x64xbf16>
    tpu.vector_store %arg8[%c0_61, %c384], %39 {strides = array<i32>} : memref<256x576xbf16, #tpu.memory_space<vmem>>, vector<256x64xbf16>,
    %c0_62 = arith.constant 0 : index
    %c2_63 = arith.constant 2 : index
    %c1_64 = arith.constant 1 : index
    %c0_65 = arith.constant 0 : index
    %41 = vector.load %arg7[%c0_62, %c2_63, %c1_64, %c0_65] : memref<1x18x18x64xbf16, #tpu.memory_space<vmem>>, vector<1x16x16x64xbf16>
    %42 = vector.shape_cast %41 : vector<1x16x16x64xbf16> to vector<256x64xbf16>
    %c0_66 = arith.constant 0 : index
    %c448 = arith.constant 448 : index
    %43 = vector.load %arg8[%c0_66, %c448] : memref<256x576xbf16, #tpu.memory_space<vmem>>, vector<256x64xbf16>
    tpu.vector_store %arg8[%c0_66, %c448], %42 {strides = array<i32>} : memref<256x576xbf16, #tpu.memory_space<vmem>>, vector<256x64xbf16>,
    %c0_67 = arith.constant 0 : index
    %c2_68 = arith.constant 2 : index
    %c2_69 = arith.constant 2 : index
    %c0_70 = arith.constant 0 : index
    %44 = vector.load %arg7[%c0_67, %c2_68, %c2_69, %c0_70] : memref<1x18x18x64xbf16, #tpu.memory_space<vmem>>, vector<1x16x16x64xbf16>
    %45 = vector.shape_cast %44 : vector<1x16x16x64xbf16> to vector<256x64xbf16>
    %c0_71 = arith.constant 0 : index
    %c512 = arith.constant 512 : index
    %46 = vector.load %arg8[%c0_71, %c512] : memref<256x576xbf16, #tpu.memory_space<vmem>>, vector<256x64xbf16>
    tpu.vector_store %arg8[%c0_71, %c512], %45 {strides = array<i32>} : memref<256x576xbf16, #tpu.memory_space<vmem>>, vector<256x64xbf16>,
    %c0_72 = arith.constant 0 : index
    %c0_73 = arith.constant 0 : index
    %47 = vector.load %arg8[%c0_72, %c0_73] : memref<256x576xbf16, #tpu.memory_space<vmem>>, vector<256x576xbf16>
    %c0_74 = arith.constant 0 : index
    %c0_75 = arith.constant 0 : index
    %48 = vector.load %arg2[%c0_74, %c0_75] : memref<576x64xbf16, #tpu.memory_space<vmem>>, vector<576x64xbf16>
    %cst_76 = arith.constant dense<0.000000e+00> : vector<256x64xf32>
    %49 = tpu.matmul %47, %48, %cst_76 {dimension_numbers = #tpu.dot_dimension_numbers<[1], [0], [0], [1], [0, 0, 1, 1], [], []>} : vector<256x576xbf16>, vector<576x64xbf16>, vector<256x64xf32> -> vector<256x64xf32>
    %50 = arith.truncf %49 : vector<256x64xf32> to vector<256x64xbf16>
    %c0_77 = arith.constant 0 : index
    %c0_78 = arith.constant 0 : index
    %c0_79 = arith.constant 0 : index
    %51 = vector.load %arg5[%c0_77, %c0_78, %c0_79] : memref<1x256x64xbf16, #tpu.memory_space<vmem>>, vector<1x256x64xbf16>
    %52 = vector.shape_cast %51 : vector<1x256x64xbf16> to vector<256x64xbf16>
    %53 = vector.shape_cast %50 : vector<256x64xbf16> to vector<1x256x64xbf16>
    tpu.vector_store %arg5[%c0_77, %c0_78, %c0_79], %53 {strides = array<i32>} : memref<1x256x64xbf16, #tpu.memory_space<vmem>>, vector<1x256x64xbf16>,
    %cst_80 = arith.constant dense<0.000000e+00> : vector<64xf32>
    %54 = vector.multi_reduction <add>, %49, %cst_80 [0] : vector<256x64xf32> to vector<64xf32>
    %55 = vector.shape_cast %54 : vector<64xf32> to vector<1x64xf32>
    %56 = arith.mulf %49, %49 : vector<256x64xf32>
    %cst_81 = arith.constant dense<0.000000e+00> : vector<64xf32>
    %57 = vector.multi_reduction <add>, %56, %cst_81 [0] : vector<256x64xf32> to vector<64xf32>
    %58 = vector.shape_cast %57 : vector<64xf32> to vector<1x64xf32>
    %59 = tpu.concatenate %55, %58 in 0 : vector<1x64xf32>, vector<1x64xf32> -> vector<2x64xf32>
    %c0_82 = arith.constant 0 : index
    %c0_83 = arith.constant 0 : index
    %c0_84 = arith.constant 0 : index
    %60 = vector.load %arg6[%c0_82, %c0_83, %c0_84] : memref<1x2x64xf32, #tpu.memory_space<vmem>>, vector<1x2x64xf32>
    %61 = vector.shape_cast %60 : vector<1x2x64xf32> to vector<2x64xf32>
    %62 = vector.shape_cast %59 : vector<2x64xf32> to vector<1x2x64xf32>
    tpu.vector_store %arg6[%c0_82, %c0_83, %c0_84], %62 {strides = array<i32>} : memref<1x2x64xf32, #tpu.memory_space<vmem>>, vector<1x2x64xf32>,
    return
  }
  func.func @transform_0(%arg0: i32) -> (i32, i32, i32, i32) {
    %c0_i32 = arith.constant 0 : i32
    %c0_i32_0 = arith.constant 0 : i32
    %c0_i32_1 = arith.constant 0 : i32
    %c0_i32_2 = arith.constant 0 : i32
    return %arg0, %c0_i32, %c0_i32_0, %c0_i32_1 : i32, i32, i32, i32
  }
  func.func @transform_1(%arg0: i32) -> (i32, i32) {
    %c0_i32 = arith.constant 0 : i32
    %c0_i32_0 = arith.constant 0 : i32
    %c0_i32_1 = arith.constant 0 : i32
    return %c0_i32, %c0_i32_0 : i32, i32
  }
  func.func @transform_2(%arg0: i32) -> (i32, i32) {
    %c0_i32 = arith.constant 0 : i32
    %c0_i32_0 = arith.constant 0 : i32
    %c0_i32_1 = arith.constant 0 : i32
    return %c0_i32, %c0_i32_0 : i32, i32
  }
  func.func @transform_3(%arg0: i32) -> (i32, i32) {
    %c0_i32 = arith.constant 0 : i32
    %c0_i32_0 = arith.constant 0 : i32
    %c0_i32_1 = arith.constant 0 : i32
    return %c0_i32, %c0_i32_0 : i32, i32
  }
  func.func @transform_4(%arg0: i32) -> (i32, i32, i32) {
    %c0_i32 = arith.constant 0 : i32
    %c0_i32_0 = arith.constant 0 : i32
    %c0_i32_1 = arith.constant 0 : i32
    return %arg0, %c0_i32, %c0_i32_0 : i32, i32, i32
  }
  func.func @transform_5(%arg0: i32) -> (i32, i32, i32) {
    %c0_i32 = arith.constant 0 : i32
    %c0_i32_0 = arith.constant 0 : i32
    %c0_i32_1 = arith.constant 0 : i32
    return %arg0, %c0_i32, %c0_i32_0 : i32, i32, i32
  }
}

module attributes {stable_mosaic.version = 11 : i64} {
  func.func @_final_kernel(%arg0: i32, %arg1: memref<16x2048xbf16, #tpu.memory_space<vmem>>, %arg2: memref<16x2048xbf16, #tpu.memory_space<vmem>>, %arg3: memref<1x2048xf32, #tpu.memory_space<vmem>>, %arg4: memref<1x2048xf32, #tpu.memory_space<vmem>>, %arg5: memref<16x2048xf32, #tpu.memory_space<vmem>>) attributes {dimension_semantics = [#tpu.dimension_semantics<parallel>], iteration_bounds = array<i64: 1>, scalar_prefetch = 0 : i64, scratch_operands = 0 : i64, tpu.core_type = #tpu.core_type<tc>, window_params = [{transform_indices = @transform_0, window_bounds = array<i64: 16, 2048>}, {transform_indices = @transform_1, window_bounds = array<i64: 16, 2048>}, {pipeline_mode = #tpu.pipeline_mode<synchronous>, transform_indices = @transform_2, window_bounds = array<i64: 1, 2048>}, {pipeline_mode = #tpu.pipeline_mode<synchronous>, transform_indices = @transform_3, window_bounds = array<i64: 1, 2048>}, {transform_indices = @transform_4, window_bounds = array<i64: 16, 2048>}]} {
    %c0 = arith.constant 0 : index
    %c0_0 = arith.constant 0 : index
    %0 = vector.load %arg1[%c0, %c0_0] : memref<16x2048xbf16, #tpu.memory_space<vmem>>, vector<16x2048xbf16>
    %1 = arith.extf %0 : vector<16x2048xbf16> to vector<16x2048xf32>
    %c0_1 = arith.constant 0 : index
    %c0_2 = arith.constant 0 : index
    %2 = vector.load %arg2[%c0_1, %c0_2] : memref<16x2048xbf16, #tpu.memory_space<vmem>>, vector<16x2048xbf16>
    %3 = arith.extf %2 : vector<16x2048xbf16> to vector<16x2048xf32>
    %c0_3 = arith.constant 0 : index
    %c0_4 = arith.constant 0 : index
    %4 = vector.load %arg3[%c0_3, %c0_4] : memref<1x2048xf32, #tpu.memory_space<vmem>>, vector<1x2048xf32>
    %5 = vector.broadcast %4 : vector<1x2048xf32> to vector<16x2048xf32>
    %6 = arith.mulf %1, %5 : vector<16x2048xf32>
    %c0_5 = arith.constant 0 : index
    %c0_6 = arith.constant 0 : index
    %7 = vector.load %arg4[%c0_5, %c0_6] : memref<1x2048xf32, #tpu.memory_space<vmem>>, vector<1x2048xf32>
    %8 = vector.broadcast %7 : vector<1x2048xf32> to vector<16x2048xf32>
    %9 = arith.addf %6, %8 : vector<16x2048xf32>
    %10 = arith.addf %9, %3 : vector<16x2048xf32>
    %cst = arith.constant 0.000000e+00 : f32
    %11 = vector.broadcast %cst : f32 to vector<16x2048xf32>
    %12 = arith.maximumf %10, %11 : vector<16x2048xf32>
    %c0_7 = arith.constant 0 : index
    %c0_8 = arith.constant 0 : index
    %13 = vector.load %arg5[%c0_7, %c0_8] : memref<16x2048xf32, #tpu.memory_space<vmem>>, vector<16x2048xf32>
    tpu.vector_store %arg5[%c0_7, %c0_8], %12 {strides = array<i32>} : memref<16x2048xf32, #tpu.memory_space<vmem>>, vector<16x2048xf32>,
    return
  }
  func.func @transform_0(%arg0: i32) -> (i32, i32) {
    %c0_i32 = arith.constant 0 : i32
    %c0_i32_0 = arith.constant 0 : i32
    return %arg0, %c0_i32 : i32, i32
  }
  func.func @transform_1(%arg0: i32) -> (i32, i32) {
    %c0_i32 = arith.constant 0 : i32
    %c0_i32_0 = arith.constant 0 : i32
    return %arg0, %c0_i32 : i32, i32
  }
  func.func @transform_2(%arg0: i32) -> (i32, i32) {
    %c0_i32 = arith.constant 0 : i32
    %c0_i32_0 = arith.constant 0 : i32
    %c0_i32_1 = arith.constant 0 : i32
    return %c0_i32, %c0_i32_0 : i32, i32
  }
  func.func @transform_3(%arg0: i32) -> (i32, i32) {
    %c0_i32 = arith.constant 0 : i32
    %c0_i32_0 = arith.constant 0 : i32
    %c0_i32_1 = arith.constant 0 : i32
    return %c0_i32, %c0_i32_0 : i32, i32
  }
  func.func @transform_4(%arg0: i32) -> (i32, i32) {
    %c0_i32 = arith.constant 0 : i32
    %c0_i32_0 = arith.constant 0 : i32
    return %arg0, %c0_i32 : i32, i32
  }
}

</mosaic_0001>

<bundles_post_ra>
// kernel: tile.18
= control target key start
LH: loop header
LB: loop body
LE: loop exit
PB: predicated region body
PF: predicated region fallthrough
CT: control target
= control target key end

     0   :  { %s40_s0 = inlined_call_operand.vmem [shape: f32[64], index: 0, kind: input, shape index: {}]   ;;  %s41_s1 = inlined_call_operand.vmem [shape: f32[32,64], index: 1, kind: output, shape index: {}]  }
   0x1   :  { %v4_v0 = vld [vmem:[%s40_s0] ss:$0 sm:$0xff] }
   0x2   :  { %5 = vst [vmem:[%s41_s1] sm:$0xff] %v4_v0 }
   0x3   :  { %12 = vst [vmem:[%s41_s1 + $0x8] sm:$0xff] %v4_v0 }
   0x4   :  { %13 = vst [vmem:[%s41_s1 + $0x10] sm:$0xff] %v4_v0 }
   0x5   :  { %14 = vst [vmem:[%s41_s1 + $0x18] sm:$0xff] %v4_v0 }

// kernel: tile.19
= control target key start
LH: loop header
LB: loop body
LE: loop exit
PB: predicated region body
PF: predicated region fallthrough
CT: control target
= control target key end

     0   :  { %s144_s8 = smov 64   ;;  %vm3_vm0 = vcmask 523264   ;;  %vm17_vm1 = vcmask 1048064   ;;  %s219_s0 = inlined_call_operand.vmem [shape: f32[32,64], index: 0, kind: input, shape index: {}]   ;;  %s220_s1 = inlined_call_operand.vmem [shape: f32[1,2048], index: 1, kind: output, shape index: {}]  }
   0x1   :  { %v126_v0 = vld [vmem:[%s219_s0 + $0x1] ss:$2 sm:$0xff]   ;;  %v127_v1 = vld [vmem:[%s219_s0 + $0x11] ss:$2 sm:$0xff]   ;;  %v2_v2 = vld [vmem:[%s219_s0] ss:$2 sm:$0xff]  }
   0x2   :  { %15 = vrot.lane.b32.xlu0 %v126_v0, %s144_s8  ;;  %4 = vst.msk [vmem:[#allocation0] ss:$8 sm:$0xf] %vm3_vm0, %v2_v2   ;;  %v125_v3 = vld [vmem:[%s219_s0 + $0x10] ss:$2 sm:$0xff]  }
   0x3   :  { %5 = vst.msk [vmem:[#allocation0] ss:$8 sm:$0xf0] %vm3_vm0, %v2_v2  }
   0x4   :  { %10 = vst.msk [vmem:[#allocation0 + $0x40] ss:$8 sm:$0xf] %vm3_vm0, %v125_v3  }
   0x5   :  { %12 = vst.msk [vmem:[#allocation0 + $0x40] ss:$8 sm:$0xf0] %vm3_vm0, %v125_v3  }
   0xa   :  { %22 = vrot.lane.b32.xlu0 %v127_v1, %s144_s8 }
  0x74   :  { %v16_v4 = vpop.permute.xlu0 %15  }
  0x75   :  { %18 = vst.msk [vmem:[#allocation0] ss:$8 sm:$0xf] %vm17_vm1, %v16_v4  }
  0x76   :  { %19 = vst.msk [vmem:[#allocation0] ss:$8 sm:$0xf0] %vm17_vm1, %v16_v4  }
  0x7c   :  { %v31_v5 = vld [vmem:[#allocation0] sm:$0x1]  ;;  %v36_v6 = vld [vmem:[#allocation0 + $0x8] sm:$0x1]  ;;  %v42_v7 = vld [vmem:[#allocation0 + $0x10] sm:$0x1]  ;;  %v23_v8 = vpop.permute.xlu0 %22  }
  0x7d   :  { %34 = vst [vmem:[%s220_s1] sm:$0x1] %v31_v5  ;;  %v48_v9 = vld [vmem:[#allocation0 + $0x18] sm:$0x1]  ;;  %v54_v10 = vld [vmem:[#allocation0 + $0x20] sm:$0x1] }
  0x7e   :  { %128 = vst [vmem:[%s220_s1 + $0x1] sm:$0x1] %v36_v6  ;;  %v60_v11 = vld [vmem:[#allocation0 + $0x28] sm:$0x1]  ;;  %v66_v12 = vld [vmem:[#allocation0 + $0x30] sm:$0x1] }
  0x7f   :  { %129 = vst [vmem:[%s220_s1 + $0x2] sm:$0x1] %v42_v7  ;;  %v72_v13 = vld [vmem:[#allocation0 + $0x38] sm:$0x1] }
  0x80   :  { %130 = vst [vmem:[%s220_s1 + $0x3] sm:$0x1] %v48_v9 }
  0x81   :  { %131 = vst [vmem:[%s220_s1 + $0x4] sm:$0x1] %v54_v10 }
  0x82   :  { %132 = vst [vmem:[%s220_s1 + $0x5] sm:$0x1] %v60_v11 }
  0x83   :  { %133 = vst [vmem:[%s220_s1 + $0x6] sm:$0x1] %v66_v12 }
  0x84   :  { %134 = vst [vmem:[%s220_s1 + $0x7] sm:$0x1] %v72_v13 }
  0x85   :  { %26 = vst.msk [vmem:[#allocation0 + $0x40] ss:$8 sm:$0xf] %vm17_vm1, %v23_v8  }
  0x86   :  { %28 = vst.msk [vmem:[#allocation0 + $0x40] ss:$8 sm:$0xf0] %vm17_vm1, %v23_v8  }
  0x8c   :  { %v78_v14 = vld [vmem:[#allocation0 + $0x40] sm:$0x1]  ;;  %v84_v15 = vld [vmem:[#allocation0 + $0x48] sm:$0x1]  ;;  %v90_v16 = vld [vmem:[#allocation0 + $0x50] sm:$0x1] }
  0x8d   :  { %135 = vst [vmem:[%s220_s1 + $0x8] sm:$0x1] %v78_v14  ;;  %v96_v17 = vld [vmem:[#allocation0 + $0x58] sm:$0x1]  ;;  %v102_v18 = vld [vmem:[#allocation0 + $0x60] sm:$0x1] }
  0x8e   :  { %136 = vst [vmem:[%s220_s1 + $0x9] sm:$0x1] %v84_v15  ;;  %v108_v19 = vld [vmem:[#allocation0 + $0x68] sm:$0x1]  ;;  %v114_v20 = vld [vmem:[#allocation0 + $0x70] sm:$0x1] }
  0x8f   :  { %137 = vst [vmem:[%s220_s1 + $0xa] sm:$0x1] %v90_v16  ;;  %v120_v21 = vld [vmem:[#allocation0 + $0x78] sm:$0x1] }
  0x90   :  { %138 = vst [vmem:[%s220_s1 + $0xb] sm:$0x1] %v96_v17 }
  0x91   :  { %139 = vst [vmem:[%s220_s1 + $0xc] sm:$0x1] %v102_v18 }
  0x92   :  { %140 = vst [vmem:[%s220_s1 + $0xd] sm:$0x1] %v108_v19 }
  0x93   :  { %141 = vst [vmem:[%s220_s1 + $0xe] sm:$0x1] %v114_v20 }
  0x94   :  { %142 = vst [vmem:[%s220_s1 + $0xf] sm:$0x1] %v120_v21 }

// kernel: baseblock_forward.5
= control target key start
LH: loop header
LB: loop body
LE: loop exit
PB: predicated region body
PF: predicated region fallthrough
CT: control target
= control target key end

     0   :  { %s746_s0 = inlined_call_operand.vmem [shape: bf16[16,2048], index: 0, kind: input, shape index: {}]   ;;  %s747_s1 = inlined_call_operand.vmem [shape: bf16[16,2048], index: 1, kind: input, shape index: {}]   ;;  %s748_s2 = inlined_call_operand.vmem [shape: f32[1,2048], index: 2, kind: input, shape index: {}]   ;;  %s749_s3 = inlined_call_operand.vmem [shape: f32[1,2048], index: 3, kind: input, shape index: {}]   ;;  %s750_s4 = inlined_call_operand.vmem [shape: f32[16,2048], index: 4, kind: output, shape index: {}]  }
   0x1   :  { %v17_v0 = vld [vmem:[%s746_s0] sm:$0xff]  ;;  %v18_v8 = vld [vmem:[%s746_s0 + $0x8] sm:$0xff]  ;;  %v19_v18 = vld [vmem:[%s746_s0 + $0x10] sm:$0xff] }
   0x2   :  { %v65_v1 = vld [vmem:[%s747_s1] sm:$0xff]  ;;  %v33_v3 = vunpack.c.l.bf16 %v17_v0  ;;  %v34_v7 = vunpack.c.h.bf16 %v17_v0  ;;  %v66_v9 = vld [vmem:[%s747_s1 + $0x8] sm:$0xff]  ;;  %v35_v15 = vunpack.c.l.bf16 %v18_v8  ;;  %v67_v19 = vld [vmem:[%s747_s1 + $0x10] sm:$0xff]  ;;  %v36_v22 = vunpack.c.h.bf16 %v18_v8 }
   0x3   :  { %v383_v2 = vld [vmem:[%s748_s2] sm:$0xff]  ;;  %v81_v4 = vunpack.c.l.bf16 %v65_v1  ;;  %v82_v11 = vunpack.c.h.bf16 %v65_v1  ;;  %v83_v16 = vunpack.c.l.bf16 %v66_v9  ;;  %v84_v23 = vunpack.c.h.bf16 %v66_v9  ;;  %v20_v36 = vld [vmem:[%s746_s0 + $0x18] sm:$0xff]  ;;  %v459_v60 = vld [vmem:[%s748_s2 + $0x8] sm:$0xff] }
   0x4   :  { %v117_v5 = vperm.slane %v383_v2, 0  ;;  %v389_v6 = vld [vmem:[%s749_s3] sm:$0xff]  ;;  %v118_v12 = vperm.slane %v383_v2, 1  ;;  %v119_v17 = vperm.slane %v383_v2, 2  ;;  %v120_v26 = vperm.slane %v383_v2, 3  ;;  %v68_v41 = vld [vmem:[%s747_s1 + $0x18] sm:$0xff] }
   0x5   :  { %v185_v10 = vperm.slane %v389_v6, 0  ;;  %v186_v13 = vperm.slane %v389_v6, 1  ;;  %v187_v21 = vperm.slane %v389_v6, 2  ;;  %v188_v27 = vperm.slane %v389_v6, 3  ;;  %v21_v54 = vld [vmem:[%s746_s0 + $0x20] sm:$0xff]  ;;  %v470_v1 = vld [vmem:[%s749_s3 + $0x8] sm:$0xff] }
   0x6   :  { %v149_v14 = vmul.f32 %v117_v5, %v33_v3  ;;  %v150_v20 = vmul.f32 %v118_v12, %v34_v7  ;;  %v151_v25 = vmul.f32 %v119_v17, %v35_v15  ;;  %v37_v29 = vunpack.c.l.bf16 %v19_v18  ;;  %v69_v59 = vld [vmem:[%s747_s1 + $0x20] sm:$0xff] }
   0x7   :  { %v85_v30 = vunpack.c.l.bf16 %v67_v19  ;;  %v121_v31 = vperm.slane %v383_v2, 4  ;;  %v152_v34 = vmul.f32 %v120_v26, %v36_v22  ;;  %v189_v35 = vperm.slane %v389_v6, 4 }
   0x8   :  { %v217_v24 = vadd.f32 %v185_v10, %v149_v14  ;;  %v218_v28 = vadd.f32 %v186_v13, %v150_v20  ;;  %v219_v33 = vadd.f32 %v187_v21, %v151_v25  ;;  %v38_v39 = vunpack.c.h.bf16 %v19_v18  ;;  %v70_v18 = vld [vmem:[%s747_s1 + $0x28] sm:$0xff] }
   0x9   :  { %v153_v38 = vmul.f32 %v121_v31, %v37_v29  ;;  %v86_v40 = vunpack.c.h.bf16 %v67_v19  ;;  %v220_v44 = vadd.f32 %v188_v27, %v152_v34  ;;  %v122_v45 = vperm.slane %v383_v2, 5 }
   0xa   :  { %v249_v32 = vadd.f32 %v217_v24, %v81_v4  ;;  %v250_v37 = vadd.f32 %v218_v28, %v82_v11  ;;  %v251_v43 = vadd.f32 %v219_v33, %v83_v16  ;;  %v190_v48 = vperm.slane %v389_v6, 5  ;;  %v22_v16 = vld [vmem:[%s746_s0 + $0x28] sm:$0xff] }
   0xb   :  { %v221_v47 = vadd.f32 %v189_v35, %v153_v38  ;;  %v39_v49 = vunpack.c.l.bf16 %v20_v36  ;;  %v252_v51 = vadd.f32 %v220_v44, %v84_v23  ;;  %v154_v52 = vmul.f32 %v122_v45, %v38_v39 }
   0xc   :  { %v281_v42 = vmax.f32 %v249_v32, 0.0  ;;  %v282_v46 = vmax.f32 %v250_v37, 0.0  ;;  %v283_v50 = vmax.f32 %v251_v43, 0.0  ;;  %v87_v53 = vunpack.c.l.bf16 %v68_v41 }
   0xd   :  { %v253_v55 = vadd.f32 %v221_v47, %v85_v30  ;;  %v123_v56 = vperm.slane %v383_v2, 6  ;;  %v191_v57 = vperm.slane %v389_v6, 6  ;;  %v40_v58 = vunpack.c.h.bf16 %v20_v36 }
   0xe   :  { %313 = vst [vmem:[%s750_s4] sm:$0xff] %v281_v42  ;;  %v284_v61 = vmax.f32 %v252_v51, 0.0  ;;  %v222_v62 = vadd.f32 %v190_v48, %v154_v52  ;;  %v88_v63 = vunpack.c.h.bf16 %v68_v41  ;;  %v124_v0 = vperm.slane %v383_v2, 7  ;;  %v71_v41 = vld [vmem:[%s747_s1 + $0x30] sm:$0xff] }
   0xf   :  { %314 = vst [vmem:[%s750_s4 + $0x8] sm:$0xff] %v282_v46  ;;  %v285_v3 = vmax.f32 %v253_v55, 0.0  ;;  %v155_v4 = vmul.f32 %v123_v56, %v39_v49  ;;  %v192_v7 = vperm.slane %v389_v6, 7  ;;  %v41_v8 = vunpack.c.l.bf16 %v21_v54 }
  0x10   :  { %315 = vst [vmem:[%s750_s4 + $0x10] sm:$0xff] %v283_v50  ;;  %v254_v9 = vadd.f32 %v222_v62, %v86_v40  ;;  %v156_v11 = vmul.f32 %v124_v0, %v40_v58  ;;  %v89_v14 = vunpack.c.l.bf16 %v69_v59  ;;  %v125_v15 = vperm.slane %v459_v60, 0  ;;  %v23_v40 = vld [vmem:[%s746_s0 + $0x30] sm:$0xff] }
  0x11   :  { %316 = vst [vmem:[%s750_s4 + $0x18] sm:$0xff] %v284_v61  ;;  %v223_v19 = vadd.f32 %v191_v57, %v155_v4  ;;  %v193_v20 = vperm.slane %v470_v1, 0  ;;  %v42_v22 = vunpack.c.h.bf16 %v21_v54  ;;  %v90_v23 = vunpack.c.h.bf16 %v69_v59 }
  0x12   :  { %317 = vst [vmem:[%s750_s4 + $0x20] sm:$0xff] %v285_v3  ;;  %v286_v24 = vmax.f32 %v254_v9, 0.0  ;;  %v224_v25 = vadd.f32 %v192_v7, %v156_v11  ;;  %v157_v28 = vmul.f32 %v125_v15, %v41_v8  ;;  %v126_v29 = vperm.slane %v459_v60, 1  ;;  %v72_v3 = vld [vmem:[%s747_s1 + $0x38] sm:$0xff] }
  0x13   :  { %v255_v30 = vadd.f32 %v223_v19, %v87_v53  ;;  %v194_v32 = vperm.slane %v470_v1, 1  ;;  %v43_v33 = vunpack.c.l.bf16 %v22_v16  ;;  %v91_v34 = vunpack.c.l.bf16 %v70_v18 }
  0x14   :  { %318 = vst [vmem:[%s750_s4 + $0x28] sm:$0xff] %v286_v24  ;;  %v256_v36 = vadd.f32 %v224_v25, %v88_v63  ;;  %v225_v37 = vadd.f32 %v193_v20, %v157_v28  ;;  %v158_v38 = vmul.f32 %v126_v29, %v42_v22  ;;  %v127_v39 = vperm.slane %v459_v60, 2  ;;  %v24_v63 = vld [vmem:[%s746_s0 + $0x38] sm:$0xff] }
  0x15   :  { %v287_v42 = vmax.f32 %v255_v30, 0.0  ;;  %v195_v43 = vperm.slane %v470_v1, 2  ;;  %v44_v44 = vunpack.c.h.bf16 %v22_v16  ;;  %v92_v46 = vunpack.c.h.bf16 %v70_v18 }
  0x16   :  { %v288_v47 = vmax.f32 %v256_v36, 0.0  ;;  %v257_v49 = vadd.f32 %v225_v37, %v89_v14  ;;  %v226_v50 = vadd.f32 %v194_v32, %v158_v38  ;;  %v159_v51 = vmul.f32 %v127_v39, %v43_v33  ;;  %v25_v36 = vld [vmem:[%s746_s0 + $0x40] sm:$0xff] }
  0x17   :  { %319 = vst [vmem:[%s750_s4 + $0x30] sm:$0xff] %v287_v42  ;;  %v128_v52 = vperm.slane %v459_v60, 3  ;;  %v196_v53 = vperm.slane %v470_v1, 3  ;;  %v45_v54 = vunpack.c.l.bf16 %v23_v40  ;;  %v93_v55 = vunpack.c.l.bf16 %v71_v41  ;;  %v73_v37 = vld [vmem:[%s747_s1 + $0x40] sm:$0xff] }
  0x18   :  { %320 = vst [vmem:[%s750_s4 + $0x38] sm:$0xff] %v288_v47  ;;  %v289_v58 = vmax.f32 %v257_v49, 0.0  ;;  %v258_v59 = vadd.f32 %v226_v50, %v90_v23  ;;  %v227_v61 = vadd.f32 %v195_v43, %v159_v51  ;;  %v129_v62 = vperm.slane %v459_v60, 4 }
  0x19   :  { %v160_v4 = vmul.f32 %v128_v52, %v44_v44  ;;  %v197_v8 = vperm.slane %v470_v1, 4  ;;  %v46_v9 = vunpack.c.h.bf16 %v23_v40  ;;  %v94_v11 = vunpack.c.h.bf16 %v71_v41 }
  0x1a   :  { %321 = vst [vmem:[%s750_s4 + $0x40] sm:$0xff] %v289_v58  ;;  %v290_v14 = vmax.f32 %v258_v59, 0.0  ;;  %v259_v16 = vadd.f32 %v227_v61, %v91_v34  ;;  %v161_v18 = vmul.f32 %v129_v62, %v45_v54  ;;  %v130_v19 = vperm.slane %v459_v60, 5 }
  0x1b   :  { %v228_v22 = vadd.f32 %v196_v53, %v160_v4  ;;  %v198_v23 = vperm.slane %v470_v1, 5  ;;  %v47_v24 = vunpack.c.l.bf16 %v24_v63  ;;  %v95_v25 = vunpack.c.l.bf16 %v72_v3 }
  0x1c   :  { %322 = vst [vmem:[%s750_s4 + $0x48] sm:$0xff] %v290_v14  ;;  %v291_v28 = vmax.f32 %v259_v16, 0.0  ;;  %v229_v30 = vadd.f32 %v197_v8, %v161_v18  ;;  %v162_v33 = vmul.f32 %v130_v19, %v46_v9  ;;  %v131_v34 = vperm.slane %v459_v60, 6 }
  0x1d   :  { %v260_v38 = vadd.f32 %v228_v22, %v92_v46  ;;  %v199_v40 = vperm.slane %v470_v1, 6  ;;  %v48_v41 = vunpack.c.h.bf16 %v24_v63  ;;  %v96_v42 = vunpack.c.h.bf16 %v72_v3  ;;  %v26_v46 = vld [vmem:[%s746_s0 + $0x48] sm:$0xff] }
  0x1e   :  { %323 = vst [vmem:[%s750_s4 + $0x50] sm:$0xff] %v291_v28  ;;  %v261_v44 = vadd.f32 %v229_v30, %v93_v55  ;;  %v230_v47 = vadd.f32 %v198_v23, %v162_v33  ;;  %v163_v49 = vmul.f32 %v131_v34, %v47_v24  ;;  %v132_v50 = vperm.slane %v459_v60, 7  ;;  %v74_v55 = vld [vmem:[%s747_s1 + $0x48] sm:$0xff] }
  0x1f   :  { %v292_v51 = vmax.f32 %v260_v38, 0.0  ;;  %v200_v54 = vperm.slane %v470_v1, 7  ;;  %v49_v58 = vunpack.c.l.bf16 %v25_v36  ;;  %v97_v59 = vunpack.c.l.bf16 %v73_v37  ;;  %v75_v38 = vld [vmem:[%s747_s1 + $0x50] sm:$0xff] }
  0x20   :  { %v293_v61 = vmax.f32 %v261_v44, 0.0  ;;  %v262_v63 = vadd.f32 %v230_v47, %v94_v11  ;;  %v231_v3 = vadd.f32 %v199_v40, %v163_v49  ;;  %v164_v4 = vmul.f32 %v132_v50, %v48_v41  ;;  %v27_v11 = vld [vmem:[%s746_s0 + $0x50] sm:$0xff] }
  0x21   :  { %324 = vst [vmem:[%s750_s4 + $0x58] sm:$0xff] %v292_v51  ;;  %v165_v9 = vmul.f32 %v117_v5, %v49_v58  ;;  %v50_v14 = vunpack.c.h.bf16 %v25_v36  ;;  %v98_v16 = vunpack.c.h.bf16 %v73_v37  ;;  %v51_v18 = vunpack.c.l.bf16 %v26_v46 }
  0x22   :  { %325 = vst [vmem:[%s750_s4 + $0x60] sm:$0xff] %v293_v61  ;;  %v294_v22 = vmax.f32 %v262_v63, 0.0  ;;  %v263_v24 = vadd.f32 %v231_v3, %v95_v25  ;;  %v232_v28 = vadd.f32 %v200_v54, %v164_v4  ;;  %v99_v30 = vunpack.c.l.bf16 %v74_v55 }
  0x23   :  { %v233_v5 = vadd.f32 %v185_v10, %v165_v9  ;;  %v166_v33 = vmul.f32 %v118_v12, %v50_v14  ;;  %v167_v36 = vmul.f32 %v119_v17, %v51_v18  ;;  %v52_v37 = vunpack.c.h.bf16 %v26_v46  ;;  %v28_v46 = vld [vmem:[%s746_s0 + $0x58] sm:$0xff]  ;;  %v29_v9 = vld [vmem:[%s746_s0 + $0x60] sm:$0xff] }
  0x24   :  { %326 = vst [vmem:[%s750_s4 + $0x68] sm:$0xff] %v294_v22  ;;  %v295_v25 = vmax.f32 %v263_v24, 0.0  ;;  %v264_v41 = vadd.f32 %v232_v28, %v96_v42  ;;  %v100_v44 = vunpack.c.h.bf16 %v74_v55  ;;  %v53_v47 = vunpack.c.l.bf16 %v27_v11  ;;  %v30_v28 = vld [vmem:[%s746_s0 + $0x68] sm:$0xff] }
  0x25   :  { %v265_v10 = vadd.f32 %v233_v5, %v97_v59  ;;  %v234_v12 = vadd.f32 %v186_v13, %v166_v33  ;;  %v235_v17 = vadd.f32 %v187_v21, %v167_v36  ;;  %v168_v49 = vmul.f32 %v120_v26, %v52_v37  ;;  %v76_v21 = vld [vmem:[%s747_s1 + $0x58] sm:$0xff] }
  0x26   :  { %327 = vst [vmem:[%s750_s4 + $0x70] sm:$0xff] %v295_v25  ;;  %v296_v42 = vmax.f32 %v264_v41, 0.0  ;;  %v101_v51 = vunpack.c.l.bf16 %v75_v38  ;;  %v169_v58 = vmul.f32 %v121_v31, %v53_v47  ;;  %v54_v13 = vunpack.c.h.bf16 %v27_v11 }
  0x27   :  { %v297_v59 = vmax.f32 %v265_v10, 0.0  ;;  %v266_v26 = vadd.f32 %v234_v12, %v98_v16  ;;  %v267_v55 = vadd.f32 %v235_v17, %v99_v30  ;;  %v236_v61 = vadd.f32 %v188_v27, %v168_v49  ;;  %v77_v27 = vld [vmem:[%s747_s1 + $0x60] sm:$0xff]  ;;  %v31_v12 = vld [vmem:[%s746_s0 + $0x70] sm:$0xff] }
  0x28   :  { %328 = vst [vmem:[%s750_s4 + $0x78] sm:$0xff] %v296_v42  ;;  %v237_v63 = vadd.f32 %v189_v35, %v169_v58  ;;  %v102_v3 = vunpack.c.h.bf16 %v75_v38  ;;  %v170_v31 = vmul.f32 %v122_v45, %v54_v13  ;;  %v55_v4 = vunpack.c.l.bf16 %v28_v46 }
  0x29   :  { %329 = vst [vmem:[%s750_s4 + $0x80] sm:$0xff] %v297_v59  ;;  %v298_v14 = vmax.f32 %v266_v26, 0.0  ;;  %v299_v16 = vmax.f32 %v267_v55, 0.0  ;;  %v268_v35 = vadd.f32 %v236_v61, %v100_v44  ;;  %v103_v18 = vunpack.c.l.bf16 %v76_v21  ;;  %v32_v59 = vld [vmem:[%s746_s0 + $0x78] sm:$0xff] }
  0x2a   :  { %v269_v11 = vadd.f32 %v237_v63, %v101_v51  ;;  %v238_v45 = vadd.f32 %v190_v48, %v170_v31  ;;  %v171_v22 = vmul.f32 %v123_v56, %v55_v4  ;;  %v56_v24 = vunpack.c.h.bf16 %v28_v46  ;;  %v78_v48 = vld [vmem:[%s747_s1 + $0x68] sm:$0xff]  ;;  %v79_v51 = vld [vmem:[%s747_s1 + $0x70] sm:$0xff] }
  0x2b   :  { %330 = vst [vmem:[%s750_s4 + $0x88] sm:$0xff] %v298_v14  ;;  %v300_v30 = vmax.f32 %v268_v35, 0.0  ;;  %v104_v5 = vunpack.c.h.bf16 %v76_v21  ;;  %v57_v33 = vunpack.c.l.bf16 %v29_v9  ;;  %v105_v36 = vunpack.c.l.bf16 %v77_v27 }
  0x2c   :  { %331 = vst [vmem:[%s750_s4 + $0x90] sm:$0xff] %v299_v16  ;;  %v301_v56 = vmax.f32 %v269_v11, 0.0  ;;  %v270_v37 = vadd.f32 %v238_v45, %v102_v3  ;;  %v239_v38 = vadd.f32 %v191_v57, %v171_v22  ;;  %v172_v25 = vmul.f32 %v124_v0, %v56_v24 }
  0x2d   :  { %332 = vst [vmem:[%s750_s4 + $0x98] sm:$0xff] %v300_v30  ;;  %v173_v41 = vmul.f32 %v125_v15, %v57_v33  ;;  %v58_v44 = vunpack.c.h.bf16 %v29_v9  ;;  %v106_v47 = vunpack.c.h.bf16 %v77_v27  ;;  %v59_v10 = vunpack.c.l.bf16 %v30_v28 }
  0x2e   :  { %333 = vst [vmem:[%s750_s4 + $0xa0] sm:$0xff] %v301_v56  ;;  %v302_v2 = vmax.f32 %v270_v37, 0.0  ;;  %v271_v57 = vadd.f32 %v239_v38, %v103_v18  ;;  %v240_v0 = vadd.f32 %v192_v7, %v172_v25  ;;  %v107_v17 = vunpack.c.l.bf16 %v78_v48 }
  0x2f   :  { %v241_v15 = vadd.f32 %v193_v20, %v173_v41  ;;  %v174_v49 = vmul.f32 %v126_v29, %v58_v44  ;;  %v175_v46 = vmul.f32 %v127_v39, %v59_v10  ;;  %v60_v42 = vunpack.c.h.bf16 %v30_v28 }
  0x30   :  { %334 = vst [vmem:[%s750_s4 + $0xa8] sm:$0xff] %v302_v2  ;;  %v303_v6 = vmax.f32 %v271_v57, 0.0  ;;  %v272_v7 = vadd.f32 %v240_v0, %v104_v5  ;;  %v108_v58 = vunpack.c.h.bf16 %v78_v48  ;;  %v61_v13 = vunpack.c.l.bf16 %v31_v12 }
  0x31   :  { %v273_v20 = vadd.f32 %v241_v15, %v105_v36  ;;  %v242_v29 = vadd.f32 %v194_v32, %v174_v49  ;;  %v243_v39 = vadd.f32 %v195_v43, %v175_v46  ;;  %v176_v21 = vmul.f32 %v128_v52, %v60_v42  ;;  %v80_v43 = vld [vmem:[%s747_s1 + $0x78] sm:$0xff] }
  0x32   :  { %335 = vst [vmem:[%s750_s4 + $0xb0] sm:$0xff] %v303_v6  ;;  %v304_v26 = vmax.f32 %v272_v7, 0.0  ;;  %v109_v55 = vunpack.c.l.bf16 %v79_v51  ;;  %v177_v61 = vmul.f32 %v129_v62, %v61_v13  ;;  %v62_v32 = vunpack.c.h.bf16 %v31_v12 }
  0x33   :  { %v305_v63 = vmax.f32 %v273_v20, 0.0  ;;  %v274_v52 = vadd.f32 %v242_v29, %v106_v47  ;;  %v275_v3 = vadd.f32 %v243_v39, %v107_v17  ;;  %v244_v31 = vadd.f32 %v196_v53, %v176_v21 }
  0x34   :  { %336 = vst [vmem:[%s750_s4 + $0xb8] sm:$0xff] %v304_v26  ;;  %v245_v4 = vadd.f32 %v197_v8, %v177_v61  ;;  %v110_v9 = vunpack.c.h.bf16 %v79_v51  ;;  %v178_v62 = vmul.f32 %v130_v19, %v62_v32  ;;  %v63_v27 = vunpack.c.l.bf16 %v32_v59 }
  0x35   :  { %337 = vst [vmem:[%s750_s4 + $0xc0] sm:$0xff] %v305_v63  ;;  %v306_v14 = vmax.f32 %v274_v52, 0.0  ;;  %v307_v16 = vmax.f32 %v275_v3, 0.0  ;;  %v276_v35 = vadd.f32 %v244_v31, %v108_v58  ;;  %v111_v53 = vunpack.c.l.bf16 %v80_v43 }
  0x36   :  { %v277_v18 = vadd.f32 %v245_v4, %v109_v55  ;;  %v246_v11 = vadd.f32 %v198_v23, %v178_v62  ;;  %v179_v8 = vmul.f32 %v131_v34, %v63_v27  ;;  %v64_v45 = vunpack.c.h.bf16 %v32_v59 }
  0x37   :  { %338 = vst [vmem:[%s750_s4 + $0xc8] sm:$0xff] %v306_v14  ;;  %v308_v19 = vmax.f32 %v276_v35, 0.0  ;;  %v112_v22 = vunpack.c.h.bf16 %v80_v43 }
  0x38   :  { %339 = vst [vmem:[%s750_s4 + $0xd0] sm:$0xff] %v307_v16  ;;  %v309_v24 = vmax.f32 %v277_v18, 0.0  ;;  %v278_v28 = vadd.f32 %v246_v11, %v110_v9  ;;  %v247_v30 = vadd.f32 %v199_v40, %v179_v8  ;;  %v180_v23 = vmul.f32 %v132_v50, %v64_v45 }
  0x39   :  { %340 = vst [vmem:[%s750_s4 + $0xd8] sm:$0xff] %v308_v19 }
  0x3a   :  { %341 = vst [vmem:[%s750_s4 + $0xe0] sm:$0xff] %v309_v24  ;;  %v310_v34 = vmax.f32 %v278_v28, 0.0  ;;  %v279_v5 = vadd.f32 %v247_v30, %v111_v53  ;;  %v248_v33 = vadd.f32 %v200_v54, %v180_v23 }
  0x3c   :  { %342 = vst [vmem:[%s750_s4 + $0xe8] sm:$0xff] %v310_v34  ;;  %v311_v40 = vmax.f32 %v279_v5, 0.0  ;;  %v280_v60 = vadd.f32 %v248_v33, %v112_v22 }
  0x3e   :  { %343 = vst [vmem:[%s750_s4 + $0xf0] sm:$0xff] %v311_v40  ;;  %v312_v50 = vmax.f32 %v280_v60, 0.0 }
  0x40   :  { %344 = vst [vmem:[%s750_s4 + $0xf8] sm:$0xff] %v312_v50 }

// kernel: baseblock_forward.3
= control target key start
LH: loop header
LB: loop body
LE: loop exit
PB: predicated region body
PF: predicated region fallthrough
CT: control target
= control target key end

     0   :  { %s5910_s12 = smov 0   ;;  %s8018_s0 = inlined_call_operand.vmem [shape: bf16[2,16,16,64], index: 0, kind: input, shape index: {}]   ;;  %s8019_s1 = inlined_call_operand.vmem [shape: bf16[576,64], index: 1, kind: input, shape index: {}]   ;;  %s8020_s2 = inlined_call_operand.vmem [shape: bf16[2,256,64], index: 2, kind: output, shape index: {0}]   ;;  %s8021_s3 = inlined_call_operand.vmem [shape: f32[2,2,64], index: 3, kind: output, shape index: {1}]  }
   0x1 LB: > { %s5188_s13 = sadd.s32 4294967295, %s5886_s12   ;;  %p5192_p0 = scmp.ge.s32.totalorder %s5886_s12, 1  ;;  %s5886_s12 = sphi %s5910_s12, %s14_s12  }
   0x2   : > { %p140_p1 = scmp.lt.s32.totalorder %s5886_s12, 3 }
   0x4   : > { %p141_p2 = pnand %p5192_p0, %p140_p1 }
   0x6   : > { %144 = sbr.rel (%p141_p2) target bundleno = 731 (0x2db), region = 28 }
   0xb   : > { %vm215_vm0 = vcmask 519168   ;;  %vm218_vm1 = vcmask 516096   ;;  %vm226_vm2 = vsmask.f32 256  ;;  %v5888_v0 = vmov 0   ;;  %p168_p3 = scmp.lt.s32.totalorder %s5188_s13, 1 }
   0xc   : > { %217 = vst.msk [vmem:[#allocation2 + $0x4] sm:$0xf] %vm215_vm0, %v5888_v0  ;;  %vm5921_vm3 = vmand %vm218_vm1, %vm226_vm2  ;;  %vm276_vm4 = vsmask.f32 7938  ;;  %vm874_vm5 = vsmask.f32 3328 }
   0xd   : > { %219 = vst.msk [vmem:[#allocation2 + $0x8] sm:$0x1] %vm218_vm1, %v5888_v0  ;;  %vm875_vm6 = vsmask.f32 7440  ;;  %v261_v2 = vld [vmem:[#allocation2 + $0x90] sm:$0x1]  ;;  %vm5929_vm7 = vmand %vm218_vm1, %vm276_vm4 }
   0xe   : > { %216 = vst.msk [vmem:[#allocation2] sm:$0xf] %vm215_vm0, %v5888_v0  ;;  %s8054_s13 = smov (!%p168_p3, %s5188_s13), 1  ;;  %v262_v4 = vsel %vm5921_vm3, 0, %v261_v2  ;;  %v249_v5 = vld [vmem:[#allocation2 + $0x60] sm:$0x1]  ;;  %vm5967_vm9 = vmand %vm215_vm0, %vm276_vm4 }
   0xf   : > { %221 = vst.msk [vmem:[#allocation2 + $0xcc] sm:$0xf] %vm215_vm0, %v5888_v0  ;;  %vm326_vm8 = vsmask.f32 4368  ;;  %v237_v6 = vld [vmem:[#allocation2 + $0x30] sm:$0x1]  ;;  %vm5982_vm11 = vmor %vm874_vm5, %vm875_vm6 }
  0x10   : > { %222 = vst.msk [vmem:[#allocation2 + $0xd0] sm:$0xf] %vm215_vm0, %v5888_v0  ;;  %s5728_s14 = sshll.u32 %s8054_s13, 7  ;;  %v250_v7 = vsel %vm5921_vm3, 0, %v249_v5  ;;  %v5943_v8 = vld [vmem:[#allocation2 + $0x98] sm:$0x1]  ;;  %vm5976_vm10 = vmor %vm226_vm2, %vm326_vm8 }
  0x11   : > { %223 = vst.msk [vmem:[#allocation2 + $0xd4] sm:$0x1] %vm218_vm1, %v5888_v0  ;;  %s5950_s17 = scalar_lea.vmem %s8018_s0, %s5728_s14  ;;  %v238_v9 = vsel %vm5921_vm3, 0, %v237_v6  ;;  %v312_v10 = vsel %vm5929_vm7, 0, %v5943_v8  ;;  %v5957_v11 = vld [vmem:[#allocation2 + $0x68] sm:$0x1]  ;;  %s7520_s26 = scalar_lea.vmem %s8020_s2, %s5728_s14 }
  0x12   : > { %263 = vst [vmem:[#allocation2 + $0x90] sm:$0x1] %v262_v4  ;;  %v205_v13 = vld [vmem:[%s5950_s17 + $0x58] sm:$0xf]  ;;  %v206_v14 = vld [vmem:[%s5950_s17 + $0x5c] sm:$0xf] }
  0x13   : > { %v827_v12 = vld [vmem:[#allocation2 + $0x4] sm:$0xf]  ;;  %v516_v18 = vshrl.u32 %v205_v13, 16  ;;  %v519_v19 = vshll.u32 %v205_v13, 16  ;;  %v524_v22 = vshrl.u32 %v206_v14, 16  ;;  %v527_v23 = vshll.u32 %v206_v14, 16 }
  0x14   : > { %v828_v15 = vld [vmem:[#allocation2 + $0x8] sm:$0x1]  ;;  %v887_v16 = vshll.u32 %v827_v12, 16  ;;  %v891_v17 = vshrl.u32 %v827_v12, 16  ;;  %v300_v24 = vsel %vm5929_vm7, 0, %v5957_v11  ;;  %s5889_s18 = smov 64  }
  0x15   : > { %v897_v20 = vshll.u32 %v828_v15, 16  ;;  %v826_v21 = vld [vmem:[#allocation2] sm:$0xf]  ;;  %v197_v29 = vld [vmem:[%s5950_s17 + $0x38] sm:$0xf]  ;;  %v518_v32 = vrot.slane %v516_v18, 7 }
  0x16   : > { %v889_v25 = vrot.slane %v887_v16, 5  ;;  %v893_v26 = vrot.slane %v891_v17, 4  ;;  %v878_v27 = vshrl.u32 %v826_v21, 16  ;;  %v881_v28 = vshll.u32 %v826_v21, 16  ;;  %v198_v34 = vld [vmem:[%s5950_s17 + $0x3c] sm:$0xf] }
  0x17   : > { %v899_v31 = vrot.slane %v897_v20, 5  ;;  %v5971_v33 = vrot.slane %v524_v22, 7  ;;  %v448_v35 = vshrl.u32 %v197_v29, 16  ;;  %251 = vst [vmem:[#allocation2 + $0x60] sm:$0x1] %v250_v7  ;;  %v451_v40 = vshll.u32 %v197_v29, 16 }
  0x18   : > { %v894_v36 = vor.u32 %v893_v26, %v889_v25  ;;  %v880_v37 = vrot.slane %v878_v27, 4  ;;  %v883_v38 = vrot.slane %v881_v28, 5  ;;  %v521_v42 = vor.u32 %v519_v19, %v518_v32  ;;  %v189_v47 = vld [vmem:[%s5950_s17 + $0x18] sm:$0xf]  ;;  %v190_v52 = vld [vmem:[%s5950_s17 + $0x1c] sm:$0xf] }
  0x19   : > { %v522_v43 = vrot.slane %v518_v32, 4  ;;  %v529_v44 = vor.u32 %v527_v23, %v5971_v33  ;;  %v727_v45 = vld [vmem:[#allocation2 + $0x90] sm:$0xf]  ;;  %v450_v46 = vrot.slane %v448_v35, 7  ;;  %v456_v50 = vshrl.u32 %v198_v34, 16  ;;  %s5197_s14 = sshll.u32 %s8054_s13, 1 }
  0x1a   : > { %v895_v48 = vrot.slane %v894_v36, 4  ;;  %v884_v49 = vor.u32 %v883_v38, %v880_v37  ;;  %v459_v51 = vshll.u32 %v198_v34, 16  ;;  %v728_v54 = vsel %vm5967_vm9, %v521_v42, %v727_v45  ;;  %239 = vst [vmem:[#allocation2 + $0x30] sm:$0x1] %v238_v9  ;;  %v287_v57 = vld [vmem:[#allocation2 + $0x38] sm:$0x1]  ;;  %s181_s28 = scalar_lea.vmem %s8021_s3, %s5197_s14 }
  0x1b   : > { %v530_v53 = vsel %vm5976_vm10, %v522_v43, %v529_v44  ;;  %v453_v55 = vor.u32 %v451_v40, %v450_v46  ;;  %v454_v56 = vrot.slane %v450_v46, 4  ;;  %729 = vst [vmem:[#allocation2 + $0x90] sm:$0xf] %v728_v54  ;;  %v458_v60 = vrot.slane %v456_v50, 7  ;;  %v207_v9 = vld [vmem:[%s5950_s17 + $0x60] sm:$0xf] }
  0x1c   : > { %v900_v58 = vsel %vm5982_vm11, %v895_v48, %v899_v31  ;;  %v885_v59 = vrot.slane %v884_v49, 4  ;;  %v380_v61 = vshrl.u32 %v189_v47, 16  ;;  %730 = vst.msk [vmem:[#allocation2 + $0x94] sm:$0xf] %vm215_vm0, %v530_v53  ;;  %v383_v62 = vshll.u32 %v189_v47, 16 }
  0x1d   : > { %1263 = vrot.lane.b32.xlu1 %v900_v58, %s5889_s18  ;;  %v388_v63 = vshrl.u32 %v190_v52, 16  ;;  %v391_v0 = vshll.u32 %v190_v52, 16  ;;  %v531_v2 = vrot.slane %v5971_v33, 4  ;;  %v461_v5 = vor.u32 %v459_v51, %v458_v60  ;;  %313 = vst [vmem:[#allocation2 + $0x98] sm:$0x1] %v312_v10 }
  0x1e   : > { %v890_v4 = vsel %vm5982_vm11, %v885_v59, %v889_v25  ;;  %v382_v6 = vrot.slane %v380_v61, 7  ;;  %v463_v7 = vrot.slane %v458_v60, 4  ;;  %v699_v11 = vld [vmem:[#allocation2 + $0x60] sm:$0xf]  ;;  %301 = vst [vmem:[#allocation2 + $0x68] sm:$0x1] %v300_v24 }
  0x1f   : > { %1261 = vrot.lane.b32.xlu0 %v890_v4, %s5889_s18  ;;  %v390_v12 = vrot.slane %v388_v63, 7  ;;  %v288_v13 = vsel %vm5929_vm7, 0, %v287_v57  ;;  %v462_v14 = vsel %vm5976_vm10, %v454_v56, %v461_v5  ;;  %v700_v15 = vsel %vm5967_vm9, %v453_v55, %v699_v11  ;;  %v208_v8 = vld [vmem:[%s5950_s17 + $0x64] sm:$0xf]  ;;  %v264_v19 = vld [vmem:[#allocation2 + $0x9c] sm:$0x1] }
  0x20   : > { %v385_v16 = vor.u32 %v383_v62, %v382_v6  ;;  %v386_v17 = vrot.slane %v382_v6, 4  ;;  %289 = vst [vmem:[#allocation2 + $0x38] sm:$0x1] %v288_v13  ;;  %v533_v20 = vshrl.u32 %v207_v9, 16  ;;  %v265_v22 = vsel %vm5921_vm3, 0, %v264_v19 }
  0x21   : > { %701 = vst [vmem:[#allocation2 + $0x60] sm:$0xf] %v700_v15  ;;  %v393_v10 = vor.u32 %v391_v0, %v390_v12  ;;  %v395_v18 = vrot.slane %v390_v12, 4  ;;  %v671_v21 = vld [vmem:[#allocation2 + $0x30] sm:$0xf]  ;;  %v536_v23 = vshll.u32 %v207_v9, 16 }
  0x22   : > { %702 = vst.msk [vmem:[#allocation2 + $0x64] sm:$0xf] %vm215_vm0, %v462_v14  ;;  %v862_v24 = vld [vmem:[#allocation2 + $0x90] sm:$0xf]  ;;  %v672_v26 = vsel %vm5967_vm9, %v385_v16, %v671_v21  ;;  %v535_v27 = vrot.slane %v533_v20, 7  ;;  %v541_v28 = vshrl.u32 %v208_v8, 16 }
  0x23   : > { %v394_v25 = vsel %vm5976_vm10, %v386_v17, %v393_v10  ;;  %266 = vst [vmem:[#allocation2 + $0x9c] sm:$0x1] %v265_v22  ;;  %v863_v29 = vld [vmem:[#allocation2 + $0x94] sm:$0xf]  ;;  %v1166_v31 = vshrl.u32 %v862_v24, 16  ;;  %v1169_v32 = vshll.u32 %v862_v24, 16 }
  0x24   : > { %673 = vst [vmem:[#allocation2 + $0x30] sm:$0xf] %v672_v26  ;;  %v1175_v33 = vshll.u32 %v863_v29, 16  ;;  %v1179_v34 = vshrl.u32 %v863_v29, 16  ;;  %v731_v35 = vld [vmem:[#allocation2 + $0x98] sm:$0x1]  ;;  %v538_v47 = vor.u32 %v536_v23, %v535_v27 }
  0x25   : > { %674 = vst.msk [vmem:[#allocation2 + $0x34] sm:$0xf] %vm215_vm0, %v394_v25  ;;  %v1168_v36 = vrot.slane %v1166_v31, 4  ;;  %v1171_v37 = vrot.slane %v1169_v32, 5  ;;  %v732_v38 = vsel %vm5921_vm3, %v531_v2, %v731_v35  ;;  %v703_v40 = vld [vmem:[#allocation2 + $0x68] sm:$0x1] }
  0x26   : > { %v539_v42 = vrot.slane %v535_v27, 4  ;;  %v1177_v43 = vrot.slane %v1175_v33, 5  ;;  %733 = vst [vmem:[#allocation2 + $0x98] sm:$0x1] %v732_v38  ;;  %v1181_v44 = vrot.slane %v1179_v34, 4  ;;  %v704_v45 = vsel %vm5921_vm3, %v463_v7, %v703_v40 }
  0x27   : > { %v675_v46 = vld [vmem:[#allocation2 + $0x38] sm:$0x1]  ;;  %v1172_v48 = vor.u32 %v1171_v37, %v1168_v36  ;;  %705 = vst [vmem:[#allocation2 + $0x68] sm:$0x1] %v704_v45  ;;  %v6027_v51 = vrot.slane %v541_v28, 7  ;;  %v544_v52 = vshll.u32 %v208_v8, 16 }
  0x28   : > { %v850_v49 = vld [vmem:[#allocation2 + $0x60] sm:$0xf]  ;;  %v676_v50 = vsel %vm5921_vm3, %v395_v18, %v675_v46  ;;  %v1182_v56 = vor.u32 %v1181_v44, %v1177_v43  ;;  %v200_v34 = vld [vmem:[%s5950_s17 + $0x44] sm:$0xf]  ;;  %v302_v35 = vld [vmem:[#allocation2 + $0x74] sm:$0x1] }
  0x29   : > { %v851_v53 = vld [vmem:[#allocation2 + $0x64] sm:$0xf]  ;;  %v1070_v54 = vshrl.u32 %v850_v49, 16  ;;  %v1073_v55 = vshll.u32 %v850_v49, 16  ;;  %677 = vst [vmem:[#allocation2 + $0x38] sm:$0x1] %v676_v50  ;;  %v546_v60 = vor.u32 %v544_v52, %v6027_v51 }
  0x2a   : > { %v1173_v57 = vrot.slane %v1172_v48, 4  ;;  %v1079_v58 = vshll.u32 %v851_v53, 16  ;;  %v1083_v59 = vshrl.u32 %v851_v53, 16  ;;  %v734_v61 = vld [vmem:[#allocation2 + $0x9c] sm:$0xf]  ;;  %v1183_v2 = vrot.slane %v1182_v56, 4 }
  0x2b   : > { %v1072_v62 = vrot.slane %v1070_v54, 4  ;;  %v1075_v63 = vrot.slane %v1073_v55, 5  ;;  %v838_v0 = vld [vmem:[#allocation2 + $0x30] sm:$0xf]  ;;  %v735_v4 = vsel %vm5967_vm9, %v538_v47, %v734_v61  ;;  %v547_v10 = vsel %vm5976_vm10, %v539_v42, %v546_v60  ;;  %v6038_v18 = vld [vmem:[%s5950_s17 + $0x40] sm:$0xf] }
  0x2c   : > { %v1178_v5 = vsel %vm5982_vm11, %v1173_v57, %v1177_v43  ;;  %v1081_v6 = vrot.slane %v1079_v58, 5  ;;  %v839_v7 = vld [vmem:[#allocation2 + $0x34] sm:$0xf]  ;;  %v974_v9 = vshrl.u32 %v838_v0, 16  ;;  %v977_v11 = vshll.u32 %v838_v0, 16 }
  0x2d   : > { %1309 = vrot.lane.b32.xlu1 %v1178_v5, %s5889_s18  ;;  %v1076_v12 = vor.u32 %v1075_v63, %v1072_v62  ;;  %v983_v13 = vshll.u32 %v839_v7, 16  ;;  %v987_v14 = vshrl.u32 %v839_v7, 16  ;;  %v1085_v15 = vrot.slane %v1083_v59, 4  ;;  %736 = vst [vmem:[#allocation2 + $0x9c] sm:$0xf] %v735_v4 }
  0x2e   : > { %v976_v16 = vrot.slane %v974_v9, 4  ;;  %v979_v17 = vrot.slane %v977_v11, 5  ;;  %v864_v8 = vld [vmem:[#allocation2 + $0x98] sm:$0x1]  ;;  %v852_v23 = vld [vmem:[#allocation2 + $0x68] sm:$0x1] }
  0x2f   : > { %v1077_v19 = vrot.slane %v1076_v12, 4  ;;  %v985_v20 = vrot.slane %v983_v13, 5  ;;  %v989_v21 = vrot.slane %v987_v14, 4  ;;  %v1185_v22 = vshll.u32 %v864_v8, 16  ;;  %737 = vst.msk [vmem:[#allocation2 + $0xa0] sm:$0xf] %vm215_vm0, %v547_v10 }
  0x30   : > { %v980_v24 = vor.u32 %v979_v17, %v976_v16  ;;  %v1086_v25 = vor.u32 %v1085_v15, %v1081_v6  ;;  %v1089_v26 = vshll.u32 %v852_v23, 16  ;;  %v840_v27 = vld [vmem:[#allocation2 + $0x38] sm:$0x1]  ;;  %v465_v28 = vshrl.u32 %v6038_v18, 16  ;;  %v6053_v45 = vld [vmem:[%s5950_s17 + $0x20] sm:$0xf] }
  0x31   : > { %v1082_v29 = vsel %vm5982_vm11, %v1077_v19, %v1081_v6  ;;  %v1187_v31 = vrot.slane %v1185_v22, 5  ;;  %v990_v32 = vor.u32 %v989_v21, %v985_v20  ;;  %v993_v33 = vshll.u32 %v840_v27, 16  ;;  %v192_v50 = vld [vmem:[%s5950_s17 + $0x24] sm:$0xf]  ;;  %v240_v61 = vld [vmem:[#allocation2 + $0x3c] sm:$0x1] }
  0x32   : > { %1293 = vrot.lane.b32.xlu0 %v1082_v29, %s5889_s18  ;;  %v981_v36 = vrot.slane %v980_v24, 4  ;;  %v1087_v37 = vrot.slane %v1086_v25, 4  ;;  %v1091_v38 = vrot.slane %v1089_v26, 5  ;;  %v303_v40 = vsel %vm5929_vm7, 0, %v302_v35  ;;  %v290_v56 = vld [vmem:[#allocation2 + $0x44] sm:$0x1] }
  0x33   : > { %v1188_v42 = vsel %vm5982_vm11, %v1183_v2, %v1187_v31  ;;  %v991_v43 = vrot.slane %v990_v32, 4  ;;  %304 = vst [vmem:[#allocation2 + $0x74] sm:$0x1] %v303_v40  ;;  %v6050_v44 = vrot.slane %v465_v28, 7  ;;  %v995_v47 = vrot.slane %v993_v33, 5 }
  0x34   : > { %v986_v46 = vsel %vm5982_vm11, %v981_v36, %v985_v20  ;;  %v865_v48 = vld [vmem:[#allocation2 + $0x9c] sm:$0xf]  ;;  %v473_v49 = vshrl.u32 %v200_v34, 16  ;;  %v468_v54 = vshll.u32 %v6038_v18, 16  ;;  %v476_v58 = vshll.u32 %v200_v34, 16 }
  0x35   : > { %1277 = vrot.lane.b32.xlu2 %v986_v46, %s5889_s18  ;;  %1311 = vrot.lane.b32.xlu1 %v1188_v42, %s5889_s18  ;;  %v1190_v52 = vshrl.u32 %v865_v48, 16  ;;  %v1193_v53 = vshll.u32 %v865_v48, 16  ;;  %v471_v55 = vrot.slane %v6050_v44, 4  ;;  %v291_v59 = vsel %vm5929_vm7, 0, %v290_v56  ;;  %v201_v9 = vld [vmem:[%s5950_s17 + $0x48] sm:$0xf] }
  0x36   : > { %v475_v57 = vrot.slane %v473_v49, 7  ;;  %v397_v60 = vshrl.u32 %v6053_v45, 16  ;;  %v1092_v62 = vsel %vm5982_vm11, %v1087_v37, %v1091_v38  ;;  %v6067_v63 = vld [vmem:[#allocation2 + $0xa0] sm:$0xf]  ;;  %292 = vst [vmem:[#allocation2 + $0x44] sm:$0x1] %v291_v59  ;;  %v996_v4 = vsel %vm5982_vm11, %v991_v43, %v995_v47 }
  0x37   : > { %v1192_v0 = vrot.slane %v1190_v52, 4  ;;  %v1195_v2 = vrot.slane %v1193_v53, 5  ;;  %v1199_v5 = vshll.u32 %v6067_v63, 16  ;;  %v400_v13 = vshll.u32 %v6053_v45, 16  ;;  %v202_v15 = vld [vmem:[%s5950_s17 + $0x4c] sm:$0xf] }
  0x38   : > { %v478_v6 = vor.u32 %v476_v58, %v475_v57  ;;  %v480_v7 = vrot.slane %v475_v57, 4  ;;  %v399_v12 = vrot.slane %v397_v60, 7  ;;  %v405_v14 = vshrl.u32 %v192_v50, 16  ;;  %v255_v24 = vld [vmem:[#allocation2 + $0x78] sm:$0x1] }
  0x39   : > { %v1196_v11 = vor.u32 %v1195_v2, %v1192_v0  ;;  %v6076_v16 = vrot.slane %v1199_v5, 5  ;;  %v408_v10 = vshll.u32 %v192_v50, 16  ;;  %v241_v19 = vsel %vm5921_vm3, 0, %v240_v61  ;;  %v252_v32 = vld [vmem:[#allocation2 + $0x6c] sm:$0x1] }
  0x3a   : > { %1295 = vrot.lane.b32.xlu0 %v1092_v62, %s5889_s18  ;;  %v479_v17 = vsel %vm5976_vm10, %v471_v55, %v478_v6  ;;  %v710_v8 = vld [vmem:[#allocation2 + $0x74] sm:$0x1]  ;;  %v403_v22 = vrot.slane %v399_v12, 4  ;;  %v407_v23 = vrot.slane %v405_v14, 7  ;;  %v482_v25 = vshrl.u32 %v201_v9, 16 }
  0x3b   : > { %v1197_v20 = vrot.slane %v1196_v11, 4  ;;  %709 = vst.msk [vmem:[#allocation2 + $0x70] sm:$0xf] %vm215_vm0, %v479_v17  ;;  %v711_v21 = vsel %vm5921_vm3, %v480_v7, %v710_v8  ;;  %v485_v26 = vshll.u32 %v201_v9, 16  ;;  %v256_v31 = vsel %vm5921_vm3, 0, %v255_v24 }
  0x3c   : > { %712 = vst [vmem:[#allocation2 + $0x74] sm:$0x1] %v711_v21  ;;  %v410_v28 = vor.u32 %v408_v10, %v407_v23  ;;  %v412_v29 = vrot.slane %v407_v23, 4  ;;  %v484_v34 = vrot.slane %v482_v25, 7  ;;  %v490_v35 = vshrl.u32 %v202_v15, 16 }
  0x3d   : > { %1279 = vrot.lane.b32.xlu2 %v996_v4, %s5889_s18  ;;  %v1202_v27 = vsel %vm5982_vm11, %v1197_v20, %v6076_v16  ;;  %242 = vst [vmem:[#allocation2 + $0x3c] sm:$0x1] %v241_v19  ;;  %v682_v33 = vld [vmem:[#allocation2 + $0x44] sm:$0x1]  ;;  %v493_v38 = vshll.u32 %v202_v15, 16  ;;  %v253_v40 = vsel %vm5921_vm3, 0, %v252_v32  ;;  %v402_v48 = vor.u32 %v400_v13, %v399_v12 }
  0x3e   : > { %1313 = vrot.lane.b32.xlu1 %v1202_v27, %s5889_s18  ;;  %257 = vst [vmem:[#allocation2 + $0x78] sm:$0x1] %v256_v31  ;;  %v411_v36 = vsel %vm5976_vm10, %v403_v22, %v410_v28  ;;  %v683_v37 = vsel %vm5921_vm3, %v412_v29, %v682_v33  ;;  %v6099_v42 = vld [vmem:[%s5950_s17] sm:$0xf]  ;;  %v184_v43 = vld [vmem:[%s5950_s17 + $0x4] sm:$0xf]  ;;  %v487_v55 = vor.u32 %v485_v26, %v484_v34 }
  0x3f   : > { %681 = vst.msk [vmem:[#allocation2 + $0x40] sm:$0xf] %vm215_vm0, %v411_v36  ;;  %v488_v45 = vrot.slane %v484_v34, 4  ;;  %v6103_v46 = vrot.slane %v490_v35, 7  ;;  %v278_v47 = vld [vmem:[#allocation2 + $0x14] sm:$0x1]  ;;  %v470_v11 = vor.u32 %v468_v54, %v6050_v44 }
  0x40   : > { %684 = vst [vmem:[#allocation2 + $0x44] sm:$0x1] %v683_v37  ;;  %v279_v49 = vsel %vm5929_vm7, 0, %v278_v47  ;;  %v329_v50 = vshrl.u32 %v6099_v42, 16  ;;  %v337_v52 = vshrl.u32 %v184_v43, 16  ;;  %v340_v57 = vshll.u32 %v184_v43, 16 }
  0x41   : > { %v495_v56 = vor.u32 %v493_v38, %v6103_v46  ;;  %254 = vst [vmem:[#allocation2 + $0x6c] sm:$0x1] %v253_v40  ;;  %v1203_v12 = vshrl.u32 %v6067_v63, 16  ;;  %v6126_v17 = vld [vmem:[%s5950_s17 + $0x68] sm:$0xf]  ;;  %v332_v33 = vshll.u32 %v6099_v42, 16 }
  0x42   : > { %v854_v53 = vld [vmem:[#allocation2 + $0x70] sm:$0xf]  ;;  %280 = vst [vmem:[#allocation2 + $0x14] sm:$0x1] %v279_v49  ;;  %v6111_v2 = vrot.slane %v329_v50, 7  ;;  %v339_v4 = vrot.slane %v337_v52, 7 }
  0x43   : > { %v855_v58 = vld [vmem:[#allocation2 + $0x74] sm:$0x1]  ;;  %v1103_v59 = vshll.u32 %v854_v53, 16  ;;  %v1107_v60 = vshrl.u32 %v854_v53, 16  ;;  %v496_v0 = vsel %vm5976_vm10, %v488_v45, %v495_v56  ;;  %v550_v22 = vshrl.u32 %v6126_v17, 16 }
  0x44   : > { %v1113_v61 = vshll.u32 %v855_v58, 16  ;;  %v678_v62 = vld [vmem:[#allocation2 + $0x3c] sm:$0xf]  ;;  %716 = vst.msk [vmem:[#allocation2 + $0x7c] sm:$0xf] %vm215_vm0, %v496_v0  ;;  %v335_v14 = vrot.slane %v6111_v2, 4  ;;  %v342_v15 = vor.u32 %v340_v57, %v339_v4 }
  0x45   : > { %v6113_v5 = vrot.slane %v1103_v59, 5  ;;  %v1109_v6 = vrot.slane %v1107_v60, 4  ;;  %v679_v7 = vsel %vm5967_vm9, %v402_v48, %v678_v62  ;;  %v713_v9 = vld [vmem:[#allocation2 + $0x78] sm:$0xf]  ;;  %v344_v20 = vrot.slane %v339_v4, 4 }
  0x46   : > { %680 = vst [vmem:[#allocation2 + $0x3c] sm:$0xf] %v679_v7  ;;  %v714_v13 = vsel %vm5967_vm9, %v487_v55, %v713_v9  ;;  %v1115_v10 = vrot.slane %v1113_v61, 5  ;;  %v842_v19 = vld [vmem:[#allocation2 + $0x40] sm:$0xf]  ;;  %v343_v54 = vsel %vm5976_vm10, %v335_v14, %v342_v15  ;;  %v6149_v43 = vrot.slane %v550_v22, 7 }
  0x47   : > { %v1110_v8 = vor.u32 %v1109_v6, %v6113_v5  ;;  %715 = vst [vmem:[#allocation2 + $0x78] sm:$0xf] %v714_v13  ;;  %v843_v21 = vld [vmem:[#allocation2 + $0x44] sm:$0x1]  ;;  %v1007_v18 = vshll.u32 %v842_v19, 16  ;;  %v1011_v44 = vshrl.u32 %v842_v19, 16 }
  0x48   : > { %v1017_v24 = vshll.u32 %v843_v21, 16  ;;  %v706_v25 = vld [vmem:[#allocation2 + $0x6c] sm:$0xf]  ;;  %653 = vst.msk [vmem:[#allocation2 + $0x10] sm:$0xf] %vm215_vm0, %v343_v54  ;;  %v548_v48 = vrot.slane %v6027_v51, 4 }
  0x49   : > { %v1111_v23 = vrot.slane %v1110_v8, 4  ;;  %v6133_v26 = vrot.slane %v1007_v18, 5  ;;  %v1013_v27 = vrot.slane %v1011_v44, 4  ;;  %v707_v28 = vsel %vm5967_vm9, %v470_v11, %v706_v25  ;;  %v654_v29 = vld [vmem:[#allocation2 + $0x14] sm:$0x1] }
  0x4a   : > { %v317_v31 = vld [vmem:[#allocation2 + $0xb0] sm:$0x1]  ;;  %708 = vst [vmem:[#allocation2 + $0x6c] sm:$0xf] %v707_v28  ;;  %v655_v34 = vsel %vm5921_vm3, %v344_v20, %v654_v29  ;;  %v210_v35 = vld [vmem:[%s5950_s17 + $0x6c] sm:$0xf] }
  0x4b   : > { %v1116_v32 = vsel %vm5982_vm11, %v1111_v23, %v1115_v10  ;;  %v318_v36 = vsel %vm5929_vm7, 0, %v317_v31  ;;  %v1014_v37 = vor.u32 %v1013_v27, %v6133_v26  ;;  %v1019_v38 = vrot.slane %v1017_v24, 5  ;;  %v6147_v40 = vld [vmem:[#allocation2 + $0x7c] sm:$0xf]  ;;  %656 = vst [vmem:[#allocation2 + $0x14] sm:$0x1] %v655_v34 }
  0x4c   : > { %1299 = vrot.lane.b32.xlu0 %v1116_v32, %s5889_s18  ;;  %v1127_v47 = vshll.u32 %v6147_v40, 16  ;;  %319 = vst [vmem:[#allocation2 + $0xb0] sm:$0x1] %v318_v36  ;;  %v556_v55 = vrot.slane %v6149_v43, 4  ;;  %v558_v59 = vshrl.u32 %v210_v35, 16  ;;  %v561_v6 = vshll.u32 %v210_v35, 16 }
  0x4d   : > { %v841_v45 = vld [vmem:[#allocation2 + $0x3c] sm:$0xf]  ;;  %v1015_v49 = vrot.slane %v1014_v37, 4  ;;  %v314_v60 = vld [vmem:[#allocation2 + $0xa4] sm:$0x1]  ;;  %vm1357_vm12 = vcmask 1043968  }
  0x4e   : > { %v998_v50 = vshrl.u32 %v841_v45, 16  ;;  %v1001_v52 = vshll.u32 %v841_v45, 16  ;;  %v856_v53 = vld [vmem:[#allocation2 + $0x78] sm:$0xf]  ;;  %v6154_v58 = vrot.slane %v1127_v47, 5  ;;  %v560_v8 = vrot.slane %v558_v59, 7 }
  0x4f   : > { %v1118_v56 = vshrl.u32 %v856_v53, 16  ;;  %v1121_v57 = vshll.u32 %v856_v53, 16  ;;  %v1020_v61 = vsel %vm5982_vm11, %v1015_v49, %v1019_v38  ;;  %v830_v4 = vld [vmem:[#allocation2 + $0x10] sm:$0xf]  ;;  %v315_v10 = vsel %vm5929_vm7, 0, %v314_v60 }
  0x50   : > { %v1000_v62 = vrot.slane %v998_v50, 4  ;;  %v1003_v0 = vrot.slane %v1001_v52, 5  ;;  %1283 = vrot.lane.b32.xlu1 %v1020_v61, %s5889_s18  ;;  %v911_v11 = vshll.u32 %v830_v4, 16  ;;  %v915_v13 = vshrl.u32 %v830_v4, 16  ;;  %v267_v19 = vld [vmem:[#allocation2 + $0xa8] sm:$0x1] }
  0x51   : > { %v1120_v7 = vrot.slane %v1118_v56, 4  ;;  %v1123_v9 = vrot.slane %v1121_v57, 5  ;;  %v853_v15 = vld [vmem:[#allocation2 + $0x6c] sm:$0xf]  ;;  %v563_v25 = vor.u32 %v561_v6, %v560_v8  ;;  %v185_v28 = vld [vmem:[%s5950_s17 + $0x8] sm:$0xf] }
  0x52   : > { %v1004_v14 = vor.u32 %v1003_v0, %v1000_v62  ;;  %v1094_v21 = vshrl.u32 %v853_v15, 16  ;;  %v1097_v18 = vshll.u32 %v853_v15, 16  ;;  %v831_v44 = vld [vmem:[#allocation2 + $0x14] sm:$0x1]  ;;  %v6161_v54 = vrot.slane %v911_v11, 5 }
  0x53   : > { %v1124_v20 = vor.u32 %v1123_v9, %v1120_v7  ;;  %v917_v23 = vrot.slane %v915_v13, 4  ;;  %v921_v24 = vshll.u32 %v831_v44, 16  ;;  %v745_v27 = vld [vmem:[#allocation2 + $0xb0] sm:$0x1]  ;;  %v565_v34 = vrot.slane %v560_v8, 4 }
  0x54   : > { %v1005_v22 = vrot.slane %v1004_v14, 4  ;;  %v1096_v31 = vrot.slane %v1094_v21, 4  ;;  %v1099_v32 = vrot.slane %v1097_v18, 5  ;;  %316 = vst [vmem:[#allocation2 + $0xa4] sm:$0x1] %v315_v10  ;;  %v564_v38 = vsel %vm5976_vm10, %v556_v55, %v563_v25 }
  0x55   : > { %v1125_v29 = vrot.slane %v1124_v20, 4  ;;  %v918_v36 = vor.u32 %v917_v23, %v6161_v54  ;;  %v923_v37 = vrot.slane %v921_v24, 5  ;;  %v186_v45 = vld [vmem:[%s5950_s17 + $0xc] sm:$0xf]  ;;  %v231_v47 = vld [vmem:[#allocation2 + $0x18] sm:$0x1] }
  0x56   : > { %v1010_v35 = vsel %vm5982_vm11, %v1005_v22, %v6133_v26  ;;  %v1100_v50 = vor.u32 %v1099_v32, %v1096_v31  ;;  %744 = vst.msk [vmem:[#allocation2 + $0xac] sm:$0xf] %vm215_vm0, %v564_v38  ;;  %v746_v26 = vsel %vm5921_vm3, %v565_v34, %v745_v27  ;;  %v268_v52 = vsel %vm5921_vm3, 0, %v267_v19  ;;  %v6183_v56 = vld [vmem:[%s5950_s17 + $0x28] sm:$0xf] }
  0x57   : > { %1281 = vrot.lane.b32.xlu0 %v1010_v35, %s5889_s18  ;;  %v1130_v49 = vsel %vm5982_vm11, %v1125_v29, %v6154_v58  ;;  %v919_v53 = vrot.slane %v918_v36, 4  ;;  %747 = vst [vmem:[#allocation2 + $0xb0] sm:$0x1] %v746_v26  ;;  %v232_v55 = vsel %vm5921_vm3, 0, %v231_v47  ;;  %v553_v59 = vshll.u32 %v6126_v17, 16 }
  0x58   : > { %1301 = vrot.lane.b32.xlu1 %v1130_v49, %s5889_s18  ;;  %v1101_v57 = vrot.slane %v1100_v50, 4  ;;  %269 = vst [vmem:[#allocation2 + $0xa8] sm:$0x1] %v268_v52  ;;  %v346_v60 = vshrl.u32 %v185_v28, 16  ;;  %v354_v61 = vshrl.u32 %v186_v45, 16  ;;  %v349_v62 = vshll.u32 %v185_v28, 16 }
  0x59   : > { %233 = vst [vmem:[#allocation2 + $0x18] sm:$0x1] %v232_v55  ;;  %v357_v0 = vshll.u32 %v186_v45, 16  ;;  %v293_v4 = vld [vmem:[#allocation2 + $0x50] sm:$0x1]  ;;  %v924_v17 = vsel %vm5982_vm11, %v919_v53, %v923_v37  ;;  %v1205_v15 = vrot.slane %v1203_v12, 4  ;;  %v555_v10 = vor.u32 %v553_v59, %v6149_v43 }
  0x5a   : > { %v1106_v6 = vsel %vm5982_vm11, %v1101_v57, %v6113_v5  ;;  %v348_v7 = vrot.slane %v346_v60, 7  ;;  %v6190_v9 = vrot.slane %v354_v61, 7  ;;  %v194_v11 = vld [vmem:[%s5950_s17 + $0x2c] sm:$0xf]  ;;  %v294_v13 = vsel %vm5929_vm7, 0, %v293_v4 }
  0x5b   : > { %1297 = vrot.lane.b32.xlu2 %v1106_v6, %s5889_s18  ;;  %v738_v14 = vld [vmem:[#allocation2 + $0xa4] sm:$0x1]  ;;  %295 = vst [vmem:[#allocation2 + $0x50] sm:$0x1] %v294_v13  ;;  %v414_v8 = vshrl.u32 %v6183_v56, 16  ;;  %v422_v44 = vshrl.u32 %v194_v11, 16  ;;  %v1206_v28 = vor.u32 %v1205_v15, %v6076_v16 }
  0x5c   : > { %v739_v5 = vsel %vm5921_vm3, %v548_v48, %v738_v14  ;;  %v352_v19 = vrot.slane %v348_v7, 4  ;;  %v359_v20 = vor.u32 %v357_v0, %v6190_v9  ;;  %v228_v21 = vld [vmem:[#allocation2 + $0xc] sm:$0x1]  ;;  %v351_v63 = vor.u32 %v349_v62, %v348_v7  ;;  %v6213_v24 = vld [vmem:[%s5950_s17 + $0x50] sm:$0xf] }
  0x5d   : > { %v869_v18 = vld [vmem:[#allocation2 + $0xac] sm:$0xf]  ;;  %740 = vst [vmem:[#allocation2 + $0xa4] sm:$0x1] %v739_v5  ;;  %v6207_v12 = vrot.slane %v414_v8, 7  ;;  %v425_v43 = vshll.u32 %v194_v11, 16  ;;  %v334_v8 = vor.u32 %v332_v33, %v6111_v2 }
  0x5e   : > { %v870_v51 = vld [vmem:[#allocation2 + $0xb0] sm:$0x1]  ;;  %v1223_v22 = vshll.u32 %v869_v18, 16  ;;  %v1227_v23 = vshrl.u32 %v869_v18, 16  ;;  %v360_v48 = vsel %vm5976_vm10, %v352_v19, %v359_v20  ;;  %v204_v25 = vld [vmem:[%s5950_s17 + $0x54] sm:$0xf] }
  0x5f   : > { %1267 = vrot.lane.b32.xlu0 %v924_v17, %s5889_s18  ;;  %v1233_v27 = vshll.u32 %v870_v51, 16  ;;  %v741_v29 = vld [vmem:[#allocation2 + $0xa8] sm:$0xf]  ;;  %660 = vst.msk [vmem:[#allocation2 + $0x1c] sm:$0xf] %vm215_vm0, %v360_v48  ;;  %v420_v31 = vrot.slane %v6207_v12, 4 }
  0x60   : > { %v6219_v32 = vrot.slane %v1223_v22, 5  ;;  %v1229_v34 = vrot.slane %v1227_v23, 4  ;;  %v742_v35 = vsel %vm5967_vm9, %v555_v10, %v741_v29  ;;  %v657_v36 = vld [vmem:[#allocation2 + $0x18] sm:$0xf]  ;;  %v424_v37 = vrot.slane %v422_v44, 7 }
  0x61   : > { %v1235_v38 = vrot.slane %v1233_v27, 5  ;;  %743 = vst [vmem:[#allocation2 + $0xa8] sm:$0xf] %v742_v35  ;;  %v658_v45 = vsel %vm5967_vm9, %v351_v63, %v657_v36  ;;  %v229_v16 = vsel %vm5921_vm3, 0, %v228_v21  ;;  %v308_v47 = vld [vmem:[#allocation2 + $0x8c] sm:$0x1] }
  0x62   : > { %v1230_v49 = vor.u32 %v1229_v34, %v6219_v32  ;;  %659 = vst [vmem:[#allocation2 + $0x18] sm:$0xf] %v658_v45  ;;  %v427_v50 = vor.u32 %v425_v43, %v424_v37  ;;  %v429_v26 = vrot.slane %v424_v37, 4  ;;  %v689_v52 = vld [vmem:[#allocation2 + $0x50] sm:$0x1]  ;;  %v309_v53 = vsel %vm5929_vm7, 0, %v308_v47 }
  0x63   : > { %v1131_v55 = vshrl.u32 %v6147_v40, 16  ;;  %v1207_v57 = vrot.slane %v1206_v28, 4  ;;  %230 = vst [vmem:[#allocation2 + $0xc] sm:$0x1] %v229_v16  ;;  %v499_v59 = vshrl.u32 %v6213_v24, 16  ;;  %v507_v60 = vshrl.u32 %v204_v25, 16 }
  0x64   : > { %v1231_v61 = vrot.slane %v1230_v49, 4  ;;  %v867_v62 = vld [vmem:[#allocation2 + $0xa4] sm:$0x1]  ;;  %v428_v0 = vsel %vm5976_vm10, %v420_v31, %v427_v50  ;;  %v690_v4 = vsel %vm5921_vm3, %v429_v26, %v689_v52  ;;  %310 = vst [vmem:[#allocation2 + $0x8c] sm:$0x1] %v309_v53  ;;  %v510_v6 = vshll.u32 %v204_v25, 16 }
  0x65   : > { %v1209_v7 = vshll.u32 %v867_v62, 16  ;;  %v417_v11 = vshll.u32 %v6183_v56, 16  ;;  %688 = vst.msk [vmem:[#allocation2 + $0x4c] sm:$0xf] %vm215_vm0, %v428_v0  ;;  %v501_v13 = vrot.slane %v499_v59, 7  ;;  %v509_v17 = vrot.slane %v507_v60, 7 }
  0x66   : > { %v1236_v14 = vsel %vm5982_vm11, %v1231_v61, %v1235_v38  ;;  %v6240_v15 = vld [vmem:[#allocation2 + $0x1c] sm:$0xf]  ;;  %691 = vst [vmem:[#allocation2 + $0x50] sm:$0x1] %v690_v4  ;;  %v258_v5 = vld [vmem:[#allocation2 + $0x84] sm:$0x1] }
  0x67   : > { %1319 = vrot.lane.b32.xlu1 %v1236_v14, %s5889_s18  ;;  %v1211_v10 = vrot.slane %v1209_v7, 5  ;;  %v502_v19 = vshll.u32 %v6213_v24, 16  ;;  %v505_v20 = vrot.slane %v501_v13, 4  ;;  %v497_v21 = vrot.slane %v6103_v46, 4  ;;  %v305_v48 = vld [vmem:[#allocation2 + $0x80] sm:$0x1] }
  0x68   : > { %v868_v18 = vld [vmem:[#allocation2 + $0xa8] sm:$0xf]  ;;  %v935_v63 = vshll.u32 %v6240_v15, 16  ;;  %v512_v44 = vor.u32 %v510_v6, %v509_v17  ;;  %v514_v51 = vrot.slane %v509_v17, 4  ;;  %v259_v22 = vsel %vm5921_vm3, 0, %v258_v5 }
  0x69   : > { %v1212_v42 = vsel %vm5982_vm11, %v1207_v57, %v1211_v10  ;;  %v1214_v2 = vshrl.u32 %v868_v18, 16  ;;  %v1217_v33 = vshll.u32 %v868_v18, 16  ;;  %v832_v23 = vld [vmem:[#allocation2 + $0x18] sm:$0xf]  ;;  %260 = vst [vmem:[#allocation2 + $0x84] sm:$0x1] %v259_v22  ;;  %v504_v26 = vor.u32 %v502_v19, %v501_v13 }
  0x6a   : > { %1315 = vrot.lane.b32.xlu2 %v1212_v42, %s5889_s18  ;;  %v926_v43 = vshrl.u32 %v832_v23, 16  ;;  %v929_v24 = vshll.u32 %v832_v23, 16  ;;  %v650_v25 = vld [vmem:[#allocation2 + $0xc] sm:$0xf]  ;;  %v513_v27 = vsel %vm5976_vm10, %v505_v20, %v512_v44  ;;  %v195_v28 = vld [vmem:[%s5950_s17 + $0x30] sm:$0xf] }
  0x6b   : > { %v1216_v29 = vrot.slane %v1214_v2, 4  ;;  %v1219_v31 = vrot.slane %v1217_v33, 5  ;;  %v651_v34 = vsel %vm5967_vm9, %v334_v8, %v650_v25  ;;  %723 = vst.msk [vmem:[#allocation2 + $0x88] sm:$0xf] %vm215_vm0, %v513_v27  ;;  %v724_v35 = vld [vmem:[#allocation2 + $0x8c] sm:$0x1] }
  0x6c   : > { %v928_v36 = vrot.slane %v926_v43, 4  ;;  %v931_v37 = vrot.slane %v929_v24, 5  ;;  %v845_v38 = vld [vmem:[#allocation2 + $0x4c] sm:$0xf]  ;;  %652 = vst [vmem:[#allocation2 + $0xc] sm:$0xf] %v651_v34  ;;  %v725_v45 = vsel %vm5921_vm3, %v514_v51, %v724_v35 }
  0x6d   : > { %v1220_v16 = vor.u32 %v1219_v31, %v1216_v29  ;;  %v846_v47 = vld [vmem:[#allocation2 + $0x50] sm:$0x1]  ;;  %v1031_v49 = vshll.u32 %v845_v38, 16  ;;  %v1035_v50 = vshrl.u32 %v845_v38, 16  ;;  %726 = vst [vmem:[#allocation2 + $0x8c] sm:$0x1] %v725_v45 }
  0x6e   : > { %v932_v52 = vor.u32 %v931_v37, %v928_v36  ;;  %v6262_v53 = vrot.slane %v935_v63, 5  ;;  %v1041_v57 = vshll.u32 %v846_v47, 16  ;;  %v306_v59 = vsel %vm5929_vm7, 0, %v305_v48  ;;  %v196_v60 = vld [vmem:[%s5950_s17 + $0x34] sm:$0xf] }
  0x6f   : > { %v1221_v61 = vrot.slane %v1220_v16, 4  ;;  %v6267_v62 = vrot.slane %v1031_v49, 5  ;;  %v1037_v0 = vrot.slane %v1035_v50, 4  ;;  %307 = vst [vmem:[#allocation2 + $0x80] sm:$0x1] %v306_v59  ;;  %v431_v4 = vshrl.u32 %v195_v28, 16 }
  0x70   : > { %v933_v6 = vrot.slane %v932_v52, 4  ;;  %v6271_v7 = vrot.slane %v1131_v55, 4  ;;  %v246_v13 = vld [vmem:[#allocation2 + $0x54] sm:$0x1]  ;;  %v434_v17 = vshll.u32 %v195_v28, 16  ;;  %v439_v14 = vshrl.u32 %v196_v60, 16 }
  0x71   : > { %v1226_v8 = vsel %vm5982_vm11, %v1221_v61, %v6219_v32  ;;  %v1038_v5 = vor.u32 %v1037_v0, %v6267_v62  ;;  %v720_v10 = vld [vmem:[#allocation2 + $0x84] sm:$0xf]  ;;  %v247_v19 = vsel %vm5921_vm3, 0, %v246_v13  ;;  %v433_v20 = vrot.slane %v431_v4, 7  ;;  %v6280_v18 = vld [vmem:[%s5950_s17 + $0x70] sm:$0xf] }
  0x72   : > { %1317 = vrot.lane.b32.xlu0 %v1226_v8, %s5889_s18  ;;  %v938_v40 = vsel %vm5982_vm11, %v933_v6, %v6262_v53  ;;  %v860_v55 = vld [vmem:[#allocation2 + $0x88] sm:$0xf]  ;;  %v721_v63 = vsel %vm5967_vm9, %v504_v26, %v720_v10  ;;  %248 = vst [vmem:[#allocation2 + $0x54] sm:$0x1] %v247_v19  ;;  %v6288_v32 = vrot.slane %v439_v14, 7  ;;  %v442_v44 = vshll.u32 %v196_v60, 16 }
  0x73   : > { %1269 = vrot.lane.b32.xlu1 %v938_v40, %s5889_s18  ;;  %v1039_v51 = vrot.slane %v1038_v5, 4  ;;  %v1043_v22 = vrot.slane %v1041_v57, 5  ;;  %v829_v42 = vld [vmem:[#allocation2 + $0xc] sm:$0xf]  ;;  %v1151_v2 = vshll.u32 %v860_v55, 16  ;;  %v1155_v33 = vshrl.u32 %v860_v55, 16 }
  0x74   : > { %v902_v23 = vshrl.u32 %v829_v42, 16  ;;  %v905_v48 = vshll.u32 %v829_v42, 16  ;;  %v861_v43 = vld [vmem:[#allocation2 + $0x8c] sm:$0x1]  ;;  %722 = vst [vmem:[#allocation2 + $0x84] sm:$0xf] %v721_v63  ;;  %v444_v24 = vor.u32 %v442_v44, %v6288_v32  ;;  %v436_v29 = vor.u32 %v434_v17, %v433_v20 }
  0x75   : > { %v6292_v25 = vrot.slane %v1151_v2, 5  ;;  %v1157_v27 = vrot.slane %v1155_v33, 4  ;;  %v1161_v28 = vshll.u32 %v861_v43, 16  ;;  %v212_v31 = vld [vmem:[%s5950_s17 + $0x74] sm:$0xf]  ;;  %v437_v37 = vrot.slane %v433_v20, 4 }
  0x76   : > { %v904_v34 = vrot.slane %v902_v23, 4  ;;  %v907_v35 = vrot.slane %v905_v48, 5  ;;  %v717_v36 = vld [vmem:[#allocation2 + $0x80] sm:$0x1]  ;;  %v567_v38 = vshrl.u32 %v6280_v18, 16  ;;  %v1044_v45 = vsel %vm5982_vm11, %v1039_v51, %v1043_v22 }
  0x77   : > { %v1158_v16 = vor.u32 %v1157_v27, %v6292_v25  ;;  %v1163_v47 = vrot.slane %v1161_v28, 5  ;;  %v718_v49 = vsel %vm5921_vm3, %v497_v21, %v717_v36  ;;  %v320_v50 = vld [vmem:[#allocation2 + $0xbc] sm:$0x1]  ;;  %v243_v26 = vld [vmem:[#allocation2 + $0x48] sm:$0x1]  ;;  %v445_v57 = vsel %vm5976_vm10, %v437_v37, %v444_v24 }
  0x78   : > { %v908_v52 = vor.u32 %v907_v35, %v904_v34  ;;  %719 = vst [vmem:[#allocation2 + $0x80] sm:$0x1] %v718_v49  ;;  %v321_v59 = vsel %vm5929_vm7, 0, %v320_v50  ;;  %v6307_v60 = vrot.slane %v567_v38, 7  ;;  %v6310_v61 = vld [vmem:[%s5950_s17 + $0x10] sm:$0xf]  ;;  %v1134_v46 = vor.u32 %v6271_v7, %v6154_v58 }
  0x79   : > { %v1159_v0 = vrot.slane %v1158_v16, 4  ;;  %v692_v4 = vld [vmem:[#allocation2 + $0x54] sm:$0xf]  ;;  %695 = vst.msk [vmem:[#allocation2 + $0x58] sm:$0xf] %vm215_vm0, %v445_v57  ;;  %v575_v21 = vshrl.u32 %v212_v31, 16  ;;  %v419_v36 = vor.u32 %v417_v11, %v6207_v12 }
  0x7a   : > { %1287 = vrot.lane.b32.xlu0 %v1044_v45, %s5889_s18  ;;  %v909_v6 = vrot.slane %v908_v52, 4  ;;  %v693_v13 = vsel %vm5967_vm9, %v436_v29, %v692_v4  ;;  %322 = vst [vmem:[#allocation2 + $0xbc] sm:$0x1] %v321_v59  ;;  %v573_v17 = vrot.slane %v6307_v60, 4  ;;  %v578_v14 = vshll.u32 %v212_v31, 16 }
  0x7b   : > { %v1164_v8 = vsel %vm5982_vm11, %v1159_v0, %v1163_v47  ;;  %v859_v5 = vld [vmem:[#allocation2 + $0x84] sm:$0xf]  ;;  %694 = vst [vmem:[#allocation2 + $0x54] sm:$0xf] %v693_v13  ;;  %v577_v58 = vrot.slane %v575_v21, 7  ;;  %v244_v7 = vsel %vm5921_vm3, 0, %v243_v26 }
  0x7c   : > { %v914_v10 = vsel %vm5982_vm11, %v909_v6, %v6161_v54  ;;  %1307 = vrot.lane.b32.xlu1 %v1164_v8, %s5889_s18  ;;  %v1142_v19 = vshrl.u32 %v859_v5, 16  ;;  %v1145_v20 = vshll.u32 %v859_v5, 16  ;;  %245 = vst [vmem:[#allocation2 + $0x48] sm:$0x1] %v244_v7  ;;  %v188_v40 = vld [vmem:[%s5950_s17 + $0x14] sm:$0xf] }
  0x7d   : > { %1265 = vrot.lane.b32.xlu2 %v914_v10, %s5889_s18  ;;  %v1135_v55 = vrot.slane %v1134_v46, 4  ;;  %v580_v63 = vor.u32 %v578_v14, %v577_v58  ;;  %v582_v44 = vrot.slane %v577_v58, 4  ;;  %v284_v51 = vld [vmem:[#allocation2 + $0x2c] sm:$0x1]  ;;  %v363_v22 = vshrl.u32 %v6310_v61, 16 }
  0x7e   : > { %v1144_v42 = vrot.slane %v1142_v19, 4  ;;  %v1147_v2 = vrot.slane %v1145_v20, 5  ;;  %v285_v33 = vsel %vm5929_vm7, 0, %v284_v51  ;;  %v371_v54 = vshrl.u32 %v188_v40, 16  ;;  %v234_v23 = vld [vmem:[#allocation2 + $0x24] sm:$0x1] }
  0x7f   : > { %v858_v48 = vld [vmem:[#allocation2 + $0x80] sm:$0x1]  ;;  %v581_v43 = vsel %vm5976_vm10, %v573_v17, %v580_v63  ;;  %286 = vst [vmem:[#allocation2 + $0x2c] sm:$0x1] %v285_v33  ;;  %v365_v24 = vrot.slane %v363_v22, 7  ;;  %v374_v27 = vshll.u32 %v188_v40, 16 }
  0x80   : > { %v1148_v28 = vor.u32 %v1147_v2, %v1144_v42  ;;  %v1137_v29 = vshll.u32 %v858_v48, 16  ;;  %v6334_v31 = vld [vmem:[#allocation2 + $0x58] sm:$0xf]  ;;  %751 = vst.msk [vmem:[#allocation2 + $0xb8] sm:$0xf] %vm215_vm0, %v581_v43  ;;  %v373_v34 = vrot.slane %v371_v54, 7 }
  0x81   : > { %v752_v35 = vld [vmem:[#allocation2 + $0xbc] sm:$0x1]  ;;  %v366_v37 = vshll.u32 %v6310_v61, 16  ;;  %v369_v38 = vrot.slane %v365_v24, 4  ;;  %v235_v45 = vsel %vm5921_vm3, 0, %v234_v23  ;;  %v1055_v59 = vshll.u32 %v6334_v31, 16 }
  0x82   : > { %v1149_v16 = vrot.slane %v1148_v28, 4  ;;  %v1139_v47 = vrot.slane %v1137_v29, 5  ;;  %v847_v49 = vld [vmem:[#allocation2 + $0x54] sm:$0xf]  ;;  %v753_v50 = vsel %vm5921_vm3, %v582_v44, %v752_v35  ;;  %v376_v26 = vor.u32 %v374_v27, %v373_v34  ;;  %236 = vst [vmem:[#allocation2 + $0x24] sm:$0x1] %v235_v45 }
  0x83   : > { %v1046_v52 = vshrl.u32 %v847_v49, 16  ;;  %v1049_v57 = vshll.u32 %v847_v49, 16  ;;  %754 = vst [vmem:[#allocation2 + $0xbc] sm:$0x1] %v753_v50  ;;  %v378_v56 = vrot.slane %v373_v34, 4  ;;  %v368_v14 = vor.u32 %v366_v37, %v365_v24 }
  0x84   : > { %v1154_v12 = vsel %vm5982_vm11, %v1149_v16, %v6292_v25  ;;  %v1140_v11 = vsel %vm5982_vm11, %v1135_v55, %v1139_v47  ;;  %v685_v61 = vld [vmem:[#allocation2 + $0x48] sm:$0xf]  ;;  %v377_v0 = vsel %vm5976_vm10, %v369_v38, %v376_v26  ;;  %v281_v46 = vld [vmem:[#allocation2 + $0x20] sm:$0x1]  ;;  %v2754_v4 = vld [vmem:[#allocation2 + $0x18] sm:$0xf] }
  0x85   : > { %1305 = vrot.lane.b32.xlu0 %v1154_v12, %s5889_s18  ;;  %1303 = vrot.lane.b32.xlu2 %v1140_v11, %s5889_s18  ;;  %v1048_v21 = vrot.slane %v1046_v52, 4  ;;  %v1051_v6 = vrot.slane %v1049_v57, 5  ;;  %v686_v13 = vsel %vm5967_vm9, %v419_v36, %v685_v61  ;;  %667 = vst.msk [vmem:[#allocation2 + $0x28] sm:$0xf] %vm215_vm0, %v377_v0  ;;  %v282_v25 = vsel %vm5929_vm7, 0, %v281_v46  ;;  %v5817_v36 = vld [vmem:[%s8019_s1 + $0x38] sm:$0xff] }
  0x86   : > { %687 = vst [vmem:[#allocation2 + $0x48] sm:$0xf] %v686_v13  ;;  %v668_v17 = vld [vmem:[#allocation2 + $0x2c] sm:$0x1]  ;;  %v6360_v5 = vrot.slane %v1055_v59, 5  ;;  %v939_v10 = vshrl.u32 %v6240_v15, 16  ;;  %4419 = vmatpush.bf16.msra.mxu0 %v5817_v36  ;;  %5846 = vmatpush.bf16.msra.mxu1 %v5817_v36 }
  0x87   : > { %v1052_v8 = vor.u32 %v1051_v6, %v1048_v21  ;;  %v872_v58 = vld [vmem:[#allocation2 + $0xb8] sm:$0xf]  ;;  %v669_v7 = vsel %vm5921_vm3, %v378_v56, %v668_v17  ;;  %283 = vst [vmem:[#allocation2 + $0x20] sm:$0x1] %v282_v25  ;;  %v2803_v40 = vshrl.u32 %v2754_v4, 16  ;;  %v2806_v2 = vshll.u32 %v2754_v4, 16  ;;  %5847 = vmatpush.bf16.msra.mxu2 %v5817_v36  ;;  %5848 = vmatpush.bf16.msra.mxu3 %v5817_v36 }
  0x88   : > { %v1247_v19 = vshll.u32 %v872_v58, 16  ;;  %v1251_v20 = vshrl.u32 %v872_v58, 16  ;;  %670 = vst [vmem:[#allocation2 + $0x2c] sm:$0x1] %v669_v7  ;;  %v361_v15 = vrot.slane %v6190_v9, 4  ;;  %v941_v43 = vrot.slane %v939_v10, 4 }
  0x89   : > { %v1053_v55 = vrot.slane %v1052_v8, 4  ;;  %v664_v63 = vld [vmem:[#allocation2 + $0x24] sm:$0xf]  ;;  %v2805_v24 = vrot.slane %v2803_v40, 4  ;;  %v6375_v35 = vld [vmem:[#allocation2 + $0x1c] sm:$0xf] }
  0x8a   : > { %v873_v44 = vld [vmem:[#allocation2 + $0xbc] sm:$0x1]  ;;  %v6365_v51 = vrot.slane %v1247_v19, 5  ;;  %v1253_v22 = vrot.slane %v1251_v20, 4  ;;  %v665_v42 = vsel %vm5967_vm9, %v368_v14, %v664_v63  ;;  %v2808_v16 = vrot.slane %v2806_v2, 5  ;;  %v5816_v52 = vld [vmem:[%s8019_s1 + $0x30] sm:$0xff] }
  0x8b   : > { %v1058_v33 = vsel %vm5982_vm11, %v1053_v55, %v6360_v5  ;;  %v1257_v54 = vshll.u32 %v873_v44, 16  ;;  %666 = vst [vmem:[#allocation2 + $0x24] sm:$0xf] %v665_v42  ;;  %v942_v61 = vor.u32 %v941_v43, %v6262_v53  ;;  %v270_v0 = vld [vmem:[#allocation2 + $0xb4] sm:$0x1]  ;;  %v2812_v13 = vshll.u32 %v6375_v35, 16  ;;  %4420 = vmatpush.bf16.msra.mxu0 %v5816_v52  ;;  %5849 = vmatpush.bf16.msra.mxu1 %v5816_v52 }
  0x8c   : > { %1289 = vrot.lane.b32.xlu1 %v1058_v33, %s5889_s18  ;;  %v1254_v23 = vor.u32 %v1253_v22, %v6365_v51  ;;  %v836_v48 = vld [vmem:[#allocation2 + $0x28] sm:$0xf]  ;;  %v2809_v6 = vor.u32 %v2808_v16, %v2805_v24  ;;  %v271_v8 = vsel %vm5921_vm3, 0, %v270_v0  ;;  %v570_v58 = vshll.u32 %v6280_v18, 16  ;;  %5850 = vmatpush.bf16.msra.mxu2 %v5816_v52  ;;  %v296_v40 = vld [vmem:[#allocation2 + $0x5c] sm:$0x1] }
  0x8d   : > { %v1259_v27 = vrot.slane %v1257_v54, 5  ;;  %v844_v28 = vld [vmem:[#allocation2 + $0x48] sm:$0xf]  ;;  %v959_v29 = vshll.u32 %v836_v48, 16  ;;  %v963_v34 = vshrl.u32 %v836_v48, 16  ;;  %5851 = vmatpush.bf16.msra.mxu3 %v5816_v52  ;;  %v943_v20 = vrot.slane %v942_v61, 4 }
  0x8e   : > { %v1255_v37 = vrot.slane %v1254_v23, 4  ;;  %v1022_v38 = vshrl.u32 %v844_v28, 16  ;;  %v1025_v9 = vshll.u32 %v844_v28, 16  ;;  %v661_v45 = vld [vmem:[#allocation2 + $0x20] sm:$0x1]  ;;  %v5815_v55 = vld [vmem:[%s8019_s1 + $0x28] sm:$0xff]  ;;  %v572_v23 = vor.u32 %v570_v58, %v6307_v60 }
  0x8f   : > { %v837_v47 = vld [vmem:[#allocation2 + $0x2c] sm:$0x1]  ;;  %v6380_v49 = vrot.slane %v959_v29, 5  ;;  %v965_v50 = vrot.slane %v963_v34, 4  ;;  %v662_v26 = vsel %vm5921_vm3, %v361_v15, %v661_v45  ;;  %272 = vst [vmem:[#allocation2 + $0xb4] sm:$0x1] %v271_v8  ;;  %4421 = vmatpush.bf16.msra.mxu0 %v5815_v55  ;;  %5852 = vmatpush.bf16.msra.mxu1 %v5815_v55  ;;  %v1278_v48 = vpop.permute.xlu2 %1277 }
  0x90   : > { %v1260_v57 = vsel %vm5982_vm11, %v1255_v37, %v1259_v27  ;;  %v1024_v59 = vrot.slane %v1022_v38, 4  ;;  %v1027_v56 = vrot.slane %v1025_v9, 5  ;;  %v969_v12 = vshll.u32 %v837_v47, 16  ;;  %663 = vst [vmem:[#allocation2 + $0x20] sm:$0x1] %v662_v26  ;;  %5853 = vmatpush.bf16.msra.mxu2 %v5815_v55  ;;  %v5812_v61 = vld [vmem:[%s8019_s1 + $0x10] sm:$0xff] }
  0x91   : > { %1323 = vrot.lane.b32.xlu0 %v1260_v57, %s5889_s18  ;;  %v966_v11 = vor.u32 %v965_v50, %v6380_v49  ;;  %v6405_v18 = vrot.slane %v2812_v13, 5  ;;  %v6407_v44 = vld [vmem:[#allocation2 + $0x10] sm:$0xf]  ;;  %v297_v22 = vsel %vm5929_vm7, 0, %v296_v40  ;;  %v2810_v54 = vrot.slane %v2809_v6, 4  ;;  %5854 = vmatpush.bf16.msra.mxu3 %v5815_v55 }
  0x92   : > { %v1028_v46 = vor.u32 %v1027_v56, %v1024_v59  ;;  %v971_v4 = vrot.slane %v969_v12, 5  ;;  %v835_v21 = vld [vmem:[#allocation2 + $0x24] sm:$0xf]  ;;  %v770_v42 = vld [vmem:[#allocation2 + $0x30] sm:$0xf]  ;;  %v2451_v28 = vrot.slane %v6407_v44, 5  ;;  %v1264_v56 = vpop.permute.xlu1 %1263 }
  0x93   : > { %v967_v25 = vrot.slane %v966_v11, 4  ;;  %v950_v17 = vshrl.u32 %v835_v21, 16  ;;  %v953_v14 = vshll.u32 %v835_v21, 16  ;;  %298 = vst [vmem:[#allocation2 + $0x5c] sm:$0x1] %v297_v22  ;;  %vm1486_vm13 = vcmask 1042432  }
  0x94   : > { %v1029_v7 = vrot.slane %v1028_v46, 4  ;;  %802 = vst.msk [vmem:[#allocation3 + $0xa0] sm:$0xf] %vm215_vm0, %v770_v42  ;;  %v2757_v43 = vld [vmem:[#allocation2 + $0x24] sm:$0xf]  ;;  %v2815_v37 = vsel %vm5982_vm11, %v2810_v54, %v6405_v18  ;;  %vm1487_vm14 = vcmask 1046532  }
  0x95   : > { %v972_v53 = vsel %vm5982_vm11, %v967_v25, %v971_v4  ;;  %v952_v10 = vrot.slane %v950_v17, 4  ;;  %v955_v19 = vrot.slane %v953_v14, 5  ;;  %v2355_v27 = vld [vmem:[#allocation2 + $0x14] sm:$0x1]  ;;  %1366 = vst.msk [vmem:[#allocation3 + $0xa0] sm:$0xf] %vm1357_vm12, %v1278_v48  ;;  %vm6441_vm15 = vmor %vm1486_vm13, %vm1487_vm14  ;;  %v1262_v4 = vpop.permute.xlu0 %1261 }
  0x96   : > { %v1034_v63 = vsel %vm5982_vm11, %v1029_v7, %v6267_v62  ;;  %1275 = vrot.lane.b32.xlu1 %v972_v53, %s5889_s18  ;;  %v5814_v62 = vld [vmem:[%s8019_s1 + $0x20] sm:$0xff]  ;;  %v2827_v34 = vshrl.u32 %v2757_v43, 16  ;;  %v2830_v36 = vshll.u32 %v2757_v43, 16  ;;  %v748_v38 = vld [vmem:[#allocation2 + $0xb4] sm:$0xf]  ;;  %v446_v9 = vrot.slane %v6288_v32, 4 }
  0x97   : > { %1285 = vrot.lane.b32.xlu2 %v1034_v63, %s5889_s18  ;;  %v956_v2 = vor.u32 %v955_v19, %v952_v10  ;;  %v834_v33 = vld [vmem:[#allocation2 + $0x20] sm:$0x1]  ;;  %4422 = vmatpush.bf16.msra.mxu0 %v5814_v62  ;;  %v2454_v16 = vrot.slane %v2355_v27, 5  ;;  %v749_v47 = vsel %vm5967_vm9, %v572_v23, %v748_v38  ;;  %v6433_v50 = vld [vmem:[#allocation2 + $0x28] sm:$0xf]  ;;  %v5813_v32 = vld [vmem:[%s8019_s1 + $0x18] sm:$0xff]  ;;  %v1280_v17 = vpop.permute.xlu2 %1279 }
  0x98   : > { %v945_v15 = vshll.u32 %v834_v33, 16  ;;  %5855 = vmatpush.bf16.msra.mxu1 %v5814_v62  ;;  %750 = vst [vmem:[#allocation2 + $0xb4] sm:$0xf] %v749_v47  ;;  %5856 = vmatpush.bf16.msra.mxu2 %v5814_v62  ;;  %v2829_v57 = vrot.slane %v2827_v34, 4  ;;  %v2832_v59 = vrot.slane %v2830_v36, 5  ;;  %v1059_v46 = vshrl.u32 %v6334_v31, 16 }
  0x99   : > { %v957_v24 = vrot.slane %v956_v2, 4  ;;  %5857 = vmatpush.bf16.msra.mxu3 %v5814_v62  ;;  %v763_v12 = vld [vmem:[#allocation2 + $0x4] sm:$0xf]  ;;  %v762_v0 = vld [vmem:[#allocation2] sm:$0xf]  ;;  %v2836_v25 = vshll.u32 %v6433_v50, 16 }
  0x9a   : > { %v947_v29 = vrot.slane %v945_v15, 5  ;;  %v696_v52 = vld [vmem:[#allocation2 + $0x5c] sm:$0x1]  ;;  %795 = vst.msk [vmem:[#allocation3 + $0x14] sm:$0xf] %vm215_vm0, %v763_v12  ;;  %v2833_v13 = vor.u32 %v2832_v59, %v2829_v57  ;;  %v1061_v8 = vrot.slane %v1059_v46, 4 }
  0x9b   : > { %v962_v60 = vsel %vm5982_vm11, %v957_v24, %v6380_v49  ;;  %v2453_v49 = vrot.slane %v2451_v28, 4  ;;  %v697_v11 = vsel %vm5921_vm3, %v446_v9, %v696_v52  ;;  %4423 = vmatpush.bf16.msra.mxu0 %v5813_v32  ;;  %1359 = vst.msk [vmem:[#allocation3 + $0x14] sm:$0xf] %vm1357_vm12, %v1264_v56  ;;  %v771_v6 = vld [vmem:[#allocation2 + $0x34] sm:$0xf]  ;;  %v5811_v53 = vld [vmem:[%s8019_s1 + $0x8] sm:$0xff] }
  0x9c   : > { %1273 = vrot.lane.b32.xlu0 %v962_v60, %s5889_s18  ;;  %v948_v45 = vsel %vm5982_vm11, %v943_v20, %v947_v29  ;;  %698 = vst [vmem:[#allocation2 + $0x5c] sm:$0x1] %v697_v11  ;;  %5858 = vmatpush.bf16.msra.mxu1 %v5813_v32  ;;  %v1666_v14 = vld [vmem:[#allocation2 + $0x10] sm:$0xf]  ;;  %v2834_v10 = vrot.slane %v2833_v13, 4  ;;  %v6466_v19 = vrot.slane %v2836_v25, 5  ;;  %v1062_v2 = vor.u32 %v1061_v8, %v6360_v5 }
  0x9d   : > { %v2455_v21 = vsel %vm6441_vm15, %v2453_v49, %v2454_v16  ;;  %5859 = vmatpush.bf16.msra.mxu2 %v5813_v32  ;;  %5860 = vmatpush.bf16.msra.mxu3 %v5813_v32  ;;  %794 = vst.msk [vmem:[#allocation3] sm:$0xf] %vm215_vm0, %v762_v0  ;;  %v6468_v20 = vld [vmem:[#allocation2 + $0x1c] sm:$0xf]  ;;  %v2760_v40 = vld [vmem:[#allocation2 + $0x30] sm:$0xf] }
  0x9e   : > { %3186 = vrot.lane.b32.xlu1 %v2815_v37, %s5889_s18  ;;  %1358 = vst.msk [vmem:[#allocation3] sm:$0xf] %vm1357_vm12, %v1262_v4  ;;  %v5810_v22 = vld [vmem:[%s8019_s1] sm:$0xff]  ;;  %v1665_v62 = vld [vmem:[#allocation2 + $0xc] sm:$0xf]  ;;  %v2458_v15 = vrot.slane %v6468_v20, 5  ;;  %v2839_v48 = vsel %vm5982_vm11, %v2834_v10, %v6466_v19 }
  0x9f   : > { %1271 = vrot.lane.b32.xlu2 %v948_v45, %s5889_s18  ;;  %4424 = vmatpush.bf16.msra.mxu0 %v5812_v61  ;;  %v871_v31 = vld [vmem:[#allocation2 + $0xb4] sm:$0xf]  ;;  %803 = vst.msk [vmem:[#allocation3 + $0xb4] sm:$0xf] %vm215_vm0, %v771_v6  ;;  %v2851_v23 = vshrl.u32 %v2760_v40, 16  ;;  %v2854_v5 = vshll.u32 %v2760_v40, 16  ;;  %v1310_v45 = vpop.permute.xlu1 %1309 }
  0xa0   : > { %5861 = vmatpush.bf16.msra.mxu1 %v5812_v61  ;;  %v1238_v58 = vshrl.u32 %v871_v31, 16  ;;  %v1241_v7 = vshll.u32 %v871_v31, 16  ;;  %1367 = vst.msk [vmem:[#allocation3 + $0xb4] sm:$0xf] %vm1357_vm12, %v1280_v17  ;;  %v2358_v43 = vld [vmem:[#allocation2 + $0x20] sm:$0x1] }
  0xa1   : > { %5862 = vmatpush.bf16.msra.mxu2 %v5812_v61  ;;  %5863 = vmatpush.bf16.msra.mxu3 %v5812_v61  ;;  %v1063_v36 = vrot.slane %v1062_v2, 4  ;;  %v2460_v37 = vrot.slane %v2458_v15, 4  ;;  %v2461_v38 = vrot.slane %v2358_v43, 5  ;;  %v2853_v9 = vrot.slane %v2851_v23, 4  ;;  %v786_v16 = vld [vmem:[#allocation2 + $0x90] sm:$0xf] }
  0xa2   : > { %v1240_v55 = vrot.slane %v1238_v58, 4  ;;  %v1243_v63 = vrot.slane %v1241_v7, 5  ;;  %v5732_v33 = vld [vmem:[#allocation3 + $0x10] sm:$0xf0]  ;;  %v778_v49 = vld [vmem:[#allocation2 + $0x60] sm:$0xf] }
  0xa3   : > { %4425 = vmatpush.bf16.msra.mxu0 %v5811_v53  ;;  %v849_v42 = vld [vmem:[#allocation2 + $0x5c] sm:$0x1]  ;;  %v5328_v32 = vld [vmem:[#allocation3 + $0xa0] sm:$0xf]  ;;  %v2856_v57 = vrot.slane %v2854_v5, 5  ;;  %v2816_v12 = vshrl.u32 %v6375_v35, 16  ;;  %v2462_v11 = vsel %vm6441_vm15, %v2460_v37, %v2461_v38 }
  0xa4   : > { %2563 = vrot.lane.b32.xlu0 %v2455_v21, %s5889_s18  ;;  %5864 = vmatpush.bf16.msra.mxu1 %v5811_v53  ;;  %v1244_v54 = vor.u32 %v1243_v63, %v1240_v55  ;;  %v1065_v29 = vshll.u32 %v849_v42, 16  ;;  %v1294_v47 = vpop.permute.xlu0 %1293  ;;  %818 = vst.msk [vmem:[#allocation3 + $0x1e0] sm:$0xf] %vm215_vm0, %v786_v16  ;;  %v6487_v59 = vld [vmem:[#allocation2 + $0x34] sm:$0xf]  ;;  %v2840_v23 = vshrl.u32 %v6433_v50, 16 }
  0xa5   : > { %5865 = vmatpush.bf16.msra.mxu2 %v5811_v53  ;;  %5866 = vmatpush.bf16.msra.mxu3 %v5811_v53  ;;  %v5248_v24 = vld [vmem:[#allocation3] sm:$0xf]  ;;  %1382 = vst.msk [vmem:[#allocation3 + $0x1e0] sm:$0xf] %vm1357_vm12, %v1310_v45  ;;  %v2353_v61 = vld [vmem:[#allocation2 + $0xc] sm:$0xe]  ;;  %v2857_v4 = vor.u32 %v2856_v57, %v2853_v9 }
  0xa6   : > { %1731 = vrot.lane.b32.xlu1 %v1666_v14, %s5889_s18  ;;  %v1245_v27 = vrot.slane %v1244_v54, 4  ;;  %v5249_v34 = vor.u32 %v5732_v33, %v5248_v24  ;;  %v1067_v52 = vrot.slane %v1065_v29, 5  ;;  %810 = vst.msk [vmem:[#allocation3 + $0x140] sm:$0xf] %vm215_vm0, %v778_v49  ;;  %v1668_v46 = vld [vmem:[#allocation2 + $0x1c] sm:$0xf] }
  0xa7   : > { %4426 = vmatpush.bf16.msra.mxu0 %v5810_v22  ;;  %1374 = vst.msk [vmem:[#allocation3 + $0x140] sm:$0xf] %vm1357_vm12, %v1294_v47  ;;  %v2860_v21 = vshll.u32 %v6487_v59, 16  ;;  %v5214_v6 = vrot.slane %v2353_v61, 9  ;;  %v2756_v35 = vld [vmem:[#allocation2 + $0x20] sm:$0x1]  ;;  %v1312_v14 = vpop.permute.xlu1 %1311 }
  0xa8   : > { %5867 = vmatpush.bf16.msra.mxu1 %v5810_v22  ;;  %v1250_v60 = vsel %vm5982_vm11, %v1245_v27, %v6365_v51  ;;  %v5752_v51 = vld [vmem:[#allocation3 + $0xb0] sm:$0xf0]  ;;  %v1068_v0 = vsel %vm5982_vm11, %v1063_v36, %v1067_v52  ;;  %v2818_v13 = vrot.slane %v2816_v12, 4  ;;  %v6501_v25 = vld [vmem:[#allocation2 + $0x28] sm:$0xf]  ;;  %v2858_v58 = vrot.slane %v2857_v4, 4 }
  0xa9   : > { %5868 = vmatpush.bf16.msra.mxu2 %v5810_v22  ;;  %5869 = vmatpush.bf16.msra.mxu3 %v5810_v22  ;;  %v5329_v56 = vor.u32 %v5752_v51, %v5328_v32  ;;  %v787_v17 = vld [vmem:[#allocation2 + $0x94] sm:$0xf]  ;;  %v779_v31 = vld [vmem:[#allocation2 + $0x64] sm:$0xf]  ;;  %v6503_v7 = vrot.slane %v2860_v21, 5  ;;  %v2822_v63 = vshll.u32 %v2756_v35, 16 }
  0xaa   : > { %1321 = vrot.lane.b32.xlu2 %v1250_v60, %s5889_s18  ;;  %4427 = vmatmul.bf16.vlgmr.msra.gmra.mxu0 %v5249_v34  ;;  %819 = vst.msk [vmem:[#allocation3 + $0x1f4] sm:$0xf] %vm215_vm0, %v787_v17  ;;  %v2763_v53 = vld [vmem:[#allocation2 + $0x3c] sm:$0xf]  ;;  %v780_v10 = vld [vmem:[#allocation2 + $0x6c] sm:$0xf]  ;;  %v2819_v55 = vor.u32 %v2818_v13, %v6405_v18 }
  0xab   : > { %4447 = vmatmul.bf16.vlgmr.msra.gmra.mxu1 %v5329_v56  ;;  %1383 = vst.msk [vmem:[#allocation3 + $0x1f4] sm:$0xf] %vm1357_vm12, %v1312_v14  ;;  %v1667_v40 = vld [vmem:[#allocation2 + $0x18] sm:$0xf]  ;;  %v2465_v22 = vrot.slane %v6501_v25, 5  ;;  %v2875_v33 = vshrl.u32 %v2763_v53, 16  ;;  %v2863_v18 = vsel %vm5982_vm11, %v2858_v58, %v6503_v7 }
  0xac   : > { %1729 = vrot.lane.b32.xlu0 %v1665_v62, %s5889_s18  ;;  %v1296_v8 = vpop.permute.xlu0 %1295  ;;  %811 = vst.msk [vmem:[#allocation3 + $0x154] sm:$0xf] %vm215_vm0, %v779_v31  ;;  %v2361_v42 = vld [vmem:[#allocation2 + $0x2c] sm:$0x1]  ;;  %v2878_v54 = vshll.u32 %v2763_v53, 16  ;;  %v2452_v62 = vsel %vm6441_vm15, %v5214_v6, %v2451_v28  ;;  %v2824_v43 = vrot.slane %v2822_v63, 5 }
  0xad   : > { %1375 = vst.msk [vmem:[#allocation3 + $0x154] sm:$0xf] %vm1357_vm12, %v1296_v8  ;;  %v2467_v44 = vrot.slane %v2465_v22, 4  ;;  %v2468_v24 = vrot.slane %v2361_v42, 5  ;;  %v2877_v28 = vrot.slane %v2875_v33, 4  ;;  %vm4370_vm1 = vcmask 523264  }
  0xae   : > { %3190 = vrot.lane.b32.xlu1 %v2839_v48, %s5889_s18  ;;  %812 = vst.msk [vmem:[#allocation3 + $0x168] sm:$0xf] %vm215_vm0, %v780_v10  ;;  %v2820_v48 = vrot.slane %v2819_v55, 4  ;;  %v2880_v27 = vrot.slane %v2878_v54, 5  ;;  %v788_v29 = vld [vmem:[#allocation2 + $0x9c] sm:$0xf] }
  0xaf   : > { %v781_v5 = vld [vmem:[#allocation2 + $0x70] sm:$0xf]  ;;  %v2356_v36 = vld [vmem:[#allocation2 + $0x18] sm:$0xe]  ;;  %820 = vst.msk [vmem:[#allocation3 + $0x208] sm:$0xf] %vm215_vm0, %v788_v29  ;;  %v2469_v16 = vsel %vm6441_vm15, %v2467_v44, %v2468_v24 }
  0xb0   : > { %v1314_v34 = vpop.permute.xlu1 %1313  ;;  %v5488_v60 = vld [vmem:[#allocation3 + $0x1e0] sm:$0xf]  ;;  %v6527_v38 = vld [vmem:[#allocation2 + $0x40] sm:$0xf]  ;;  %813 = vst.msk [vmem:[#allocation3 + $0x17c] sm:$0xf] %vm215_vm0, %v781_v5  ;;  %v2825_v52 = vsel %vm5982_vm11, %v2820_v48, %v2824_v43  ;;  %v2881_v51 = vor.u32 %v2880_v27, %v2877_v28 }
  0xb1   : > { %1384 = vst.msk [vmem:[#allocation3 + $0x208] sm:$0xf] %vm1357_vm12, %v1314_v34  ;;  %v789_v9 = vld [vmem:[#allocation2 + $0xa0] sm:$0xf]  ;;  %v5408_v47 = vld [vmem:[#allocation3 + $0x140] sm:$0xf] }
  0xb2   : > { %1291 = vrot.lane.b32.xlu2 %v1068_v0, %s5889_s18  ;;  %v5792_v37 = vld [vmem:[#allocation3 + $0x1f0] sm:$0xf0]  ;;  %v1670_v57 = vld [vmem:[#allocation2 + $0x28] sm:$0xf]  ;;  %v2884_v56 = vshll.u32 %v6527_v38, 16  ;;  %v5215_v12 = vrot.slane %v2356_v36, 9 }
  0xb3   : > { %v5489_v45 = vor.u32 %v5792_v37, %v5488_v60  ;;  %821 = vst.msk [vmem:[#allocation3 + $0x21c] sm:$0xf] %vm215_vm0, %v789_v9  ;;  %v2759_v0 = vld [vmem:[#allocation2 + $0x2c] sm:$0x1]  ;;  %v773_v21 = vld [vmem:[#allocation2 + $0x40] sm:$0xf] }
  0xb4   : > { %2567 = vrot.lane.b32.xlu0 %v2462_v11, %s5889_s18  ;;  %v5772_v49 = vld [vmem:[#allocation3 + $0x150] sm:$0xf0]  ;;  %v2842_v11 = vrot.slane %v2840_v23, 4  ;;  %v772_v6 = vld [vmem:[#allocation2 + $0x3c] sm:$0xf]  ;;  %v2882_v17 = vrot.slane %v2881_v51, 4  ;;  %v2459_v42 = vsel %vm6441_vm15, %v5215_v12, %v2458_v15 }
  0xb5   : > { %v1298_v2 = vpop.permute.xlu2 %1297  ;;  %v5409_v32 = vor.u32 %v5772_v49, %v5408_v47  ;;  %4487 = vmatmul.bf16.vlgmr.msra.gmra.mxu3 %v5489_v45  ;;  %v2766_v35 = vld [vmem:[#allocation2 + $0x48] sm:$0xf]  ;;  %v1669_v13 = vld [vmem:[#allocation2 + $0x24] sm:$0xf]  ;;  %v6544_v14 = vrot.slane %v2884_v56, 5  ;;  %v2846_v8 = vshll.u32 %v2759_v0, 16 }
  0xb6   : > { %1735 = vrot.lane.b32.xlu1 %v1668_v46, %s5889_s18  ;;  %1376 = vst.msk [vmem:[#allocation3 + $0x168] sm:$0xf] %vm1357_vm12, %v1298_v2  ;;  %v6539_v46 = vld [vmem:[#allocation2 + $0x34] sm:$0xf]  ;;  %v2843_v31 = vor.u32 %v2842_v11, %v6466_v19  ;;  %v764_v53 = vld [vmem:[#allocation2 + $0xc] sm:$0xf] }
  0xb7   : > { %4467 = vmatmul.bf16.vlgmr.msra.gmra.mxu2 %v5409_v32  ;;  %805 = vst.msk [vmem:[#allocation3 + $0xdc] sm:$0xf] %vm215_vm0, %v773_v21  ;;  %v2364_v10 = vld [vmem:[#allocation2 + $0x38] sm:$0x1]  ;;  %v2899_v55 = vshrl.u32 %v2766_v35, 16  ;;  %v2902_v63 = vshll.u32 %v2766_v35, 16  ;;  %v2887_v19 = vsel %vm5982_vm11, %v2882_v17, %v6544_v14 }
  0xb8   : > { %804 = vst.msk [vmem:[#allocation3 + $0xc8] sm:$0xf] %vm215_vm0, %v772_v6  ;;  %v2864_v2 = vshrl.u32 %v6487_v59, 16  ;;  %v2844_v33 = vrot.slane %v2843_v31, 4  ;;  %v2848_v54 = vrot.slane %v2846_v8, 5  ;;  %v5833_v59 = vld [vmem:[%s8019_s1 + $0xb8] sm:$0xff] }
  0xb9   : > { %796 = vst.msk [vmem:[#allocation3 + $0x28] sm:$0xf] %vm215_vm0, %v764_v53  ;;  %v2901_v20 = vrot.slane %v2899_v55, 4  ;;  %v5508_v23 = vld [vmem:[#allocation3 + $0x208] sm:$0xf]  ;;  %v2904_v43 = vrot.slane %v2902_v63, 5  ;;  %4597 = vmatpush.bf16.msrb.mxu2 %v5833_v59 }
  0xba   : > { %2561 = vrot.lane.b32.xlu2 %v2452_v62, %s5889_s18  ;;  %v2475_v62 = vrot.slane %v2364_v10, 5  ;;  %v6566_v15 = vld [vmem:[#allocation2 + $0x4c] sm:$0xf]  ;;  %v782_v44 = vld [vmem:[#allocation2 + $0x78] sm:$0xf]  ;;  %v2849_v49 = vsel %vm5982_vm11, %v2844_v33, %v2848_v54  ;;  %v2866_v56 = vrot.slane %v2864_v2, 4 }
  0xbb   : > { %v765_v28 = vld [vmem:[#allocation2 + $0x10] sm:$0xf]  ;;  %814 = vst.msk [vmem:[#allocation3 + $0x190] sm:$0xf] %vm215_vm0, %v782_v44  ;;  %v5841_v27 = vld [vmem:[%s8019_s1 + $0xf8] sm:$0xff]  ;;  %v5831_v44 = vld [vmem:[%s8019_s1 + $0xa8] sm:$0xff] }
  0xbc   : > { %1733 = vrot.lane.b32.xlu0 %v1667_v40, %s5889_s18  ;;  %v2472_v40 = vrot.slane %v6539_v46, 5  ;;  %v5825_v34 = vld [vmem:[%s8019_s1 + $0x78] sm:$0xff]  ;;  %797 = vst.msk [vmem:[#allocation3 + $0x3c] sm:$0xf] %vm215_vm0, %v765_v28  ;;  %4686 = vmatpush.bf16.msrb.mxu3 %v5841_v27  ;;  %v2359_v45 = vld [vmem:[#allocation2 + $0x24] sm:$0xe]  ;;  %v2867_v53 = vor.u32 %v2866_v56, %v6503_v7 }
  0xbd   : > { %4508 = vmatpush.bf16.msrb.mxu1 %v5825_v34  ;;  %v5428_v47 = vld [vmem:[#allocation3 + $0x168] sm:$0xf]  ;;  %v1672_v32 = vld [vmem:[#allocation2 + $0x34] sm:$0xf]  ;;  %v2762_v12 = vld [vmem:[#allocation2 + $0x38] sm:$0x1] }
  0xbe   : > { %3194 = vrot.lane.b32.xlu1 %v2863_v18, %s5889_s18  ;;  %v1300_v50 = vpop.permute.xlu0 %1299  ;;  %v2474_v18 = vrot.slane %v2472_v40, 4  ;;  %v6588_v11 = vld [vmem:[#allocation2 + $0x40] sm:$0xf]  ;;  %v5216_v0 = vrot.slane %v2359_v45, 9  ;;  %v791_v21 = vld [vmem:[#allocation2 + $0xac] sm:$0xf] }
  0xbf   : > { %1377 = vst.msk [vmem:[#allocation3 + $0x17c] sm:$0xf] %vm1357_vm12, %v1300_v50  ;;  %v783_v50 = vld [vmem:[#allocation2 + $0x7c] sm:$0xf]  ;;  %v790_v6 = vld [vmem:[#allocation2 + $0xa8] sm:$0xf] }
  0xc0   : > { %v2476_v37 = vsel %vm6441_vm15, %v2474_v18, %v2475_v62  ;;  %815 = vst.msk [vmem:[#allocation3 + $0x1a4] sm:$0xf] %vm215_vm0, %v783_v50  ;;  %v1671_v35 = vld [vmem:[#allocation2 + $0x30] sm:$0xf]  ;;  %v2870_v10 = vshll.u32 %v2762_v12, 16  ;;  %v2466_v54 = vsel %vm6441_vm15, %v5216_v0, %v2465_v22  ;;  %v2868_v18 = vrot.slane %v2867_v53, 4 }
  0xc1   : > { %823 = vst.msk [vmem:[#allocation3 + $0x244] sm:$0xf] %vm215_vm0, %v791_v21  ;;  %v5840_v8 = vld [vmem:[%s8019_s1 + $0xf0] sm:$0xff]  ;;  %v774_v55 = vld [vmem:[#allocation2 + $0x48] sm:$0xf]  ;;  %v5830_v21 = vld [vmem:[%s8019_s1 + $0xa0] sm:$0xff] }
  0xc2   : > { %3188 = vrot.lane.b32.xlu2 %v2825_v52, %s5889_s18  ;;  %v1284_v4 = vpop.permute.xlu1 %1283  ;;  %v2905_v52 = vor.u32 %v2904_v43, %v2901_v20  ;;  %v5824_v63 = vld [vmem:[%s8019_s1 + $0x70] sm:$0xff]  ;;  %822 = vst.msk [vmem:[#allocation3 + $0x230] sm:$0xf] %vm215_vm0, %v790_v6  ;;  %4687 = vmatpush.bf16.msrb.mxu3 %v5840_v8  ;;  %v2872_v20 = vrot.slane %v2870_v10, 5  ;;  %v6623_v59 = vld [vmem:[#allocation2 + $0x58] sm:$0xf] }
  0xc3   : > { %1369 = vst.msk [vmem:[#allocation3 + $0xdc] sm:$0xf] %vm1357_vm12, %v1284_v4  ;;  %v5832_v4 = vld [vmem:[%s8019_s1 + $0xb0] sm:$0xff]  ;;  %4509 = vmatpush.bf16.msrb.mxu1 %v5824_v63  ;;  %v775_v28 = vld [vmem:[#allocation2 + $0x4c] sm:$0xf]  ;;  %vm5098_vm2 = vcmask 1040384  }
  0xc4   : > { %2571 = vrot.lane.b32.xlu0 %v2469_v16, %s5889_s18  ;;  %v1316_v61 = vpop.permute.xlu2 %1315  ;;  %v2906_v17 = vrot.slane %v2905_v52, 4  ;;  %4598 = vmatpush.bf16.msrb.mxu2 %v5832_v4  ;;  %806 = vst.msk [vmem:[#allocation3 + $0xf0] sm:$0xf] %vm215_vm0, %v774_v55  ;;  %v767_v34 = vld [vmem:[#allocation2 + $0x1c] sm:$0xf]  ;;  %v5838_v55 = vld [vmem:[%s8019_s1 + $0xe0] sm:$0xff] }
  0xc5   : > { %1385 = vst.msk [vmem:[#allocation3 + $0x21c] sm:$0xf] %vm1357_vm12, %v1316_v61  ;;  %v2769_v61 = vld [vmem:[#allocation2 + $0x54] sm:$0xf]  ;;  %v2362_v45 = vld [vmem:[#allocation2 + $0x30] sm:$0xe] }
  0xc6   : > { %1739 = vrot.lane.b32.xlu1 %v1670_v57, %s5889_s18  ;;  %v5777_v29 = vld [vmem:[#allocation3 + $0x178] sm:$0xf0]  ;;  %v2908_v57 = vshll.u32 %v6566_v15, 16  ;;  %v2923_v33 = vshrl.u32 %v2769_v61, 16  ;;  %v2926_v7 = vshll.u32 %v2769_v61, 16 }
  0xc7   : > { %v5429_v51 = vor.u32 %v5777_v29, %v5428_v47  ;;  %807 = vst.msk [vmem:[#allocation3 + $0x104] sm:$0xf] %vm215_vm0, %v775_v28  ;;  %v1674_v47 = vld [vmem:[#allocation2 + $0x40] sm:$0xf]  ;;  %v2765_v0 = vld [vmem:[#allocation2 + $0x44] sm:$0x1] }
  0xc8   : > { %v6595_v31 = vrot.slane %v2908_v57, 5  ;;  %v2925_v25 = vrot.slane %v2923_v33, 4  ;;  %v2928_v22 = vrot.slane %v2926_v7, 5  ;;  %4599 = vmatpush.bf16.msrb.mxu2 %v5831_v44  ;;  %799 = vst.msk [vmem:[#allocation3 + $0x64] sm:$0xf] %vm215_vm0, %v767_v34  ;;  %v5844_v63 = vld [vmem:[%s8019_s1 + $0x110] sm:$0xff] }
  0xc9   : > { %v1282_v58 = vpop.permute.xlu0 %1281  ;;  %4472 = vmatmul.bf16.gmra.mxu2 %v5429_v51  ;;  %v6649_v51 = vld [vmem:[#allocation2 + $0x4c] sm:$0xf]  ;;  %v2772_v61 = vld [vmem:[#allocation2 + $0x60] sm:$0xf]  ;;  %v785_v6 = vld [vmem:[#allocation2 + $0x88] sm:$0xf] }
  0xca   : > { %1368 = vst.msk [vmem:[#allocation3 + $0xc8] sm:$0xf] %vm1357_vm12, %v1282_v58  ;;  %2565 = vrot.lane.b32.xlu2 %v2459_v42, %s5889_s18  ;;  %v1302_v24 = vpop.permute.xlu1 %1301  ;;  %v5757_v36 = vld [vmem:[#allocation3 + $0xd8] sm:$0xf0]  ;;  %v5845_v58 = vld [vmem:[%s8019_s1 + $0x118] sm:$0xff]  ;;  %v2911_v62 = vsel %vm5982_vm11, %v2906_v17, %v6595_v31  ;;  %v2950_v7 = vshll.u32 %v2772_v61, 16 }
  0xcb   : > { %1378 = vst.msk [vmem:[#allocation3 + $0x190] sm:$0xf] %vm1357_vm12, %v1302_v24  ;;  %v2367_v42 = vld [vmem:[#allocation2 + $0x44] sm:$0x1]  ;;  %4779 = vmatpush.bf16.msrb.mxu0 %v5845_v58  ;;  %v766_v24 = vld [vmem:[#allocation2 + $0x18] sm:$0xf] }
  0xcc   : > { %1737 = vrot.lane.b32.xlu0 %v1669_v13, %s5889_s18  ;;  %v5797_v48 = vld [vmem:[#allocation3 + $0x218] sm:$0xf0]  ;;  %798 = vst.msk [vmem:[#allocation3 + $0x50] sm:$0xf] %vm215_vm0, %v766_v24  ;;  %v784_v8 = vld [vmem:[#allocation2 + $0x84] sm:$0xf]  ;;  %4600 = vmatpush.bf16.msrb.mxu2 %v5830_v21 }
  0xcd   : > { %v5509_v60 = vor.u32 %v5797_v48, %v5508_v23  ;;  %v2482_v23 = vrot.slane %v2367_v42, 5  ;;  %817 = vst.msk [vmem:[#allocation3 + $0x1cc] sm:$0xf] %vm215_vm0, %v785_v6  ;;  %v2486_v58 = vrot.slane %v6649_v51, 5  ;;  %v792_v10 = vld [vmem:[#allocation2 + $0xb4] sm:$0xf] }
  0xce   : > { %3198 = vrot.lane.b32.xlu1 %v2887_v19, %s5889_s18  ;;  %v2479_v19 = vrot.slane %v6588_v11, 5  ;;  %816 = vst.msk [vmem:[#allocation3 + $0x1b8] sm:$0xf] %vm215_vm0, %v784_v8  ;;  %v5822_v42 = vld [vmem:[%s8019_s1 + $0x60] sm:$0xff]  ;;  %v2952_v44 = vrot.slane %v2950_v7, 5  ;;  %v5829_v24 = vld [vmem:[%s8019_s1 + $0x98] sm:$0xff] }
  0xcf   : > { %4492 = vmatmul.bf16.gmra.mxu3 %v5509_v60  ;;  %v5839_v60 = vld [vmem:[%s8019_s1 + $0xe8] sm:$0xff]  ;;  %824 = vst.msk [vmem:[#allocation3 + $0x258] sm:$0xf] %vm215_vm0, %v792_v10  ;;  %4780 = vmatpush.bf16.msrb.mxu0 %v5844_v63  ;;  %v2488_v46 = vrot.slane %v2486_v58, 4  ;;  %v776_v28 = vld [vmem:[#allocation2 + $0x54] sm:$0xf] }
  0xd0   : > { %v2481_v48 = vrot.slane %v2479_v19, 4  ;;  %4688 = vmatpush.bf16.msrb.mxu3 %v5839_v60  ;;  %4601 = vmatpush.bf16.msrb.mxu2 %v5829_v24  ;;  %808 = vst.msk [vmem:[#allocation3 + $0x118] sm:$0xf] %vm215_vm0, %v776_v28  ;;  %v5828_v8 = vld [vmem:[%s8019_s1 + $0x90] sm:$0xff]  ;;  %v1675_v10 = vld [vmem:[#allocation2 + $0x48] sm:$0xf] }
  0xd1   : > { %v1268_v5 = vpop.permute.xlu0 %1267  ;;  %v5348_v9 = vld [vmem:[#allocation3 + $0xc8] sm:$0xf] }
  0xd2   : > { %1361 = vst.msk [vmem:[#allocation3 + $0x3c] sm:$0xf] %vm1357_vm12, %v1268_v5  ;;  %v5349_v16 = vor.u32 %v5757_v36, %v5348_v9  ;;  %3192 = vrot.lane.b32.xlu2 %v2849_v49, %s5889_s18  ;;  %v2888_v5 = vshrl.u32 %v6527_v38, 16  ;;  %v2932_v36 = vshll.u32 %v6623_v59, 16  ;;  %v2483_v9 = vsel %vm6441_vm15, %v2481_v48, %v2482_v23  ;;  %v5448_v12 = vld [vmem:[#allocation3 + $0x190] sm:$0xf] }
  0xd3   : > { %v2929_v38 = vor.u32 %v2928_v22, %v2925_v25  ;;  %v5217_v49 = vrot.slane %v2362_v45, 9  ;;  %v2912_v23 = vshrl.u32 %v6566_v15, 16  ;;  %v5837_v45 = vld [vmem:[%s8019_s1 + $0xd8] sm:$0xff] }
  0xd4   : > { %2575 = vrot.lane.b32.xlu0 %v2476_v37, %s5889_s18  ;;  %4452 = vmatmul.bf16.gmra.mxu1 %v5349_v16  ;;  %v5823_v37 = vld [vmem:[%s8019_s1 + $0x68] sm:$0xff]  ;;  %v2873_v16 = vsel %vm5982_vm11, %v2868_v18, %v2872_v20  ;;  %v6647_v57 = vrot.slane %v2932_v36, 5  ;;  %v2894_v18 = vshll.u32 %v2765_v0, 16  ;;  %v777_v36 = vld [vmem:[#allocation2 + $0x58] sm:$0xf] }
  0xd5   : > { %4510 = vmatpush.bf16.msrb.mxu1 %v5823_v37  ;;  %v2930_v4 = vrot.slane %v2929_v38, 4  ;;  %4689 = vmatpush.bf16.msrb.mxu3 %v5838_v55  ;;  %v5821_v38 = vld [vmem:[%s8019_s1 + $0x58] sm:$0xff]  ;;  %809 = vst.msk [vmem:[#allocation3 + $0x12c] sm:$0xf] %vm215_vm0, %v777_v36  ;;  %v1859_v36 = vld [vmem:[#allocation2 + $0x14] sm:$0x1] }
  0xd6   : > { %1743 = vrot.lane.b32.xlu1 %v1672_v32, %s5889_s18  ;;  %v2890_v32 = vrot.slane %v2888_v5, 4  ;;  %v2896_v34 = vrot.slane %v2894_v18, 5  ;;  %v2365_v5 = vld [vmem:[#allocation2 + $0x3c] sm:$0xe]  ;;  %4602 = vmatpush.bf16.msrb.mxu2 %v5828_v8  ;;  %v5835_v8 = vld [vmem:[%s8019_s1 + $0xc8] sm:$0xff] }
  0xd7   : > { %v1266_v13 = vpop.permute.xlu2 %1265  ;;  %v2935_v20 = vsel %vm5982_vm11, %v2930_v4, %v6647_v57 }
  0xd8   : > { %1360 = vst.msk [vmem:[#allocation3 + $0x28] sm:$0xf] %vm1357_vm12, %v1266_v13  ;;  %v2370_v13 = vld [vmem:[#allocation2 + $0x50] sm:$0x1] }
  0xd9   : > { %v1320_v2 = vpop.permute.xlu1 %1319  ;;  %v5737_v43 = vld [vmem:[#allocation3 + $0x38] sm:$0xf0]  ;;  %v2489_v48 = vrot.slane %v2370_v13, 5  ;;  %4511 = vmatpush.bf16.msrb.mxu1 %v5822_v42  ;;  %4690 = vmatpush.bf16.msrb.mxu3 %v5837_v45  ;;  %v2373_v42 = vld [vmem:[#allocation2 + $0x5c] sm:$0x1]  ;;  %v5827_v45 = vld [vmem:[%s8019_s1 + $0x88] sm:$0xff] }
  0xda   : > { %1387 = vst.msk [vmem:[#allocation3 + $0x244] sm:$0xf] %vm1357_vm12, %v1320_v2  ;;  %2569 = vrot.lane.b32.xlu2 %v2466_v54, %s5889_s18  ;;  %v2947_v2 = vshrl.u32 %v2772_v61, 16  ;;  %v2473_v54 = vsel %vm6441_vm15, %v5217_v49, %v2472_v40  ;;  %v6684_v40 = vld [vmem:[#allocation2 + $0x64] sm:$0xf]  ;;  %v2496_v11 = vrot.slane %v2373_v42, 5  ;;  %4603 = vmatpush.bf16.msrb.mxu2 %v5827_v45 }
  0xdb   : > { %v2490_v37 = vsel %vm6441_vm15, %v2488_v46, %v2489_v48  ;;  %v1857_v61 = vld [vmem:[#allocation2 + $0xc] sm:$0xf] }
  0xdc   : > { %1741 = vrot.lane.b32.xlu0 %v1671_v35, %s5889_s18  ;;  %v1673_v35 = vld [vmem:[#allocation2 + $0x3c] sm:$0xf]  ;;  %v2949_v22 = vrot.slane %v2947_v2, 4  ;;  %v1906_v21 = vshrl.u32 %v1857_v61, 16  ;;  %v1909_v6 = vshll.u32 %v1857_v61, 16  ;;  %v5843_v48 = vld [vmem:[%s8019_s1 + $0x108] sm:$0xff] }
  0xdd   : > { %4512 = vmatpush.bf16.msrb.mxu1 %v5821_v38  ;;  %v768_v2 = vld [vmem:[#allocation2 + $0x24] sm:$0xf]  ;;  %4781 = vmatpush.bf16.msrb.mxu0 %v5843_v48  ;;  %v2690_v38 = vld [vmem:[#allocation2 + $0x18] sm:$0xf]  ;;  %v2960_v48 = vshrl.u32 %v6684_v40, 16 }
  0xde   : > { %3202 = vrot.lane.b32.xlu1 %v2911_v62, %s5889_s18  ;;  %v2891_v62 = vor.u32 %v2890_v32, %v6544_v14  ;;  %v1676_v32 = vld [vmem:[#allocation2 + $0x4c] sm:$0xf]  ;;  %v1908_v7 = vrot.slane %v1906_v21, 4  ;;  %800 = vst.msk [vmem:[#allocation3 + $0x78] sm:$0xf] %vm215_vm0, %v768_v2 }
  0xdf   : > { %v1304_v27 = vpop.permute.xlu2 %1303  ;;  %v5268_v29 = vld [vmem:[#allocation3 + $0x28] sm:$0xf]  ;;  %2722 = vst.msk [vmem:[#allocation3 + $0xc] sm:$0xf] %vm215_vm0, %v2690_v38 }
  0xe0   : > { %1379 = vst.msk [vmem:[#allocation3 + $0x1a4] sm:$0xf] %vm1357_vm12, %v1304_v27  ;;  %v5269_v50 = vor.u32 %v5737_v43, %v5268_v29  ;;  %v793_v27 = vld [vmem:[#allocation2 + $0xb8] sm:$0xf]  ;;  %v2892_v29 = vrot.slane %v2891_v62, 4 }
  0xe1   : > { %v5802_v33 = vld [vmem:[#allocation3 + $0x240] sm:$0xf0]  ;;  %825 = vst.msk [vmem:[#allocation3 + $0x26c] sm:$0xf] %vm215_vm0, %v793_v27 }
  0xe2   : > { %4432 = vmatmul.bf16.gmra.mxu0 %v5269_v50  ;;  %3196 = vrot.lane.b32.xlu2 %v2873_v16, %s5889_s18  ;;  %v6692_v50 = vld [vmem:[#allocation2 + $0x50] sm:$0x1]  ;;  %v2953_v16 = vor.u32 %v2952_v44, %v2949_v22  ;;  %v2897_v49 = vsel %vm5982_vm11, %v2892_v29, %v2896_v34 }
  0xe4   : > { %2579 = vrot.lane.b32.xlu0 %v2483_v9, %s5889_s18  ;;  %v1318_v52 = vpop.permute.xlu0 %1317  ;;  %v2956_v9 = vshll.u32 %v6684_v40, 16  ;;  %v5834_v40 = vld [vmem:[%s8019_s1 + $0xc0] sm:$0xff] }
  0xe5   : > { %1386 = vst.msk [vmem:[#allocation3 + $0x230] sm:$0xf] %vm1357_vm12, %v1318_v52  ;;  %v1270_v56 = vpop.permute.xlu1 %1269  ;;  %v2914_v52 = vrot.slane %v2912_v23, 4 }
  0xe6   : > { %1747 = vrot.lane.b32.xlu1 %v1674_v47, %s5889_s18  ;;  %1362 = vst.msk [vmem:[#allocation3 + $0x50] sm:$0xf] %vm1357_vm12, %v1270_v56  ;;  %v6706_v47 = vld [vmem:[#allocation2 + $0x58] sm:$0xf]  ;;  %v5218_v56 = vrot.slane %v2365_v5, 9  ;;  %v6713_v0 = vrot.slane %v2956_v9, 5 }
  0xe7   : > { %v5782_v17 = vld [vmem:[#allocation3 + $0x1a0] sm:$0xf0]  ;;  %v2493_v4 = vrot.slane %v6706_v47, 5  ;;  %v2915_v55 = vor.u32 %v2914_v52, %v6595_v31  ;;  %v5836_v31 = vld [vmem:[%s8019_s1 + $0xd0] sm:$0xff] }
  0xe8   : > { %v5449_v53 = vor.u32 %v5782_v17, %v5448_v12  ;;  %v2918_v12 = vshll.u32 %v6692_v50, 16  ;;  %v2954_v17 = vrot.slane %v2953_v16, 4  ;;  %v2480_v22 = vsel %vm6441_vm15, %v5218_v56, %v2479_v19  ;;  %4691 = vmatpush.bf16.msrb.mxu3 %v5836_v31  ;;  %v2691_v52 = vld [vmem:[#allocation2 + $0x1c] sm:$0xf] }
  0xe9   : > { %v2495_v34 = vrot.slane %v2493_v4, 4  ;;  %2723 = vst.msk [vmem:[#allocation3 + $0x20] sm:$0xf] %vm215_vm0, %v2691_v52  ;;  %v2774_v52 = vld [vmem:[#allocation2 + $0x68] sm:$0x1] }
  0xea   : > { %4477 = vmatmul.bf16.gmra.mxu2 %v5449_v53  ;;  %2573 = vrot.lane.b32.xlu2 %v2473_v54, %s5889_s18  ;;  %v769_v53 = vld [vmem:[#allocation2 + $0x28] sm:$0xf]  ;;  %v1911_v54 = vrot.slane %v1909_v6, 5  ;;  %v2959_v44 = vsel %vm5982_vm11, %v2954_v17, %v6713_v0  ;;  %v2920_v28 = vrot.slane %v2918_v12, 5  ;;  %v6757_v12 = vld [vmem:[#allocation2 + $0x70] sm:$0xf] }
  0xeb   : > { %801 = vst.msk [vmem:[#allocation3 + $0x8c] sm:$0xf] %vm215_vm0, %v769_v53  ;;  %v6761_v17 = vld [vmem:[#allocation2 + $0x5c] sm:$0x1] }
  0xec   : > { %1745 = vrot.lane.b32.xlu0 %v1673_v35, %s5889_s18  ;;  %v1288_v43 = vpop.permute.xlu0 %1287  ;;  %v5528_v25 = vld [vmem:[#allocation3 + $0x230] sm:$0xf]  ;;  %v2775_v35 = vld [vmem:[#allocation2 + $0x6c] sm:$0xf]  ;;  %v1912_v46 = vor.u32 %v1911_v54, %v1908_v7  ;;  %v2980_v54 = vshll.u32 %v6757_v12, 16  ;;  %4692 = vmatpush.bf16.msrb.mxu3 %v5835_v8 }
  0xed   : > { %1371 = vst.msk [vmem:[#allocation3 + $0x104] sm:$0xf] %vm1357_vm12, %v1288_v43  ;;  %v5529_v14 = vor.u32 %v5802_v33, %v5528_v25  ;;  %v1858_v33 = vld [vmem:[#allocation2 + $0x10] sm:$0xf]  ;;  %v2971_v18 = vshrl.u32 %v2775_v35, 16  ;;  %v2936_v43 = vshrl.u32 %v6623_v59, 16 }
  0xee   : > { %3206 = vrot.lane.b32.xlu1 %v2935_v20, %s5889_s18  ;;  %v1308_v15 = vpop.permute.xlu1 %1307  ;;  %v1915_v62 = vshll.u32 %v1858_v33, 16  ;;  %v5820_v59 = vld [vmem:[%s8019_s1 + $0x50] sm:$0xff]  ;;  %v2974_v24 = vshll.u32 %v2775_v35, 16  ;;  %v1913_v27 = vrot.slane %v1912_v46, 4  ;;  %v5288_v29 = vld [vmem:[#allocation3 + $0x50] sm:$0xf]  ;;  %v2497_v35 = vsel %vm6441_vm15, %v2495_v34, %v2496_v11 }
  0xef   : > { %4497 = vmatmul.bf16.gmra.mxu3 %v5529_v14  ;;  %1381 = vst.msk [vmem:[#allocation3 + $0x1cc] sm:$0xf] %vm1357_vm12, %v1308_v15  ;;  %v1919_v14 = vshrl.u32 %v1858_v33, 16  ;;  %v6737_v15 = vrot.slane %v2915_v55, 4  ;;  %4513 = vmatpush.bf16.msrb.mxu1 %v5820_v59  ;;  %v2973_v50 = vrot.slane %v2971_v18, 4  ;;  %v2938_v33 = vrot.slane %v2936_v43, 4 }
  0xf0   : > { %v1917_v19 = vrot.slane %v1915_v62, 5  ;;  %v2976_v9 = vrot.slane %v2974_v24, 5  ;;  %v6775_v62 = vld [vmem:[#allocation2 + $0x64] sm:$0xf]  ;;  %v1677_v59 = vld [vmem:[#allocation2 + $0x54] sm:$0xf]  ;;  %4693 = vmatpush.bf16.msrb.mxu3 %v5834_v40 }
  0xf1   : > { %v1286_v60 = vpop.permute.xlu2 %1285  ;;  %v1921_v16 = vrot.slane %v1919_v14, 4  ;;  %v2921_v42 = vsel %vm5982_vm11, %v6737_v15, %v2920_v28  ;;  %v1391_v18 = vld [vmem:[#allocation2 + $0x4] sm:$0xf]  ;;  %v2942_v14 = vshll.u32 %v6761_v17, 16  ;;  %v2939_v24 = vor.u32 %v2938_v33, %v6647_v57 }
  0xf2   : > { %1370 = vst.msk [vmem:[#allocation3 + $0xf0] sm:$0xf] %vm1357_vm12, %v1286_v60  ;;  %3200 = vrot.lane.b32.xlu2 %v2897_v49, %s5889_s18  ;;  %v1925_v49 = vshll.u32 %v1859_v36, 16  ;;  %v2977_v7 = vor.u32 %v2976_v9, %v2973_v50  ;;  %v1491_v31 = vrot.slane %v1391_v18, 5  ;;  %v6793_v11 = vrot.slane %v2980_v54, 5 }
  0xf3   : > { %v1922_v61 = vor.u32 %v1921_v16, %v1917_v19  ;;  %v2500_v50 = vrot.slane %v6775_v62, 5  ;;  %v2778_v9 = vld [vmem:[#allocation2 + $0x78] sm:$0xf]  ;;  %v5842_v16 = vld [vmem:[%s8019_s1 + $0x100] sm:$0xff]  ;;  %v2940_v51 = vrot.slane %v2939_v24, 4  ;;  %v2962_v33 = vrot.slane %v2960_v48, 4 }
  0xf4   : > { %2583 = vrot.lane.b32.xlu0 %v2490_v37, %s5889_s18  ;;  %v5762_v13 = vld [vmem:[#allocation3 + $0x100] sm:$0xf0]  ;;  %v1918_v37 = vsel %vm5982_vm11, %v1913_v27, %v1917_v19  ;;  %v1927_v21 = vrot.slane %v1925_v49, 5  ;;  %v1493_v15 = vrot.slane %v1491_v31, 4  ;;  %v2978_v28 = vrot.slane %v2977_v7, 4  ;;  %v5818_v49 = vld [vmem:[%s8019_s1 + $0x40] sm:$0xff]  ;;  %4782 = vmatpush.bf16.msrb.mxu0 %v5842_v16 }
  0xf5   : > { %2321 = vst.msk [vmem:[#allocation3 + $0x8] sm:$0xf] %vm215_vm0, %v1918_v37  ;;  %v1923_v55 = vrot.slane %v1922_v61, 4  ;;  %v1860_v27 = vld [vmem:[#allocation2 + $0x18] sm:$0xf]  ;;  %v2502_v8 = vrot.slane %v2500_v50, 4 }
  0xf6   : > { %1751 = vrot.lane.b32.xlu1 %v1676_v32, %s5889_s18  ;;  %v5787_v5 = vld [vmem:[#allocation3 + $0x1c8] sm:$0xf0]  ;;  %v1861_v19 = vld [vmem:[#allocation2 + $0x1c] sm:$0xf]  ;;  %v1933_v37 = vshll.u32 %v1860_v27, 16 }
  0xf7   : > { %v1306_v63 = vpop.permute.xlu0 %1305  ;;  %v1939_v45 = vshll.u32 %v1861_v19, 16  ;;  %v1943_v38 = vshrl.u32 %v1861_v19, 16  ;;  %v6824_v54 = vld [vmem:[#allocation2 + $0x7c] sm:$0xf]  ;;  %v2963_v19 = vor.u32 %v2962_v33, %v6713_v0  ;;  %v6845_v16 = vld [vmem:[#allocation2 + $0x70] sm:$0xf] }
  0xf8   : > { %1380 = vst.msk [vmem:[#allocation3 + $0x1b8] sm:$0xf] %vm1357_vm12, %v1306_v63  ;;  %v5819_v63 = vld [vmem:[%s8019_s1 + $0x48] sm:$0xff]  ;;  %v1935_v61 = vrot.slane %v1933_v37, 5  ;;  %v3004_v24 = vshll.u32 %v6824_v54, 16 }
  0xf9   : > { %v1272_v20 = vpop.permute.xlu2 %1271  ;;  %v5368_v23 = vld [vmem:[#allocation3 + $0xf0] sm:$0xf]  ;;  %4514 = vmatpush.bf16.msrb.mxu1 %v5819_v63  ;;  %v1945_v63 = vrot.slane %v1943_v38, 4  ;;  %v3314_v37 = vld [vmem:[#allocation2 + $0x18] sm:$0xe] }
  0xfa   : > { %1363 = vst.msk [vmem:[#allocation3 + $0x64] sm:$0xf] %vm1357_vm12, %v1272_v20  ;;  %v5369_v25 = vor.u32 %v5762_v13, %v5368_v23  ;;  %2577 = vrot.lane.b32.xlu2 %v2480_v22, %s5889_s18  ;;  %v2368_v13 = vld [vmem:[#allocation2 + $0x48] sm:$0xe]  ;;  %v1928_v20 = vsel %vm5982_vm11, %v1923_v55, %v1927_v21  ;;  %v1392_v23 = vld [vmem:[#allocation2 + $0x8] sm:$0x1]  ;;  %v2983_v21 = vsel %vm5982_vm11, %v2978_v28, %v6793_v11 }
  0xfb   : > { %2322 = vst.msk [vmem:[#allocation3 + $0x1c] sm:$0xf] %vm215_vm0, %v1928_v20  ;;  %v1494_v43 = vrot.slane %v1392_v23, 5  ;;  %v5219_v46 = vrot.slane %v2368_v13, 9  ;;  %v5826_v22 = vld [vmem:[%s8019_s1 + $0x80] sm:$0xff]  ;;  %v2998_v13 = vshll.u32 %v2778_v9, 16 }
  0xfc   : > { %1749 = vrot.lane.b32.xlu0 %v1675_v10, %s5889_s18  ;;  %4457 = vmatmul.bf16.gmra.mxu1 %v5369_v25  ;;  %v1678_v10 = vld [vmem:[#allocation2 + $0x58] sm:$0xf]  ;;  %v1390_v25 = vld [vmem:[#allocation2] sm:$0xe]  ;;  %v2966_v55 = vshll.u32 %v2774_v52, 16  ;;  %v5230_v0 = vrot.slane %v3314_v37, 9 }
  0xfd   : > { %4604 = vmatpush.bf16.msrb.mxu2 %v5826_v22  ;;  %v1495_v36 = vsel %vm6441_vm15, %v1493_v15, %v1494_v43  ;;  %4515 = vmatpush.bf16.msrb.mxu1 %v5818_v49  ;;  %v3000_v20 = vrot.slane %v2998_v13, 5  ;;  %v2692_v23 = vld [vmem:[#allocation2 + $0x24] sm:$0xf]  ;;  %v1862_v28 = vld [vmem:[#allocation2 + $0x20] sm:$0x1] }
  0xfe   : > { %3210 = vrot.lane.b32.xlu1 %v2959_v44, %s5889_s18  ;;  %v1290_v60 = vpop.permute.xlu1 %1289  ;;  %v5198_v44 = vrot.slane %v1390_v25, 9  ;;  %1634 = vst.msk [vmem:[#allocation3 + $0x18] sm:$0xf] %vm215_vm0, %v1495_v36  ;;  %v3316_v38 = vld [vmem:[#allocation2 + $0x20] sm:$0x1] }
  0xff   : > { %1372 = vst.msk [vmem:[#allocation3 + $0x118] sm:$0xf] %vm1357_vm12, %v1290_v60  ;;  %v5468_v32 = vld [vmem:[#allocation3 + $0x1b8] sm:$0xf]  ;;  %v1930_v60 = vshrl.u32 %v1860_v27, 16  ;;  %v3415_v52 = vrot.slane %v3316_v38, 5 }
 0x100   : > { %v5469_v56 = vor.u32 %v5787_v5, %v5468_v32  ;;  %v2376_v5 = vld [vmem:[#allocation2 + $0x68] sm:$0x1]  ;;  %v1492_v57 = vsel %vm6441_vm15, %v5198_v44, %v1491_v31  ;;  %v2487_v32 = vsel %vm6441_vm15, %v5219_v46, %v2486_v58  ;;  %v2944_v58 = vrot.slane %v2942_v14, 5  ;;  %2724 = vst.msk [vmem:[#allocation3 + $0x34] sm:$0xf] %vm215_vm0, %v2692_v23 }
 0x101   : > { %v5742_v6 = vld [vmem:[#allocation3 + $0x60] sm:$0xf0]  ;;  %1633 = vst.msk [vmem:[#allocation3 + $0x4] sm:$0xf] %vm215_vm0, %v1492_v57  ;;  %v2984_v46 = vshrl.u32 %v6757_v12, 16 }
 0x102   : > { %v5289_v53 = vor.u32 %v5742_v6, %v5288_v29  ;;  %4482 = vmatmul.bf16.gmra.mxu2 %v5469_v56  ;;  %3204 = vrot.lane.b32.xlu2 %v2921_v42, %s5889_s18  ;;  %v1932_v56 = vrot.slane %v1930_v60, 4  ;;  %v1941_v6 = vrot.slane %v1939_v45, 5  ;;  %v1680_v44 = vld [vmem:[#allocation2 + $0x64] sm:$0xf]  ;;  %v2945_v36 = vsel %vm5982_vm11, %v2940_v51, %v2944_v58  ;;  %v6847_v49 = vld [vmem:[#allocation2 + $0x74] sm:$0x1] }
 0x103   : > { %v1324_v2 = vpop.permute.xlu0 %1323 }
 0x104   : > { %4437 = vmatmul.bf16.gmra.mxu0 %v5289_v53  ;;  %2587 = vrot.lane.b32.xlu0 %v2497_v35, %s5889_s18  ;;  %1389 = vst.msk [vmem:[#allocation3 + $0x26c] sm:$0xf] %vm1357_vm12, %v1324_v2  ;;  %v1322_v29 = vpop.permute.xlu2 %1321  ;;  %v2995_v35 = vshrl.u32 %v2778_v9, 16  ;;  %v1936_v17 = vor.u32 %v1935_v61, %v1932_v56  ;;  %v2503_v53 = vrot.slane %v2376_v5, 5  ;;  %v1946_v31 = vor.u32 %v1945_v63, %v1941_v6  ;;  %v2693_v5 = vld [vmem:[#allocation2 + $0x28] sm:$0xf] }
 0x105   : > { %1388 = vst.msk [vmem:[#allocation3 + $0x258] sm:$0xf] %vm1357_vm12, %v1322_v29  ;;  %v3315_v9 = vld [vmem:[#allocation2 + $0x1c] sm:$0xf] }
 0x106   : > { %1755 = vrot.lane.b32.xlu1 %v1678_v10, %s5889_s18  ;;  %v6820_v10 = vld [vmem:[#allocation2 + $0x54] sm:$0xe]  ;;  %v1937_v7 = vrot.slane %v1936_v17, 4  ;;  %v2997_v18 = vrot.slane %v2995_v35, 4  ;;  %v2504_v15 = vsel %vm6441_vm15, %v2502_v8, %v2503_v53  ;;  %v1947_v29 = vrot.slane %v1946_v31, 4 }
 0x107   : > { %v5220_v14 = vrot.slane %v6820_v10, 9  ;;  %v5388_v57 = vld [vmem:[#allocation3 + $0x118] sm:$0xf]  ;;  %2725 = vst.msk [vmem:[#allocation3 + $0x48] sm:$0xf] %vm215_vm0, %v2693_v5 }
 0x108   : > { %v1276_v34 = vpop.permute.xlu1 %1275  ;;  %v1942_v40 = vsel %vm5982_vm11, %v1937_v7, %v1941_v6  ;;  %v3001_v60 = vor.u32 %v3000_v20, %v2997_v18  ;;  %v6853_v6 = vrot.slane %v3004_v24, 5  ;;  %v6855_v35 = vld [vmem:[#allocation2 + $0x60] sm:$0xe]  ;;  %v1395_v8 = vld [vmem:[#allocation2 + $0x14] sm:$0x1] }
 0x109   : > { %1365 = vst.msk [vmem:[#allocation3 + $0x8c] sm:$0xf] %vm1357_vm12, %v1276_v34  ;;  %v1949_v34 = vshll.u32 %v1862_v28, 16  ;;  %v1679_v18 = vld [vmem:[#allocation2 + $0x60] sm:$0xf]  ;;  %v5221_v20 = vrot.slane %v6855_v35, 9 }
 0x10a   : > { %2581 = vrot.lane.b32.xlu2 %v2487_v32, %s5889_s18  ;;  %2323 = vst.msk [vmem:[#allocation3 + $0x30] sm:$0xf] %vm215_vm0, %v1942_v40  ;;  %v3412_v32 = vrot.slane %v3315_v9, 5  ;;  %v3002_v58 = vrot.slane %v3001_v60, 4  ;;  %v1501_v31 = vrot.slane %v1395_v8, 5 }
 0x10b   : > { %v5807_v2 = vld [vmem:[#allocation3 + $0x268] sm:$0xf0]  ;;  %v1951_v45 = vrot.slane %v1949_v34, 5  ;;  %v1864_v24 = vld [vmem:[#allocation2 + $0x28] sm:$0xf] }
 0x10c   : > { %1753 = vrot.lane.b32.xlu0 %v1677_v59, %s5889_s18  ;;  %v1292_v43 = vpop.permute.xlu2 %1291  ;;  %v5548_v25 = vld [vmem:[#allocation3 + $0x258] sm:$0xf]  ;;  %v6835_v59 = vrot.slane %v2966_v55, 5  ;;  %v3414_v17 = vrot.slane %v3412_v32, 4  ;;  %v3413_v33 = vsel %vm6441_vm15, %v5230_v0, %v3412_v32  ;;  %v3007_v40 = vsel %vm5982_vm11, %v3002_v58, %v6853_v6  ;;  %v6892_v9 = vld [vmem:[#allocation2 + $0x88] sm:$0xf] }
 0x10d   : > { %1373 = vst.msk [vmem:[#allocation3 + $0x12c] sm:$0xf] %vm1357_vm12, %v1292_v43  ;;  %v5549_v48 = vor.u32 %v5807_v2, %v5548_v25  ;;  %v1952_v13 = vsel %vm5982_vm11, %v1947_v29, %v1951_v45  ;;  %v2510_v2 = vrot.slane %v6847_v49, 5  ;;  %v1394_v43 = vld [vmem:[#allocation2 + $0x10] sm:$0xf]  ;;  %v1967_v37 = vshrl.u32 %v1864_v24, 16 }
 0x10e   : > { %v1274_v42 = vpop.permute.xlu0 %1273  ;;  %3214 = vrot.lane.b32.xlu1 %v2983_v21, %s5889_s18  ;;  %v6851_v21 = vrot.slane %v2963_v19, 4  ;;  %2324 = vst.msk [vmem:[#allocation3 + $0x44] sm:$0xf] %vm215_vm0, %v1952_v13  ;;  %v3416_v23 = vsel %vm6441_vm15, %v3414_v17, %v3415_v52  ;;  %v1393_v25 = vld [vmem:[#allocation2 + $0xc] sm:$0xe]  ;;  %v6896_v49 = vrot.slane %v2984_v46, 4 }
 0x10f   : > { %1364 = vst.msk [vmem:[#allocation3 + $0x78] sm:$0xf] %vm1357_vm12, %v1274_v42  ;;  %4502 = vmatmul.bf16.gmra.mxu3 %v5549_v48  ;;  %v2507_v42 = vrot.slane %v6845_v16, 5  ;;  %v1498_v48 = vrot.slane %v1394_v43, 5  ;;  %v2781_v19 = vld [vmem:[#allocation2 + $0x84] sm:$0xf] }
 0x110   : > { %v3187_v22 = vpop.permute.xlu1 %3186  ;;  %v5747_v27 = vld [vmem:[#allocation3 + $0x88] sm:$0xf0]  ;;  %3554 = vst.msk [vmem:[#allocation3 + $0x10] sm:$0xf] %vm215_vm0, %v3413_v33  ;;  %v3022_v52 = vshll.u32 %v2781_v19, 16  ;;  %v2969_v8 = vsel %vm5982_vm11, %v6851_v21, %v6835_v59 }
 0x111   : > { %3282 = vst.msk [vmem:[#allocation3 + $0xc] sm:$0xf] %vm1357_vm12, %v3187_v22  ;;  %v2494_v22 = vsel %vm6441_vm15, %v5220_v14, %v2493_v4  ;;  %v2509_v10 = vrot.slane %v2507_v42, 4  ;;  %v1500_v4 = vrot.slane %v1498_v48, 4  ;;  %v6902_v13 = vld [vmem:[#allocation2 + $0x74] sm:$0x1] }
 0x112   : > { %3208 = vrot.lane.b32.xlu2 %v2945_v36, %s5889_s18  ;;  %3555 = vst.msk [vmem:[#allocation3 + $0x24] sm:$0xf] %vm215_vm0, %v3416_v23  ;;  %v3024_v46 = vrot.slane %v3022_v52, 5  ;;  %v2694_v59 = vld [vmem:[#allocation2 + $0x30] sm:$0xf] }
 0x113   : > { %v1502_v60 = vsel %vm6441_vm15, %v1500_v4, %v1501_v31  ;;  %2726 = vst.msk [vmem:[#allocation3 + $0x5c] sm:$0xf] %vm215_vm0, %v2694_v59  ;;  %v2987_v4 = vor.u32 %v6896_v49, %v6793_v11  ;;  %v3008_v11 = vshrl.u32 %v6824_v54, 16  ;;  %v3319_v49 = vld [vmem:[#allocation2 + $0x2c] sm:$0x1] }
 0x114   : > { %2591 = vrot.lane.b32.xlu0 %v2504_v15, %s5889_s18  ;;  %v2562_v53 = vpop.permute.xlu2 %2561  ;;  %v5767_v55 = vld [vmem:[#allocation3 + $0x128] sm:$0xf0]  ;;  %v5199_v15 = vrot.slane %v1393_v25, 9  ;;  %1636 = vst.msk [vmem:[#allocation3 + $0x40] sm:$0xf] %vm215_vm0, %v1502_v60  ;;  %v3422_v35 = vrot.slane %v3319_v49, 5 }
 0x115   : > { %2657 = vst.msk [vmem:[#allocation3 + $0x8] sm:$0xf] %vm1357_vm12, %v2562_v53  ;;  %v5389_v7 = vor.u32 %v5767_v55, %v5388_v57  ;;  %v3019_v57 = vshrl.u32 %v2781_v19, 16  ;;  %v1682_v55 = vld [vmem:[#allocation2 + $0x70] sm:$0xf]  ;;  %v2988_v52 = vrot.slane %v2987_v4, 4 }
 0x116   : > { %v2564_v56 = vpop.permute.xlu0 %2563  ;;  %v5308_v61 = vld [vmem:[#allocation3 + $0x78] sm:$0xf]  ;;  %1759 = vrot.lane.b32.xlu1 %v1680_v44, %s5889_s18  ;;  %v1863_v44 = vld [vmem:[#allocation2 + $0x24] sm:$0xf]  ;;  %v1499_v14 = vsel %vm6441_vm15, %v5199_v15, %v1498_v48  ;;  %v1681_v15 = vld [vmem:[#allocation2 + $0x6c] sm:$0xf] }
 0x117   : > { %2658 = vst.msk [vmem:[#allocation3 + $0x1c] sm:$0xf] %vm1357_vm12, %v2564_v56  ;;  %v5309_v51 = vor.u32 %v5747_v27, %v5308_v61  ;;  %4462 = vmatmul.bf16.gmra.mxu1 %v5389_v7  ;;  %v1954_v47 = vshrl.u32 %v1863_v44, 16  ;;  %v1957_v28 = vshll.u32 %v1863_v44, 16  ;;  %v1963_v27 = vshll.u32 %v1864_v24, 16 }
 0x118   : > { %v1732_v63 = vpop.permute.xlu1 %1731  ;;  %1635 = vst.msk [vmem:[#allocation3 + $0x2c] sm:$0xf] %vm215_vm0, %v1499_v14  ;;  %v2511_v61 = vsel %vm6441_vm15, %v2509_v10, %v2510_v2  ;;  %v3021_v58 = vrot.slane %v3019_v57, 4  ;;  %v5264_v17 = vld [vmem:[#allocation3 + $0x10] sm:$0xf]  ;;  %v1969_v2 = vrot.slane %v1967_v37, 4 }
 0x119   : > { %4442 = vmatmul.bf16.gmra.mxu0 %v5309_v51  ;;  %1826 = vst.msk [vmem:[#allocation3 + $0x18] sm:$0xf] %vm1357_vm12, %v1732_v63  ;;  %v1956_v5 = vrot.slane %v1954_v47, 4  ;;  %v1959_v36 = vrot.slane %v1957_v28, 5  ;;  %v1965_v51 = vrot.slane %v1963_v27, 5  ;;  %v3028_v63 = vshll.u32 %v6892_v9, 16 }
 0x11a   : > { %2585 = vrot.lane.b32.xlu2 %v2494_v22, %s5889_s18  ;;  %v5734_v53 = vld [vmem:[#allocation3 + $0x20] sm:$0xf0]  ;;  %v2990_v7 = vshll.u32 %v6902_v13, 16  ;;  %v3025_v23 = vor.u32 %v3024_v46, %v3021_v58  ;;  %v5731_v31 = vld [vmem:[#allocation3 + $0xc] sm:$0xf] }
 0x11b   : > { %v1960_v32 = vor.u32 %v1959_v36, %v1956_v5  ;;  %v5265_v43 = vor.u32 %v5734_v53, %v5264_v17  ;;  %v1970_v21 = vor.u32 %v1969_v2, %v1965_v51  ;;  %v6921_v24 = vrot.slane %v3028_v63, 5  ;;  %v1865_v47 = vld [vmem:[#allocation2 + $0x2c] sm:$0x1]  ;;  %v2382_v27 = vld [vmem:[#allocation2 + $0x80] sm:$0x1] }
 0x11c   : > { %1757 = vrot.lane.b32.xlu0 %v1679_v18, %s5889_s18  ;;  %v3189_v45 = vpop.permute.xlu2 %3188  ;;  %v5256_v38 = vld [vmem:[#allocation3 + $0x8] sm:$0xf]  ;;  %v3026_v44 = vrot.slane %v3025_v23, 4  ;;  %v3317_v60 = vld [vmem:[#allocation2 + $0x24] sm:$0xe]  ;;  %v2992_v54 = vrot.slane %v2990_v7, 5 }
 0x11d   : > { %3283 = vst.msk [vmem:[#allocation3 + $0x20] sm:$0xf] %vm1357_vm12, %v3189_v45  ;;  %v1961_v12 = vrot.slane %v1960_v32, 4  ;;  %v1971_v19 = vrot.slane %v1970_v21, 4  ;;  %v3318_v57 = vld [vmem:[#allocation2 + $0x28] sm:$0xf] }
 0x11e   : > { %v1730_v29 = vpop.permute.xlu0 %1729  ;;  %v5733_v34 = vld [vmem:[#allocation3 + $0x18] sm:$0xf0]  ;;  %3218 = vrot.lane.b32.xlu1 %v3007_v40, %s5889_s18  ;;  %v6917_v40 = vld [vmem:[#allocation2 + $0x7c] sm:$0xf]  ;;  %v5231_v45 = vrot.slane %v3317_v60, 9  ;;  %v3419_v32 = vrot.slane %v3318_v57, 5 }
 0x11f   : > { %1825 = vst.msk [vmem:[#allocation3 + $0x4] sm:$0xf] %vm1357_vm12, %v1730_v29  ;;  %v5257_v56 = vor.u32 %v5733_v34, %v5256_v38  ;;  %v1966_v18 = vsel %vm5982_vm11, %v1961_v12, %v1965_v51  ;;  %v1973_v29 = vshll.u32 %v1865_v47, 16  ;;  %v2695_v34 = vld [vmem:[#allocation2 + $0x34] sm:$0xf]  ;;  %v2514_v36 = vrot.slane %v6917_v40, 5 }
 0x120   : > { %v3191_v0 = vpop.permute.xlu1 %3190  ;;  %v5250_v33 = vld [vmem:[#allocation3 + $0x14] sm:$0xf0]  ;;  %2325 = vst.msk [vmem:[#allocation3 + $0x58] sm:$0xf] %vm215_vm0, %v1966_v18  ;;  %v2501_v38 = vsel %vm6441_vm15, %v5221_v20, %v2500_v50  ;;  %v2517_v20 = vrot.slane %v2382_v27, 5 }
 0x121   : > { %3284 = vst.msk [vmem:[#allocation3 + $0x34] sm:$0xf] %vm1357_vm12, %v3191_v0  ;;  %4605 = vmatmul.bf16.vlgmr.msrb.gmra.mxu2 %v5257_v56  ;;  %v1975_v37 = vrot.slane %v1973_v29, 5  ;;  %v3031_v0 = vsel %vm5982_vm11, %v3026_v44, %v6921_v24  ;;  %v2516_v50 = vrot.slane %v2514_v36, 4  ;;  %v3420_v56 = vsel %vm6441_vm15, %v5231_v45, %v3419_v32  ;;  %v6950_v58 = vld [vmem:[#allocation2 + $0x6c] sm:$0xe] }
 0x122   : > { %3212 = vrot.lane.b32.xlu2 %v2969_v8, %s5889_s18  ;;  %2727 = vst.msk [vmem:[#allocation3 + $0x70] sm:$0xf] %vm215_vm0, %v2695_v34  ;;  %v1397_v12 = vld [vmem:[#allocation2 + $0x1c] sm:$0xf]  ;;  %v1398_v46 = vld [vmem:[#allocation2 + $0x20] sm:$0x1] }
 0x123   : > { %v1976_v62 = vsel %vm5982_vm11, %v1971_v19, %v1975_v37  ;;  %3556 = vst.msk [vmem:[#allocation3 + $0x38] sm:$0xf] %vm215_vm0, %v3420_v56  ;;  %v1505_v63 = vrot.slane %v1397_v12, 5  ;;  %v2518_v7 = vsel %vm6441_vm15, %v2516_v50, %v2517_v20  ;;  %v1684_v18 = vld [vmem:[#allocation2 + $0x7c] sm:$0xf]  ;;  %v1508_v23 = vrot.slane %v1398_v46, 5 }
 0x124   : > { %2595 = vrot.lane.b32.xlu0 %v2511_v61, %s5889_s18  ;;  %v2566_v28 = vpop.permute.xlu2 %2565  ;;  %v5258_v10 = vld [vmem:[#allocation3 + $0x1c] sm:$0xf0]  ;;  %2326 = vst.msk [vmem:[#allocation3 + $0x6c] sm:$0xf] %vm215_vm0, %v1976_v62  ;;  %v3421_v61 = vrot.slane %v3419_v32, 4 }
 0x125   : > { %2659 = vst.msk [vmem:[#allocation3 + $0x30] sm:$0xf] %vm1357_vm12, %v2566_v28  ;;  %v5261_v5 = vor.u32 %v5731_v31, %v5258_v10  ;;  %v5222_v31 = vrot.slane %v6950_v58, 9  ;;  %v1507_v59 = vrot.slane %v1505_v63, 4  ;;  %v1396_v21 = vld [vmem:[#allocation2 + $0x18] sm:$0xe] }
 0x126   : > { %v2568_v25 = vpop.permute.xlu0 %2567  ;;  %v5730_v22 = vld [vmem:[#allocation3 + $0x4] sm:$0xf]  ;;  %1763 = vrot.lane.b32.xlu1 %v1682_v55, %s5889_s18  ;;  %v3423_v17 = vsel %vm6441_vm15, %v3421_v61, %v3422_v35  ;;  %v1867_v44 = vld [vmem:[#allocation2 + $0x34] sm:$0xf]  ;;  %v2784_v27 = vld [vmem:[#allocation2 + $0x90] sm:$0xf] }
 0x127   : > { %2660 = vst.msk [vmem:[#allocation3 + $0x44] sm:$0xf] %vm1357_vm12, %v2568_v25  ;;  %v5253_v48 = vor.u32 %v5730_v22, %v5250_v33  ;;  %4694 = vmatmul.bf16.vlgmr.msrb.gmra.mxu3 %v5261_v5  ;;  %v3032_v33 = vshrl.u32 %v6892_v9, 16  ;;  %v2993_v25 = vsel %vm5982_vm11, %v2988_v52, %v2992_v54  ;;  %v6965_v22 = vrot.slane %v3008_v11, 4  ;;  %v2780_v57 = vld [vmem:[#allocation2 + $0x80] sm:$0x1] }
 0x128   : > { %v1736_v14 = vpop.permute.xlu1 %1735  ;;  %3557 = vst.msk [vmem:[#allocation3 + $0x4c] sm:$0xf] %vm215_vm0, %v3423_v17  ;;  %v5736_v47 = vld [vmem:[#allocation3 + $0x34] sm:$0xf]  ;;  %v1509_v28 = vsel %vm6441_vm15, %v1507_v59, %v1508_v23  ;;  %v1991_v34 = vshrl.u32 %v1867_v44, 16  ;;  %v3043_v5 = vshrl.u32 %v2784_v27, 16 }
 0x129   : > { %5710 = vmatmul.msk.bf16.vlgmr.msrb.gmra.mxu0 %vm4370_vm1, %v5265_v43  ;;  %1828 = vst.msk [vmem:[#allocation3 + $0x40] sm:$0xf] %vm1357_vm12, %v1736_v14  ;;  %4516 = vmatmul.bf16.vlgmr.msrb.gmra.mxu1 %v5253_v48  ;;  %v5200_v48 = vrot.slane %v1396_v21, 9  ;;  %v1987_v14 = vshll.u32 %v1867_v44, 16  ;;  %v6977_v20 = vld [vmem:[#allocation2 + $0x94] sm:$0xf]  ;;  %v3011_v17 = vor.u32 %v6965_v22, %v6853_v6 }
 0x12a   : > { %2589 = vrot.lane.b32.xlu2 %v2501_v38, %s5889_s18  ;;  %v5284_v19 = vld [vmem:[#allocation3 + $0x38] sm:$0xf]  ;;  %1638 = vst.msk [vmem:[#allocation3 + $0x68] sm:$0xf] %vm215_vm0, %v1509_v28  ;;  %v3045_v32 = vrot.slane %v3043_v5, 4  ;;  %v3046_v56 = vshll.u32 %v2784_v27, 16 }
 0x12b   : > { %v1506_v29 = vsel %vm6441_vm15, %v5200_v48, %v1505_v63  ;;  %v1989_v49 = vrot.slane %v1987_v14, 5  ;;  %v1993_v61 = vrot.slane %v1991_v34, 4  ;;  %v3052_v58 = vshll.u32 %v6977_v20, 16  ;;  %v1868_v59 = vld [vmem:[#allocation2 + $0x38] sm:$0x1] }
 0x12c   : > { %1761 = vrot.lane.b32.xlu0 %v1681_v15, %s5889_s18  ;;  %v3193_v8 = vpop.permute.xlu2 %3192  ;;  %v5276_v53 = vld [vmem:[#allocation3 + $0x30] sm:$0xf]  ;;  %v1866_v15 = vld [vmem:[#allocation2 + $0x30] sm:$0xf]  ;;  %1637 = vst.msk [vmem:[#allocation3 + $0x54] sm:$0xf] %vm215_vm0, %v1506_v29 }
 0x12d   : > { %3285 = vst.msk [vmem:[#allocation3 + $0x48] sm:$0xf] %vm1357_vm12, %v3193_v8  ;;  %v1978_v10 = vshrl.u32 %v1866_v15, 16  ;;  %v1981_v4 = vshll.u32 %v1866_v15, 16  ;;  %v3048_v46 = vrot.slane %v3046_v56, 5  ;;  %v3014_v63 = vshll.u32 %v2780_v57, 16 }
 0x12e   : > { %v1734_v13 = vpop.permute.xlu0 %1733  ;;  %v5738_v51 = vld [vmem:[#allocation3 + $0x40] sm:$0xf0]  ;;  %3222 = vrot.lane.b32.xlu1 %v3031_v0, %s5889_s18  ;;  %v6985_v8 = vld [vmem:[#allocation2 + $0x88] sm:$0xf]  ;;  %v6995_v23 = vrot.slane %v3052_v58, 5  ;;  %v3034_v16 = vrot.slane %v3032_v33, 4 }
 0x12f   : > { %1827 = vst.msk [vmem:[#allocation3 + $0x2c] sm:$0xf] %vm1357_vm12, %v1734_v13  ;;  %v5277_v2 = vor.u32 %v5738_v51, %v5276_v53  ;;  %v1980_v45 = vrot.slane %v1978_v10, 4  ;;  %v1983_v11 = vrot.slane %v1981_v4, 5  ;;  %v5739_v0 = vld [vmem:[#allocation3 + $0x48] sm:$0xf0]  ;;  %v1994_v53 = vor.u32 %v1993_v61, %v1989_v49 }
 0x130   : > { %v3195_v55 = vpop.permute.xlu1 %3194  ;;  %v5270_v43 = vld [vmem:[#allocation3 + $0x3c] sm:$0xf0]  ;;  %v5285_v62 = vor.u32 %v5739_v0, %v5284_v19  ;;  %v3012_v22 = vrot.slane %v3011_v17, 4  ;;  %v3016_v9 = vrot.slane %v3014_v63, 5  ;;  %v2697_v28 = vld [vmem:[#allocation2 + $0x40] sm:$0xf]  ;;  %v3035_v29 = vor.u32 %v3034_v16, %v6921_v24 }
 0x131   : > { %3286 = vst.msk [vmem:[#allocation3 + $0x5c] sm:$0xf] %vm1357_vm12, %v3195_v55  ;;  %4610 = vmatmul.bf16.gmra.mxu2 %v5277_v2  ;;  %v1984_v50 = vor.u32 %v1983_v11, %v1980_v45  ;;  %v1683_v51 = vld [vmem:[#allocation2 + $0x78] sm:$0xf]  ;;  %v2508_v55 = vsel %vm6441_vm15, %v5222_v31, %v2507_v42  ;;  %v2385_v2 = vld [vmem:[#allocation2 + $0x8c] sm:$0x1] }
 0x132   : > { %3216 = vrot.lane.b32.xlu2 %v2993_v25, %s5889_s18  ;;  %v2524_v31 = vrot.slane %v2385_v2, 5  ;;  %v1995_v21 = vrot.slane %v1994_v53, 4  ;;  %v1997_v25 = vshll.u32 %v1868_v59, 16  ;;  %2729 = vst.msk [vmem:[#allocation3 + $0x98] sm:$0xf] %vm215_vm0, %v2697_v28  ;;  %v3056_v5 = vshrl.u32 %v6977_v20, 16 }
 0x133   : > { %v1985_v12 = vrot.slane %v1984_v50, 4  ;;  %v3320_v19 = vld [vmem:[#allocation2 + $0x30] sm:$0xe]  ;;  %v3321_v57 = vld [vmem:[#allocation2 + $0x34] sm:$0xf]  ;;  %v3017_v24 = vsel %vm5982_vm11, %v3012_v22, %v3016_v9  ;;  %v7027_v50 = vrot.slane %v3035_v29, 4 }
 0x134   : > { %2599 = vrot.lane.b32.xlu0 %v2518_v7, %s5889_s18  ;;  %v2570_v52 = vpop.permute.xlu2 %2569  ;;  %v5278_v54 = vld [vmem:[#allocation3 + $0x44] sm:$0xf0]  ;;  %v2521_v7 = vrot.slane %v6985_v8, 5  ;;  %v1999_v33 = vrot.slane %v1997_v25, 5  ;;  %v3322_v45 = vld [vmem:[#allocation2 + $0x38] sm:$0x1] }
 0x135   : > { %2661 = vst.msk [vmem:[#allocation3 + $0x58] sm:$0xf] %vm1357_vm12, %v2570_v52  ;;  %v5281_v13 = vor.u32 %v5736_v47, %v5278_v54  ;;  %v1990_v6 = vsel %vm5982_vm11, %v1985_v12, %v1989_v49  ;;  %v7003_v47 = vld [vmem:[#allocation2 + $0x78] sm:$0xe]  ;;  %v5232_v11 = vrot.slane %v3320_v19, 9  ;;  %v3429_v49 = vrot.slane %v3322_v45, 5 }
 0x136   : > { %v2572_v60 = vpop.permute.xlu0 %2571  ;;  %v5735_v37 = vld [vmem:[#allocation3 + $0x2c] sm:$0xf]  ;;  %1767 = vrot.lane.b32.xlu1 %v1684_v18, %s5889_s18  ;;  %v3049_v18 = vor.u32 %v3048_v46, %v3045_v32  ;;  %2327 = vst.msk [vmem:[#allocation3 + $0x80] sm:$0xf] %vm215_vm0, %v1990_v6  ;;  %v2523_v42 = vrot.slane %v2521_v7, 4  ;;  %v5223_v0 = vrot.slane %v7003_v47, 9 }
 0x137   : > { %2662 = vst.msk [vmem:[#allocation3 + $0x6c] sm:$0xf] %vm1357_vm12, %v2572_v60  ;;  %v5273_v38 = vor.u32 %v5735_v37, %v5270_v43  ;;  %4699 = vmatmul.bf16.gmra.mxu3 %v5281_v13  ;;  %v2696_v43 = vld [vmem:[#allocation2 + $0x3c] sm:$0xf]  ;;  %v2000_v37 = vsel %vm5982_vm11, %v1995_v21, %v1999_v33  ;;  %v1686_v20 = vld [vmem:[#allocation2 + $0x88] sm:$0xf] }
 0x138   : > { %v1740_v35 = vpop.permute.xlu1 %1739  ;;  %v3050_v44 = vrot.slane %v3049_v18, 4  ;;  %2728 = vst.msk [vmem:[#allocation3 + $0x84] sm:$0xf] %vm215_vm0, %v2696_v43  ;;  %v2525_v60 = vsel %vm6441_vm15, %v2523_v42, %v2524_v31  ;;  %v5741_v32 = vld [vmem:[#allocation3 + $0x5c] sm:$0xf]  ;;  %v7033_v12 = vrot.slane %v3056_v5, 4  ;;  %v2515_v47 = vsel %vm6441_vm15, %v5223_v0, %v2514_v36 }
 0x139   : > { %5711 = vmatmul.msk.bf16.gmra.mxu0 %vm4370_vm1, %v5285_v62  ;;  %1830 = vst.msk [vmem:[#allocation3 + $0x68] sm:$0xf] %vm1357_vm12, %v1740_v35  ;;  %4521 = vmatmul.bf16.gmra.mxu1 %v5273_v38  ;;  %v3426_v38 = vrot.slane %v3321_v57, 5  ;;  %v2783_v35 = vld [vmem:[#allocation2 + $0x8c] sm:$0x1] }
 0x13a   : > { %2593 = vrot.lane.b32.xlu2 %v2508_v55, %s5889_s18  ;;  %v3055_v14 = vsel %vm5982_vm11, %v3050_v44, %v6995_v23  ;;  %2328 = vst.msk [vmem:[#allocation3 + $0x94] sm:$0xf] %vm215_vm0, %v2000_v37  ;;  %v1400_v56 = vld [vmem:[#allocation2 + $0x28] sm:$0xf]  ;;  %v1401_v58 = vld [vmem:[#allocation2 + $0x2c] sm:$0x1] }
 0x13b   : > { %v3427_v54 = vsel %vm6441_vm15, %v5232_v11, %v3426_v38  ;;  %v3428_v62 = vrot.slane %v3426_v38, 4  ;;  %v1512_v17 = vrot.slane %v1400_v56, 5  ;;  %v1685_v53 = vld [vmem:[#allocation2 + $0x84] sm:$0xf]  ;;  %v3038_v55 = vshll.u32 %v2783_v35, 16 }
 0x13c   : > { %1765 = vrot.lane.b32.xlu0 %v1683_v51, %s5889_s18  ;;  %v3197_v10 = vpop.permute.xlu2 %3196  ;;  %v5296_v4 = vld [vmem:[#allocation3 + $0x58] sm:$0xf]  ;;  %3558 = vst.msk [vmem:[#allocation3 + $0x60] sm:$0xf] %vm215_vm0, %v3427_v54  ;;  %v1515_v63 = vrot.slane %v1401_v58, 5 }
 0x13d   : > { %3287 = vst.msk [vmem:[#allocation3 + $0x70] sm:$0xf] %vm1357_vm12, %v3197_v10  ;;  %v3430_v51 = vsel %vm6441_vm15, %v3428_v62, %v3429_v49  ;;  %v1399_v2 = vld [vmem:[#allocation2 + $0x24] sm:$0xe]  ;;  %v1514_v43 = vrot.slane %v1512_v17, 4  ;;  %v3040_v29 = vrot.slane %v3038_v55, 5 }
 0x13e   : > { %v1738_v48 = vpop.permute.xlu0 %1737  ;;  %v5743_v15 = vld [vmem:[#allocation3 + $0x68] sm:$0xf0]  ;;  %3226 = vrot.lane.b32.xlu1 %v3055_v14, %s5889_s18  ;;  %3559 = vst.msk [vmem:[#allocation3 + $0x74] sm:$0xf] %vm215_vm0, %v3430_v51  ;;  %v5201_v16 = vrot.slane %v1399_v2, 9 }
 0x13f   : > { %1829 = vst.msk [vmem:[#allocation3 + $0x54] sm:$0xf] %vm1357_vm12, %v1738_v48  ;;  %v5297_v34 = vor.u32 %v5743_v15, %v5296_v4  ;;  %v1869_v31 = vld [vmem:[#allocation2 + $0x3c] sm:$0xf]  ;;  %v1870_v21 = vld [vmem:[#allocation2 + $0x40] sm:$0xf]  ;;  %v1516_v25 = vsel %vm6441_vm15, %v1514_v43, %v1515_v63  ;;  %v3041_v51 = vsel %vm5982_vm11, %v7027_v50, %v3040_v29 }
 0x140   : > { %v3199_v27 = vpop.permute.xlu1 %3198  ;;  %v5290_v52 = vld [vmem:[#allocation3 + $0x64] sm:$0xf0]  ;;  %v1513_v22 = vsel %vm6441_vm15, %v5201_v16, %v1512_v17  ;;  %v2002_v48 = vshrl.u32 %v1869_v31, 16  ;;  %v2005_v15 = vshll.u32 %v1869_v31, 16  ;;  %v2787_v44 = vld [vmem:[#allocation2 + $0x9c] sm:$0xf] }
 0x141   : > { %3288 = vst.msk [vmem:[#allocation3 + $0x84] sm:$0xf] %vm1357_vm12, %v3199_v27  ;;  %4615 = vmatmul.bf16.gmra.mxu2 %v5297_v34  ;;  %v2011_v9 = vshll.u32 %v1870_v21, 16  ;;  %v2015_v33 = vshrl.u32 %v1870_v21, 16  ;;  %v7048_v28 = vld [vmem:[#allocation2 + $0xa0] sm:$0xf] }
 0x142   : > { %3220 = vrot.lane.b32.xlu2 %v3017_v24, %s5889_s18  ;;  %1640 = vst.msk [vmem:[#allocation3 + $0x90] sm:$0xf] %vm215_vm0, %v1516_v25  ;;  %v2004_v4 = vrot.slane %v2002_v48, 4  ;;  %v2007_v14 = vrot.slane %v2005_v15, 5  ;;  %v3067_v27 = vshrl.u32 %v2787_v44, 16  ;;  %v3070_v19 = vshll.u32 %v2787_v44, 16 }
 0x143   : > { %v5304_v10 = vld [vmem:[#allocation3 + $0x60] sm:$0xf]  ;;  %1639 = vst.msk [vmem:[#allocation3 + $0x7c] sm:$0xf] %vm215_vm0, %v1513_v22  ;;  %v2013_v40 = vrot.slane %v2011_v9, 5  ;;  %v3076_v36 = vshll.u32 %v7048_v28, 16 }
 0x144   : > { %2603 = vrot.lane.b32.xlu0 %v2525_v60, %s5889_s18  ;;  %v2574_v6 = vpop.permute.xlu2 %2573  ;;  %v5298_v18 = vld [vmem:[#allocation3 + $0x6c] sm:$0xf0]  ;;  %v2008_v5 = vor.u32 %v2007_v14, %v2004_v4  ;;  %v7055_v37 = vld [vmem:[#allocation2 + $0x94] sm:$0xf]  ;;  %v2017_v57 = vrot.slane %v2015_v33, 4  ;;  %v3069_v11 = vrot.slane %v3067_v27, 4 }
 0x145   : > { %2663 = vst.msk [vmem:[#allocation3 + $0x80] sm:$0xf] %vm1357_vm12, %v2574_v6  ;;  %v5301_v42 = vor.u32 %v5741_v32, %v5298_v18  ;;  %v5744_v45 = vld [vmem:[#allocation3 + $0x70] sm:$0xf0]  ;;  %v3072_v38 = vrot.slane %v3070_v19, 5  ;;  %v3080_v19 = vshrl.u32 %v7048_v28, 16 }
 0x146   : > { %v2576_v61 = vpop.permute.xlu0 %2575  ;;  %v5740_v13 = vld [vmem:[#allocation3 + $0x54] sm:$0xf]  ;;  %1771 = vrot.lane.b32.xlu1 %v1686_v20, %s5889_s18  ;;  %v5305_v0 = vor.u32 %v5744_v45, %v5304_v10  ;;  %v2009_v49 = vrot.slane %v2008_v5, 4  ;;  %v2388_v54 = vld [vmem:[#allocation2 + $0x98] sm:$0x1]  ;;  %v2018_v35 = vor.u32 %v2017_v57, %v2013_v40  ;;  %v3059_v45 = vor.u32 %v7033_v12, %v6995_v23 }
 0x147   : > { %2664 = vst.msk [vmem:[#allocation3 + $0x94] sm:$0xf] %vm1357_vm12, %v2576_v61  ;;  %v5293_v46 = vor.u32 %v5740_v13, %v5290_v52  ;;  %4704 = vmatmul.bf16.gmra.mxu3 %v5301_v42  ;;  %v7058_v52 = vrot.slane %v3076_v36, 5  ;;  %v3073_v56 = vor.u32 %v3072_v38, %v3069_v11  ;;  %v2528_v61 = vrot.slane %v7055_v37, 5  ;;  %v2383_v17 = vld [vmem:[#allocation2 + $0x84] sm:$0xe] }
 0x148   : > { %v1744_v59 = vpop.permute.xlu1 %1743  ;;  %v2531_v13 = vrot.slane %v2388_v54, 5  ;;  %v2014_v58 = vsel %vm5982_vm11, %v2009_v49, %v2013_v40  ;;  %v2019_v2 = vrot.slane %v2018_v35, 4  ;;  %v5746_v18 = vld [vmem:[#allocation3 + $0x84] sm:$0xf]  ;;  %v2699_v43 = vld [vmem:[#allocation2 + $0x4c] sm:$0xf] }
 0x149   : > { %4526 = vmatmul.bf16.gmra.mxu1 %v5293_v46  ;;  %1832 = vst.msk [vmem:[#allocation3 + $0x90] sm:$0xf] %vm1357_vm12, %v1744_v59  ;;  %5712 = vmatmul.msk.bf16.gmra.mxu0 %vm4370_vm1, %v5305_v0  ;;  %v2698_v46 = vld [vmem:[#allocation2 + $0x48] sm:$0xf]  ;;  %v3074_v55 = vrot.slane %v3073_v56, 4  ;;  %v2530_v63 = vrot.slane %v2528_v61, 4 }
 0x14a   : > { %2597 = vrot.lane.b32.xlu2 %v2515_v47, %s5889_s18  ;;  %2329 = vst.msk [vmem:[#allocation3 + $0xa8] sm:$0xf] %vm215_vm0, %v2014_v58  ;;  %v5224_v42 = vrot.slane %v2383_v17, 9  ;;  %v3323_v21 = vld [vmem:[#allocation2 + $0x3c] sm:$0xe]  ;;  %v3060_v8 = vrot.slane %v3059_v45, 4 }
 0x14b   : > { %2730 = vst.msk [vmem:[#allocation3 + $0xac] sm:$0xf] %vm215_vm0, %v2698_v46  ;;  %v3079_v59 = vsel %vm5982_vm11, %v3074_v55, %v7058_v52  ;;  %v2532_v16 = vsel %vm6441_vm15, %v2530_v63, %v2531_v13  ;;  %v3324_v48 = vld [vmem:[#allocation2 + $0x40] sm:$0xf]  ;;  %v3325_v47 = vld [vmem:[#allocation2 + $0x44] sm:$0x1]  ;;  %v7113_v55 = vpop.f32.mrf.mxu1 }
 0x14c   : > { %1769 = vrot.lane.b32.xlu0 %v1685_v53, %s5889_s18  ;;  %v3201_v24 = vpop.permute.xlu2 %3200  ;;  %v5316_v32 = vld [vmem:[#allocation3 + $0x80] sm:$0xf]  ;;  %v1871_v53 = vld [vmem:[#allocation2 + $0x44] sm:$0x1]  ;;  %2731 = vst.msk [vmem:[#allocation3 + $0xc0] sm:$0xf] %vm215_vm0, %v2699_v43  ;;  %v2522_v28 = vsel %vm6441_vm15, %v5224_v42, %v2521_v7 }
 0x14d   : > { %3289 = vst.msk [vmem:[#allocation3 + $0x98] sm:$0xf] %vm1357_vm12, %v3201_v24  ;;  %v2021_v6 = vshll.u32 %v1871_v53, 16  ;;  %v5233_v9 = vrot.slane %v3323_v21, 9  ;;  %v3433_v33 = vrot.slane %v3324_v48, 5  ;;  %v3436_v14 = vrot.slane %v3325_v47, 5 }
 0x14e   : > { %v1742_v34 = vpop.permute.xlu0 %1741  ;;  %v5748_v60 = vld [vmem:[#allocation3 + $0x90] sm:$0xf0]  ;;  %3230 = vrot.lane.b32.xlu1 %v3079_v59, %s5889_s18  ;;  %v1688_v5 = vld [vmem:[#allocation2 + $0x94] sm:$0xf]  ;;  %v2786_v57 = vld [vmem:[#allocation2 + $0x98] sm:$0x1] }
 0x14f   : > { %1831 = vst.msk [vmem:[#allocation3 + $0x7c] sm:$0xf] %vm1357_vm12, %v1742_v34  ;;  %v5317_v20 = vor.u32 %v5748_v60, %v5316_v32  ;;  %v2023_v31 = vrot.slane %v2021_v6, 5  ;;  %v3434_v36 = vsel %vm6441_vm15, %v5233_v9, %v3433_v33  ;;  %v3435_v29 = vrot.slane %v3433_v33, 4  ;;  %v7089_v34 = vpop.f32.mrf.mxu2  ;;  %v1687_v60 = vld [vmem:[#allocation2 + $0x90] sm:$0xf] }
 0x150   : > { %v3203_v62 = vpop.permute.xlu1 %3202  ;;  %v5310_v50 = vld [vmem:[#allocation3 + $0x8c] sm:$0xf0]  ;;  %v1403_v11 = vld [vmem:[#allocation2 + $0x34] sm:$0xf]  ;;  %3560 = vst.msk [vmem:[#allocation3 + $0x88] sm:$0xf] %vm215_vm0, %v3434_v36 }
 0x151   : > { %4620 = vmatmul.bf16.gmra.mxu2 %v5317_v20  ;;  %3290 = vst.msk [vmem:[#allocation3 + $0xac] sm:$0xf] %vm1357_vm12, %v3203_v62  ;;  %v2024_v15 = vsel %vm5982_vm11, %v2019_v2, %v2023_v31  ;;  %v3437_v38 = vsel %vm6441_vm15, %v3435_v29, %v3436_v14  ;;  %v3062_v24 = vshll.u32 %v2786_v57, 16  ;;  %v1404_v0 = vld [vmem:[#allocation2 + $0x38] sm:$0x1]  ;;  %v1519_v49 = vrot.slane %v1403_v11, 5 }
 0x152   : > { %3224 = vrot.lane.b32.xlu2 %v3041_v51, %s5889_s18  ;;  %2330 = vst.msk [vmem:[#allocation3 + $0xbc] sm:$0xf] %vm215_vm0, %v2024_v15  ;;  %v1522_v32 = vrot.slane %v1404_v0, 5  ;;  %v1402_v23 = vld [vmem:[#allocation2 + $0x30] sm:$0xe]  ;;  %v7111_v53 = vrot.slane %v3080_v19, 4 }
 0x153   : > { %3561 = vst.msk [vmem:[#allocation3 + $0x9c] sm:$0xf] %vm215_vm0, %v3437_v38  ;;  %v1521_v12 = vrot.slane %v1519_v49, 4  ;;  %v5202_v54 = vrot.slane %v1402_v23, 9  ;;  %v1872_v62 = vld [vmem:[#allocation2 + $0x48] sm:$0xf] }
 0x154   : > { %2607 = vrot.lane.b32.xlu0 %v2532_v16, %s5889_s18  ;;  %v2578_v10 = vpop.permute.xlu2 %2577  ;;  %v5318_v4 = vld [vmem:[#allocation3 + $0x94] sm:$0xf0]  ;;  %v1873_v35 = vld [vmem:[#allocation2 + $0x4c] sm:$0xf]  ;;  %v2026_v20 = vshrl.u32 %v1872_v62, 16  ;;  %v2029_v56 = vshll.u32 %v1872_v62, 16 }
 0x155   : > { %2665 = vst.msk [vmem:[#allocation3 + $0xa8] sm:$0xf] %vm1357_vm12, %v2578_v10  ;;  %v5321_v27 = vor.u32 %v5746_v18, %v5318_v4  ;;  %v3064_v13 = vrot.slane %v3062_v24, 5  ;;  %v1523_v51 = vsel %vm6441_vm15, %v1521_v12, %v1522_v32  ;;  %v1520_v58 = vsel %vm6441_vm15, %v5202_v54, %v1519_v49  ;;  %v2790_v17 = vld [vmem:[#allocation2 + $0xa8] sm:$0xf] }
 0x156   : > { %v2580_v25 = vpop.permute.xlu0 %2579  ;;  %v5745_v22 = vld [vmem:[#allocation3 + $0x7c] sm:$0xf]  ;;  %1775 = vrot.lane.b32.xlu1 %v1688_v5, %s5889_s18  ;;  %v7109_v46 = vld [vmem:[#allocation2 + $0xac] sm:$0xf]  ;;  %1642 = vst.msk [vmem:[#allocation3 + $0xb8] sm:$0xf] %vm215_vm0, %v1523_v51 }
 0x157   : > { %v5313_v44 = vor.u32 %v5745_v22, %v5310_v50  ;;  %2666 = vst.msk [vmem:[#allocation3 + $0xbc] sm:$0xf] %vm1357_vm12, %v2580_v25  ;;  %4709 = vmatmul.bf16.gmra.mxu3 %v5321_v27  ;;  %v2028_v2 = vrot.slane %v2026_v20, 4  ;;  %v2031_v6 = vrot.slane %v2029_v56, 5  ;;  %v2035_v18 = vshll.u32 %v1873_v35, 16  ;;  %v7117_v50 = vpop.f32.mrf.mxu3  ;;  %v7123_v47 = vpop.f32.mrf.mxu2 }
 0x158   : > { %v1748_v40 = vpop.permute.xlu1 %1747  ;;  %v3091_v43 = vshrl.u32 %v2790_v17, 16  ;;  %v2039_v59 = vshrl.u32 %v1873_v35, 16  ;;  %v3094_v42 = vshll.u32 %v2790_v17, 16  ;;  %v5324_v21 = vld [vmem:[#allocation3 + $0x88] sm:$0xf]  ;;  %v3065_v15 = vsel %vm5982_vm11, %v3060_v8, %v3064_v13  ;;  %v7148_v13 = vpop.f32.mrf.mxu1 }
 0x159   : > { %4531 = vmatmul.bf16.gmra.mxu1 %v5313_v44  ;;  %1834 = vst.msk [vmem:[#allocation3 + $0xb8] sm:$0xf] %vm1357_vm12, %v1748_v40  ;;  %v2032_v25 = vor.u32 %v2031_v6, %v2028_v2  ;;  %v2037_v14 = vrot.slane %v2035_v18, 5  ;;  %v5751_v27 = vld [vmem:[#allocation3 + $0xac] sm:$0xf]  ;;  %v3100_v40 = vshll.u32 %v7109_v46, 16  ;;  %v3083_v56 = vor.u32 %v7111_v53, %v7058_v52 }
 0x15a   : > { %2601 = vrot.lane.b32.xlu2 %v2522_v28, %s5889_s18  ;;  %v5749_v48 = vld [vmem:[#allocation3 + $0x98] sm:$0xf0]  ;;  %1641 = vst.msk [vmem:[#allocation3 + $0xa4] sm:$0xf] %vm215_vm0, %v1520_v58  ;;  %v3093_v9 = vrot.slane %v3091_v43, 4  ;;  %v3096_v33 = vrot.slane %v3094_v42, 5 }
 0x15b   : > { %v5325_v10 = vor.u32 %v5749_v48, %v5324_v21  ;;  %v2033_v4 = vrot.slane %v2032_v25, 4  ;;  %v7127_v36 = vld [vmem:[#allocation2 + $0xa0] sm:$0xf]  ;;  %v2391_v29 = vld [vmem:[#allocation2 + $0xa4] sm:$0x1]  ;;  %v7135_v45 = vrot.slane %v3100_v40, 5 }
 0x15c   : > { %1773 = vrot.lane.b32.xlu0 %v1687_v60, %s5889_s18  ;;  %v3205_v63 = vpop.permute.xlu2 %3204  ;;  %v5336_v16 = vld [vmem:[#allocation3 + $0xa8] sm:$0xf]  ;;  %v3097_v19 = vor.u32 %v3096_v33, %v3093_v9  ;;  %v2386_v5 = vld [vmem:[#allocation2 + $0x90] sm:$0xe]  ;;  %v7129_v60 = vpop.f32.mrf.mxu0  ;;  %v2535_v11 = vrot.slane %v7127_v36, 5  ;;  %v2538_v28 = vrot.slane %v2391_v29, 5 }
 0x15d   : > { %3291 = vst.msk [vmem:[#allocation3 + $0xc0] sm:$0xf] %vm1357_vm12, %v3205_v63  ;;  %5713 = vmatmul.msk.bf16.gmra.mxu0 %vm4370_vm1, %v5325_v10  ;;  %v2038_v57 = vsel %vm5982_vm11, %v2033_v4, %v2037_v14  ;;  %v2700_v38 = vld [vmem:[#allocation2 + $0x54] sm:$0xf]  ;;  %v5225_v49 = vrot.slane %v2386_v5, 9  ;;  %v2041_v62 = vrot.slane %v2039_v59, 4 }
 0x15e   : > { %v1746_v7 = vpop.permute.xlu0 %1745  ;;  %v5753_v22 = vld [vmem:[#allocation3 + $0xb8] sm:$0xf0]  ;;  %2331 = vst.msk [vmem:[#allocation3 + $0xd0] sm:$0xf] %vm215_vm0, %v2038_v57  ;;  %v3098_v0 = vrot.slane %v3097_v19, 4  ;;  %v2537_v54 = vrot.slane %v2535_v11, 4 }
 0x15f   : > { %v5337_v44 = vor.u32 %v5753_v22, %v5336_v16  ;;  %1833 = vst.msk [vmem:[#allocation3 + $0xa4] sm:$0xf] %vm1357_vm12, %v1746_v7  ;;  %v1874_v32 = vld [vmem:[#allocation2 + $0x50] sm:$0x1]  ;;  %v2701_v20 = vld [vmem:[#allocation2 + $0x58] sm:$0xf]  ;;  %v2042_v58 = vor.u32 %v2041_v62, %v2037_v14  ;;  %v7154_v2 = vpop.f32.mrf.mxu3  ;;  %v2529_v52 = vsel %vm6441_vm15, %v5225_v49, %v2528_v61  ;;  %v7162_v22 = vpop.f32.mrf.mxu2 }
 0x160   : > { %v3207_v31 = vpop.permute.xlu1 %3206  ;;  %2732 = vst.msk [vmem:[#allocation3 + $0xd4] sm:$0xf] %vm215_vm0, %v2700_v38  ;;  %v3103_v7 = vsel %vm5982_vm11, %v3098_v0, %v7135_v45  ;;  %v2045_v35 = vshll.u32 %v1874_v32, 16  ;;  %v2539_v51 = vsel %vm6441_vm15, %v2537_v54, %v2538_v28  ;;  %v5330_v17 = vld [vmem:[#allocation3 + $0xb4] sm:$0xf0]  ;;  %v3104_v29 = vshrl.u32 %v7109_v46, 16 }
 0x161   : > { %4625 = vmatmul.bf16.gmra.mxu2 %v5337_v44  ;;  %3234 = vrot.lane.b32.xlu1 %v3103_v7, %s5889_s18  ;;  %3292 = vst.msk [vmem:[#allocation3 + $0xd4] sm:$0xf] %vm1357_vm12, %v3207_v31  ;;  %v3326_v63 = vld [vmem:[#allocation2 + $0x48] sm:$0xe]  ;;  %v2043_v59 = vrot.slane %v2042_v58, 4 }
 0x162   : > { %3228 = vrot.lane.b32.xlu2 %v3065_v15, %s5889_s18  ;;  %8035 = vst [vmem:[#allocation4_spill] sm:$0xff] %v7154_v2  ;;  %v2047_v53 = vrot.slane %v2045_v35, 5  ;;  %v5234_v18 = vrot.slane %v3326_v63, 9  ;;  %v3327_v42 = vld [vmem:[#allocation2 + $0x4c] sm:$0xf]  ;;  %v3084_v15 = vrot.slane %v3083_v56, 4 }
 0x163   : > { %2733 = vst.msk [vmem:[#allocation3 + $0xe8] sm:$0xf] %vm215_vm0, %v2701_v20  ;;  %v3328_v31 = vld [vmem:[#allocation2 + $0x50] sm:$0x1]  ;;  %v3440_v21 = vrot.slane %v3327_v42, 5  ;;  %v7190_v35 = vrot.slane %v3104_v29, 4 }
 0x164   : > { %v2582_v23 = vpop.permute.xlu2 %2581  ;;  %v5338_v12 = vld [vmem:[#allocation3 + $0xbc] sm:$0xf0]  ;;  %2611 = vrot.lane.b32.xlu0 %v2539_v51, %s5889_s18  ;;  %v3443_v25 = vrot.slane %v3328_v31, 5  ;;  %v1690_v48 = vld [vmem:[#allocation2 + $0xa0] sm:$0xf]  ;;  %v2048_v37 = vsel %vm5982_vm11, %v2043_v59, %v2047_v53  ;;  %v7170_v19 = vpop.f32.mrf.mxu0 }
 0x165   : > { %2667 = vst.msk [vmem:[#allocation3 + $0xd0] sm:$0xf] %vm1357_vm12, %v2582_v23  ;;  %v5341_v8 = vor.u32 %v5751_v27, %v5338_v12  ;;  %v1689_v61 = vld [vmem:[#allocation2 + $0x9c] sm:$0xf]  ;;  %v2789_v44 = vld [vmem:[#allocation2 + $0xa4] sm:$0x1]  ;;  %v3441_v4 = vsel %vm6441_vm15, %v5234_v18, %v3440_v21  ;;  %v7177_v23 = vpop.f32.mrf.mxu1 }
 0x166   : > { %v2584_v24 = vpop.permute.xlu0 %2583  ;;  %v5750_v6 = vld [vmem:[#allocation3 + $0xa4] sm:$0xf]  ;;  %v1406_v9 = vld [vmem:[#allocation2 + $0x40] sm:$0xf]  ;;  %v1407_v33 = vld [vmem:[#allocation2 + $0x44] sm:$0x1] }
 0x167   : > { %4714 = vmatmul.bf16.gmra.mxu3 %v5341_v8  ;;  %v5333_v16 = vor.u32 %v5750_v6, %v5330_v17  ;;  %2332 = vst.msk [vmem:[#allocation3 + $0xe4] sm:$0xf] %vm215_vm0, %v2048_v37  ;;  %v3442_v14 = vrot.slane %v3440_v21, 4  ;;  %v3086_v27 = vshll.u32 %v2789_v44, 16  ;;  %v1526_v40 = vrot.slane %v1406_v9, 5  ;;  %v7192_v20 = vpop.f32.mrf.mxu3 }
 0x168   : > { %v1752_v43 = vpop.permute.xlu1 %1751  ;;  %2668 = vst.msk [vmem:[#allocation3 + $0xe4] sm:$0xf] %vm1357_vm12, %v2584_v24  ;;  %v1529_v57 = vrot.slane %v1407_v33, 5  ;;  %v1405_v28 = vld [vmem:[#allocation2 + $0x3c] sm:$0xe] }
 0x169   : > { %4536 = vmatmul.bf16.gmra.mxu1 %v5333_v16  ;;  %v3444_v38 = vsel %vm6441_vm15, %v3442_v14, %v3443_v25  ;;  %v3088_v0 = vrot.slane %v3086_v27, 5  ;;  %v1528_v49 = vrot.slane %v1526_v40, 4  ;;  %v5203_v32 = vrot.slane %v1405_v28, 9  ;;  %3562 = vst.msk [vmem:[#allocation3 + $0xb0] sm:$0xf] %vm215_vm0, %v3441_v4  ;;  %1779 = vrot.lane.b32.xlu1 %v1690_v48, %s5889_s18  ;;  %v7200_v16 = vpop.f32.mrf.mxu2 }
 0x16a   : > { %2605 = vrot.lane.b32.xlu2 %v2529_v52, %s5889_s18  ;;  %v1875_v46 = vld [vmem:[#allocation2 + $0x54] sm:$0xf]  ;;  %v1876_v12 = vld [vmem:[#allocation2 + $0x58] sm:$0xf]  ;;  %3563 = vst.msk [vmem:[#allocation3 + $0xc4] sm:$0xf] %vm215_vm0, %v3444_v38 }
 0x16b   : > { %v3089_v24 = vsel %vm5982_vm11, %v3084_v15, %v3088_v0  ;;  %v1530_v54 = vsel %vm6441_vm15, %v1528_v49, %v1529_v57  ;;  %v1527_v62 = vsel %vm6441_vm15, %v5203_v32, %v1526_v40  ;;  %v2050_v8 = vshrl.u32 %v1875_v46, 16  ;;  %8036 = vst [vmem:[#allocation5_spill] sm:$0xff] %v7192_v20  ;;  %v5756_v17 = vld [vmem:[#allocation3 + $0xd4] sm:$0xf]  ;;  %v2793_v6 = vld [vmem:[#allocation2 + $0xb4] sm:$0xf] }
 0x16c   : > { %v3209_v5 = vpop.permute.xlu2 %3208  ;;  %1777 = vrot.lane.b32.xlu0 %v1689_v61, %s5889_s18  ;;  %1644 = vst.msk [vmem:[#allocation3 + $0xe0] sm:$0xf] %vm215_vm0, %v1530_v54  ;;  %v2053_v7 = vshll.u32 %v1875_v46, 16  ;;  %v2059_v51 = vshll.u32 %v1876_v12, 16  ;;  %v5356_v58 = vld [vmem:[#allocation3 + $0xd0] sm:$0xf]  ;;  %v7204_v21 = vpop.f32.mrf.mxu0 }
 0x16d   : > { %3293 = vst.msk [vmem:[#allocation3 + $0xe8] sm:$0xf] %vm1357_vm12, %v3209_v5  ;;  %v2052_v56 = vrot.slane %v2050_v8, 4  ;;  %v2063_v53 = vshrl.u32 %v1876_v12, 16  ;;  %v3115_v15 = vshrl.u32 %v2793_v6, 16  ;;  %v3118_v37 = vshll.u32 %v2793_v6, 16  ;;  %v7212_v32 = vpop.f32.mrf.mxu1 }
 0x16e   : > { %v1750_v10 = vpop.permute.xlu0 %1749  ;;  %1836 = vst.msk [vmem:[#allocation3 + $0xe0] sm:$0xf] %vm1357_vm12, %v1752_v43  ;;  %v2055_v52 = vrot.slane %v2053_v7, 5  ;;  %v7202_v43 = vld [vmem:[#allocation2 + $0xb8] sm:$0xf]  ;;  %v2061_v9 = vrot.slane %v2059_v51, 5  ;;  %v3107_v6 = vor.u32 %v7190_v35, %v7135_v45 }
 0x16f   : > { %1643 = vst.msk [vmem:[#allocation3 + $0xcc] sm:$0xf] %vm215_vm0, %v1527_v62  ;;  %v5758_v59 = vld [vmem:[#allocation3 + $0xe0] sm:$0xf0]  ;;  %v7206_v61 = vld [vmem:[#allocation2 + $0xac] sm:$0xf] }
 0x170   : > { %v3211_v63 = vpop.permute.xlu1 %3210  ;;  %1835 = vst.msk [vmem:[#allocation3 + $0xcc] sm:$0xf] %vm1357_vm12, %v1750_v10  ;;  %v2056_v42 = vor.u32 %v2055_v52, %v2052_v56  ;;  %v5357_v25 = vor.u32 %v5758_v59, %v5356_v58  ;;  %v5344_v44 = vld [vmem:[#allocation3 + $0xb0] sm:$0xf]  ;;  %v3124_v10 = vshll.u32 %v7202_v43, 16  ;;  %v3117_v40 = vrot.slane %v3115_v15, 4  ;;  %v7230_v59 = vpop.f32.mrf.mxu3 }
 0x171   : > { %v2394_v4 = vld [vmem:[#allocation2 + $0xb0] sm:$0x1]  ;;  %v5754_v14 = vld [vmem:[#allocation3 + $0xc0] sm:$0xf0]  ;;  %v3120_v29 = vrot.slane %v3118_v37, 5  ;;  %v2542_v5 = vrot.slane %v7206_v61, 5 }
 0x172   : > { %3232 = vrot.lane.b32.xlu2 %v3089_v24, %s5889_s18  ;;  %v2057_v27 = vrot.slane %v2056_v42, 4  ;;  %4630 = vmatmul.bf16.gmra.mxu2 %v5357_v25  ;;  %v5345_v57 = vor.u32 %v5754_v14, %v5344_v44  ;;  %v7210_v28 = vrot.slane %v3124_v10, 5  ;;  %v2545_v38 = vrot.slane %v2394_v4, 5  ;;  %v2389_v0 = vld [vmem:[#allocation2 + $0x9c] sm:$0xe]  ;;  %8037 = vst [vmem:[#allocation6_spill] sm:$0xff] %v7230_v59 }
 0x173   : > { %v2702_v49 = vld [vmem:[#allocation2 + $0x60] sm:$0xf]  ;;  %v3121_v12 = vor.u32 %v3120_v29, %v3117_v40  ;;  %v2544_v24 = vrot.slane %v2542_v5, 4  ;;  %v5226_v54 = vrot.slane %v2389_v0, 9  ;;  %v1877_v62 = vld [vmem:[#allocation2 + $0x5c] sm:$0x1] }
 0x174   : > { %v2586_v31 = vpop.permute.xlu2 %2585  ;;  %v5358_v48 = vld [vmem:[#allocation3 + $0xe4] sm:$0xf0]  ;;  %v2062_v46 = vsel %vm5982_vm11, %v2057_v27, %v2061_v9  ;;  %2734 = vst.msk [vmem:[#allocation3 + $0xfc] sm:$0xf] %vm215_vm0, %v2702_v49  ;;  %5714 = vmatmul.msk.bf16.gmra.mxu0 %vm4370_vm1, %v5345_v57  ;;  %v2065_v8 = vrot.slane %v2063_v53, 4  ;;  %v2069_v7 = vshll.u32 %v1877_v62, 16 }
 0x175   : > { %v5361_v33 = vor.u32 %v5756_v17, %v5358_v48  ;;  %2333 = vst.msk [vmem:[#allocation3 + $0xf8] sm:$0xf] %vm215_vm0, %v2062_v46  ;;  %v2703_v56 = vld [vmem:[#allocation2 + $0x64] sm:$0xf]  ;;  %v3122_v51 = vrot.slane %v3121_v12, 4  ;;  %v2546_v58 = vsel %vm6441_vm15, %v2544_v24, %v2545_v38  ;;  %v2536_v17 = vsel %vm6441_vm15, %v5226_v54, %v2535_v11 }
 0x176   : > { %v7197_v18 = vpop.permute.xlu0 %2587  ;;  %2669 = vst.msk [vmem:[#allocation3 + $0xf8] sm:$0xf] %vm1357_vm12, %v2586_v31  ;;  %2615 = vrot.lane.b32.xlu0 %v2546_v58, %s5889_s18  ;;  %v2066_v53 = vor.u32 %v2065_v8, %v2061_v9  ;;  %v2071_v42 = vrot.slane %v2069_v7, 5  ;;  %v5350_v31 = vld [vmem:[#allocation3 + $0xdc] sm:$0xf0]  ;;  %v7243_v9 = vpop.f32.mrf.mxu2  ;;  %v3108_v27 = vrot.slane %v3107_v6, 4 }
 0x177   : > { %4719 = vmatmul.bf16.gmra.mxu3 %v5361_v33  ;;  %v5755_v52 = vld [vmem:[#allocation3 + $0xcc] sm:$0xf]  ;;  %3294 = vst.msk [vmem:[#allocation3 + $0xfc] sm:$0xf] %vm1357_vm12, %v3211_v63  ;;  %v3127_v36 = vsel %vm5982_vm11, %v3122_v51, %v7210_v28  ;;  %v3329_v35 = vld [vmem:[#allocation2 + $0x54] sm:$0xe]  ;;  %v7245_v33 = vpop.f32.mrf.mxu0 }
 0x178   : > { %v1756_v25 = vpop.permute.xlu1 %1755  ;;  %2735 = vst.msk [vmem:[#allocation3 + $0x110] sm:$0xf] %vm215_vm0, %v2703_v56  ;;  %v5353_v45 = vor.u32 %v5755_v52, %v5350_v31  ;;  %v3330_v48 = vld [vmem:[#allocation2 + $0x58] sm:$0xf]  ;;  %3238 = vrot.lane.b32.xlu1 %v3127_v36, %s5889_s18  ;;  %v2067_v37 = vrot.slane %v2066_v53, 4  ;;  %v5235_v44 = vrot.slane %v3329_v35, 9 }
 0x179   : > { %v3331_v63 = vld [vmem:[#allocation2 + $0x5c] sm:$0x1]  ;;  %v3447_v10 = vrot.slane %v3330_v48, 5  ;;  %v1691_v14 = vld [vmem:[#allocation2 + $0xa8] sm:$0xf]  ;;  %v7252_v54 = vpop.f32.mrf.mxu1  ;;  %v3128_v62 = vshrl.u32 %v7202_v43, 16 }
 0x17a   : > { %2609 = vrot.lane.b32.xlu2 %v2536_v17, %s5889_s18  ;;  %4541 = vmatmul.bf16.gmra.mxu1 %v5353_v45  ;;  %v3450_v4 = vrot.slane %v3331_v63, 5  ;;  %v2072_v40 = vsel %vm5982_vm11, %v2067_v37, %v2071_v42  ;;  %v2792_v29 = vld [vmem:[#allocation2 + $0xb0] sm:$0x1]  ;;  %v1409_v57 = vld [vmem:[#allocation2 + $0x4c] sm:$0xf] }
 0x17b   : > { %v1410_v38 = vld [vmem:[#allocation2 + $0x50] sm:$0x1]  ;;  %2334 = vst.msk [vmem:[#allocation3 + $0x10c] sm:$0xf] %vm215_vm0, %v2072_v40  ;;  %v3448_v0 = vsel %vm6441_vm15, %v5235_v44, %v3447_v10  ;;  %v3449_v49 = vrot.slane %v3447_v10, 4  ;;  %v3110_v12 = vshll.u32 %v2792_v29, 16 }
 0x17c   : > { %v3213_v11 = vpop.permute.xlu2 %3212  ;;  %v1692_v46 = vld [vmem:[#allocation2 + $0xac] sm:$0xf]  ;;  %v1533_v24 = vrot.slane %v1409_v57, 5  ;;  %2670 = vst.msk [vmem:[#allocation3 + $0x10c] sm:$0xf] %vm1357_vm12, %v7197_v18  ;;  %v1536_v8 = vrot.slane %v1410_v38, 5 }
 0x17d   : > { %3295 = vst.msk [vmem:[#allocation3 + $0x110] sm:$0xf] %vm1357_vm12, %v3213_v11  ;;  %v1408_v7 = vld [vmem:[#allocation2 + $0x48] sm:$0xe]  ;;  %v3451_v56 = vsel %vm6441_vm15, %v3449_v49, %v3450_v4  ;;  %v3112_v51 = vrot.slane %v3110_v12, 5  ;;  %v7269_v11 = vpop.f32.mrf.mxu3 }
 0x17e   : > { %v7239_v15 = vpop.permute.xlu0 %1753  ;;  %3564 = vst.msk [vmem:[#allocation3 + $0xd8] sm:$0xf] %vm215_vm0, %v3448_v0  ;;  %v1535_v58 = vrot.slane %v1533_v24, 4  ;;  %v5204_v17 = vrot.slane %v1408_v7, 9  ;;  %1781 = vrot.lane.b32.xlu0 %v1691_v14, %s5889_s18  ;;  %v1878_v52 = vld [vmem:[#allocation2 + $0x60] sm:$0xf]  ;;  %v7282_v38 = vpop.f32.mrf.mxu2 }
 0x17f   : > { %3565 = vst.msk [vmem:[#allocation3 + $0xec] sm:$0xf] %vm215_vm0, %v3451_v56  ;;  %v1879_v6 = vld [vmem:[#allocation2 + $0x64] sm:$0xf]  ;;  %v3113_v43 = vsel %vm5982_vm11, %v3108_v27, %v3112_v51  ;;  %v2074_v42 = vshrl.u32 %v1878_v52, 16  ;;  %v2077_v45 = vshll.u32 %v1878_v52, 16 }
 0x180   : > { %v1537_v18 = vsel %vm6441_vm15, %v1535_v58, %v1536_v8  ;;  %v1534_v53 = vsel %vm6441_vm15, %v5204_v17, %v1533_v24  ;;  %v5761_v36 = vld [vmem:[#allocation3 + $0xfc] sm:$0xf]  ;;  %1783 = vrot.lane.b32.xlu1 %v1692_v46, %s5889_s18  ;;  %8038 = vst [vmem:[#allocation7_spill] sm:$0xff] %v7269_v11  ;;  %v2083_v35 = vshll.u32 %v1879_v6, 16  ;;  %v2087_v48 = vshrl.u32 %v1879_v6, 16  ;;  %v7274_v10 = vpop.permute.xlu1 %3214 }
 0x181   : > { %1646 = vst.msk [vmem:[#allocation3 + $0x108] sm:$0xf] %vm215_vm0, %v1537_v18  ;;  %v2076_v37 = vrot.slane %v2074_v42, 4  ;;  %v5376_v63 = vld [vmem:[#allocation3 + $0xf8] sm:$0xf]  ;;  %v7278_v14 = vrot.slane %v3128_v62, 4  ;;  %v7291_v6 = vpop.f32.mrf.mxu1 }
 0x182   : > { %3236 = vrot.lane.b32.xlu2 %v3113_v43, %s5889_s18  ;;  %1838 = vst.msk [vmem:[#allocation3 + $0x108] sm:$0xf] %vm1357_vm12, %v1756_v25  ;;  %v2079_v27 = vrot.slane %v2077_v45, 5  ;;  %v2085_v40 = vrot.slane %v2083_v35, 5  ;;  %v213_v57 = vld [vmem:[%s5950_s17 + $0x78] sm:$0xf]  ;;  %v7286_v25 = vpop.f32.mrf.mxu0 }
 0x183   : > { %1645 = vst.msk [vmem:[#allocation3 + $0xf4] sm:$0xf] %vm215_vm0, %v1534_v53  ;;  %v5763_v0 = vld [vmem:[#allocation3 + $0x108] sm:$0xf0]  ;;  %v214_v49 = vld [vmem:[%s5950_s17 + $0x7c] sm:$0xf] }
 0x184   : > { %v2590_v31 = vpop.permute.xlu2 %2589  ;;  %v5378_v44 = vld [vmem:[#allocation3 + $0x10c] sm:$0xf0]  ;;  %1837 = vst.msk [vmem:[#allocation3 + $0xf4] sm:$0xf] %vm1357_vm12, %v7239_v15  ;;  %v2080_v12 = vor.u32 %v2079_v27, %v2076_v37  ;;  %v5377_v24 = vor.u32 %v5763_v0, %v5376_v63  ;;  %v273_v62 = vld [vmem:[#allocation2 + $0xc0] sm:$0x1] }
 0x185   : > { %v5381_v29 = vor.u32 %v5761_v36, %v5378_v44  ;;  %v5364_v46 = vld [vmem:[#allocation3 + $0xd8] sm:$0xf]  ;;  %v584_v8 = vshrl.u32 %v213_v57, 16  ;;  %v587_v7 = vshll.u32 %v213_v57, 16  ;;  %v274_v51 = vsel %vm5921_vm3, 0, %v273_v62 }
 0x186   : > { %v7276_v4 = vpop.permute.xlu0 %2591  ;;  %v5759_v56 = vld [vmem:[#allocation3 + $0xe8] sm:$0xf0]  ;;  %v592_v58 = vshrl.u32 %v214_v49, 16  ;;  %v595_v17 = vshll.u32 %v214_v49, 16  ;;  %v2089_v52 = vrot.slane %v2087_v48, 4  ;;  %v2081_v43 = vrot.slane %v2080_v12, 4  ;;  %4635 = vmatmul.bf16.gmra.mxu2 %v5377_v24  ;;  %v7326_v61 = vpop.f32.mrf.mxu2 }
 0x187   : > { %4724 = vmatmul.bf16.gmra.mxu3 %v5381_v29  ;;  %v5365_v15 = vor.u32 %v5759_v56, %v5364_v46  ;;  %275 = vst [vmem:[#allocation2 + $0xc0] sm:$0x1] %v274_v51  ;;  %v586_v18 = vrot.slane %v584_v8, 7  ;;  %v7293_v53 = vld [vmem:[#allocation2 + $0xb8] sm:$0xf] }
 0x188   : > { %v7295_v42 = vrot.slane %v592_v58, 7  ;;  %v2397_v36 = vld [vmem:[#allocation2 + $0xbc] sm:$0x1]  ;;  %v8022_v45 = vrot.slane %v7293_v53, 5  ;;  %v2392_v35 = vld [vmem:[#allocation2 + $0xa8] sm:$0xe]  ;;  %v2090_v37 = vor.u32 %v2089_v52, %v2085_v40  ;;  %v2086_v48 = vsel %vm5982_vm11, %v2081_v43, %v2085_v40  ;;  %v7306_v56 = vpop.permute.xlu1 %1759  ;;  %v7312_v58 = vpop.f32.mrf.mxu3 }
 0x189   : > { %5715 = vmatmul.msk.bf16.gmra.mxu0 %vm4370_vm1, %v5365_v15  ;;  %v590_v44 = vrot.slane %v586_v18, 4  ;;  %v2552_v27 = vrot.slane %v2397_v36, 5  ;;  %v2704_v29 = vld [vmem:[#allocation2 + $0x6c] sm:$0xf]  ;;  %v1880_v57 = vld [vmem:[#allocation2 + $0x68] sm:$0x1]  ;;  %v589_v12 = vor.u32 %v587_v7, %v586_v18  ;;  %v3131_v18 = vor.u32 %v7278_v14, %v7210_v28 }
 0x18a   : > { %2335 = vst.msk [vmem:[#allocation3 + $0x120] sm:$0xf] %vm215_vm0, %v2086_v48  ;;  %v597_v0 = vor.u32 %v595_v17, %v7295_v42  ;;  %v2551_v49 = vrot.slane %v8022_v45, 4  ;;  %v5227_v46 = vrot.slane %v2392_v35, 9  ;;  %v2091_v24 = vrot.slane %v2090_v37, 4 }
 0x18b   : > { %2671 = vst.msk [vmem:[#allocation3 + $0x120] sm:$0xf] %vm1357_vm12, %v2590_v31  ;;  %v2093_v62 = vshll.u32 %v1880_v57, 16  ;;  %v2705_v8 = vld [vmem:[#allocation2 + $0x70] sm:$0xf] }
 0x18c   : > { %v3217_v63 = vpop.permute.xlu2 %3216  ;;  %v598_v51 = vsel %vm5976_vm10, %v590_v44, %v597_v0  ;;  %8039 = vst [vmem:[#allocation8_spill] sm:$0xff] %v7312_v58  ;;  %v2553_v17 = vsel %vm6441_vm15, %v2551_v49, %v2552_v27  ;;  %v2543_v31 = vsel %vm6441_vm15, %v5227_v46, %v2542_v5  ;;  %v5760_v7 = vld [vmem:[#allocation3 + $0xf4] sm:$0xf]  ;;  %v5370_v52 = vld [vmem:[#allocation3 + $0x104] sm:$0xf0]  ;;  %v7330_v5 = vpop.f32.mrf.mxu0  ;;  %v3132_v49 = vrot.slane %v3131_v18, 4 }
 0x18d   : > { %2736 = vst.msk [vmem:[#allocation3 + $0x124] sm:$0xf] %vm215_vm0, %v2704_v29  ;;  %2619 = vrot.lane.b32.xlu0 %v2553_v17, %s5889_s18  ;;  %2613 = vrot.lane.b32.xlu2 %v2543_v31, %s5889_s18  ;;  %v2095_v39 = vrot.slane %v2093_v62, 5  ;;  %v5373_v15 = vor.u32 %v5760_v7, %v5370_v52  ;;  %v3332_v43 = vld [vmem:[#allocation2 + $0x60] sm:$0xe] }
 0x18e   : > { %v7308_v40 = vpop.permute.xlu0 %1757  ;;  %758 = vst.msk [vmem:[#allocation2 + $0xc4] sm:$0xf] %vm215_vm0, %v598_v51  ;;  %v755_v36 = vld [vmem:[#allocation2 + $0xc0] sm:$0xf]  ;;  %v3333_v35 = vld [vmem:[#allocation2 + $0x64] sm:$0xf] }
 0x18f   : > { %3296 = vst.msk [vmem:[#allocation3 + $0x124] sm:$0xf] %vm1357_vm12, %v7274_v10  ;;  %v756_v37 = vsel %vm5967_vm9, %v589_v12, %v755_v36  ;;  %v2096_v48 = vsel %vm5982_vm11, %v2091_v24, %v2095_v39  ;;  %4546 = vmatmul.bf16.gmra.mxu1 %v5373_v15  ;;  %v3334_v44 = vld [vmem:[#allocation2 + $0x68] sm:$0x1]  ;;  %v5236_v28 = vrot.slane %v3332_v43, 9  ;;  %v3454_v14 = vrot.slane %v3333_v35, 5 }
 0x190   : > { %2737 = vst.msk [vmem:[#allocation3 + $0x138] sm:$0xf] %vm215_vm0, %v2705_v8  ;;  %v3457_v27 = vrot.slane %v3334_v44, 5  ;;  %v1693_v0 = vld [vmem:[#allocation2 + $0xb4] sm:$0xf]  ;;  %v7357_v39 = vpop.permute.xlu1 %3218 }
 0x191   : > { %757 = vst [vmem:[#allocation2 + $0xc0] sm:$0xf] %v756_v37  ;;  %v3455_v30 = vsel %vm6441_vm15, %v5236_v28, %v3454_v14  ;;  %v3456_v57 = vrot.slane %v3454_v14, 4  ;;  %v2795_v46 = vld [vmem:[#allocation2 + $0xbc] sm:$0x1] }
 0x192   : > { %2336 = vst.msk [vmem:[#allocation3 + $0x134] sm:$0xf] %vm215_vm0, %v2096_v48  ;;  %v1412_v12 = vld [vmem:[#allocation2 + $0x58] sm:$0xf]  ;;  %v3134_v62 = vshll.u32 %v2795_v46, 16  ;;  %v7352_v7 = vpop.f32.mrf.mxu3 }
 0x193   : > { %2672 = vst.msk [vmem:[#allocation3 + $0x134] sm:$0xf] %vm1357_vm12, %v7276_v4  ;;  %v3458_v24 = vsel %vm6441_vm15, %v3456_v57, %v3457_v27  ;;  %v1413_v8 = vld [vmem:[#allocation2 + $0x5c] sm:$0x1]  ;;  %v1540_v51 = vrot.slane %v1412_v12, 5  ;;  %v7369_v27 = vpop.f32.mrf.mxu2 }
 0x194   : > { %v7337_v29 = vpop.f32.mrf.mxu1  ;;  %v7339_v10 = vpop.permute.xlu2 %2593  ;;  %3297 = vst.msk [vmem:[#allocation3 + $0x138] sm:$0xf] %vm1357_vm12, %v3217_v63  ;;  %v1543_v31 = vrot.slane %v1413_v8, 5  ;;  %v3136_v4 = vrot.slane %v3134_v62, 5  ;;  %v1411_v43 = vld [vmem:[#allocation2 + $0x54] sm:$0xe] }
 0x195   : > { %v7349_v17 = vld [vmem:[#allocation2 + $0xc4] sm:$0xf]  ;;  %3566 = vst.msk [vmem:[#allocation3 + $0x100] sm:$0xf] %vm215_vm0, %v3455_v30  ;;  %1785 = vrot.lane.b32.xlu0 %v1693_v0, %s5889_s18  ;;  %v1542_v63 = vrot.slane %v1540_v51, 4  ;;  %v5205_v14 = vrot.slane %v1411_v43, 9 }
 0x196   : > { %8040 = vst [vmem:[#allocation9_spill] sm:$0xff] %v7352_v7  ;;  %v3148_v52 = vshll.u32 %v7349_v17, 16  ;;  %v7359_v15 = vpop.permute.xlu0 %2595  ;;  %v1881_v18 = vld [vmem:[#allocation2 + $0x6c] sm:$0xf]  ;;  %v1882_v36 = vld [vmem:[#allocation2 + $0x70] sm:$0xf]  ;;  %v7361_v35 = vpop.f32.mrf.mxu0  ;;  %v3137_v44 = vsel %vm5982_vm11, %v3132_v49, %v3136_v4 }
 0x197   : > { %3567 = vst.msk [vmem:[#allocation3 + $0x114] sm:$0xf] %vm215_vm0, %v3458_v24  ;;  %v1544_v28 = vsel %vm6441_vm15, %v1542_v63, %v1543_v31  ;;  %3240 = vrot.lane.b32.xlu2 %v3137_v44, %s5889_s18  ;;  %v2098_v0 = vshrl.u32 %v1881_v18, 16  ;;  %v2101_v46 = vshll.u32 %v1881_v18, 16  ;;  %v5396_v12 = vld [vmem:[#allocation3 + $0x120] sm:$0xf]  ;;  %v1541_v49 = vsel %vm6441_vm15, %v5205_v14, %v1540_v51 }
 0x198   : > { %v2796_v37 = vld [vmem:[#allocation2 + $0xc0] sm:$0xf]  ;;  %v7363_v48 = vrot.slane %v3148_v52, 5  ;;  %1648 = vst.msk [vmem:[#allocation3 + $0x130] sm:$0xf] %vm215_vm0, %v1544_v28  ;;  %v2107_v8 = vshll.u32 %v1882_v36, 16  ;;  %v7386_v11 = vpop.permute.xlu1 %1763 }
 0x199   : > { %v3139_v30 = vshrl.u32 %v2796_v37, 16  ;;  %v3142_v57 = vshll.u32 %v2796_v37, 16  ;;  %1840 = vst.msk [vmem:[#allocation3 + $0x130] sm:$0xf] %vm1357_vm12, %v7306_v56  ;;  %v2111_v31 = vshrl.u32 %v1882_v36, 16  ;;  %v2100_v43 = vrot.slane %v2098_v0, 4 }
 0x19a   : > { %v5768_v52 = vld [vmem:[#allocation3 + $0x130] sm:$0xf0]  ;;  %1647 = vst.msk [vmem:[#allocation3 + $0x11c] sm:$0xf] %vm215_vm0, %v1541_v49  ;;  %v2103_v18 = vrot.slane %v2101_v46, 5  ;;  %v2109_v44 = vrot.slane %v2107_v8, 5  ;;  %v7384_v36 = vpop.f32.mrf.mxu3 }
 0x19b   : > { %v3141_v4 = vrot.slane %v3139_v30, 4  ;;  %v3144_v63 = vrot.slane %v3142_v57, 5  ;;  %1839 = vst.msk [vmem:[#allocation3 + $0x11c] sm:$0xf] %vm1357_vm12, %v7308_v40  ;;  %v5397_v28 = vor.u32 %v5768_v52, %v5396_v12  ;;  %v2113_v45 = vrot.slane %v2111_v31, 4 }
 0x19c   : > { %v7373_v24 = vpop.f32.mrf.mxu1  ;;  %v7375_v62 = vpop.permute.xlu2 %3220  ;;  %v5384_v37 = vld [vmem:[#allocation3 + $0x100] sm:$0xf]  ;;  %v2104_v58 = vor.u32 %v2103_v18, %v2100_v43  ;;  %v5766_v51 = vld [vmem:[#allocation3 + $0x124] sm:$0xf]  ;;  %v5398_v14 = vld [vmem:[#allocation3 + $0x134] sm:$0xf0] }
 0x19d   : > { %v3145_v56 = vor.u32 %v3144_v63, %v3141_v4  ;;  %8041 = vst [vmem:[#allocation10_spill] sm:$0xff] %v7384_v36  ;;  %4640 = vmatmul.bf16.gmra.mxu2 %v5397_v28  ;;  %v5401_v57 = vor.u32 %v5766_v51, %v5398_v14  ;;  %v2799_v49 = vld [vmem:[#allocation2 + $0xcc] sm:$0xf]  ;;  %v323_v0 = vld [vmem:[#allocation2 + $0xc8] sm:$0x1]  ;;  %v2114_v46 = vor.u32 %v2113_v45, %v2109_v44  ;;  %v3152_v4 = vshrl.u32 %v7349_v17, 16 }
 0x19e   : > { %v5764_v7 = vld [vmem:[#allocation3 + $0x110] sm:$0xf0]  ;;  %v7388_v59 = vpop.permute.xlu0 %1761  ;;  %v2105_v12 = vrot.slane %v2104_v58, 4  ;;  %v3163_v8 = vshrl.u32 %v2799_v49, 16  ;;  %v3166_v31 = vshll.u32 %v2799_v49, 16  ;;  %v7390_v52 = vpop.f32.mrf.mxu0  ;;  %v324_v45 = vsel %vm5929_vm7, 0, %v323_v0 }
 0x19f   : > { %v5385_v30 = vor.u32 %v5764_v7, %v5384_v37  ;;  %v3146_v40 = vrot.slane %v3145_v56, 4  ;;  %4729 = vmatmul.bf16.gmra.mxu3 %v5401_v57  ;;  %v7394_v7 = vld [vmem:[#allocation2 + $0xd0] sm:$0xf]  ;;  %v2395_v63 = vld [vmem:[#allocation2 + $0xb4] sm:$0xe]  ;;  %v8042_v0 = vrot.slane %v7293_v53, 5 }
 0x1a0   : > { %v2110_v18 = vsel %vm5982_vm11, %v2105_v12, %v2109_v44  ;;  %v3165_v37 = vrot.slane %v3163_v8, 4  ;;  %v3168_v28 = vrot.slane %v3166_v31, 5  ;;  %325 = vst [vmem:[#allocation2 + $0xc8] sm:$0x1] %v324_v45  ;;  %v2706_v17 = vld [vmem:[#allocation2 + $0x78] sm:$0xf] }
 0x1a1   : > { %5716 = vmatmul.msk.bf16.gmra.mxu0 %vm4370_vm1, %v5385_v30  ;;  %v3151_v58 = vsel %vm5982_vm11, %v3146_v40, %v7363_v48  ;;  %2337 = vst.msk [vmem:[#allocation3 + $0x148] sm:$0xf] %vm215_vm0, %v2110_v18  ;;  %v7407_v3 = vld [vmem:[#allocation2 + $0xc4] sm:$0xf]  ;;  %v5228_v14 = vrot.slane %v2395_v63, 9  ;;  %v2115_v30 = vrot.slane %v2114_v46, 4 }
 0x1a2   : > { %3242 = vrot.lane.b32.xlu1 %v3151_v58, %s5889_s18  ;;  %2673 = vst.msk [vmem:[#allocation3 + $0x148] sm:$0xf] %vm1357_vm12, %v7339_v10  ;;  %v1883_v57 = vld [vmem:[#allocation2 + $0x74] sm:$0x1]  ;;  %v2707_v44 = vld [vmem:[#allocation2 + $0x7c] sm:$0xf]  ;;  %v3169_v63 = vor.u32 %v3168_v28, %v3165_v37 }
 0x1a3   : > { %v2550_v40 = vsel %vm6441_vm15, %v5228_v14, %v8042_v0  ;;  %2738 = vst.msk [vmem:[#allocation3 + $0x14c] sm:$0xf] %vm215_vm0, %v2706_v17  ;;  %v2117_v12 = vshll.u32 %v1883_v57, 16  ;;  %v5765_v8 = vld [vmem:[#allocation3 + $0x11c] sm:$0xf]  ;;  %v3154_v31 = vrot.slane %v3152_v4, 4  ;;  %v7424_v4 = vpop.permute.xlu1 %3222 }
 0x1a4   : > { %v4606_v43 = vpop.f32.mrf.mxu2  ;;  %v7403_v56 = vpop.permute.xlu2 %2597  ;;  %v1694_v45 = vld [vmem:[#allocation2 + $0xb8] sm:$0xf]  ;;  %v3172_v46 = vshll.u32 %v7394_v7, 16  ;;  %v599_v10 = vrot.slane %v7295_v42, 4  ;;  %2617 = vrot.lane.b32.xlu2 %v2550_v40, %s5889_s18  ;;  %3298 = vst.msk [vmem:[#allocation3 + $0x14c] sm:$0xf] %vm1357_vm12, %v7357_v39 }
 0x1a5   : > { %v2119_v58 = vrot.slane %v2117_v12, 5  ;;  %2739 = vst.msk [vmem:[#allocation3 + $0x160] sm:$0xf] %vm215_vm0, %v2707_v44  ;;  %v3335_v17 = vld [vmem:[#allocation2 + $0x6c] sm:$0xe]  ;;  %v3155_v39 = vor.u32 %v3154_v31, %v7363_v48  ;;  %v8043_v1 = vrot.slane %v7407_v3, 5 }
 0x1a6   : > { %v4517_v51 = vpop.f32.mrf.mxu1  ;;  %v7426_v37 = vpop.permute.xlu0 %2599  ;;  %3299 = vst.msk [vmem:[#allocation3 + $0x160] sm:$0xf] %vm1357_vm12, %v7375_v62  ;;  %v3336_v42 = vld [vmem:[#allocation2 + $0x70] sm:$0xf]  ;;  %v5237_v40 = vrot.slane %v3335_v17, 9  ;;  %v7433_v53 = vrot.slane %v3172_v46, 5 }
 0x1a7   : > { %v4518_v49 = vadd.f32 %v4517_v51, %v7129_v60  ;;  %v5390_v60 = vld [vmem:[#allocation3 + $0x12c] sm:$0xf0]  ;;  %v3337_v51 = vld [vmem:[#allocation2 + $0x74] sm:$0x1]  ;;  %v4784_v57 = vpop.f32.mrf.mxu0  ;;  %v2120_v44 = vsel %vm5982_vm11, %v2115_v30, %v2119_v58  ;;  %v3461_v12 = vrot.slane %v3336_v42, 5  ;;  %v8044_v2 = vshrl.u32 %v7394_v7, 16 }
 0x1a8   : > { %v5393_v18 = vor.u32 %v5765_v8, %v5390_v60  ;;  %v759_v0 = vld [vmem:[#allocation2 + $0xc8] sm:$0x1]  ;;  %v3464_v8 = vrot.slane %v3337_v51, 5  ;;  %v3170_v60 = vrot.slane %v3169_v63, 4  ;;  %2338 = vst.msk [vmem:[#allocation3 + $0x15c] sm:$0xf] %vm215_vm0, %v2120_v44 }
 0x1a9   : > { %v4607_v28 = vadd.f32 %v4606_v43, %v4518_v49  ;;  %v760_v62 = vsel %vm5921_vm3, %v599_v10, %v759_v0  ;;  %v3462_v30 = vsel %vm6441_vm15, %v5237_v40, %v3461_v12  ;;  %v3463_v49 = vrot.slane %v3461_v12, 4  ;;  %v1415_v31 = vld [vmem:[#allocation2 + $0x64] sm:$0xf]  ;;  %2674 = vst.msk [vmem:[#allocation3 + $0x15c] sm:$0xf] %vm1357_vm12, %v7359_v15 }
 0x1aa   : > { %v4695_v14 = vpop.f32.mrf.mxu3  ;;  %4551 = vmatmul.bf16.gmra.mxu1 %v5393_v18  ;;  %1787 = vrot.lane.b32.xlu1 %v1694_v45, %s5889_s18  ;;  %761 = vst [vmem:[#allocation2 + $0xc8] sm:$0x1] %v760_v62  ;;  %v2558_v10 = vrot.slane %v8043_v1, 4  ;;  %v1416_v18 = vld [vmem:[#allocation2 + $0x68] sm:$0x1]  ;;  %v1547_v17 = vrot.slane %v1415_v31, 5  ;;  %v3175_v0 = vsel %vm5982_vm11, %v3170_v60, %v7433_v53 }
 0x1ab   : > { %v4696_v63 = vadd.f32 %v4695_v14, %v4607_v28  ;;  %v3465_v42 = vsel %vm6441_vm15, %v3463_v49, %v3464_v8  ;;  %3568 = vst.msk [vmem:[#allocation3 + $0x128] sm:$0xf] %vm215_vm0, %v3462_v30  ;;  %v7452_v51 = vrot.slane %v3155_v39, 4  ;;  %v1550_v28 = vrot.slane %v1416_v18, 5  ;;  %v1414_v14 = vld [vmem:[#allocation2 + $0x60] sm:$0xe]  ;;  %v7460_v8 = vpop.permute.xlu1 %1767 }
 0x1ac   : > { %v7438_v43 = vpop.permute.xlu2 %3224  ;;  %v4608_v46 = vpop.f32.mrf.mxu2  ;;  %3569 = vst.msk [vmem:[#allocation3 + $0x13c] sm:$0xf] %vm215_vm0, %v3465_v42  ;;  %v1549_v15 = vrot.slane %v1547_v17, 4  ;;  %v5206_v44 = vrot.slane %v1414_v14, 9  ;;  %v1884_v40 = vld [vmem:[#allocation2 + $0x78] sm:$0xf] }
 0x1ad   : > { %v1885_v12 = vld [vmem:[#allocation2 + $0x7c] sm:$0xf]  ;;  %v2125_v62 = vshll.u32 %v1884_v40, 16  ;;  %v7458_v31 = vadd.f32 %v4784_v57, %v4696_v63  ;;  %v5771_v18 = vld [vmem:[#allocation3 + $0x14c] sm:$0xf] }
 0x1ae   : > { %v4519_v58 = vpop.f32.mrf.mxu1  ;;  %v7462_v39 = vpop.permute.xlu0 %1765  ;;  %v1551_v49 = vsel %vm6441_vm15, %v1549_v15, %v1550_v28  ;;  %v1548_v60 = vsel %vm6441_vm15, %v5206_v44, %v1547_v17  ;;  %v2135_v1 = vshrl.u32 %v1885_v12, 16  ;;  %v5418_v42 = vld [vmem:[#allocation3 + $0x15c] sm:$0xf0]  ;;  %v7471_v28 = vld [vmem:[#allocation2 + $0xc0] sm:$0xe] }
 0x1af   : > { %v4520_v45 = vadd.f32 %v4519_v58, %v7170_v19  ;;  %v2122_v19 = vshrl.u32 %v1884_v40, 16  ;;  %v2131_v58 = vshll.u32 %v1885_v12, 16  ;;  %v4786_v48 = vpop.f32.mrf.mxu0  ;;  %1650 = vst.msk [vmem:[#allocation3 + $0x158] sm:$0xf] %vm215_vm0, %v1551_v49  ;;  %v2127_v63 = vrot.slane %v2125_v62, 5 }
 0x1b0   : > { %v5421_v40 = vor.u32 %v5771_v18, %v5418_v42  ;;  %1842 = vst.msk [vmem:[#allocation3 + $0x158] sm:$0xf] %vm1357_vm12, %v7386_v11  ;;  %v5773_v49 = vld [vmem:[#allocation3 + $0x158] sm:$0xf0]  ;;  %v4997_v11 = vmul.f32 %v7458_v31, %v7458_v31 }
 0x1b1   : > { %v4609_v30 = vadd.f32 %v4608_v46, %v4520_v45  ;;  %v2124_v57 = vrot.slane %v2122_v19, 4  ;;  %v2400_v20 = vld [vmem:[#allocation2 + $0xc8] sm:$0x1]  ;;  %v5416_v45 = vld [vmem:[#allocation3 + $0x148] sm:$0xf]  ;;  %v2133_v12 = vrot.slane %v2131_v58, 5 }
 0x1b2   : > { %v4697_v14 = vpop.f32.mrf.mxu3  ;;  %v2798_v46 = vld [vmem:[#allocation2 + $0xc8] sm:$0x1]  ;;  %3246 = vrot.lane.b32.xlu1 %v3175_v0, %s5889_s18  ;;  %v2559_v17 = vrot.slane %v2400_v20, 5  ;;  %1649 = vst.msk [vmem:[#allocation3 + $0x144] sm:$0xf] %vm215_vm0, %v1548_v60  ;;  %4734 = vmatmul.bf16.gmra.mxu3 %v5421_v40 }
 0x1b3   : > { %v4698_v36 = vadd.f32 %v4697_v14, %v4609_v30  ;;  %v3158_v15 = vshll.u32 %v2798_v46, 16  ;;  %v2128_v44 = vor.u32 %v2127_v63, %v2124_v57  ;;  %v5404_v30 = vld [vmem:[#allocation3 + $0x128] sm:$0xf]  ;;  %1841 = vst.msk [vmem:[#allocation3 + $0x144] sm:$0xf] %vm1357_vm12, %v7388_v59  ;;  %v5417_v14 = vor.u32 %v5773_v49, %v5416_v45 }
 0x1b4   : > { %v4611_v19 = vpop.f32.mrf.mxu2  ;;  %v7479_v18 = vpop.permute.xlu2 %2601  ;;  %v2560_v20 = vsel %vm6441_vm15, %v2558_v10, %v2559_v17  ;;  %v5769_v60 = vld [vmem:[#allocation3 + $0x138] sm:$0xf0]  ;;  %v2708_v57 = vld [vmem:[#allocation2 + $0x84] sm:$0xf]  ;;  %v1886_v40 = vld [vmem:[#allocation2 + $0x80] sm:$0x1] }
 0x1b5   : > { %v7481_v0 = vadd.f32 %v4786_v48, %v4698_v36  ;;  %v3160_v58 = vrot.slane %v3158_v15, 5  ;;  %v2129_v42 = vrot.slane %v2128_v44, 4  ;;  %2623 = vrot.lane.b32.xlu0 %v2560_v20, %s5889_s18  ;;  %v5405_v63 = vor.u32 %v5769_v60, %v5404_v30  ;;  %v1696_v59 = vld [vmem:[#allocation2 + $0xc4] sm:$0xf]  ;;  %2740 = vst.msk [vmem:[#allocation3 + $0x174] sm:$0xf] %vm215_vm0, %v2708_v57  ;;  %4645 = vmatmul.bf16.gmra.mxu2 %v5417_v14 }
 0x1b6   : > { %v4522_v62 = vpop.f32.mrf.mxu1  ;;  %v2137_v46 = vrot.slane %v2135_v1, 4  ;;  %v7489_v36 = vrot.slane %v8044_v2, 4  ;;  %v5229_v17 = vrot.slane %v7471_v28, 9  ;;  %3300 = vst.msk [vmem:[#allocation3 + $0x174] sm:$0xf] %vm1357_vm12, %v7424_v4  ;;  %v2141_v1 = vshll.u32 %v1886_v40, 16  ;;  %v7500_v2 = vpop.permute.xlu1 %3226 }
 0x1b7   : > { %v4523_v48 = vadd.f32 %v4522_v62, %v7204_v21  ;;  %v3161_v10 = vsel %vm5982_vm11, %v7452_v51, %v3160_v58  ;;  %v2134_v45 = vsel %vm5982_vm11, %v2129_v42, %v2133_v12  ;;  %v2709_v15 = vld [vmem:[#allocation2 + $0x88] sm:$0xf]  ;;  %v7502_v7 = vpop.permute.xlu0 %2603  ;;  %5717 = vmatmul.msk.bf16.gmra.mxu0 %vm4370_vm1, %v5405_v63  ;;  %v4864_v51 = vpack.c.bf16 %v7458_v31, %v7458_v31  ;;  %v3338_v28 = vld [vmem:[#allocation2 + $0x78] sm:$0xe]  ;;  %v4789_v30 = vpop.f32.mrf.mxu0  ;;  %v1695_v49 = vld [vmem:[#allocation2 + $0xc0] sm:$0xf] }
 0x1b8   : > { %3244 = vrot.lane.b32.xlu2 %v3161_v10, %s5889_s18  ;;  %2339 = vst.msk [vmem:[#allocation3 + $0x170] sm:$0xf] %vm215_vm0, %v2134_v45  ;;  %v2138_v21 = vor.u32 %v2137_v46, %v2133_v12  ;;  %v4928_v4 = vsel %vm4370_vm1, %v7458_v31, 0.0  ;;  %v4929_v44 = vsel %vm4370_vm1, %v7481_v0, 0.0  ;;  %v2143_v20 = vrot.slane %v2141_v1, 5 }
 0x1b9   : > { %2675 = vst.msk [vmem:[#allocation3 + $0x170] sm:$0xf] %vm1357_vm12, %v7403_v56  ;;  %v5029_v12 = vsel %vm4370_vm1, %v4997_v11, 0.0  ;;  %v5410_v31 = vld [vmem:[#allocation3 + $0x154] sm:$0xf0]  ;;  %v7523_v60 = vadd.f32 %v4929_v44, %v4928_v4  ;;  %v4998_v58 = vmul.f32 %v7481_v0, %v7481_v0  ;;  %v5238_v14 = vrot.slane %v3338_v28, 9 }
 0x1ba   : > { %v4700_v62 = vpop.f32.mrf.mxu3  ;;  %v2139_v42 = vrot.slane %v2138_v21, 4  ;;  %2741 = vst.msk [vmem:[#allocation3 + $0x188] sm:$0xf] %vm215_vm0, %v2709_v15  ;;  %v3339_v56 = vld [vmem:[#allocation2 + $0x7c] sm:$0xf]  ;;  %v4612_v57 = vadd.f32 %v4611_v19, %v4523_v48  ;;  %1791 = vrot.lane.b32.xlu1 %v1696_v59, %s5889_s18  ;;  %v8045_v63 = vrot.slane %v7407_v3, 5  ;;  %v3179_v10 = vor.u32 %v7489_v36, %v7433_v53 }
 0x1bb   : > { %3301 = vst.msk [vmem:[#allocation3 + $0x188] sm:$0xf] %vm1357_vm12, %v7438_v43  ;;  %v5770_v40 = vld [vmem:[#allocation3 + $0x144] sm:$0xf]  ;;  %v3340_v46 = vld [vmem:[#allocation2 + $0x80] sm:$0x1]  ;;  %v4865_v45 = vpack.c.bf16 %v7481_v0, %v7481_v0 }
 0x1bc   : > { %v2557_v11 = vsel %vm6441_vm15, %v5229_v17, %v8045_v63  ;;  %v4613_v1 = vpop.f32.mrf.mxu2  ;;  %v2144_v59 = vsel %vm5982_vm11, %v2139_v42, %v2143_v20  ;;  %4896 = vst.msk [vmem:[%s7520_s26] sm:$0xf] %vm215_vm0, %v4864_v51  ;;  %v5413_v3 = vor.u32 %v5770_v40, %v5410_v31  ;;  %v3468_v48 = vrot.slane %v3339_v56, 5  ;;  %v2801_v15 = vld [vmem:[#allocation2 + $0xd4] sm:$0x1]  ;;  %v7553_v31 = vpop.permute.xlu2 %3228 }
 0x1bd   : > { %v3471_v17 = vrot.slane %v3340_v46, 5  ;;  %2340 = vst.msk [vmem:[#allocation3 + $0x184] sm:$0xf] %vm215_vm0, %v2144_v59  ;;  %v3182_v43 = vshll.u32 %v2801_v15, 16  ;;  %v1418_v21 = vld [vmem:[#allocation2 + $0x70] sm:$0xf]  ;;  %v4701_v36 = vadd.f32 %v4700_v62, %v4612_v57  ;;  %1789 = vrot.lane.b32.xlu0 %v1695_v49, %s5889_s18 }
 0x1be   : > { %v4524_v19 = vpop.f32.mrf.mxu1  ;;  %v5030_v53 = vsel %vm4370_vm1, %v4998_v58, 0.0  ;;  %2676 = vst.msk [vmem:[#allocation3 + $0x184] sm:$0xf] %vm1357_vm12, %v7426_v37  ;;  %4556 = vmatmul.bf16.gmra.mxu1 %v5413_v3  ;;  %v3469_v51 = vsel %vm6441_vm15, %v5238_v14, %v3468_v48  ;;  %v3470_v4 = vrot.slane %v3468_v48, 4  ;;  %v1419_v28 = vld [vmem:[#allocation2 + $0x74] sm:$0x1]  ;;  %v7568_v48 = vpop.permute.xlu1 %1771 }
 0x1bf   : > { %v4525_v0 = vadd.f32 %v4524_v19, %v7245_v33  ;;  %v1554_v44 = vrot.slane %v1418_v21, 5  ;;  %v7551_v20 = vadd.f32 %v5030_v53, %v5029_v12  ;;  %3570 = vst.msk [vmem:[#allocation3 + $0x150] sm:$0xf] %vm215_vm0, %v3469_v51  ;;  %v3180_v62 = vrot.slane %v3179_v10, 4  ;;  %v1417_v58 = vld [vmem:[#allocation2 + $0x6c] sm:$0xe]  ;;  %v4791_v40 = vpop.f32.mrf.mxu0 }
 0x1c0   : > { %v1557_v33 = vrot.slane %v1419_v28, 5  ;;  %v7556_v49 = vadd.f32 %v4789_v30, %v4701_v36  ;;  %2621 = vrot.lane.b32.xlu2 %v2557_v11, %s5889_s18  ;;  %v3472_v37 = vsel %vm6441_vm15, %v3470_v4, %v3471_v17  ;;  %v5207_v56 = vrot.slane %v1417_v58, 9  ;;  %v1887_v14 = vld [vmem:[#allocation2 + $0x84] sm:$0xf]  ;;  %v1888_v12 = vld [vmem:[#allocation2 + $0x88] sm:$0xf]  ;;  %v7570_v17 = vpop.permute.xlu0 %1769 }
 0x1c1   : > { %v1556_v42 = vrot.slane %v1554_v44, 4  ;;  %v4614_v63 = vadd.f32 %v4613_v1, %v4525_v0  ;;  %3571 = vst.msk [vmem:[#allocation3 + $0x164] sm:$0xf] %vm215_vm0, %v3472_v37  ;;  %v3184_v46 = vrot.slane %v3182_v43, 5  ;;  %v2146_v10 = vshrl.u32 %v1887_v14, 16 }
 0x1c2   : > { %v4702_v57 = vpop.f32.mrf.mxu3  ;;  %v2149_v19 = vshll.u32 %v1887_v14, 16  ;;  %v2155_v30 = vshll.u32 %v1888_v12, 16  ;;  %v1555_v59 = vsel %vm6441_vm15, %v5207_v56, %v1554_v44  ;;  %v2159_v3 = vshrl.u32 %v1888_v12, 16  ;;  %4897 = vst.msk [vmem:[%s7520_s26 + $0x4] sm:$0xf] %vm215_vm0, %v4865_v45 }
 0x1c3   : > { %v1558_v11 = vsel %vm6441_vm15, %v1556_v42, %v1557_v33  ;;  %v2148_v1 = vrot.slane %v2146_v10, 4  ;;  %v5436_v21 = vld [vmem:[#allocation3 + $0x170] sm:$0xf]  ;;  %v4931_v53 = vsel %vm4370_vm1, %v7556_v49, 0.0  ;;  %v5776_v51 = vld [vmem:[#allocation3 + $0x174] sm:$0xf]  ;;  %v4999_v28 = vmul.f32 %v7556_v49, %v7556_v49 }
 0x1c4   : > { %1652 = vst.msk [vmem:[#allocation3 + $0x180] sm:$0xf] %vm215_vm0, %v1558_v11  ;;  %v2151_v15 = vrot.slane %v2149_v19, 5  ;;  %v2157_v43 = vrot.slane %v2155_v30, 5  ;;  %v4616_v36 = vpop.f32.mrf.mxu2  ;;  %v5438_v45 = vld [vmem:[#allocation3 + $0x184] sm:$0xf0]  ;;  %v7578_v4 = vadd.f32 %v4931_v53, %v7523_v60  ;;  %v4703_v44 = vadd.f32 %v4702_v57, %v4614_v63  ;;  %v7598_v11 = vpop.permute.xlu2 %2605 }
 0x1c5   : > { %1844 = vst.msk [vmem:[#allocation3 + $0x180] sm:$0xf] %vm1357_vm12, %v7460_v8  ;;  %v3185_v58 = vsel %vm5982_vm11, %v3180_v62, %v3184_v46  ;;  %v5778_v42 = vld [vmem:[#allocation3 + $0x180] sm:$0xf0]  ;;  %v5441_v56 = vor.u32 %v5776_v51, %v5438_v45  ;;  %v2710_v8 = vld [vmem:[#allocation2 + $0x90] sm:$0xf] }
 0x1c6   : > { %v4527_v0 = vpop.f32.mrf.mxu1  ;;  %1651 = vst.msk [vmem:[#allocation3 + $0x16c] sm:$0xf] %vm215_vm0, %v1555_v59  ;;  %v2152_v37 = vor.u32 %v2151_v15, %v2148_v1  ;;  %v5424_v14 = vld [vmem:[#allocation3 + $0x150] sm:$0xf]  ;;  %v5437_v60 = vor.u32 %v5778_v42, %v5436_v21  ;;  %v1889_v12 = vld [vmem:[#allocation2 + $0x8c] sm:$0x1]  ;;  %v7600_v59 = vadd.f32 %v4791_v40, %v4703_v44 }
 0x1c7   : > { %v4528_v33 = vadd.f32 %v4527_v0, %v7286_v25  ;;  %1843 = vst.msk [vmem:[#allocation3 + $0x16c] sm:$0xf] %vm1357_vm12, %v7462_v39  ;;  %4739 = vmatmul.bf16.gmra.mxu3 %v5441_v56  ;;  %v2161_v25 = vrot.slane %v2159_v3, 4  ;;  %v2165_v57 = vshll.u32 %v1889_v12, 16  ;;  %v5032_v62 = vsel %vm4370_vm1, %v4999_v28, 0.0 }
 0x1c8   : > { %v2153_v19 = vrot.slane %v2152_v37, 4  ;;  %2742 = vst.msk [vmem:[#allocation3 + $0x19c] sm:$0xf] %vm215_vm0, %v2710_v8  ;;  %v5774_v63 = vld [vmem:[#allocation3 + $0x160] sm:$0xf0]  ;;  %3248 = vrot.lane.b32.xlu2 %v3185_v58, %s5889_s18  ;;  %4650 = vmatmul.bf16.gmra.mxu2 %v5437_v60  ;;  %v4866_v39 = vpack.c.bf16 %v7556_v49, %v7556_v49  ;;  %v7596_v30 = vadd.f32 %v5032_v62, %v7551_v20  ;;  %v7611_v37 = vpop.permute.xlu0 %2607  ;;  %v7620_v60 = vpop.permute.xlu1 %3230 }
 0x1c9   : > { %v4617_v10 = vadd.f32 %v4616_v36, %v4528_v33  ;;  %3302 = vst.msk [vmem:[#allocation3 + $0x19c] sm:$0xf] %vm1357_vm12, %v7500_v2  ;;  %v2711_v46 = vld [vmem:[#allocation2 + $0x94] sm:$0xf]  ;;  %v5425_v1 = vor.u32 %v5774_v63, %v5424_v14  ;;  %v2162_v21 = vor.u32 %v2161_v25, %v2157_v43  ;;  %v2167_v53 = vrot.slane %v2165_v57, 5  ;;  %v4794_v36 = vpop.f32.mrf.mxu0 }
 0x1ca   : > { %v4705_v3 = vpop.f32.mrf.mxu3  ;;  %v2158_v15 = vsel %vm5982_vm11, %v2153_v19, %v2157_v43  ;;  %2743 = vst.msk [vmem:[#allocation3 + $0x1b0] sm:$0xf] %vm215_vm0, %v2711_v46  ;;  %v3341_v2 = vld [vmem:[#allocation2 + $0x84] sm:$0xe]  ;;  %v3342_v49 = vld [vmem:[#allocation2 + $0x88] sm:$0xf]  ;;  %v5000_v14 = vmul.f32 %v7600_v59, %v7600_v59  ;;  %v4867_v63 = vpack.c.bf16 %v7600_v59, %v7600_v59 }
 0x1cb   : > { %2341 = vst.msk [vmem:[#allocation3 + $0x198] sm:$0xf] %vm215_vm0, %v2158_v15  ;;  %v3343_v20 = vld [vmem:[#allocation2 + $0x8c] sm:$0x1]  ;;  %5718 = vmatmul.msk.bf16.gmra.mxu0 %vm4370_vm1, %v5425_v1  ;;  %v2163_v40 = vrot.slane %v2162_v21, 4  ;;  %v5239_v51 = vrot.slane %v3341_v2, 9  ;;  %v4706_v45 = vadd.f32 %v4705_v3, %v4617_v10 }
 0x1cc   : > { %2677 = vst.msk [vmem:[#allocation3 + $0x198] sm:$0xf] %vm1357_vm12, %v7479_v18  ;;  %v5430_v0 = vld [vmem:[#allocation3 + $0x17c] sm:$0xf0]  ;;  %v4618_v43 = vpop.f32.mrf.mxu2  ;;  %v3475_v44 = vrot.slane %v3342_v49, 5  ;;  %v3478_v33 = vrot.slane %v3343_v20, 5 }
 0x1cd   : > { %3303 = vst.msk [vmem:[#allocation3 + $0x1b0] sm:$0xf] %vm1357_vm12, %v7553_v31  ;;  %v1421_v58 = vld [vmem:[#allocation2 + $0x7c] sm:$0xf]  ;;  %v2168_v56 = vsel %vm5982_vm11, %v2163_v40, %v2167_v53  ;;  %v1422_v8 = vld [vmem:[#allocation2 + $0x80] sm:$0x1]  ;;  %v7629_v46 = vadd.f32 %v4794_v36, %v4706_v45  ;;  %v7643_v45 = vpop.permute.xlu2 %3232 }
 0x1ce   : > { %v4529_v28 = vpop.f32.mrf.mxu1  ;;  %4898 = vst.msk [vmem:[%s7520_s26 + $0x8] sm:$0xf] %vm215_vm0, %v4866_v39  ;;  %v5775_v18 = vld [vmem:[#allocation3 + $0x16c] sm:$0xf]  ;;  %v3476_v12 = vsel %vm6441_vm15, %v5239_v51, %v3475_v44  ;;  %v3477_v10 = vrot.slane %v3475_v44, 4  ;;  %v1564_v25 = vrot.slane %v1422_v8, 5 }
 0x1cf   : > { %v4530_v42 = vadd.f32 %v4529_v28, %v7330_v5  ;;  %2342 = vst.msk [vmem:[#allocation3 + $0x1ac] sm:$0xf] %vm215_vm0, %v2168_v56  ;;  %v5433_v31 = vor.u32 %v5775_v18, %v5430_v0  ;;  %v1561_v5 = vrot.slane %v1421_v58, 5  ;;  %v1420_v19 = vld [vmem:[#allocation2 + $0x78] sm:$0xe]  ;;  %v4933_v0 = vsel %vm4370_vm1, %v7600_v59, 0.0 }
 0x1d0   : > { %2678 = vst.msk [vmem:[#allocation3 + $0x1ac] sm:$0xf] %vm1357_vm12, %v7502_v7  ;;  %v5208_v57 = vrot.slane %v1420_v19, 9  ;;  %v1890_v62 = vld [vmem:[#allocation2 + $0x90] sm:$0xf]  ;;  %v3479_v39 = vsel %vm6441_vm15, %v3477_v10, %v3478_v33  ;;  %v5034_v51 = vsel %vm4370_vm1, %v5000_v14, 0.0  ;;  %v4934_v44 = vadd.f32 %v4933_v0, %v7578_v4 }
 0x1d1   : > { %4561 = vmatmul.bf16.gmra.mxu1 %v5433_v31  ;;  %3572 = vst.msk [vmem:[#allocation3 + $0x178] sm:$0xf] %vm215_vm0, %v3476_v12  ;;  %v1563_v3 = vrot.slane %v1561_v5, 4  ;;  %v1891_v1 = vld [vmem:[#allocation2 + $0x94] sm:$0xf]  ;;  %v2170_v15 = vshrl.u32 %v1890_v62, 16  ;;  %v4619_v53 = vadd.f32 %v4618_v43, %v4530_v42  ;;  %v5035_v33 = vadd.f32 %v5034_v51, %v7596_v30  ;;  %v4796_v58 = vpop.f32.mrf.mxu0 }
 0x1d2   : > { %v4707_v21 = vpop.f32.mrf.mxu3  ;;  %3573 = vst.msk [vmem:[#allocation3 + $0x18c] sm:$0xf] %vm215_vm0, %v3479_v39  ;;  %v1562_v7 = vsel %vm6441_vm15, %v5208_v57, %v1561_v5  ;;  %v2173_v2 = vshll.u32 %v1890_v62, 16  ;;  %v2179_v49 = vshll.u32 %v1891_v1, 16  ;;  %v2183_v36 = vshrl.u32 %v1891_v1, 16  ;;  %v7659_v62 = vpop.permute.xlu0 %1773 }
 0x1d3   : > { %v1565_v20 = vsel %vm6441_vm15, %v1563_v3, %v1564_v25  ;;  %1653 = vst.msk [vmem:[#allocation3 + $0x194] sm:$0xf] %vm215_vm0, %v1562_v7  ;;  %v2172_v40 = vrot.slane %v2170_v15, 4  ;;  %v5456_v56 = vld [vmem:[#allocation3 + $0x198] sm:$0xf]  ;;  %v5001_v8 = vmul.f32 %v7629_v46, %v7629_v46  ;;  %v4708_v14 = vadd.f32 %v4707_v21, %v4619_v53 }
 0x1d4   : > { %1654 = vst.msk [vmem:[#allocation3 + $0x1a8] sm:$0xf] %vm215_vm0, %v1565_v20  ;;  %v2175_v43 = vrot.slane %v2173_v2, 5  ;;  %v2181_v28 = vrot.slane %v2179_v49, 5  ;;  %v4621_v42 = vpop.f32.mrf.mxu2  ;;  %v5781_v59 = vld [vmem:[#allocation3 + $0x19c] sm:$0xf]  ;;  %v4868_v5 = vpack.c.bf16 %v7629_v46, %v7629_v46 }
 0x1d5   : > { %1846 = vst.msk [vmem:[#allocation3 + $0x1a8] sm:$0xf] %vm1357_vm12, %v7568_v48  ;;  %v5458_v18 = vld [vmem:[#allocation3 + $0x1ac] sm:$0xf0]  ;;  %v2712_v30 = vld [vmem:[#allocation2 + $0x9c] sm:$0xf]  ;;  %v7661_v39 = vadd.f32 %v4796_v58, %v4708_v14 }
 0x1d6   : > { %v4532_v31 = vpop.f32.mrf.mxu1  ;;  %1845 = vst.msk [vmem:[#allocation3 + $0x194] sm:$0xf] %vm1357_vm12, %v7570_v17  ;;  %v2176_v4 = vor.u32 %v2175_v43, %v2172_v40  ;;  %v5461_v12 = vor.u32 %v5781_v59, %v5458_v18  ;;  %v1892_v10 = vld [vmem:[#allocation2 + $0x98] sm:$0x1]  ;;  %v2185_v25 = vrot.slane %v2183_v36, 4  ;;  %v4935_v15 = vsel %vm4370_vm1, %v7629_v46, 0.0 }
 0x1d7   : > { %v4533_v48 = vadd.f32 %v4532_v31, %v7361_v35  ;;  %4899 = vst.msk [vmem:[%s7520_s26 + $0xc] sm:$0xf] %vm215_vm0, %v4867_v63  ;;  %v5783_v19 = vld [vmem:[#allocation3 + $0x1a8] sm:$0xf0]  ;;  %v2189_v57 = vshll.u32 %v1892_v10, 16  ;;  %v7666_v35 = vpop.permute.xlu1 %1775  ;;  %v7670_v2 = vadd.f32 %v4935_v15, %v4934_v44  ;;  %v5036_v49 = vsel %vm4370_vm1, %v5001_v8, 0.0  ;;  %v7686_v8 = vpop.permute.xlu2 %2609 }
 0x1d8   : > { %v5444_v3 = vld [vmem:[#allocation3 + $0x178] sm:$0xf]  ;;  %v2177_v17 = vrot.slane %v2176_v4, 4  ;;  %v5457_v1 = vor.u32 %v5783_v19, %v5456_v56  ;;  %4744 = vmatmul.bf16.gmra.mxu3 %v5461_v12  ;;  %2744 = vst.msk [vmem:[#allocation3 + $0x1c4] sm:$0xf] %vm215_vm0, %v2712_v30  ;;  %v2186_v53 = vor.u32 %v2185_v25, %v2181_v28  ;;  %v7677_v0 = vadd.f32 %v5036_v49, %v5035_v33 }
 0x1d9   : > { %v4622_v63 = vadd.f32 %v4621_v42, %v4533_v48  ;;  %v5779_v21 = vld [vmem:[#allocation3 + $0x188] sm:$0xf0]  ;;  %3304 = vst.msk [vmem:[#allocation3 + $0x1c4] sm:$0xf] %vm1357_vm12, %v7620_v60  ;;  %v2191_v7 = vrot.slane %v2189_v57, 5  ;;  %v5002_v30 = vmul.f32 %v7661_v39, %v7661_v39 }
 0x1da   : > { %v4710_v36 = vpop.f32.mrf.mxu3  ;;  %v5445_v20 = vor.u32 %v5779_v21, %v5444_v3  ;;  %v2182_v40 = vsel %vm5982_vm11, %v2177_v17, %v2181_v28  ;;  %4655 = vmatmul.bf16.gmra.mxu2 %v5457_v1  ;;  %v2713_v46 = vld [vmem:[#allocation2 + $0xa0] sm:$0xf]  ;;  %4900 = vst.msk [vmem:[%s7520_s26 + $0x10] sm:$0xf] %vm215_vm0, %v4868_v5  ;;  %v3344_v51 = vld [vmem:[#allocation2 + $0x90] sm:$0xe]  ;;  %v4799_v10 = vpop.f32.mrf.mxu0 }
 0x1db   : > { %2343 = vst.msk [vmem:[#allocation3 + $0x1c0] sm:$0xf] %vm215_vm0, %v2182_v40  ;;  %v2187_v60 = vrot.slane %v2186_v53, 4  ;;  %v3345_v43 = vld [vmem:[#allocation2 + $0x94] sm:$0xf]  ;;  %v5240_v44 = vrot.slane %v3344_v51, 9  ;;  %v4711_v28 = vadd.f32 %v4710_v36, %v4622_v63  ;;  %v7705_v53 = vpop.permute.xlu0 %2611 }
 0x1dc   : > { %5719 = vmatmul.msk.bf16.gmra.mxu0 %vm4370_vm1, %v5445_v20  ;;  %2679 = vst.msk [vmem:[#allocation3 + $0x1c0] sm:$0xf] %vm1357_vm12, %v7598_v11  ;;  %v5450_v58 = vld [vmem:[#allocation3 + $0x1a4] sm:$0xf0]  ;;  %v3346_v42 = vld [vmem:[#allocation2 + $0x98] sm:$0x1]  ;;  %v4869_v11 = vpack.c.bf16 %v7661_v39, %v7661_v39  ;;  %v4623_v5 = vpop.f32.mrf.mxu2 }
 0x1dd   : > { %v2192_v56 = vsel %vm5982_vm11, %v2187_v60, %v2191_v7  ;;  %2745 = vst.msk [vmem:[#allocation3 + $0x1d8] sm:$0xf] %vm215_vm0, %v2713_v46  ;;  %v5780_v33 = vld [vmem:[#allocation3 + $0x194] sm:$0xf]  ;;  %v3482_v59 = vrot.slane %v3345_v43, 5  ;;  %v3485_v18 = vrot.slane %v3346_v42, 5  ;;  %v7700_v15 = vadd.f32 %v4799_v10, %v4711_v28 }
 0x1de   : > { %v4534_v14 = vpop.f32.mrf.mxu1  ;;  %2344 = vst.msk [vmem:[#allocation3 + $0x1d4] sm:$0xf] %vm215_vm0, %v2192_v56  ;;  %v5453_v31 = vor.u32 %v5780_v33, %v5450_v58  ;;  %v1424_v4 = vld [vmem:[#allocation2 + $0x88] sm:$0xf]  ;;  %v1425_v12 = vld [vmem:[#allocation2 + $0x8c] sm:$0x1] }
 0x1df   : > { %v4535_v48 = vadd.f32 %v4534_v14, %v7390_v52  ;;  %2680 = vst.msk [vmem:[#allocation3 + $0x1d4] sm:$0xf] %vm1357_vm12, %v7611_v37  ;;  %v3483_v19 = vsel %vm6441_vm15, %v5240_v44, %v3482_v59  ;;  %v3484_v25 = vrot.slane %v3482_v59, 4  ;;  %v1568_v57 = vrot.slane %v1424_v4, 5  ;;  %v1423_v17 = vld [vmem:[#allocation2 + $0x84] sm:$0xe]  ;;  %v3235_v46 = vpop.permute.xlu1 %3234 }
 0x1e0   : > { %v1571_v3 = vrot.slane %v1425_v12, 5  ;;  %3305 = vst.msk [vmem:[#allocation3 + $0x1d8] sm:$0xf] %vm1357_vm12, %v7643_v45  ;;  %v1893_v1 = vld [vmem:[#allocation2 + $0x9c] sm:$0xf]  ;;  %v5209_v63 = vrot.slane %v1423_v17, 9  ;;  %v3237_v17 = vpop.permute.xlu2 %3236 }
 0x1e1   : > { %4566 = vmatmul.bf16.gmra.mxu1 %v5453_v31  ;;  %v3486_v52 = vsel %vm6441_vm15, %v3484_v25, %v3485_v18  ;;  %3574 = vst.msk [vmem:[#allocation3 + $0x1a0] sm:$0xf] %vm215_vm0, %v3483_v19  ;;  %v1570_v37 = vrot.slane %v1568_v57, 4  ;;  %v1894_v21 = vld [vmem:[#allocation2 + $0xa0] sm:$0xf]  ;;  %v4624_v49 = vadd.f32 %v4623_v5, %v4535_v48  ;;  %v2194_v45 = vshrl.u32 %v1893_v1, 16 }
 0x1e2   : > { %v4712_v7 = vpop.f32.mrf.mxu3  ;;  %3575 = vst.msk [vmem:[#allocation3 + $0x1b4] sm:$0xf] %vm215_vm0, %v3486_v52  ;;  %v2197_v36 = vshll.u32 %v1893_v1, 16  ;;  %v2203_v20 = vshll.u32 %v1894_v21, 16  ;;  %v2207_v40 = vshrl.u32 %v1894_v21, 16  ;;  %v1569_v60 = vsel %vm6441_vm15, %v5209_v63, %v1568_v57 }
 0x1e3   : > { %v1572_v51 = vsel %vm6441_vm15, %v1570_v37, %v1571_v3  ;;  %4901 = vst.msk [vmem:[%s7520_s26 + $0x14] sm:$0xf] %vm215_vm0, %v4869_v11  ;;  %v4937_v43 = vsel %vm4370_vm1, %v7661_v39, 0.0  ;;  %v5038_v44 = vsel %vm4370_vm1, %v5002_v30, 0.0  ;;  %v2196_v58 = vrot.slane %v2194_v45, 4  ;;  %v4801_v30 = vpop.f32.mrf.mxu0 }
 0x1e4   : > { %1656 = vst.msk [vmem:[#allocation3 + $0x1d0] sm:$0xf] %vm215_vm0, %v1572_v51  ;;  %v2199_v42 = vrot.slane %v2197_v36, 5  ;;  %v2205_v28 = vrot.slane %v2203_v20, 5  ;;  %v4938_v56 = vadd.f32 %v4937_v43, %v7670_v2  ;;  %v5476_v33 = vld [vmem:[#allocation3 + $0x1c0] sm:$0xf]  ;;  %v5039_v59 = vadd.f32 %v5038_v44, %v7677_v0  ;;  %v4626_v52 = vpop.f32.mrf.mxu2  ;;  %v1778_v43 = vpop.permute.xlu0 %1777 }
 0x1e5   : > { %1848 = vst.msk [vmem:[#allocation3 + $0x1d0] sm:$0xf] %vm1357_vm12, %v7666_v35  ;;  %v5786_v18 = vld [vmem:[#allocation3 + $0x1c4] sm:$0xf]  ;;  %v2714_v14 = vld [vmem:[#allocation2 + $0xa8] sm:$0xf]  ;;  %v5003_v39 = vmul.f32 %v7700_v15, %v7700_v15  ;;  %v4713_v31 = vadd.f32 %v4712_v7, %v4624_v49  ;;  %v4870_v2 = vpack.c.bf16 %v7700_v15, %v7700_v15 }
 0x1e6   : > { %1655 = vst.msk [vmem:[#allocation3 + $0x1bc] sm:$0xf] %vm215_vm0, %v1569_v60  ;;  %v2200_v4 = vor.u32 %v2199_v42, %v2196_v58  ;;  %v5788_v12 = vld [vmem:[#allocation3 + $0x1d0] sm:$0xf0]  ;;  %v1895_v11 = vld [vmem:[#allocation2 + $0xa4] sm:$0x1]  ;;  %v4537_v10 = vpop.f32.mrf.mxu1 }
 0x1e7   : > { %1847 = vst.msk [vmem:[#allocation3 + $0x1bc] sm:$0xf] %vm1357_vm12, %v7659_v62  ;;  %v5477_v35 = vor.u32 %v5788_v12, %v5476_v33  ;;  %v5478_v0 = vld [vmem:[#allocation3 + $0x1d4] sm:$0xf0]  ;;  %v2209_v5 = vrot.slane %v2207_v40, 4  ;;  %v2213_v48 = vshll.u32 %v1895_v11, 16  ;;  %v7729_v19 = vadd.f32 %v4801_v30, %v4713_v31  ;;  %v1780_v42 = vpop.permute.xlu1 %1779 }
 0x1e8   : > { %v5464_v25 = vld [vmem:[#allocation3 + $0x1a0] sm:$0xf]  ;;  %v2201_v57 = vrot.slane %v2200_v4, 4  ;;  %v5481_v3 = vor.u32 %v5786_v18, %v5478_v0  ;;  %2746 = vst.msk [vmem:[#allocation3 + $0x1ec] sm:$0xf] %vm215_vm0, %v2714_v14  ;;  %v4939_v1 = vsel %vm4370_vm1, %v7700_v15, 0.0  ;;  %v4538_v37 = vadd.f32 %v4537_v10, %v7113_v55 }
 0x1e9   : > { %v5784_v62 = vld [vmem:[#allocation3 + $0x1b0] sm:$0xf0]  ;;  %3306 = vst.msk [vmem:[#allocation3 + $0x1ec] sm:$0xf] %vm1357_vm12, %v3235_v46  ;;  %v2210_v63 = vor.u32 %v2209_v5, %v2205_v28  ;;  %v2215_v21 = vrot.slane %v2213_v48, 5  ;;  %v7736_v7 = vadd.f32 %v4939_v1, %v4938_v56  ;;  %v5040_v49 = vsel %vm4370_vm1, %v5003_v39, 0.0 }
 0x1ea   : > { %v4715_v45 = vpop.f32.mrf.mxu3  ;;  %v5465_v36 = vor.u32 %v5784_v62, %v5464_v25  ;;  %v2206_v20 = vsel %vm5982_vm11, %v2201_v57, %v2205_v28  ;;  %4660 = vmatmul.bf16.gmra.mxu2 %v5477_v35  ;;  %4749 = vmatmul.bf16.gmra.mxu3 %v5481_v3  ;;  %v2715_v15 = vld [vmem:[#allocation2 + $0xac] sm:$0xf]  ;;  %4902 = vst.msk [vmem:[%s7520_s26 + $0x18] sm:$0xf] %vm215_vm0, %v4870_v2  ;;  %v3347_v40 = vld [vmem:[#allocation2 + $0x9c] sm:$0xe] }
 0x1eb   : > { %v5041_v55 = vadd.f32 %v5040_v49, %v5039_v59  ;;  %2345 = vst.msk [vmem:[#allocation3 + $0x1e8] sm:$0xf] %vm215_vm0, %v2206_v20  ;;  %v2211_v46 = vrot.slane %v2210_v63, 4  ;;  %v3348_v51 = vld [vmem:[#allocation2 + $0xa0] sm:$0xf]  ;;  %v5241_v60 = vrot.slane %v3347_v40, 9  ;;  %v4627_v28 = vadd.f32 %v4626_v52, %v4538_v37  ;;  %v2614_v63 = vpop.permute.xlu2 %2613 }
 0x1ec   : > { %5720 = vmatmul.msk.bf16.gmra.mxu0 %vm4370_vm1, %v5465_v36  ;;  %2681 = vst.msk [vmem:[#allocation3 + $0x1e8] sm:$0xf] %vm1357_vm12, %v7686_v8  ;;  %v5470_v44 = vld [vmem:[#allocation3 + $0x1cc] sm:$0xf0]  ;;  %v3349_v58 = vld [vmem:[#allocation2 + $0xa4] sm:$0x1]  ;;  %v5004_v31 = vmul.f32 %v7729_v19, %v7729_v19  ;;  %v4871_v5 = vpack.c.bf16 %v7729_v19, %v7729_v19 }
 0x1ed   : > { %v2216_v56 = vsel %vm5982_vm11, %v2211_v46, %v2215_v21  ;;  %2747 = vst.msk [vmem:[#allocation3 + $0x200] sm:$0xf] %vm215_vm0, %v2715_v15  ;;  %v3489_v33 = vrot.slane %v3348_v51, 5  ;;  %v3492_v59 = vrot.slane %v3349_v58, 5  ;;  %v1427_v18 = vld [vmem:[#allocation2 + $0x94] sm:$0xf]  ;;  %v4716_v48 = vadd.f32 %v4715_v45, %v4627_v28  ;;  %v4628_v21 = vpop.f32.mrf.mxu2  ;;  %v2616_v28 = vpop.permute.xlu0 %2615 }
 0x1ee   : > { %2346 = vst.msk [vmem:[#allocation3 + $0x1fc] sm:$0xf] %vm215_vm0, %v2216_v56  ;;  %v5785_v14 = vld [vmem:[#allocation3 + $0x1bc] sm:$0xf]  ;;  %v1428_v39 = vld [vmem:[#allocation2 + $0x98] sm:$0x1]  ;;  %v4539_v8 = vpop.f32.mrf.mxu1 }
 0x1ef   : > { %2682 = vst.msk [vmem:[#allocation3 + $0x1fc] sm:$0xf] %vm1357_vm12, %v7705_v53  ;;  %v5473_v4 = vor.u32 %v5785_v14, %v5470_v44  ;;  %v3490_v12 = vsel %vm6441_vm15, %v5241_v60, %v3489_v33  ;;  %v3491_v11 = vrot.slane %v3489_v33, 4  ;;  %v1575_v2 = vrot.slane %v1427_v18, 5  ;;  %v1426_v30 = vld [vmem:[#allocation2 + $0x90] sm:$0xe] }
 0x1f0   : > { %3307 = vst.msk [vmem:[#allocation3 + $0x200] sm:$0xf] %vm1357_vm12, %v3237_v17  ;;  %v1578_v10 = vrot.slane %v1428_v39, 5  ;;  %v5210_v35 = vrot.slane %v1426_v30, 9  ;;  %v1896_v0 = vld [vmem:[#allocation2 + $0xa8] sm:$0xf]  ;;  %v4540_v1 = vadd.f32 %v4539_v8, %v7148_v13 }
 0x1f1   : > { %4571 = vmatmul.bf16.gmra.mxu1 %v5473_v4  ;;  %v3493_v53 = vsel %vm6441_vm15, %v3491_v11, %v3492_v59  ;;  %3576 = vst.msk [vmem:[#allocation3 + $0x1c8] sm:$0xf] %vm215_vm0, %v3490_v12  ;;  %v1577_v25 = vrot.slane %v1575_v2, 4  ;;  %v1897_v57 = vld [vmem:[#allocation2 + $0xac] sm:$0xf]  ;;  %v2218_v3 = vshrl.u32 %v1896_v0, 16  ;;  %v4804_v56 = vpop.f32.mrf.mxu0  ;;  %v3239_v59 = vpop.permute.xlu1 %3238 }
 0x1f2   : > { %3577 = vst.msk [vmem:[#allocation3 + $0x1dc] sm:$0xf] %vm215_vm0, %v3493_v53  ;;  %v1576_v17 = vsel %vm6441_vm15, %v5210_v35, %v1575_v2  ;;  %v2221_v52 = vshll.u32 %v1896_v0, 16  ;;  %v2227_v37 = vshll.u32 %v1897_v57, 16  ;;  %v2231_v62 = vshrl.u32 %v1897_v57, 16  ;;  %v4717_v20 = vpop.f32.mrf.mxu3 }
 0x1f3   : > { %v1579_v49 = vsel %vm6441_vm15, %v1577_v25, %v1578_v10  ;;  %1657 = vst.msk [vmem:[#allocation3 + $0x1e4] sm:$0xf] %vm215_vm0, %v1576_v17  ;;  %v2220_v45 = vrot.slane %v2218_v3, 4  ;;  %v4941_v36 = vsel %vm4370_vm1, %v7729_v19, 0.0  ;;  %v5042_v13 = vsel %vm4370_vm1, %v5004_v31, 0.0 }
 0x1f4   : > { %1658 = vst.msk [vmem:[#allocation3 + $0x1f8] sm:$0xf] %vm215_vm0, %v1579_v49  ;;  %v2223_v15 = vrot.slane %v2221_v52, 5  ;;  %v2229_v40 = vrot.slane %v2227_v37, 5  ;;  %v4942_v46 = vadd.f32 %v4941_v36, %v7736_v7  ;;  %v5043_v51 = vadd.f32 %v5042_v13, %v5041_v55  ;;  %v5496_v60 = vld [vmem:[#allocation3 + $0x1e8] sm:$0xf]  ;;  %v3241_v37 = vpop.permute.xlu2 %3240 }
 0x1f5   : > { %1850 = vst.msk [vmem:[#allocation3 + $0x1f8] sm:$0xf] %vm1357_vm12, %v1780_v42  ;;  %v5791_v44 = vld [vmem:[#allocation3 + $0x1ec] sm:$0xf]  ;;  %v2716_v58 = vld [vmem:[#allocation2 + $0xb4] sm:$0xf]  ;;  %v4805_v14 = vadd.f32 %v4804_v56, %v4716_v48  ;;  %v4629_v39 = vadd.f32 %v4628_v21, %v4540_v1 }
 0x1f6   : > { %1849 = vst.msk [vmem:[#allocation3 + $0x1e4] sm:$0xf] %vm1357_vm12, %v1778_v43  ;;  %v2224_v19 = vor.u32 %v2223_v15, %v2220_v45  ;;  %v5793_v33 = vld [vmem:[#allocation3 + $0x1f8] sm:$0xf0]  ;;  %v1898_v18 = vld [vmem:[#allocation2 + $0xb0] sm:$0x1]  ;;  %v4631_v45 = vpop.f32.mrf.mxu2 }
 0x1f7   : > { %4903 = vst.msk [vmem:[%s7520_s26 + $0x1c] sm:$0xf] %vm215_vm0, %v4871_v5  ;;  %v5497_v31 = vor.u32 %v5793_v33, %v5496_v60  ;;  %v5498_v7 = vld [vmem:[#allocation3 + $0x1fc] sm:$0xf0]  ;;  %v2233_v55 = vrot.slane %v2231_v62, 4  ;;  %v2237_v8 = vshll.u32 %v1898_v18, 16  ;;  %v4872_v11 = vpack.c.bf16 %v4805_v14, %v4805_v14  ;;  %v4542_v3 = vpop.f32.mrf.mxu1  ;;  %v1782_v18 = vpop.permute.xlu0 %1781 }
 0x1f8   : > { %v5484_v4 = vld [vmem:[#allocation3 + $0x1c8] sm:$0xf]  ;;  %v2225_v42 = vrot.slane %v2224_v19, 4  ;;  %v5501_v12 = vor.u32 %v5791_v44, %v5498_v7  ;;  %2748 = vst.msk [vmem:[#allocation3 + $0x214] sm:$0xf] %vm215_vm0, %v2716_v58  ;;  %v4943_v43 = vsel %vm4370_vm1, %v4805_v14, 0.0  ;;  %v5005_v0 = vmul.f32 %v4805_v14, %v4805_v14 }
 0x1f9   : > { %v5789_v2 = vld [vmem:[#allocation3 + $0x1d8] sm:$0xf0]  ;;  %3308 = vst.msk [vmem:[#allocation3 + $0x214] sm:$0xf] %vm1357_vm12, %v3239_v59  ;;  %v2234_v30 = vor.u32 %v2233_v55, %v2229_v40  ;;  %v2239_v10 = vrot.slane %v2237_v8, 5  ;;  %v4944_v35 = vadd.f32 %v4943_v43, %v4942_v46  ;;  %v4718_v57 = vadd.f32 %v4717_v20, %v4629_v39 }
 0x1fa   : > { %v5485_v5 = vor.u32 %v5789_v2, %v5484_v4  ;;  %v2230_v48 = vsel %vm5982_vm11, %v2225_v42, %v2229_v40  ;;  %4665 = vmatmul.bf16.gmra.mxu2 %v5497_v31  ;;  %4754 = vmatmul.bf16.gmra.mxu3 %v5501_v12  ;;  %v2717_v53 = vld [vmem:[#allocation2 + $0xb8] sm:$0xf]  ;;  %4904 = vst.msk [vmem:[%s7520_s26 + $0x20] sm:$0xf] %vm215_vm0, %v4872_v11  ;;  %v3350_v25 = vld [vmem:[#allocation2 + $0xa8] sm:$0xe]  ;;  %v4806_v40 = vpop.f32.mrf.mxu0  ;;  %v4720_v46 = vpop.f32.mrf.mxu3 }
 0x1fb   : > { %2347 = vst.msk [vmem:[#allocation3 + $0x210] sm:$0xf] %vm215_vm0, %v2230_v48  ;;  %v2235_v1 = vrot.slane %v2234_v30, 4  ;;  %v5044_v17 = vsel %vm4370_vm1, %v5005_v0, 0.0  ;;  %v3351_v52 = vld [vmem:[#allocation2 + $0xac] sm:$0xf]  ;;  %v4807_v58 = vadd.f32 %v4806_v40, %v4718_v57  ;;  %v1784_v12 = vpop.permute.xlu1 %1783 }
 0x1fc   : > { %5721 = vmatmul.msk.bf16.gmra.mxu0 %vm4370_vm1, %v5485_v5  ;;  %2683 = vst.msk [vmem:[#allocation3 + $0x210] sm:$0xf] %vm1357_vm12, %v2614_v63  ;;  %v5045_v62 = vadd.f32 %v5044_v17, %v5043_v51  ;;  %v5490_v21 = vld [vmem:[#allocation3 + $0x1f4] sm:$0xf0]  ;;  %v5242_v20 = vrot.slane %v3350_v25, 9  ;;  %v3496_v15 = vrot.slane %v3351_v52, 5  ;;  %v4543_v51 = vadd.f32 %v4542_v3, %v7177_v23 }
 0x1fd   : > { %v3352_v49 = vld [vmem:[#allocation2 + $0xb0] sm:$0x1]  ;;  %v2240_v36 = vsel %vm5982_vm11, %v2235_v1, %v2239_v10  ;;  %2749 = vst.msk [vmem:[#allocation3 + $0x228] sm:$0xf] %vm215_vm0, %v2717_v53  ;;  %v5790_v13 = vld [vmem:[#allocation3 + $0x1e4] sm:$0xf]  ;;  %v4873_v31 = vpack.c.bf16 %v4807_v58, %v4807_v58  ;;  %v5006_v55 = vmul.f32 %v4807_v58, %v4807_v58 }
 0x1fe   : > { %2348 = vst.msk [vmem:[#allocation3 + $0x224] sm:$0xf] %vm215_vm0, %v2240_v36  ;;  %v5493_v60 = vor.u32 %v5790_v13, %v5490_v21  ;;  %v3499_v44 = vrot.slane %v3352_v49, 5  ;;  %v1430_v63 = vld [vmem:[#allocation2 + $0xa0] sm:$0xf]  ;;  %v3497_v56 = vsel %vm6441_vm15, %v5242_v20, %v3496_v15  ;;  %v3498_v19 = vrot.slane %v3496_v15, 4 }
 0x1ff   : > { %2684 = vst.msk [vmem:[#allocation3 + $0x224] sm:$0xf] %vm1357_vm12, %v2616_v28  ;;  %v1431_v33 = vld [vmem:[#allocation2 + $0xa4] sm:$0x1]  ;;  %v1582_v59 = vrot.slane %v1430_v63, 5  ;;  %v4945_v7 = vsel %vm4370_vm1, %v4807_v58, 0.0  ;;  %v4632_v30 = vadd.f32 %v4631_v45, %v4543_v51  ;;  %v4544_v10 = vpop.f32.mrf.mxu1  ;;  %v2618_v51 = vpop.permute.xlu2 %2617 }
 0x200   : > { %3309 = vst.msk [vmem:[#allocation3 + $0x228] sm:$0xf] %vm1357_vm12, %v3241_v37  ;;  %v1585_v14 = vrot.slane %v1431_v33, 5  ;;  %v1429_v39 = vld [vmem:[#allocation2 + $0x9c] sm:$0xe]  ;;  %v3500_v23 = vsel %vm6441_vm15, %v3498_v19, %v3499_v44  ;;  %v7803_v42 = vadd.f32 %v4945_v7, %v4944_v35  ;;  %v5046_v57 = vsel %vm4370_vm1, %v5006_v55, 0.0  ;;  %v4633_v44 = vpop.f32.mrf.mxu2 }
 0x201   : > { %4576 = vmatmul.bf16.gmra.mxu1 %v5493_v60  ;;  %3578 = vst.msk [vmem:[#allocation3 + $0x1f0] sm:$0xf] %vm215_vm0, %v3497_v56  ;;  %v1584_v28 = vrot.slane %v1582_v59, 4  ;;  %v5211_v8 = vrot.slane %v1429_v39, 9  ;;  %v1899_v4 = vld [vmem:[#allocation2 + $0xb4] sm:$0xf]  ;;  %v4545_v1 = vadd.f32 %v4544_v10, %v7212_v32  ;;  %v5047_v52 = vadd.f32 %v5046_v57, %v5045_v62 }
 0x202   : > { %3579 = vst.msk [vmem:[#allocation3 + $0x204] sm:$0xf] %vm215_vm0, %v3500_v23  ;;  %v1900_v11 = vld [vmem:[#allocation2 + $0xb8] sm:$0xf]  ;;  %v2242_v43 = vshrl.u32 %v1899_v4, 16  ;;  %v2245_v2 = vshll.u32 %v1899_v4, 16  ;;  %v4721_v60 = vadd.f32 %v4720_v46, %v4632_v30  ;;  %v4722_v32 = vpop.f32.mrf.mxu3 }
 0x203   : > { %v1586_v0 = vsel %vm6441_vm15, %v1584_v28, %v1585_v14  ;;  %v1583_v5 = vsel %vm6441_vm15, %v5211_v8, %v1582_v59  ;;  %v2251_v48 = vshll.u32 %v1900_v11, 16  ;;  %v2255_v53 = vshrl.u32 %v1900_v11, 16  ;;  %4905 = vst.msk [vmem:[%s7520_s26 + $0x24] sm:$0xf] %vm215_vm0, %v4873_v31  ;;  %v5516_v3 = vld [vmem:[#allocation3 + $0x210] sm:$0xf]  ;;  %v2620_v14 = vpop.permute.xlu0 %2619 }
 0x204   : > { %1660 = vst.msk [vmem:[#allocation3 + $0x220] sm:$0xf] %vm215_vm0, %v1586_v0  ;;  %v2244_v35 = vrot.slane %v2242_v43, 4  ;;  %v2247_v25 = vrot.slane %v2245_v2, 5  ;;  %v5796_v37 = vld [vmem:[#allocation3 + $0x214] sm:$0xf]  ;;  %v4634_v19 = vadd.f32 %v4633_v44, %v4545_v1 }
 0x205   : > { %1852 = vst.msk [vmem:[#allocation3 + $0x220] sm:$0xf] %vm1357_vm12, %v1784_v12  ;;  %v2253_v17 = vrot.slane %v2251_v48, 5  ;;  %v2257_v21 = vrot.slane %v2255_v53, 4  ;;  %v2718_v36 = vld [vmem:[#allocation2 + $0xc0] sm:$0xf] }
 0x206   : > { %1659 = vst.msk [vmem:[#allocation3 + $0x20c] sm:$0xf] %vm215_vm0, %v1583_v5  ;;  %v2248_v49 = vor.u32 %v2247_v25, %v2244_v35  ;;  %v5798_v45 = vld [vmem:[#allocation3 + $0x220] sm:$0xf0]  ;;  %v2719_v39 = vld [vmem:[#allocation2 + $0xc4] sm:$0xf]  ;;  %v4723_v2 = vadd.f32 %v4722_v32, %v4634_v19 }
 0x207   : > { %1851 = vst.msk [vmem:[#allocation3 + $0x20c] sm:$0xf] %vm1357_vm12, %v1782_v18  ;;  %v5517_v13 = vor.u32 %v5798_v45, %v5516_v3  ;;  %v5518_v20 = vld [vmem:[#allocation3 + $0x224] sm:$0xf0]  ;;  %v1901_v15 = vld [vmem:[#allocation2 + $0xbc] sm:$0x1]  ;;  %v2258_v40 = vor.u32 %v2257_v21, %v2253_v17  ;;  %v4809_v18 = vpop.f32.mrf.mxu0 }
 0x208   : > { %v5504_v63 = vld [vmem:[#allocation3 + $0x1f0] sm:$0xf]  ;;  %v2249_v58 = vrot.slane %v2248_v49, 4  ;;  %v5521_v62 = vor.u32 %v5796_v37, %v5518_v20  ;;  %2750 = vst.msk [vmem:[#allocation3 + $0x23c] sm:$0xf] %vm215_vm0, %v2718_v36  ;;  %v2261_v56 = vshll.u32 %v1901_v15, 16  ;;  %v4810_v23 = vadd.f32 %v4809_v18, %v4721_v60 }
 0x209   : > { %v5794_v33 = vld [vmem:[#allocation3 + $0x200] sm:$0xf0]  ;;  %v2259_v59 = vrot.slane %v2258_v40, 4  ;;  %2751 = vst.msk [vmem:[#allocation3 + $0x250] sm:$0xf] %vm215_vm0, %v2719_v39 }
 0x20a   : > { %v5505_v31 = vor.u32 %v5794_v33, %v5504_v63  ;;  %v2254_v7 = vsel %vm5982_vm11, %v2249_v58, %v2253_v17  ;;  %4670 = vmatmul.bf16.gmra.mxu2 %v5517_v13  ;;  %4759 = vmatmul.bf16.gmra.mxu3 %v5521_v62  ;;  %v2263_v46 = vrot.slane %v2261_v56, 5  ;;  %v3353_v55 = vld [vmem:[#allocation2 + $0xb4] sm:$0xe]  ;;  %v3354_v28 = vld [vmem:[#allocation2 + $0xb8] sm:$0xf]  ;;  %v4874_v30 = vpack.c.bf16 %v4810_v23, %v4810_v23  ;;  %v7840_v60 = vpop.f32.mrf.mxu3 }
 0x20b   : > { %2349 = vst.msk [vmem:[#allocation3 + $0x238] sm:$0xf] %vm215_vm0, %v2254_v7  ;;  %v3355_v8 = vld [vmem:[#allocation2 + $0xbc] sm:$0x1]  ;;  %v5243_v11 = vrot.slane %v3353_v55, 9  ;;  %v3503_v43 = vrot.slane %v3354_v28, 5  ;;  %v5007_v0 = vmul.f32 %v4810_v23, %v4810_v23  ;;  %v1786_v19 = vpop.permute.xlu0 %1785 }
 0x20c   : > { %5722 = vmatmul.msk.bf16.gmra.mxu0 %vm4370_vm1, %v5505_v31  ;;  %2685 = vst.msk [vmem:[#allocation3 + $0x238] sm:$0xf] %vm1357_vm12, %v2618_v51  ;;  %v2264_v4 = vsel %vm5982_vm11, %v2259_v59, %v2263_v46  ;;  %v5510_v12 = vld [vmem:[#allocation3 + $0x21c] sm:$0xf0]  ;;  %v4947_v10 = vsel %vm4370_vm1, %v4810_v23, 0.0  ;;  %v3506_v5 = vrot.slane %v3355_v8, 5  ;;  %v4547_v21 = vpop.f32.mrf.mxu1  ;;  %v4636_v51 = vpop.f32.mrf.mxu2 }
 0x20d   : > { %2350 = vst.msk [vmem:[#allocation3 + $0x24c] sm:$0xf] %vm215_vm0, %v2264_v4  ;;  %v1433_v48 = vld [vmem:[#allocation2 + $0xac] sm:$0xf]  ;;  %v4948_v53 = vadd.f32 %v4947_v10, %v7803_v42  ;;  %v3504_v25 = vsel %vm6441_vm15, %v5243_v11, %v3503_v43  ;;  %v3505_v57 = vrot.slane %v3503_v43, 4  ;;  %v5048_v1 = vsel %vm4370_vm1, %v5007_v0, 0.0 }
 0x20e   : > { %2686 = vst.msk [vmem:[#allocation3 + $0x24c] sm:$0xf] %vm1357_vm12, %v2620_v14  ;;  %v5795_v35 = vld [vmem:[#allocation3 + $0x20c] sm:$0xf]  ;;  %v1589_v3 = vrot.slane %v1433_v48, 5  ;;  %v5049_v49 = vadd.f32 %v5048_v1, %v5047_v52  ;;  %v4548_v39 = vadd.f32 %v4547_v21, %v7252_v54 }
 0x20f   : > { %4906 = vst.msk [vmem:[%s7520_s26 + $0x28] sm:$0xf] %vm215_vm0, %v4874_v30  ;;  %v5513_v17 = vor.u32 %v5795_v35, %v5510_v12  ;;  %v1434_v37 = vld [vmem:[#allocation2 + $0xb0] sm:$0x1]  ;;  %v3507_v45 = vsel %vm6441_vm15, %v3505_v57, %v3506_v5  ;;  %v1432_v13 = vld [vmem:[#allocation2 + $0xa8] sm:$0xe]  ;;  %v4811_v40 = vpop.f32.mrf.mxu0 }
 0x210   : > { %3580 = vst.msk [vmem:[#allocation3 + $0x218] sm:$0xf] %vm215_vm0, %v3504_v25  ;;  %v1591_v42 = vrot.slane %v1589_v3, 4  ;;  %v1592_v36 = vrot.slane %v1434_v37, 5  ;;  %v5212_v20 = vrot.slane %v1432_v13, 9  ;;  %v4812_v58 = vadd.f32 %v4811_v40, %v4723_v2 }
 0x211   : > { %4581 = vmatmul.bf16.gmra.mxu1 %v5513_v17  ;;  %3581 = vst.msk [vmem:[#allocation3 + $0x22c] sm:$0xf] %vm215_vm0, %v3507_v45  ;;  %v1902_v15 = vld [vmem:[#allocation2 + $0xc0] sm:$0xf]  ;;  %v1903_v52 = vld [vmem:[#allocation2 + $0xc4] sm:$0xf]  ;;  %v4637_v57 = vadd.f32 %v4636_v51, %v4548_v39 }
 0x212   : > { %v1593_v44 = vsel %vm6441_vm15, %v1591_v42, %v1592_v36  ;;  %v2266_v32 = vshrl.u32 %v1902_v15, 16  ;;  %v2269_v63 = vshll.u32 %v1902_v15, 16  ;;  %v3245_v62 = vpop.permute.xlu2 %3244  ;;  %v1590_v56 = vsel %vm6441_vm15, %v5212_v20, %v1589_v3  ;;  %v2720_v55 = vld [vmem:[#allocation2 + $0xcc] sm:$0xf]  ;;  %v1904_v2 = vld [vmem:[#allocation2 + $0xc8] sm:$0x1] }
 0x213   : > { %1662 = vst.msk [vmem:[#allocation3 + $0x248] sm:$0xf] %vm215_vm0, %v1593_v44  ;;  %v2275_v33 = vshll.u32 %v1903_v52, 16  ;;  %v2279_v59 = vshrl.u32 %v1903_v52, 16  ;;  %v5536_v14 = vld [vmem:[#allocation3 + $0x238] sm:$0xf]  ;;  %v4875_v7 = vpack.c.bf16 %v4812_v58, %v4812_v58  ;;  %v5008_v8 = vmul.f32 %v4812_v58, %v4812_v58  ;;  %v4727_v44 = vpop.f32.mrf.mxu3 }
 0x214   : > { %3311 = vst.msk [vmem:[#allocation3 + $0x250] sm:$0xf] %vm1357_vm12, %v3245_v62  ;;  %v2268_v18 = vrot.slane %v2266_v32, 4  ;;  %v2271_v31 = vrot.slane %v2269_v63, 5  ;;  %v4949_v46 = vsel %vm4370_vm1, %v4812_v58, 0.0  ;;  %v3243_v11 = vpop.permute.xlu1 %3242  ;;  %v2285_v48 = vshll.u32 %v1904_v2, 16  ;;  %v4549_v21 = vpop.f32.mrf.mxu1 }
 0x215   : > { %1661 = vst.msk [vmem:[#allocation3 + $0x234] sm:$0xf] %vm215_vm0, %v1590_v56  ;;  %v2277_v23 = vrot.slane %v2275_v33, 5  ;;  %v7851_v28 = vadd.f32 %v4949_v46, %v4948_v53  ;;  %v5803_v4 = vld [vmem:[#allocation3 + $0x248] sm:$0xf0]  ;;  %v2281_v12 = vrot.slane %v2279_v59, 4  ;;  %v4726_v52 = vadd.f32 %v7840_v60, %v4637_v57  ;;  %v4638_v63 = vpop.f32.mrf.mxu2 }
 0x216   : > { %1853 = vst.msk [vmem:[#allocation3 + $0x234] sm:$0xf] %vm1357_vm12, %v1786_v19  ;;  %v2272_v54 = vor.u32 %v2271_v31, %v2268_v18  ;;  %v5537_v43 = vor.u32 %v5803_v4, %v5536_v14  ;;  %v2721_v30 = vld [vmem:[#allocation2 + $0xd0] sm:$0xf]  ;;  %v5050_v0 = vsel %vm4370_vm1, %v5008_v8, 0.0  ;;  %v2287_v17 = vrot.slane %v2285_v48, 5 }
 0x217   : > { %3310 = vst.msk [vmem:[#allocation3 + $0x23c] sm:$0xf] %vm1357_vm12, %v3243_v11  ;;  %v5524_v10 = vld [vmem:[#allocation3 + $0x218] sm:$0xf]  ;;  %v2282_v5 = vor.u32 %v2281_v12, %v2277_v23  ;;  %v7858_v25 = vadd.f32 %v5050_v0, %v5049_v49  ;;  %v3356_v37 = vld [vmem:[#allocation2 + $0xc0] sm:$0xe]  ;;  %v4550_v51 = vadd.f32 %v4549_v21, %v7291_v6 }
 0x218   : > { %v5799_v53 = vld [vmem:[#allocation3 + $0x228] sm:$0xf0]  ;;  %v2273_v35 = vrot.slane %v2272_v54, 4  ;;  %4907 = vst.msk [vmem:[%s7520_s26 + $0x2c] sm:$0xf] %vm215_vm0, %v4875_v7  ;;  %v5244_v15 = vrot.slane %v3356_v37, 9 }
 0x219   : > { %v5525_v3 = vor.u32 %v5799_v53, %v5524_v10  ;;  %2752 = vst.msk [vmem:[#allocation3 + $0x264] sm:$0xf] %vm215_vm0, %v2720_v55  ;;  %v2283_v1 = vrot.slane %v2282_v5, 4  ;;  %v3357_v42 = vld [vmem:[#allocation2 + $0xc4] sm:$0xf]  ;;  %v4639_v55 = vadd.f32 %v4638_v63, %v4550_v51 }
 0x21a   : > { %v2278_v45 = vsel %vm5982_vm11, %v2273_v35, %v2277_v23  ;;  %4675 = vmatmul.bf16.gmra.mxu2 %v5537_v43  ;;  %2753 = vst.msk [vmem:[#allocation3 + $0x278] sm:$0xf] %vm215_vm0, %v2721_v30  ;;  %v3358_v36 = vld [vmem:[#allocation2 + $0xc8] sm:$0x1]  ;;  %v2622_v49 = vpop.permute.xlu2 %2621  ;;  %v3510_v40 = vrot.slane %v3357_v42, 5 }
 0x21b   : > { %2351 = vst.msk [vmem:[#allocation3 + $0x260] sm:$0xf] %vm215_vm0, %v2278_v45  ;;  %v5538_v13 = vld [vmem:[#allocation3 + $0x24c] sm:$0xf0]  ;;  %v2288_v20 = vsel %vm5982_vm11, %v2283_v1, %v2287_v17  ;;  %v3513_v32 = vrot.slane %v3358_v36, 5  ;;  %v4728_v57 = vadd.f32 %v4727_v44, %v4639_v55 }
 0x21c   : > { %5723 = vmatmul.msk.bf16.gmra.mxu0 %vm4370_vm1, %v5525_v3  ;;  %2687 = vst.msk [vmem:[#allocation3 + $0x260] sm:$0xf] %vm1357_vm12, %v2622_v49  ;;  %v1436_v58 = vld [vmem:[#allocation2 + $0xb8] sm:$0xf]  ;;  %v3511_v41 = vsel %vm6441_vm15, %v5244_v15, %v3510_v40  ;;  %v3512_v62 = vrot.slane %v3510_v40, 4  ;;  %v1788_v19 = vpop.permute.xlu1 %1787 }
 0x21d   : > { %2352 = vst.msk [vmem:[#allocation3 + $0x274] sm:$0xf] %vm215_vm0, %v2288_v20  ;;  %v1596_v56 = vrot.slane %v1436_v58, 5  ;;  %v1437_v59 = vld [vmem:[#allocation2 + $0xbc] sm:$0x1] }
 0x21e   : > { %v5801_v33 = vld [vmem:[#allocation3 + $0x23c] sm:$0xf]  ;;  %3582 = vst.msk [vmem:[#allocation3 + $0x240] sm:$0xf] %vm215_vm0, %v3511_v41  ;;  %v4814_v14 = vpop.f32.mrf.mxu0  ;;  %v3514_v39 = vsel %vm6441_vm15, %v3512_v62, %v3513_v32  ;;  %v1599_v18 = vrot.slane %v1437_v59, 5 }
 0x21f   : > { %1854 = vst.msk [vmem:[#allocation3 + $0x248] sm:$0xf] %vm1357_vm12, %v1788_v19  ;;  %v5541_v60 = vor.u32 %v5801_v33, %v5538_v13  ;;  %v1598_v6 = vrot.slane %v1596_v56, 4  ;;  %v1435_v31 = vld [vmem:[#allocation2 + $0xb4] sm:$0xe]  ;;  %v4815_v7 = vadd.f32 %v4814_v14, %v4726_v52 }
 0x220   : > { %3583 = vst.msk [vmem:[#allocation3 + $0x254] sm:$0xf] %vm215_vm0, %v3514_v39  ;;  %v5213_v46 = vrot.slane %v1435_v31, 9  ;;  %v3359_v23 = vld [vmem:[#allocation2 + $0xcc] sm:$0xe]  ;;  %v4641_v42 = vpop.f32.mrf.mxu2 }
 0x221   : > { %4764 = vmatmul.bf16.gmra.mxu3 %v5541_v60  ;;  %v1600_v8 = vsel %vm6441_vm15, %v1598_v6, %v1599_v18  ;;  %v3360_v4 = vld [vmem:[#allocation2 + $0xd0] sm:$0xf]  ;;  %v3361_v12 = vld [vmem:[#allocation2 + $0xd4] sm:$0x1]  ;;  %v5245_v11 = vrot.slane %v3359_v23, 9  ;;  %v4876_v54 = vpack.c.bf16 %v4815_v7, %v4815_v7  ;;  %v4951_v43 = vsel %vm4370_vm1, %v4815_v7, 0.0 }
 0x222   : > { %v5009_v2 = vmul.f32 %v4815_v7, %v4815_v7  ;;  %1664 = vst.msk [vmem:[#allocation3 + $0x270] sm:$0xf] %vm215_vm0, %v1600_v8  ;;  %v1597_v30 = vsel %vm6441_vm15, %v5213_v46, %v1596_v56  ;;  %v3249_v10 = vpop.permute.xlu2 %3248  ;;  %v4952_v0 = vadd.f32 %v4951_v43, %v7851_v28  ;;  %v3517_v5 = vrot.slane %v3360_v4, 5  ;;  %v5800_v35 = vld [vmem:[#allocation3 + $0x234] sm:$0xf]  ;;  %v4730_v17 = vpop.f32.mrf.mxu3 }
 0x223   : > { %1663 = vst.msk [vmem:[#allocation3 + $0x25c] sm:$0xf] %vm215_vm0, %v1597_v30  ;;  %v3520_v48 = vrot.slane %v3361_v12, 5  ;;  %v5556_v6 = vld [vmem:[#allocation3 + $0x260] sm:$0xf] }
 0x224   : > { %3313 = vst.msk [vmem:[#allocation3 + $0x278] sm:$0xf] %vm1357_vm12, %v3249_v10  ;;  %v5052_v53 = vsel %vm4370_vm1, %v5009_v2, 0.0  ;;  %v3518_v37 = vsel %vm6441_vm15, %v5245_v11, %v3517_v5  ;;  %v3519_v28 = vrot.slane %v3517_v5, 4  ;;  %v3247_v21 = vpop.permute.xlu1 %3246 }
 0x225   : > { %4908 = vst.msk [vmem:[%s7520_s26 + $0x30] sm:$0xf] %vm215_vm0, %v4876_v54  ;;  %v5053_v3 = vadd.f32 %v5052_v53, %v7858_v25  ;;  %v5544_v1 = vld [vmem:[#allocation3 + $0x240] sm:$0xf] }
 0x226   : > { %v5530_v45 = vld [vmem:[#allocation3 + $0x244] sm:$0xf0]  ;;  %3584 = vst.msk [vmem:[#allocation3 + $0x268] sm:$0xf] %vm215_vm0, %v3518_v37  ;;  %v4816_v13 = vpop.f32.mrf.mxu0  ;;  %v3521_v25 = vsel %vm6441_vm15, %v3519_v28, %v3520_v48 }
 0x227   : > { %3312 = vst.msk [vmem:[#allocation3 + $0x264] sm:$0xf] %vm1357_vm12, %v3247_v21  ;;  %v5533_v36 = vor.u32 %v5800_v35, %v5530_v45  ;;  %v5804_v49 = vld [vmem:[#allocation3 + $0x250] sm:$0xf0]  ;;  %v4552_v20 = vpop.f32.mrf.mxu1  ;;  %v4817_v40 = vadd.f32 %v4816_v13, %v4728_v57  ;;  %v2624_v44 = vpop.permute.xlu0 %2623 }
 0x228   : > { %v5545_v15 = vor.u32 %v5804_v49, %v5544_v1  ;;  %3585 = vst.msk [vmem:[#allocation3 + $0x27c] sm:$0xf] %vm215_vm0, %v3521_v25  ;;  %v4553_v51 = vadd.f32 %v4552_v20, %v7337_v29  ;;  %v4643_v29 = vpop.f32.mrf.mxu2 }
 0x229   : > { %4586 = vmatmul.bf16.gmra.mxu1 %v5533_v36  ;;  %2688 = vst.msk [vmem:[#allocation3 + $0x274] sm:$0xf] %vm1357_vm12, %v2624_v44  ;;  %v4877_v52 = vpack.c.bf16 %v4817_v40, %v4817_v40  ;;  %v4953_v32 = vsel %vm4370_vm1, %v4817_v40, 0.0  ;;  %v5010_v63 = vmul.f32 %v4817_v40, %v4817_v40 }
 0x22a   : > { %v4954_v58 = vadd.f32 %v4953_v32, %v4952_v0  ;;  %v4732_v56 = vpop.f32.mrf.mxu3  ;;  %v4642_v60 = vadd.f32 %v4641_v42, %v4553_v51 }
 0x22b   : > { %4909 = vst.msk [vmem:[%s7520_s26 + $0x34] sm:$0xf] %vm215_vm0, %v4877_v52  ;;  %v5054_v26 = vsel %vm4370_vm1, %v5010_v63, 0.0  ;;  %v5558_v41 = vld [vmem:[#allocation3 + $0x274] sm:$0xf0] }
 0x22c   : > { %5724 = vmatmul.msk.bf16.gmra.mxu0 %vm4370_vm1, %v5545_v15  ;;  %v5055_v62 = vadd.f32 %v5054_v26, %v5053_v3  ;;  %v1792_v19 = vpop.permute.xlu1 %1791  ;;  %v4731_v7 = vadd.f32 %v4730_v17, %v4642_v60 }
 0x22d   : > { %1856 = vst.msk [vmem:[#allocation3 + $0x270] sm:$0xf] %vm1357_vm12, %v1792_v19  ;;  %v5564_v55 = vld [vmem:[#allocation3 + $0x268] sm:$0xf] }
 0x22e   : > { %v5806_v33 = vld [vmem:[#allocation3 + $0x264] sm:$0xf] }
 0x22f   : > { %v5561_v59 = vor.u32 %v5806_v33, %v5558_v41  ;;  %v4554_v14 = vpop.f32.mrf.mxu1  ;;  %v1790_v39 = vpop.permute.xlu0 %1789  ;;  %v5809_v23 = vld [vmem:[#allocation3 + $0x278] sm:$0xf0] }
 0x230   : > { %v5808_v18 = vld [vmem:[#allocation3 + $0x270] sm:$0xf0]  ;;  %1855 = vst.msk [vmem:[#allocation3 + $0x25c] sm:$0xf] %vm1357_vm12, %v1790_v39  ;;  %v4555_v46 = vadd.f32 %v4554_v14, %v7373_v24  ;;  %v5565_v43 = vor.u32 %v5809_v23, %v5564_v55 }
 0x231   : > { %4769 = vmatmul.bf16.gmra.mxu3 %v5561_v59  ;;  %v5557_v31 = vor.u32 %v5808_v18, %v5556_v6 }
 0x232   : > { %v4644_v11 = vadd.f32 %v4643_v29, %v4555_v46 }
 0x233   : > { %4680 = vmatmul.bf16.gmra.mxu2 %v5557_v31 }
 0x234   : > { %v4819_v8 = vpop.f32.mrf.mxu0  ;;  %v5550_v12 = vld [vmem:[#allocation3 + $0x26c] sm:$0xf0]  ;;  %v4733_v53 = vadd.f32 %v4732_v56, %v4644_v11 }
 0x235   : > { %v4820_v4 = vadd.f32 %v4819_v8, %v4731_v7  ;;  %v4735_v54 = vpop.f32.mrf.mxu3 }
 0x237   : > { %v4878_v2 = vpack.c.bf16 %v4820_v4, %v4820_v4  ;;  %v4955_v30 = vsel %vm4370_vm1, %v4820_v4, 0.0  ;;  %v5011_v10 = vmul.f32 %v4820_v4, %v4820_v4  ;;  %v5805_v0 = vld [vmem:[#allocation3 + $0x25c] sm:$0xf] }
 0x238   : > { %v4956_v5 = vadd.f32 %v4955_v30, %v4954_v58  ;;  %v5553_v48 = vor.u32 %v5805_v0, %v5550_v12  ;;  %v4646_v35 = vpop.f32.mrf.mxu2 }
 0x239   : > { %4910 = vst.msk [vmem:[%s7520_s26 + $0x38] sm:$0xf] %vm215_vm0, %v4878_v2  ;;  %v5056_v24 = vsel %vm4370_vm1, %v5011_v10, 0.0 }
 0x23a   : > { %v5057_v57 = vadd.f32 %v5056_v24, %v5055_v62  ;;  %4591 = vmatmul.bf16.gmra.mxu1 %v5553_v48 }
 0x23b   : > { %v4557_v3 = vpop.f32.mrf.mxu1 }
 0x23c   : > { %5725 = vmatmul.msk.bf16.gmra.mxu0 %vm4370_vm1, %v5565_v43  ;;  %v4821_v1 = vpop.f32.mrf.mxu0  ;;  %v4558_v17 = vadd.f32 %v4557_v3, %v7089_v34 }
 0x23d   : > { %v4822_v37 = vadd.f32 %v4821_v1, %v4733_v53  ;;  %v4737_v42 = vpop.f32.mrf.mxu3 }
 0x23e   : > { %v4647_v49 = vadd.f32 %v4646_v35, %v4558_v17 }
 0x23f   : > { %v4879_v28 = vpack.c.bf16 %v4822_v37, %v4822_v37  ;;  %v4957_v21 = vsel %vm4370_vm1, %v4822_v37, 0.0  ;;  %v5012_v45 = vmul.f32 %v4822_v37, %v4822_v37 }
 0x240   : > { %v4958_v36 = vadd.f32 %v4957_v21, %v4956_v5  ;;  %v4648_v20 = vpop.f32.mrf.mxu2  ;;  %v4736_v40 = vadd.f32 %v4735_v54, %v4647_v49 }
 0x241   : > { %4911 = vst.msk [vmem:[%s7520_s26 + $0x3c] sm:$0xf] %vm215_vm0, %v4879_v28  ;;  %v5058_v13 = vsel %vm4370_vm1, %v5012_v45, 0.0 }
 0x242   : > { %v5059_v25 = vadd.f32 %v5058_v13, %v5057_v57 }
 0x243   : > { %v4559_v15 = vpop.f32.mrf.mxu1 }
 0x244   : > { %v4560_v44 = vadd.f32 %v4559_v15, %v7123_v47 }
 0x246   : > { %v4649_v32 = vadd.f32 %v4648_v20, %v4560_v44 }
 0x248   : > { %v4824_v34 = vpop.f32.mrf.mxu0  ;;  %v4738_v19 = vadd.f32 %v4737_v42, %v4649_v32 }
 0x249   : > { %v4825_v52 = vadd.f32 %v4824_v34, %v4736_v40 }
 0x24a   : > { %v4740_v63 = vpop.f32.mrf.mxu3 }
 0x24b   : > { %v4880_v58 = vpack.c.bf16 %v4825_v52, %v4825_v52  ;;  %v4959_v51 = vsel %vm4370_vm1, %v4825_v52, 0.0  ;;  %v5013_v26 = vmul.f32 %v4825_v52, %v4825_v52  ;;  %v4651_v41 = vpop.f32.mrf.mxu2 }
 0x24c   : > { %v4960_v62 = vadd.f32 %v4959_v51, %v4958_v36 }
 0x24d   : > { %4912 = vst.msk [vmem:[%s7520_s26 + $0x40] sm:$0xf] %vm215_vm0, %v4880_v58  ;;  %v5060_v56 = vsel %vm4370_vm1, %v5013_v26, 0.0 }
 0x24e   : > { %v4562_v33 = vpop.f32.mrf.mxu1  ;;  %v5061_v59 = vadd.f32 %v5060_v56, %v5059_v25 }
 0x24f   : > { %v4563_v47 = vadd.f32 %v4562_v33, %v7162_v22 }
 0x250   : > { %v4826_v60 = vpop.f32.mrf.mxu0 }
 0x251   : > { %v4827_v14 = vadd.f32 %v4826_v60, %v4738_v19  ;;  %v4652_v39 = vadd.f32 %v4651_v41, %v4563_v47 }
 0x252   : > { %v4742_v6 = vpop.f32.mrf.mxu3 }
 0x253   : > { %v4881_v18 = vpack.c.bf16 %v4827_v14, %v4827_v14  ;;  %v4961_v29 = vsel %vm4370_vm1, %v4827_v14, 0.0  ;;  %v5014_v31 = vmul.f32 %v4827_v14, %v4827_v14  ;;  %v4653_v7 = vpop.f32.mrf.mxu2  ;;  %v4741_v23 = vadd.f32 %v4740_v63, %v4652_v39 }
 0x254   : > { %v4962_v46 = vadd.f32 %v4961_v29, %v4960_v62 }
 0x255   : > { %4913 = vst.msk [vmem:[%s7520_s26 + $0x44] sm:$0xf] %vm215_vm0, %v4881_v18  ;;  %v5062_v55 = vsel %vm4370_vm1, %v5014_v31, 0.0 }
 0x256   : > { %v4564_v8 = vpop.f32.mrf.mxu1  ;;  %v5063_v4 = vadd.f32 %v5062_v55, %v5061_v59 }
 0x257   : > { %v4565_v22 = vadd.f32 %v4564_v8, %v7200_v16 }
 0x259   : > { %v4829_v12 = vpop.f32.mrf.mxu0  ;;  %v4654_v54 = vadd.f32 %v4653_v7, %v4565_v22 }
 0x25a   : > { %v4830_v11 = vadd.f32 %v4829_v12, %v4741_v23 }
 0x25b   : > { %v4745_v43 = vpop.f32.mrf.mxu3  ;;  %v4743_v24 = vadd.f32 %v4742_v6, %v4654_v54 }
 0x25c   : > { %v4882_v2 = vpack.c.bf16 %v4830_v11, %v4830_v11  ;;  %v4963_v30 = vsel %vm4370_vm1, %v4830_v11, 0.0  ;;  %v5015_v10 = vmul.f32 %v4830_v11, %v4830_v11 }
 0x25d   : > { %v4964_v0 = vadd.f32 %v4963_v30, %v4962_v46  ;;  %v4656_v5 = vpop.f32.mrf.mxu2 }
 0x25e   : > { %4914 = vst.msk [vmem:[%s7520_s26 + $0x48] sm:$0xf] %vm215_vm0, %v4882_v2  ;;  %v5064_v48 = vsel %vm4370_vm1, %v5015_v10, 0.0  ;;  %v4567_v53 = vpop.f32.mrf.mxu1 }
 0x25f   : > { %v5065_v35 = vadd.f32 %v5064_v48, %v5063_v4  ;;  %v4568_v16 = vadd.f32 %v4567_v53, %v7243_v9  ;;  %v8046_v48 = vld [vmem:[#allocation4_spill] sm:$0xff] }
 0x261   : > { %v4831_v57 = vpop.f32.mrf.mxu0  ;;  %v4657_v1 = vadd.f32 %v4656_v5, %v4568_v16 }
 0x262   : > { %v4832_v3 = vadd.f32 %v4831_v57, %v4743_v24 }
 0x263   : > { %v4747_v17 = vpop.f32.mrf.mxu3  ;;  %v4746_v49 = vadd.f32 %v4745_v43, %v4657_v1 }
 0x264   : > { %v4883_v37 = vpack.c.bf16 %v4832_v3, %v4832_v3  ;;  %v4965_v28 = vsel %vm4370_vm1, %v4832_v3, 0.0  ;;  %v5016_v21 = vmul.f32 %v4832_v3, %v4832_v3 }
 0x265   : > { %v4966_v45 = vadd.f32 %v4965_v28, %v4964_v0  ;;  %v4658_v42 = vpop.f32.mrf.mxu2 }
 0x266   : > { %4915 = vst.msk [vmem:[%s7520_s26 + $0x4c] sm:$0xf] %vm215_vm0, %v4883_v37  ;;  %v5066_v36 = vsel %vm4370_vm1, %v5016_v21, 0.0  ;;  %v4569_v13 = vpop.f32.mrf.mxu1  ;;  %v8047_v37 = vld [vmem:[#allocation5_spill] sm:$0xff] }
 0x267   : > { %v5067_v20 = vadd.f32 %v5066_v36, %v5065_v35  ;;  %v4570_v9 = vadd.f32 %v4569_v13, %v7282_v38 }
 0x269   : > { %v4834_v25 = vpop.f32.mrf.mxu0  ;;  %v4659_v40 = vadd.f32 %v4658_v42, %v4570_v9  ;;  %v8048_v9 = vld [vmem:[#allocation6_spill] sm:$0xff] }
 0x26a   : > { %v4835_v15 = vadd.f32 %v4834_v25, %v4746_v49 }
 0x26b   : > { %v4748_v26 = vadd.f32 %v4747_v17, %v4659_v40 }
 0x26c   : > { %v4884_v44 = vpack.c.bf16 %v4835_v15, %v4835_v15  ;;  %v4967_v34 = vsel %vm4370_vm1, %v4835_v15, 0.0  ;;  %v5017_v52 = vmul.f32 %v4835_v15, %v4835_v15 }
 0x26d   : > { %v4968_v32 = vadd.f32 %v4967_v34, %v4966_v45  ;;  %v4661_v63 = vpop.f32.mrf.mxu2  ;;  %v4750_v58 = vpop.f32.mrf.mxu3 }
 0x26e   : > { %4916 = vst.msk [vmem:[%s7520_s26 + $0x50] sm:$0xf] %vm215_vm0, %v4884_v44  ;;  %v5068_v51 = vsel %vm4370_vm1, %v5017_v52, 0.0  ;;  %v4572_v41 = vpop.f32.mrf.mxu1 }
 0x26f   : > { %v5069_v62 = vadd.f32 %v5068_v51, %v5067_v20  ;;  %v4573_v38 = vadd.f32 %v4572_v41, %v7326_v61 }
 0x271   : > { %v4836_v56 = vpop.f32.mrf.mxu0  ;;  %v4662_v33 = vadd.f32 %v4661_v63, %v4573_v38 }
 0x272   : > { %v4837_v19 = vadd.f32 %v4836_v56, %v4748_v26  ;;  %v8049_v56 = vld [vmem:[#allocation7_spill] sm:$0xff] }
 0x273   : > { %v4751_v29 = vadd.f32 %v4750_v58, %v4662_v33 }
 0x274   : > { %v4885_v59 = vpack.c.bf16 %v4837_v19, %v4837_v19  ;;  %v4969_v47 = vsel %vm4370_vm1, %v4837_v19, 0.0  ;;  %v5018_v60 = vmul.f32 %v4837_v19, %v4837_v19 }
 0x275   : > { %v7946_v14 = vadd.f32 %v4969_v47, %v4968_v32  ;;  %v4663_v39 = vpop.f32.mrf.mxu2  ;;  %v4752_v6 = vpop.f32.mrf.mxu3 }
 0x276   : > { %4917 = vst.msk [vmem:[%s7520_s26 + $0x54] sm:$0xf] %vm215_vm0, %v4885_v59  ;;  %v5070_v18 = vsel %vm4370_vm1, %v5018_v60, 0.0  ;;  %v4574_v31 = vpop.f32.mrf.mxu1 }
 0x277   : > { %v7951_v7 = vadd.f32 %v5070_v18, %v5069_v62  ;;  %v4575_v61 = vadd.f32 %v4574_v31, %v7369_v27 }
 0x279   : > { %v4839_v46 = vpop.f32.mrf.mxu0  ;;  %v4664_v23 = vadd.f32 %v4663_v39, %v4575_v61 }
 0x27a   : > { %v7954_v55 = vadd.f32 %v4839_v46, %v4751_v29  ;;  %v8050_v29 = vld [vmem:[#allocation8_spill] sm:$0xff] }
 0x27b   : > { %v4753_v22 = vadd.f32 %v4752_v6, %v4664_v23 }
 0x27c   : > { %v4886_v8 = vpack.c.bf16 %v7954_v55, %v7954_v55 }
 0x27d   : > { %v4666_v4 = vpop.f32.mrf.mxu2  ;;  %v4755_v11 = vpop.f32.mrf.mxu3 }
 0x27e   : > { %4918 = vst.msk [vmem:[%s7520_s26 + $0x58] sm:$0xf] %vm215_vm0, %v4886_v8  ;;  %v4577_v12 = vpop.f32.mrf.mxu1 }
 0x27f   : > { %v4578_v54 = vadd.f32 %v4577_v12, %v7117_v50  ;;  %v4971_v12 = vsel %vm4370_vm1, %v7954_v55, 0.0 }
 0x281   : > { %v4841_v43 = vpop.f32.mrf.mxu0  ;;  %v4667_v27 = vadd.f32 %v4666_v4, %v4578_v54  ;;  %v5019_v4 = vmul.f32 %v7954_v55, %v7954_v55 }
 0x282   : > { %v4842_v2 = vadd.f32 %v4841_v43, %v4753_v22 }
 0x283   : > { %v4756_v0 = vadd.f32 %v4755_v11, %v4667_v27  ;;  %v5072_v43 = vsel %vm4370_vm1, %v5019_v4, 0.0 }
 0x284   : > { %v4887_v30 = vpack.c.bf16 %v4842_v2, %v4842_v2  ;;  %v5020_v11 = vmul.f32 %v4842_v2, %v4842_v2  ;;  %v4973_v27 = vsel %vm4370_vm1, %v4842_v2, 0.0 }
 0x285   : > { %v4668_v10 = vpop.f32.mrf.mxu2  ;;  %v4757_v35 = vpop.f32.mrf.mxu3 }
 0x286   : > { %4919 = vst.msk [vmem:[%s7520_s26 + $0x5c] sm:$0xf] %vm215_vm0, %v4887_v30  ;;  %v4579_v5 = vpop.f32.mrf.mxu1 }
 0x287   : > { %v4580_v24 = vadd.f32 %v4579_v5, %v8046_v48  ;;  %v5074_v48 = vsel %vm4370_vm1, %v5020_v11, 0.0 }
 0x289   : > { %v4844_v53 = vpop.f32.mrf.mxu0  ;;  %v4669_v57 = vadd.f32 %v4668_v10, %v4580_v24  ;;  %v4972_v10 = vadd.f32 %v4971_v12, %v7946_v14 }
 0x28a   : > { %v4845_v16 = vadd.f32 %v4844_v53, %v4756_v0 }
 0x28b   : > { %v4758_v50 = vadd.f32 %v4757_v35, %v4669_v57  ;;  %v8051_v35 = vld [vmem:[#allocation9_spill] sm:$0xff]  ;;  %v5073_v57 = vadd.f32 %v5072_v43, %v7951_v7 }
 0x28c   : > { %v4888_v3 = vpack.c.bf16 %v4845_v16, %v4845_v16  ;;  %v5021_v30 = vmul.f32 %v4845_v16, %v4845_v16  ;;  %v4975_v24 = vsel %vm4370_vm1, %v4845_v16, 0.0 }
 0x28d   : > { %v4671_v17 = vpop.f32.mrf.mxu2  ;;  %v4760_v36 = vpop.f32.mrf.mxu3 }
 0x28e   : > { %4920 = vst.msk [vmem:[%s7520_s26 + $0x60] sm:$0xf] %vm215_vm0, %v4888_v3  ;;  %v4582_v1 = vpop.f32.mrf.mxu1  ;;  %v4974_v3 = vadd.f32 %v4973_v27, %v4972_v10  ;;  %v5076_v2 = vsel %vm4370_vm1, %v5021_v30, 0.0 }
 0x28f   : > { %v4583_v28 = vadd.f32 %v4582_v1, %v8047_v37  ;;  %v5075_v37 = vadd.f32 %v5074_v48, %v5073_v57 }
 0x291   : > { %v4846_v21 = vpop.f32.mrf.mxu0  ;;  %v4672_v42 = vadd.f32 %v4671_v17, %v4583_v28  ;;  %v4976_v28 = vadd.f32 %v4975_v24, %v4974_v3 }
 0x292   : > { %v4847_v45 = vadd.f32 %v4846_v21, %v4758_v50 }
 0x293   : > { %v4761_v13 = vadd.f32 %v4760_v36, %v4672_v42 }
 0x294   : > { %v4889_v49 = vpack.c.bf16 %v4847_v45, %v4847_v45  ;;  %v5022_v53 = vmul.f32 %v4847_v45, %v4847_v45  ;;  %v4977_v1 = vsel %vm4370_vm1, %v4847_v45, 0.0 }
 0x295   : > { %v4673_v40 = vpop.f32.mrf.mxu2  ;;  %v4762_v32 = vpop.f32.mrf.mxu3 }
 0x296   : > { %4921 = vst.msk [vmem:[%s7520_s26 + $0x64] sm:$0xf] %vm215_vm0, %v4889_v49  ;;  %v4584_v20 = vpop.f32.mrf.mxu1  ;;  %v5078_v36 = vsel %vm4370_vm1, %v5022_v53, 0.0 }
 0x297   : > { %v4585_v25 = vadd.f32 %v4584_v20, %v8048_v9  ;;  %v4978_v20 = vadd.f32 %v4977_v1, %v4976_v28 }
 0x299   : > { %v4849_v15 = vpop.f32.mrf.mxu0  ;;  %v4674_v34 = vadd.f32 %v4673_v40, %v4585_v25 }
 0x29a   : > { %v4850_v44 = vadd.f32 %v4849_v15, %v4761_v13  ;;  %v5077_v13 = vadd.f32 %v5076_v2, %v5075_v37 }
 0x29b   : > { %v4763_v63 = vadd.f32 %v4762_v32, %v4674_v34 }
 0x29c   : > { %v4890_v52 = vpack.c.bf16 %v4850_v44, %v4850_v44  ;;  %v5023_v14 = vmul.f32 %v4850_v44, %v4850_v44  ;;  %v4979_v16 = vsel %vm4370_vm1, %v4850_v44, 0.0  ;;  %v5079_v15 = vadd.f32 %v5078_v36, %v5077_v13  ;;  %v8052_v44 = vld [vmem:[#allocation10_spill] sm:$0xff] }
 0x29d   : > { %v4676_v41 = vpop.f32.mrf.mxu2  ;;  %v4980_v40 = vadd.f32 %v4979_v16, %v4978_v20 }
 0x29e   : > { %4922 = vst.msk [vmem:[%s7520_s26 + $0x68] sm:$0xf] %vm215_vm0, %v4890_v52  ;;  %v5080_v7 = vsel %vm4370_vm1, %v5023_v14, 0.0 }
 0x2a1   : > { %v4851_v58 = vpop.f32.mrf.mxu0 }
 0x2a2   : > { %v4852_v51 = vadd.f32 %v4851_v58, %v4763_v63 }
 0x2a4   : > { %v4891_v26 = vpack.c.bf16 %v4852_v51, %v4852_v51  ;;  %v4765_v38 = vpop.f32.mrf.mxu3  ;;  %v5024_v21 = vmul.f32 %v4852_v51, %v4852_v51  ;;  %v4981_v9 = vsel %vm4370_vm1, %v4852_v51, 0.0 }
 0x2a5   : > { %v4678_v18 = vpop.f32.mrf.mxu2 }
 0x2a6   : > { %4923 = vst.msk [vmem:[%s7520_s26 + $0x6c] sm:$0xf] %vm215_vm0, %v4891_v26  ;;  %v4587_v62 = vpop.f32.mrf.mxu1  ;;  %v5082_v34 = vsel %vm4370_vm1, %v5024_v21, 0.0 }
 0x2a7   : > { %v4588_v19 = vadd.f32 %v4587_v62, %v8049_v56  ;;  %v4982_v62 = vadd.f32 %v4981_v9, %v4980_v40 }
 0x2a9   : > { %v4677_v33 = vadd.f32 %v4676_v41, %v4588_v19  ;;  %v4854_v59 = vpop.f32.mrf.mxu0  ;;  %v5081_v41 = vadd.f32 %v5080_v7, %v5079_v15 }
 0x2ab   : > { %v4766_v47 = vadd.f32 %v4765_v38, %v4677_v33 }
 0x2ac   : > { %v4767_v61 = vpop.f32.mrf.mxu3 }
 0x2ad   : > { %v4855_v60 = vadd.f32 %v4854_v59, %v4766_v47  ;;  %v5083_v59 = vadd.f32 %v5082_v34, %v5081_v41 }
 0x2ae   : > { %v4589_v39 = vpop.f32.mrf.mxu1 }
 0x2af   : > { %v4892_v6 = vpack.c.bf16 %v4855_v60, %v4855_v60  ;;  %v4590_v31 = vadd.f32 %v4589_v39, %v8050_v29  ;;  %v5025_v25 = vmul.f32 %v4855_v60, %v4855_v60  ;;  %v4983_v32 = vsel %vm4370_vm1, %v4855_v60, 0.0 }
 0x2b0   : > { %v4984_v47 = vadd.f32 %v4983_v32, %v4982_v62 }
 0x2b1   : > { %4924 = vst.msk [vmem:[%s7520_s26 + $0x70] sm:$0xf] %vm215_vm0, %v4892_v6  ;;  %v4679_v46 = vadd.f32 %v4678_v18, %v4590_v31  ;;  %v4856_v8 = vpop.f32.mrf.mxu0  ;;  %v5084_v56 = vsel %vm4370_vm1, %v5025_v25, 0.0 }
 0x2b2   : > { %v5085_v29 = vadd.f32 %v5084_v56, %v5083_v59 }
 0x2b3   : > { %v4768_v23 = vadd.f32 %v4767_v61, %v4679_v46 }
 0x2b4   : > { %v4770_v50 = vpop.f32.mrf.mxu3 }
 0x2b5   : > { %v4857_v22 = vadd.f32 %v4856_v8, %v4768_v23 }
 0x2b6   : > { %v4681_v0 = vpop.f32.mrf.mxu2 }
 0x2b7   : > { %v4893_v54 = vpack.c.bf16 %v4857_v22, %v4857_v22  ;;  %v4592_v5 = vpop.f32.mrf.mxu1  ;;  %v5026_v63 = vmul.f32 %v4857_v22, %v4857_v22  ;;  %v4985_v51 = vsel %vm4370_vm1, %v4857_v22, 0.0 }
 0x2b8   : > { %v4593_v55 = vadd.f32 %v4592_v5, %v8051_v35  ;;  %v4986_v31 = vadd.f32 %v4985_v51, %v4984_v47 }
 0x2b9   : > { %4925 = vst.msk [vmem:[%s7520_s26 + $0x74] sm:$0xf] %vm215_vm0, %v4893_v54  ;;  %v4859_v42 = vpop.f32.mrf.mxu0  ;;  %v5086_v60 = vsel %vm4370_vm1, %v5026_v63, 0.0 }
 0x2ba   : > { %v4682_v17 = vadd.f32 %v4681_v0, %v4593_v55  ;;  %v5087_v8 = vadd.f32 %v5086_v60, %v5085_v29 }
 0x2bc   : > { %v4771_v49 = vadd.f32 %v4770_v50, %v4682_v17  ;;  %v4772_v39 = vpop.f32.mrf.mxu3 }
 0x2be   : > { %v4860_v45 = vadd.f32 %v4859_v42, %v4771_v49  ;;  %v4683_v38 = vpop.f32.mrf.mxu2 }
 0x2bf   : > { %v4594_v52 = vpop.f32.mrf.mxu1 }
 0x2c0   : > { %v4894_v58 = vpack.c.bf16 %v4860_v45, %v4860_v45  ;;  %v4595_v26 = vadd.f32 %v4594_v52, %v8052_v44  ;;  %v5027_v19 = vmul.f32 %v4860_v45, %v4860_v45  ;;  %v4987_v6 = vsel %vm4370_vm1, %v4860_v45, 0.0 }
 0x2c1   : > { %v4861_v61 = vpop.f32.mrf.mxu0  ;;  %v4988_v4 = vadd.f32 %v4987_v6, %v4986_v31 }
 0x2c2   : > { %4926 = vst.msk [vmem:[%s7520_s26 + $0x78] sm:$0xf] %vm215_vm0, %v4894_v58  ;;  %v4684_v33 = vadd.f32 %v4683_v38, %v4595_v26  ;;  %v5088_v46 = vsel %vm4370_vm1, %v5027_v19, 0.0 }
 0x2c3   : > { %v5089_v54 = vadd.f32 %v5088_v46, %v5087_v8 }
 0x2c4   : > { %v4773_v18 = vadd.f32 %v4772_v39, %v4684_v33 }
 0x2c6   : > { %v4862_v23 = vadd.f32 %v4861_v61, %v4773_v18 }
 0x2c8   : > { %v4895_v22 = vpack.c.bf16 %v4862_v23, %v4862_v23  ;;  %v4989_v12 = vsel %vm4370_vm1, %v4862_v23, 0.0  ;;  %v5028_v11 = vmul.f32 %v4862_v23, %v4862_v23 }
 0x2c9   : > { %v4990_v43 = vadd.f32 %v4989_v12, %v4988_v4 }
 0x2ca   : > { %4927 = vst.msk [vmem:[%s7520_s26 + $0x7c] sm:$0xf] %vm215_vm0, %v4895_v22  ;;  %v5090_v27 = vsel %vm4370_vm1, %v5028_v11, 0.0  ;;  %vm5100_vm0 = vcmask 517120  }
 0x2cb   : > { %v4991_v30 = vrot.slane %v4990_v43, 4  ;;  %v5091_v10 = vadd.f32 %v5090_v27, %v5089_v54 }
 0x2cd   : > { %v4992_v0 = vadd.f32 %v4991_v30, %v4990_v43  ;;  %v5092_v5 = vrot.slane %v5091_v10, 4 }
 0x2cf   : > { %v4993_v48 = vrot.slane %v4992_v0, 2  ;;  %v5093_v24 = vadd.f32 %v5092_v5, %v5091_v10 }
 0x2d1   : > { %v4994_v53 = vadd.f32 %v4993_v48, %v4992_v0  ;;  %v5094_v35 = vrot.slane %v5093_v24, 2 }
 0x2d3   : > { %v4995_v55 = vrot.slane %v4994_v53, 1  ;;  %v5095_v57 = vadd.f32 %v5094_v35, %v5093_v24 }
 0x2d5   : > { %v5096_v3 = vrot.slane %v5095_v57, 1  ;;  %v4996_v50 = vadd.f32 %v4995_v55, %v4994_v53 }
 0x2d7   : > { %v5097_v2 = vadd.f32 %v5096_v3, %v5095_v57 }
 0x2d9   : > { %v5099_v1 = vsel %vm5098_vm2, %v4996_v50, %v5097_v2 }
 0x2da   : > { %5101 = vst.msk [vmem:[%s181_s28] sm:$0x3] %vm5100_vm0, %v5099_v1 }
 0x2db PF: > { %s14_s12 = sadd.s32 1, %s5886_s12  }
 0x2dc   : > { %p11_p4 = scmp.ge.s32.totalorder %s14_s12, 4  }
 0x2de   :  { %13 = sbr.rel (!%p11_p4) target bundleno = 1 (0x1), region = 73 }

// kernel: baseblock_forward.4
= control target key start
LH: loop header
LB: loop body
LE: loop exit
PB: predicated region body
PF: predicated region fallthrough
CT: control target
= control target key end

     0   :  { %s6227_s18 = smov 0   ;;  %s8368_s0 = inlined_call_operand.vmem [shape: bf16[2,16,16,64], index: 0, kind: input, shape index: {}]   ;;  %s8369_s1 = inlined_call_operand.vmem [shape: bf16[576,64], index: 1, kind: input, shape index: {}]   ;;  %s8370_s2 = inlined_call_operand.vmem [shape: f32[1,64], index: 2, kind: input, shape index: {}]   ;;  %s8371_s3 = inlined_call_operand.vmem [shape: f32[1,64], index: 3, kind: input, shape index: {}]   ;;  %s8372_s4 = inlined_call_operand.vmem [shape: bf16[2,256,64], index: 4, kind: output, shape index: {0}]   ;;  %s8373_s5 = inlined_call_operand.vmem [shape: f32[2,2,64], index: 5, kind: output, shape index: {1}]  }
   0x1 LB: > { %s5410_s19 = sadd.s32 4294967295, %s6193_s18   ;;  %p5414_p0 = scmp.ge.s32.totalorder %s6193_s18, 1  ;;  %s6193_s18 = sphi %s6227_s18, %s16_s18  }
   0x2   : > { %p190_p1 = scmp.lt.s32.totalorder %s6193_s18, 3 }
   0x4   : > { %p191_p2 = pnand %p5414_p0, %p190_p1 }
   0x6   : > { %194 = sbr.rel (%p191_p2) target bundleno = 751 (0x2ef), region = 36 }
   0xb   : > { %vm437_vm0 = vcmask 519168   ;;  %vm440_vm1 = vcmask 516096   ;;  %vm448_vm2 = vsmask.f32 256  ;;  %v6195_v0 = vmov 0   ;;  %p222_p3 = scmp.lt.s32.totalorder %s5410_s19, 1 }
   0xc   : > { %439 = vst.msk [vmem:[#allocation2 + $0x4] sm:$0xf] %vm437_vm0, %v6195_v0  ;;  %vm6239_vm3 = vmand %vm440_vm1, %vm448_vm2  ;;  %vm1096_vm4 = vsmask.f32 3328  ;;  %vm1097_vm5 = vsmask.f32 7440 }
   0xd   : > { %441 = vst.msk [vmem:[#allocation2 + $0x8] sm:$0x1] %vm440_vm1, %v6195_v0  ;;  %s8404_s19 = smov (!%p222_p3, %s5410_s19), 1  ;;  %v483_v2 = vld [vmem:[#allocation2 + $0x90] sm:$0x1]  ;;  %vm6282_vm8 = vmor %vm1096_vm4, %vm1097_vm5  ;;  %s6196_s28 = smov 64  }
   0xe   : > { %438 = vst.msk [vmem:[#allocation2] sm:$0xf] %vm437_vm0, %v6195_v0  ;;  %s5950_s20 = sshll.u32 %s8404_s19, 7  ;;  %v6253_v3 = vld [vmem:[%s8370_s2] ss:$0 sm:$0xff]  ;;  %v484_v4 = vsel %vm6239_vm3, 0, %v483_v2 }
   0xf   : > { %443 = vst.msk [vmem:[#allocation2 + $0xcc] sm:$0xf] %vm437_vm0, %v6195_v0  ;;  %vm498_vm6 = vsmask.f32 7938  ;;  %s6262_s25 = scalar_lea.vmem %s8368_s0, %s5950_s20  ;;  %v471_v5 = vld [vmem:[#allocation2 + $0x60] sm:$0x1]  ;;  %s7902_s30 = scalar_lea.vmem %s8372_s4, %s5950_s20 }
  0x10   : > { %444 = vst.msk [vmem:[#allocation2 + $0xd0] sm:$0xf] %vm437_vm0, %v6195_v0  ;;  %v459_v6 = vld [vmem:[#allocation2 + $0x30] sm:$0x1]  ;;  %v6142_v8 = vld [vmem:[%s6262_s25 + $0x58] sm:$0xff]   ;;  %v472_v11 = vsel %vm6239_vm3, 0, %v471_v5  ;;  %vm6292_vm9 = vmand %vm440_vm1, %vm498_vm6 }
  0x11   : > { %445 = vst.msk [vmem:[#allocation2 + $0xd4] sm:$0x1] %vm440_vm1, %v6195_v0  ;;  %v6268_v9 = vld [vmem:[%s8371_s3] ss:$0 sm:$0xff]  ;;  %v6138_v10 = vld [vmem:[%s6262_s25 + $0x38] sm:$0xff]   ;;  %v460_v12 = vsel %vm6239_vm3, 0, %v459_v6  ;;  %v6114_v16 = vunpack.c.l.bf16 %v6142_v8  ;;  %v6115_v17 = vunpack.c.h.bf16 %v6142_v8  ;;  %vm6310_vm10 = vmand %vm437_vm0, %vm498_vm6 }
  0x12   : > { %485 = vst [vmem:[#allocation2 + $0x90] sm:$0x1] %v484_v4  ;;  %v6098_v20 = vunpack.c.l.bf16 %v6138_v10  ;;  %v6099_v21 = vunpack.c.h.bf16 %v6138_v10  ;;  %v6134_v26 = vld [vmem:[%s6262_s25 + $0x18] sm:$0xff]   ;;  %vm548_vm7 = vsmask.f32 4368  ;;  %vm1579_vm12 = vcmask 1043968  }
  0x13   : > { %v1049_v7 = vld [vmem:[#allocation2 + $0x4] sm:$0xf]  ;;  %473 = vst [vmem:[#allocation2 + $0x60] sm:$0x1] %v472_v11  ;;  %v328_v28 = vmul.f32 %v6253_v3, %v6114_v16  ;;  %v329_v29 = vmul.f32 %v6253_v3, %v6115_v17  ;;  %v6082_v39 = vunpack.c.l.bf16 %v6134_v26  ;;  %v6083_v43 = vunpack.c.h.bf16 %v6134_v26  ;;  %v533_v49 = vld [vmem:[#allocation2 + $0x98] sm:$0x1]  ;;  %vm6316_vm11 = vmor %vm448_vm2, %vm548_vm7 }
  0x14   : > { %v1050_v13 = vld [vmem:[#allocation2 + $0x8] sm:$0x1]  ;;  %v1109_v14 = vshll.u32 %v1049_v7, 16  ;;  %v1113_v15 = vshrl.u32 %v1049_v7, 16  ;;  %461 = vst [vmem:[#allocation2 + $0x30] sm:$0x1] %v460_v12  ;;  %v320_v30 = vmul.f32 %v6253_v3, %v6098_v20  ;;  %v321_v34 = vmul.f32 %v6253_v3, %v6099_v21 }
  0x15   : > { %v1119_v18 = vshll.u32 %v1050_v13, 16  ;;  %v1048_v19 = vld [vmem:[#allocation2] sm:$0xf]  ;;  %v363_v36 = vadd.f32 %v6268_v9, %v328_v28  ;;  %v364_v37 = vadd.f32 %v6268_v9, %v329_v29  ;;  %v312_v48 = vmul.f32 %v6253_v3, %v6082_v39  ;;  %v521_v62 = vld [vmem:[#allocation2 + $0x68] sm:$0x1]  ;;  %s5419_s20 = sshll.u32 %s8404_s19, 1 }
  0x16   : > { %v1111_v22 = vrot.slane %v1109_v14, 5  ;;  %v1115_v23 = vrot.slane %v1113_v15, 4  ;;  %v1100_v24 = vshrl.u32 %v1048_v19, 16  ;;  %v1103_v25 = vshll.u32 %v1048_v19, 16  ;;  %v509_v63 = vld [vmem:[#allocation2 + $0x38] sm:$0x1]  ;;  %s235_s7 = scalar_lea.vmem %s8373_s5, %s5419_s20 }
  0x17   : > { %v1121_v27 = vrot.slane %v1119_v18, 5  ;;  %v355_v38 = vadd.f32 %v6268_v9, %v320_v30  ;;  %v356_v42 = vadd.f32 %v6268_v9, %v321_v34  ;;  %v395_v45 = vmax.f32 %v363_v36, 0.0 }
  0x18   : > { %v1116_v31 = vor.u32 %v1115_v23, %v1111_v22  ;;  %v1102_v32 = vrot.slane %v1100_v24, 4  ;;  %v1105_v33 = vrot.slane %v1103_v25, 5  ;;  %v396_v46 = vmax.f32 %v364_v37, 0.0  ;;  %v486_v37 = vld [vmem:[#allocation2 + $0x9c] sm:$0x1] }
  0x19   : > { %v387_v47 = vmax.f32 %v355_v38, 0.0  ;;  %v388_v52 = vmax.f32 %v356_v42, 0.0  ;;  %v313_v53 = vmul.f32 %v6253_v3, %v6083_v43  ;;  %v427_v54 = vpack.c.bf16 %v395_v45, %v395_v45  ;;  %v949_v17 = vld [vmem:[#allocation2 + $0x90] sm:$0xf]  ;;  %v6139_v38 = vld [vmem:[%s6262_s25 + $0x40] sm:$0xff]  }
  0x1a   : > { %v1117_v40 = vrot.slane %v1116_v31, 4  ;;  %v1106_v41 = vor.u32 %v1105_v33, %v1102_v32  ;;  %v428_v55 = vpack.c.bf16 %v396_v46, %v396_v46  ;;  %v347_v57 = vadd.f32 %v6268_v9, %v312_v48  ;;  %v921_v25 = vld [vmem:[#allocation2 + $0x60] sm:$0xf] }
  0x1b   : > { %v419_v56 = vpack.c.bf16 %v387_v47, %v387_v47  ;;  %v420_v59 = vpack.c.bf16 %v388_v52, %v388_v52  ;;  %v348_v60 = vadd.f32 %v6268_v9, %v313_v53  ;;  %v534_v61 = vsel %vm6292_vm9, 0, %v533_v49  ;;  %v6143_v31 = vld [vmem:[%s6262_s25 + $0x60] sm:$0xff]  }
  0x1c   : > { %v1122_v50 = vsel %vm6282_vm8, %v1117_v40, %v1121_v27  ;;  %v1107_v51 = vrot.slane %v1106_v41, 4  ;;  %v738_v0 = vshrl.u32 %v427_v54, 16  ;;  %v741_v2 = vshll.u32 %v427_v54, 16  ;;  %535 = vst [vmem:[#allocation2 + $0x98] sm:$0x1] %v534_v61 }
  0x1d   : > { %1485 = vrot.lane.b32.xlu1 %v1122_v50, %s6196_s28  ;;  %v746_v4 = vshrl.u32 %v428_v55, 16  ;;  %v749_v5 = vshll.u32 %v428_v55, 16  ;;  %v670_v6 = vshrl.u32 %v419_v56, 16  ;;  %v673_v7 = vshll.u32 %v419_v56, 16  ;;  %v893_v50 = vld [vmem:[#allocation2 + $0x30] sm:$0xf] }
  0x1e   : > { %v1112_v58 = vsel %vm6282_vm8, %v1107_v51, %v1111_v22  ;;  %v678_v8 = vshrl.u32 %v420_v59, 16  ;;  %v681_v10 = vshll.u32 %v420_v59, 16  ;;  %v740_v12 = vrot.slane %v738_v0, 7  ;;  %v6345_v0 = vld [vmem:[%s6262_s25 + $0x20] sm:$0xff]  }
  0x1f   : > { %1483 = vrot.lane.b32.xlu0 %v1112_v58, %s6196_s28  ;;  %v748_v13 = vrot.slane %v746_v4, 7  ;;  %v379_v14 = vmax.f32 %v347_v57, 0.0  ;;  %v380_v15 = vmax.f32 %v348_v60, 0.0  ;;  %v672_v18 = vrot.slane %v670_v6, 7  ;;  %v6341_v58 = vld [vmem:[#allocation2 + $0x74] sm:$0x1] }
  0x20   : > { %v680_v19 = vrot.slane %v678_v8, 7  ;;  %v522_v20 = vsel %vm6292_vm9, 0, %v521_v62  ;;  %v510_v21 = vsel %vm6292_vm9, 0, %v509_v63  ;;  %v743_v22 = vor.u32 %v741_v2, %v740_v12 }
  0x21   : > { %v744_v23 = vrot.slane %v740_v12, 4  ;;  %v751_v24 = vor.u32 %v749_v5, %v748_v13  ;;  %v411_v26 = vpack.c.bf16 %v379_v14, %v379_v14  ;;  %523 = vst [vmem:[#allocation2 + $0x68] sm:$0x1] %v522_v20  ;;  %v675_v27 = vor.u32 %v673_v7, %v672_v18 }
  0x22   : > { %v676_v28 = vrot.slane %v672_v18, 4  ;;  %v683_v29 = vor.u32 %v681_v10, %v680_v19  ;;  %v412_v30 = vpack.c.bf16 %v380_v15, %v380_v15  ;;  %511 = vst [vmem:[#allocation2 + $0x38] sm:$0x1] %v510_v21  ;;  %v950_v33 = vsel %vm6310_vm10, %v743_v22, %v949_v17 }
  0x23   : > { %v752_v32 = vsel %vm6316_vm11, %v744_v23, %v751_v24  ;;  %v602_v34 = vshrl.u32 %v411_v26, 16  ;;  %v605_v36 = vshll.u32 %v411_v26, 16  ;;  %951 = vst [vmem:[#allocation2 + $0x90] sm:$0xf] %v950_v33  ;;  %v922_v40 = vsel %vm6310_vm10, %v675_v27, %v921_v25  ;;  %v953_v43 = vld [vmem:[#allocation2 + $0x98] sm:$0x1] }
  0x24   : > { %v684_v39 = vsel %vm6316_vm11, %v676_v28, %v683_v29  ;;  %v610_v41 = vshrl.u32 %v412_v30, 16  ;;  %v613_v42 = vshll.u32 %v412_v30, 16  ;;  %952 = vst.msk [vmem:[#allocation2 + $0x94] sm:$0xf] %vm437_vm0, %v752_v32  ;;  %v753_v46 = vrot.slane %v748_v13, 4 }
  0x25   : > { %v604_v45 = vrot.slane %v602_v34, 7  ;;  %v685_v47 = vrot.slane %v680_v19, 4  ;;  %v6118_v48 = vunpack.c.l.bf16 %v6143_v31  ;;  %923 = vst [vmem:[#allocation2 + $0x60] sm:$0xf] %v922_v40  ;;  %v6119_v51 = vunpack.c.h.bf16 %v6143_v31 }
  0x26   : > { %v612_v49 = vrot.slane %v610_v41, 7  ;;  %v487_v52 = vsel %vm6239_vm3, 0, %v486_v37  ;;  %v6102_v53 = vunpack.c.l.bf16 %v6139_v38  ;;  %924 = vst.msk [vmem:[#allocation2 + $0x64] sm:$0xf] %vm437_vm0, %v684_v39  ;;  %v954_v56 = vsel %vm6239_vm3, %v753_v46, %v953_v43 }
  0x27   : > { %v607_v54 = vor.u32 %v605_v36, %v604_v45  ;;  %v608_v55 = vrot.slane %v604_v45, 4  ;;  %v330_v57 = vmul.f32 %v6253_v3, %v6118_v48  ;;  %955 = vst [vmem:[#allocation2 + $0x98] sm:$0x1] %v954_v56  ;;  %v331_v62 = vmul.f32 %v6253_v3, %v6119_v51 }
  0x28   : > { %v615_v59 = vor.u32 %v613_v42, %v612_v49  ;;  %v925_v60 = vld [vmem:[#allocation2 + $0x68] sm:$0x1]  ;;  %v617_v61 = vrot.slane %v612_v49, 4  ;;  %v6103_v63 = vunpack.c.h.bf16 %v6139_v38  ;;  %488 = vst [vmem:[#allocation2 + $0x9c] sm:$0x1] %v487_v52  ;;  %v322_v7 = vmul.f32 %v6253_v3, %v6102_v53 }
  0x29   : > { %v894_v2 = vsel %vm6310_vm10, %v607_v54, %v893_v50  ;;  %v926_v4 = vsel %vm6239_vm3, %v685_v47, %v925_v60  ;;  %v897_v5 = vld [vmem:[#allocation2 + $0x38] sm:$0x1]  ;;  %v365_v6 = vadd.f32 %v6268_v9, %v330_v57  ;;  %v6358_v12 = vadd.f32 %v6268_v9, %v331_v62 }
  0x2a   : > { %v616_v8 = vsel %vm6316_vm11, %v608_v55, %v615_v59  ;;  %895 = vst [vmem:[#allocation2 + $0x30] sm:$0xf] %v894_v2  ;;  %v898_v10 = vsel %vm6239_vm3, %v617_v61, %v897_v5  ;;  %v323_v13 = vmul.f32 %v6253_v3, %v6103_v63  ;;  %v1084_v14 = vld [vmem:[#allocation2 + $0x90] sm:$0xf]  ;;  %v6363_v17 = vadd.f32 %v6268_v9, %v322_v7 }
  0x2b   : > { %896 = vst.msk [vmem:[#allocation2 + $0x34] sm:$0xf] %vm437_vm0, %v616_v8  ;;  %v397_v15 = vmax.f32 %v365_v6, 0.0  ;;  %v525_v18 = vsel %vm6292_vm9, 0, %v6341_v58  ;;  %v6086_v19 = vunpack.c.l.bf16 %v6345_v0  ;;  %v1085_v20 = vld [vmem:[#allocation2 + $0x94] sm:$0xf]  ;;  %v6087_v24 = vunpack.c.h.bf16 %v6345_v0 }
  0x2c   : > { %v1388_v21 = vshrl.u32 %v1084_v14, 16  ;;  %v1391_v22 = vshll.u32 %v1084_v14, 16  ;;  %927 = vst [vmem:[#allocation2 + $0x68] sm:$0x1] %v926_v4  ;;  %v6370_v23 = vadd.f32 %v6268_v9, %v323_v13  ;;  %v1397_v25 = vshll.u32 %v1085_v20, 16 }
  0x2d   : > { %v1401_v26 = vshrl.u32 %v1085_v20, 16  ;;  %v1072_v27 = vld [vmem:[#allocation2 + $0x60] sm:$0xf]  ;;  %899 = vst [vmem:[#allocation2 + $0x38] sm:$0x1] %v898_v10  ;;  %v6373_v28 = vpack.c.bf16 %v397_v15, %v397_v15  ;;  %v6376_v29 = vmul.f32 %v6253_v3, %v6086_v19  ;;  %v398_v50 = vmax.f32 %v6358_v12, 0.0 }
  0x2e   : > { %v1390_v30 = vrot.slane %v1388_v21, 4  ;;  %v1393_v31 = vrot.slane %v1391_v22, 5  ;;  %v1073_v32 = vld [vmem:[#allocation2 + $0x64] sm:$0xf]  ;;  %v1292_v33 = vshrl.u32 %v1072_v27, 16  ;;  %v1295_v34 = vshll.u32 %v1072_v27, 16 }
  0x2f   : > { %v1399_v36 = vrot.slane %v1397_v25, 5  ;;  %v1301_v37 = vshll.u32 %v1073_v32, 16  ;;  %v1305_v38 = vshrl.u32 %v1073_v32, 16  ;;  %v1086_v39 = vld [vmem:[#allocation2 + $0x98] sm:$0x1]  ;;  %v1403_v40 = vrot.slane %v1401_v26, 4 }
  0x30   : > { %v1394_v41 = vor.u32 %v1393_v31, %v1390_v30  ;;  %v1294_v42 = vrot.slane %v1292_v33, 4  ;;  %v1297_v43 = vrot.slane %v1295_v34, 5  ;;  %v1407_v45 = vshll.u32 %v1086_v39, 16  ;;  %526 = vst [vmem:[#allocation2 + $0x74] sm:$0x1] %v525_v18 }
  0x31   : > { %v1303_v46 = vrot.slane %v1301_v37, 5  ;;  %v1060_v47 = vld [vmem:[#allocation2 + $0x30] sm:$0xf]  ;;  %v1404_v48 = vor.u32 %v1403_v40, %v1399_v36  ;;  %v1307_v49 = vrot.slane %v1305_v38, 4  ;;  %v430_v20 = vpack.c.bf16 %v398_v50, %v398_v50  ;;  %v462_v33 = vld [vmem:[#allocation2 + $0x3c] sm:$0x1] }
  0x32   : > { %v1395_v51 = vrot.slane %v1394_v41, 4  ;;  %v1298_v52 = vor.u32 %v1297_v43, %v1294_v42  ;;  %v1061_v53 = vld [vmem:[#allocation2 + $0x34] sm:$0xf]  ;;  %v1196_v54 = vshrl.u32 %v1060_v47, 16  ;;  %v1199_v55 = vshll.u32 %v1060_v47, 16 }
  0x33   : > { %v1205_v56 = vshll.u32 %v1061_v53, 16  ;;  %v1209_v57 = vshrl.u32 %v1061_v53, 16  ;;  %v1405_v58 = vrot.slane %v1404_v48, 4  ;;  %v1409_v59 = vrot.slane %v1407_v45, 5  ;;  %v1074_v60 = vld [vmem:[#allocation2 + $0x68] sm:$0x1] }
  0x34   : > { %v1400_v61 = vsel %vm6282_vm8, %v1395_v51, %v1399_v36  ;;  %v1299_v62 = vrot.slane %v1298_v52, 4  ;;  %v1198_v63 = vrot.slane %v1196_v54, 4  ;;  %v1201_v2 = vrot.slane %v1199_v55, 5  ;;  %v1062_v4 = vld [vmem:[#allocation2 + $0x38] sm:$0x1] }
  0x35   : > { %1531 = vrot.lane.b32.xlu1 %v1400_v61, %s6196_s28  ;;  %v1207_v5 = vrot.slane %v1205_v56, 5  ;;  %v1211_v6 = vrot.slane %v1209_v57, 4  ;;  %v1410_v7 = vsel %vm6282_vm8, %v1405_v58, %v1409_v59  ;;  %v1308_v8 = vor.u32 %v1307_v49, %v1303_v46  ;;  %v956_v37 = vld [vmem:[#allocation2 + $0x9c] sm:$0xf]  ;;  %v512_v40 = vld [vmem:[#allocation2 + $0x44] sm:$0x1] }
  0x36   : > { %v1304_v10 = vsel %vm6282_vm8, %v1299_v62, %v1303_v46  ;;  %v1202_v12 = vor.u32 %v1201_v2, %v1198_v63  ;;  %v1311_v13 = vshll.u32 %v1074_v60, 16  ;;  %v1215_v14 = vshll.u32 %v1062_v4, 16  ;;  %v477_v0 = vld [vmem:[#allocation2 + $0x78] sm:$0x1]  ;;  %v474_v52 = vld [vmem:[#allocation2 + $0x6c] sm:$0x1] }
  0x37   : > { %1515 = vrot.lane.b32.xlu0 %v1304_v10, %s6196_s28  ;;  %v1309_v15 = vrot.slane %v1308_v8, 4  ;;  %v1212_v19 = vor.u32 %v1211_v6, %v1207_v5  ;;  %v755_v21 = vshrl.u32 %v6373_v28, 16  ;;  %v758_v27 = vshll.u32 %v6373_v28, 16  ;;  %v932_v63 = vld [vmem:[#allocation2 + $0x74] sm:$0x1] }
  0x38   : > { %v1203_v22 = vrot.slane %v1202_v12, 4  ;;  %v1313_v25 = vrot.slane %v1311_v13, 5  ;;  %v1217_v26 = vrot.slane %v1215_v14, 5  ;;  %v763_v31 = vshrl.u32 %v430_v20, 16  ;;  %v6069_v13 = vld [vmem:[%s6262_s25] sm:$0xff]  }
  0x39   : > { %v1213_v30 = vrot.slane %v1212_v19, 4  ;;  %v757_v18 = vrot.slane %v755_v21, 7  ;;  %v766_v32 = vshll.u32 %v430_v20, 16  ;;  %v389_v38 = vmax.f32 %v6363_v17, 0.0 }
  0x3a   : > { %v1208_v34 = vsel %vm6282_vm8, %v1203_v22, %v1207_v5  ;;  %v1314_v36 = vsel %vm6282_vm8, %v1309_v15, %v1313_v25  ;;  %v390_v39 = vmax.f32 %v6370_v23, 0.0  ;;  %v6398_v43 = vrot.slane %v763_v31, 7  ;;  %v6140_v23 = vld [vmem:[%s6262_s25 + $0x48] sm:$0xff]  }
  0x3b   : > { %1499 = vrot.lane.b32.xlu2 %v1208_v34, %s6196_s28  ;;  %v1218_v28 = vsel %vm6282_vm8, %v1213_v30, %v1217_v26  ;;  %v760_v41 = vor.u32 %v758_v27, %v757_v18  ;;  %v761_v42 = vrot.slane %v757_v18, 4  ;;  %v6400_v45 = vpack.c.bf16 %v389_v38, %v389_v38 }
  0x3c   : > { %v422_v46 = vpack.c.bf16 %v390_v39, %v390_v39  ;;  %v315_v47 = vmul.f32 %v6253_v3, %v6087_v24  ;;  %v349_v17 = vadd.f32 %v6268_v9, %v6376_v29  ;;  %v768_v48 = vor.u32 %v766_v32, %v6398_v43 }
  0x3d   : > { %1533 = vrot.lane.b32.xlu1 %v1410_v7, %s6196_s28  ;;  %v957_v49 = vsel %vm6310_vm10, %v760_v41, %v956_v37  ;;  %v513_v50 = vsel %vm6292_vm9, 0, %v512_v40  ;;  %v463_v51 = vsel %vm6239_vm3, 0, %v462_v33  ;;  %v687_v24 = vshrl.u32 %v6400_v45, 16 }
  0x3e   : > { %958 = vst [vmem:[#allocation2 + $0x9c] sm:$0xf] %v957_v49  ;;  %v695_v29 = vshrl.u32 %v422_v46, 16  ;;  %v698_v53 = vshll.u32 %v422_v46, 16  ;;  %v350_v54 = vadd.f32 %v6268_v9, %v315_v47  ;;  %v769_v55 = vsel %vm6316_vm11, %v761_v42, %v768_v48 }
  0x3f   : > { %1517 = vrot.lane.b32.xlu0 %v1314_v36, %s6196_s28  ;;  %v381_v56 = vmax.f32 %v349_v17, 0.0  ;;  %514 = vst [vmem:[#allocation2 + $0x44] sm:$0x1] %v513_v50  ;;  %v6106_v57 = vunpack.c.l.bf16 %v6140_v23  ;;  %v6107_v58 = vunpack.c.h.bf16 %v6140_v23  ;;  %v6422_v59 = vrot.slane %v687_v24, 7 }
  0x40   : > { %959 = vst.msk [vmem:[#allocation2 + $0xa0] sm:$0xf] %vm437_vm0, %v769_v55  ;;  %v697_v60 = vrot.slane %v695_v29, 7  ;;  %v382_v61 = vmax.f32 %v350_v54, 0.0  ;;  %v478_v62 = vsel %vm6239_vm3, 0, %v477_v0  ;;  %v475_v6 = vsel %vm6239_vm3, 0, %v474_v52 }
  0x41   : > { %v413_v2 = vpack.c.bf16 %v381_v56, %v381_v56  ;;  %464 = vst [vmem:[#allocation2 + $0x3c] sm:$0x1] %v463_v51  ;;  %v324_v4 = vmul.f32 %v6253_v3, %v6106_v57  ;;  %v325_v5 = vmul.f32 %v6253_v3, %v6107_v58  ;;  %v693_v7 = vrot.slane %v6422_v59, 4 }
  0x42   : > { %v700_v8 = vor.u32 %v698_v53, %v697_v60  ;;  %v702_v10 = vrot.slane %v697_v60, 4  ;;  %v414_v12 = vpack.c.bf16 %v382_v61, %v382_v61  ;;  %479 = vst [vmem:[#allocation2 + $0x78] sm:$0x1] %v478_v62  ;;  %v6070_v31 = vunpack.c.l.bf16 %v6069_v13 }
  0x43   : > { %1501 = vrot.lane.b32.xlu2 %v1218_v28, %s6196_s28  ;;  %v619_v14 = vshrl.u32 %v413_v2, 16  ;;  %v622_v15 = vshll.u32 %v413_v2, 16  ;;  %v359_v19 = vadd.f32 %v6268_v9, %v324_v4  ;;  %v360_v20 = vadd.f32 %v6268_v9, %v325_v5  ;;  %476 = vst [vmem:[#allocation2 + $0x6c] sm:$0x1] %v475_v6 }
  0x44   : > { %v701_v21 = vsel %vm6316_vm11, %v693_v7, %v700_v8  ;;  %v933_v22 = vsel %vm6239_vm3, %v702_v10, %v932_v63  ;;  %v627_v25 = vshrl.u32 %v414_v12, 16  ;;  %v630_v26 = vshll.u32 %v414_v12, 16 }
  0x45   : > { %v1087_v27 = vld [vmem:[#allocation2 + $0x9c] sm:$0xf]  ;;  %931 = vst.msk [vmem:[#allocation2 + $0x70] sm:$0xf] %vm437_vm0, %v701_v21  ;;  %v621_v30 = vrot.slane %v619_v14, 7  ;;  %v391_v18 = vmax.f32 %v359_v19, 0.0  ;;  %v6071_v32 = vunpack.c.h.bf16 %v6069_v13  ;;  %v306_v4 = vmul.f32 %v6253_v3, %v6070_v31 }
  0x46   : > { %v1412_v33 = vshrl.u32 %v1087_v27, 16  ;;  %v1415_v34 = vshll.u32 %v1087_v27, 16  ;;  %934 = vst [vmem:[#allocation2 + $0x74] sm:$0x1] %v933_v22  ;;  %v629_v36 = vrot.slane %v627_v25, 7  ;;  %v392_v37 = vmax.f32 %v360_v20, 0.0 }
  0x47   : > { %v6440_v38 = vld [vmem:[#allocation2 + $0xa0] sm:$0xf]  ;;  %v625_v39 = vrot.slane %v621_v30, 4  ;;  %v904_v40 = vld [vmem:[#allocation2 + $0x44] sm:$0x1]  ;;  %v624_v28 = vor.u32 %v622_v15, %v621_v30  ;;  %v423_v41 = vpack.c.bf16 %v391_v18, %v391_v18  ;;  %v690_v42 = vshll.u32 %v6400_v45, 16 }
  0x48   : > { %v1414_v46 = vrot.slane %v1412_v33, 4  ;;  %v1417_v47 = vrot.slane %v1415_v34, 5  ;;  %v1421_v17 = vshll.u32 %v6440_v38, 16  ;;  %v1425_v23 = vshrl.u32 %v6440_v38, 16  ;;  %v900_v48 = vld [vmem:[#allocation2 + $0x3c] sm:$0xf] }
  0x49   : > { %v632_v49 = vor.u32 %v630_v26, %v629_v36  ;;  %v634_v50 = vrot.slane %v629_v36, 4  ;;  %v901_v51 = vsel %vm6310_vm10, %v624_v28, %v900_v48  ;;  %v424_v0 = vpack.c.bf16 %v392_v37, %v392_v37  ;;  %v6144_v45 = vld [vmem:[%s6262_s25 + $0x68] sm:$0xff]   ;;  %v935_v58 = vld [vmem:[#allocation2 + $0x78] sm:$0xf]  ;;  %v500_v19 = vld [vmem:[#allocation2 + $0x14] sm:$0x1] }
  0x4a   : > { %v1418_v52 = vor.u32 %v1417_v47, %v1414_v46  ;;  %v6447_v24 = vrot.slane %v1421_v17, 5  ;;  %902 = vst [vmem:[#allocation2 + $0x3c] sm:$0xf] %v901_v51  ;;  %v704_v29 = vshrl.u32 %v423_v41, 16  ;;  %v707_v53 = vshll.u32 %v423_v41, 16 }
  0x4b   : > { %v633_v54 = vsel %vm6316_vm11, %v625_v39, %v632_v49  ;;  %v905_v55 = vsel %vm6239_vm3, %v634_v50, %v904_v40  ;;  %v712_v56 = vshrl.u32 %v424_v0, 16  ;;  %v715_v57 = vshll.u32 %v424_v0, 16  ;;  %v928_v60 = vld [vmem:[#allocation2 + $0x6c] sm:$0xf] }
  0x4c   : > { %v1419_v61 = vrot.slane %v1418_v52, 4  ;;  %v1076_v62 = vld [vmem:[#allocation2 + $0x70] sm:$0xf]  ;;  %903 = vst.msk [vmem:[#allocation2 + $0x40] sm:$0xf] %vm437_vm0, %v633_v54  ;;  %v706_v63 = vrot.slane %v704_v29, 7  ;;  %v692_v2 = vor.u32 %v690_v42, %v6422_v59  ;;  %v307_v8 = vmul.f32 %v6253_v3, %v6071_v32 }
  0x4d   : > { %v1077_v5 = vld [vmem:[#allocation2 + $0x74] sm:$0x1]  ;;  %v1325_v6 = vshll.u32 %v1076_v62, 16  ;;  %v1329_v7 = vshrl.u32 %v1076_v62, 16  ;;  %906 = vst [vmem:[#allocation2 + $0x44] sm:$0x1] %v905_v55  ;;  %v6122_v10 = vunpack.c.l.bf16 %v6144_v45  ;;  %v341_v27 = vadd.f32 %v6268_v9, %v306_v4 }
  0x4e   : > { %v1424_v12 = vsel %vm6282_vm8, %v1419_v61, %v6447_v24  ;;  %v1335_v13 = vshll.u32 %v1077_v5, 16  ;;  %v709_v14 = vor.u32 %v707_v53, %v706_v63  ;;  %v710_v15 = vrot.slane %v706_v63, 4 }
  0x4f   : > { %1535 = vrot.lane.b32.xlu1 %v1424_v12, %s6196_s28  ;;  %v6462_v59 = vrot.slane %v1325_v6, 5  ;;  %v1331_v20 = vrot.slane %v1329_v7, 4  ;;  %v6464_v21 = vrot.slane %v712_v56, 7  ;;  %v929_v22 = vsel %vm6310_vm10, %v692_v2, %v928_v60 }
  0x50   : > { %v1337_v25 = vrot.slane %v1335_v13, 5  ;;  %v936_v26 = vsel %vm6310_vm10, %v709_v14, %v935_v58  ;;  %930 = vst [vmem:[#allocation2 + $0x6c] sm:$0xf] %v929_v22  ;;  %v342_v30 = vadd.f32 %v6268_v9, %v307_v8  ;;  %v501_v33 = vsel %vm6292_vm9, 0, %v500_v19 }
  0x51   : > { %v1332_v18 = vor.u32 %v1331_v20, %v6462_v59  ;;  %v1063_v31 = vld [vmem:[#allocation2 + $0x3c] sm:$0xf]  ;;  %v717_v32 = vor.u32 %v715_v57, %v6464_v21  ;;  %937 = vst [vmem:[#allocation2 + $0x78] sm:$0xf] %v936_v26  ;;  %v6123_v34 = vunpack.c.h.bf16 %v6144_v45  ;;  %v373_v39 = vmax.f32 %v341_v27, 0.0 }
  0x52   : > { %v1220_v36 = vshrl.u32 %v1063_v31, 16  ;;  %v1223_v37 = vshll.u32 %v1063_v31, 16  ;;  %v374_v40 = vmax.f32 %v342_v30, 0.0  ;;  %502 = vst [vmem:[#allocation2 + $0x14] sm:$0x1] %v501_v33  ;;  %v332_v46 = vmul.f32 %v6253_v3, %v6122_v10 }
  0x53   : > { %v1333_v28 = vrot.slane %v1332_v18, 4  ;;  %v1064_v41 = vld [vmem:[#allocation2 + $0x40] sm:$0xf]  ;;  %v718_v42 = vsel %vm6316_vm11, %v710_v15, %v717_v32  ;;  %v333_v47 = vmul.f32 %v6253_v3, %v6123_v34  ;;  %v6483_v29 = vpack.c.bf16 %v373_v39, %v373_v39  ;;  %v539_v20 = vld [vmem:[#allocation2 + $0xb0] sm:$0x1] }
  0x54   : > { %v1065_v17 = vld [vmem:[#allocation2 + $0x44] sm:$0x1]  ;;  %v1229_v48 = vshll.u32 %v1064_v41, 16  ;;  %v1233_v49 = vshrl.u32 %v1064_v41, 16  ;;  %v1222_v50 = vrot.slane %v1220_v36, 4  ;;  %v1225_v51 = vrot.slane %v1223_v37, 5 }
  0x55   : > { %v1338_v0 = vsel %vm6282_vm8, %v1333_v28, %v1337_v25  ;;  %v1239_v52 = vshll.u32 %v1065_v17, 16  ;;  %938 = vst.msk [vmem:[#allocation2 + $0x7c] sm:$0xf] %vm437_vm0, %v718_v42  ;;  %v406_v53 = vpack.c.bf16 %v374_v40, %v374_v40  ;;  %v367_v56 = vadd.f32 %v6268_v9, %v332_v46  ;;  %v536_v36 = vld [vmem:[#allocation2 + $0xa4] sm:$0x1] }
  0x56   : > { %1521 = vrot.lane.b32.xlu0 %v1338_v0, %s6196_s28  ;;  %v1231_v45 = vrot.slane %v1229_v48, 5  ;;  %v1235_v54 = vrot.slane %v1233_v49, 4  ;;  %v1226_v55 = vor.u32 %v1225_v51, %v1222_v50  ;;  %v551_v60 = vshrl.u32 %v6483_v29, 16  ;;  %v489_v41 = vld [vmem:[#allocation2 + $0xa8] sm:$0x1] }
  0x57   : > { %v1241_v57 = vrot.slane %v1239_v52, 5  ;;  %v1075_v58 = vld [vmem:[#allocation2 + $0x6c] sm:$0xf]  ;;  %v559_v61 = vshrl.u32 %v406_v53, 16  ;;  %v562_v62 = vshll.u32 %v406_v53, 16  ;;  %v368_v34 = vadd.f32 %v6268_v9, %v333_v47 }
  0x58   : > { %v1236_v63 = vor.u32 %v1235_v54, %v1231_v45  ;;  %v1227_v2 = vrot.slane %v1226_v55, 4  ;;  %v1078_v4 = vld [vmem:[#allocation2 + $0x78] sm:$0xf]  ;;  %v1316_v5 = vshrl.u32 %v1075_v58, 16  ;;  %v1319_v6 = vshll.u32 %v1075_v58, 16  ;;  %v6132_v48 = vld [vmem:[%s6262_s25 + $0x8] sm:$0xff]  }
  0x59   : > { %v1340_v7 = vshrl.u32 %v1078_v4, 16  ;;  %v1343_v8 = vshll.u32 %v1078_v4, 16  ;;  %v6488_v10 = vrot.slane %v551_v60, 7  ;;  %v561_v12 = vrot.slane %v559_v61, 7  ;;  %v876_v30 = vld [vmem:[#allocation2 + $0x14] sm:$0x1] }
  0x5a   : > { %v1237_v13 = vrot.slane %v1236_v63, 4  ;;  %v1232_v14 = vsel %vm6282_vm8, %v1227_v2, %v1231_v45  ;;  %v1318_v15 = vrot.slane %v1316_v5, 4  ;;  %v1321_v19 = vrot.slane %v1319_v6, 5  ;;  %v453_v55 = vld [vmem:[#allocation2 + $0x18] sm:$0x1] }
  0x5b   : > { %v1342_v22 = vrot.slane %v1340_v7, 4  ;;  %v1345_v25 = vrot.slane %v1343_v8, 5  ;;  %v557_v26 = vrot.slane %v6488_v10, 4  ;;  %v564_v27 = vor.u32 %v562_v62, %v561_v12  ;;  %v515_v61 = vld [vmem:[#allocation2 + $0x50] sm:$0x1] }
  0x5c   : > { %v1242_v18 = vsel %vm6282_vm8, %v1237_v13, %v1241_v57  ;;  %v6495_v31 = vld [vmem:[#allocation2 + $0x7c] sm:$0xf]  ;;  %v1322_v32 = vor.u32 %v1321_v19, %v1318_v15  ;;  %v566_v33 = vrot.slane %v561_v12, 4  ;;  %v399_v47 = vmax.f32 %v367_v56, 0.0  ;;  %v6136_v56 = vld [vmem:[%s6262_s25 + $0x28] sm:$0xff]  }
  0x5d   : > { %1505 = vrot.lane.b32.xlu1 %v1242_v18, %s6196_s28  ;;  %v1346_v37 = vor.u32 %v1345_v25, %v1342_v22  ;;  %v1349_v39 = vshll.u32 %v6495_v31, 16  ;;  %v1353_v40 = vshrl.u32 %v6495_v31, 16  ;;  %v565_v28 = vsel %vm6316_vm11, %v557_v26, %v564_v27  ;;  %v2926_v16 = vld [vmem:[#allocation2 + $0x6c] sm:$0xf] }
  0x5e   : > { %1503 = vrot.lane.b32.xlu0 %v1232_v14, %s6196_s28  ;;  %v1323_v42 = vrot.slane %v1322_v32, 4  ;;  %875 = vst.msk [vmem:[#allocation2 + $0x10] sm:$0xf] %vm437_vm0, %v565_v28  ;;  %v877_v46 = vsel %vm6239_vm3, %v566_v33, %v876_v30  ;;  %v400_v17 = vmax.f32 %v368_v34, 0.0  ;;  %v540_v51 = vsel %vm6292_vm9, 0, %v539_v20 }
  0x5f   : > { %v1347_v49 = vrot.slane %v1346_v37, 4  ;;  %v6508_v50 = vrot.slane %v1349_v39, 5  ;;  %878 = vst [vmem:[#allocation2 + $0x14] sm:$0x1] %v877_v46  ;;  %v537_v0 = vsel %vm6292_vm9, 0, %v536_v36  ;;  %v431_v53 = vpack.c.bf16 %v399_v47, %v399_v47 }
  0x60   : > { %v1328_v52 = vsel %vm6282_vm8, %v1323_v42, %v6462_v59  ;;  %v432_v45 = vpack.c.bf16 %v400_v17, %v400_v17  ;;  %541 = vst [vmem:[#allocation2 + $0xb0] sm:$0x1] %v540_v51  ;;  %v770_v54 = vrot.slane %v6398_v43, 4  ;;  %v1427_v58 = vrot.slane %v1425_v23, 4  ;;  %v450_v30 = vld [vmem:[#allocation2 + $0xc] sm:$0x1] }
  0x61   : > { %v1352_v57 = vsel %vm6282_vm8, %v1347_v49, %v6508_v50  ;;  %1519 = vrot.lane.b32.xlu2 %v1328_v52, %s6196_s28  ;;  %538 = vst [vmem:[#allocation2 + $0xa4] sm:$0x1] %v537_v0  ;;  %v490_v59 = vsel %vm6239_vm3, 0, %v489_v41  ;;  %v6074_v60 = vunpack.c.l.bf16 %v6132_v48  ;;  %v772_v62 = vshrl.u32 %v431_v53, 16 }
  0x62   : > { %v780_v63 = vshrl.u32 %v432_v45, 16  ;;  %v783_v43 = vshll.u32 %v432_v45, 16  ;;  %491 = vst [vmem:[#allocation2 + $0xa8] sm:$0x1] %v490_v59  ;;  %v775_v2 = vshll.u32 %v431_v53, 16  ;;  %v1428_v4 = vor.u32 %v1427_v58, %v6447_v24  ;;  %v6141_v45 = vld [vmem:[%s6262_s25 + $0x50] sm:$0xff]  }
  0x63   : > { %v6075_v5 = vunpack.c.h.bf16 %v6132_v48  ;;  %v308_v6 = vmul.f32 %v6253_v3, %v6074_v60  ;;  %v454_v7 = vsel %vm6239_vm3, 0, %v453_v55  ;;  %v774_v38 = vrot.slane %v772_v62, 7  ;;  %v530_v58 = vld [vmem:[#allocation2 + $0x8c] sm:$0x1]  ;;  %2958 = vst.msk [vmem:[#allocation3 + $0x124] sm:$0xf] %vm437_vm0, %v2926_v16 }
  0x64   : > { %v782_v23 = vrot.slane %v780_v63, 7  ;;  %455 = vst [vmem:[#allocation2 + $0x18] sm:$0x1] %v454_v7  ;;  %v6090_v8 = vunpack.c.l.bf16 %v6136_v56  ;;  %v6091_v12 = vunpack.c.h.bf16 %v6136_v56  ;;  %v6532_v14 = vrot.slane %v1428_v4, 4 }
  0x65   : > { %1523 = vrot.lane.b32.xlu1 %v1352_v57, %s6196_s28  ;;  %v1052_v13 = vld [vmem:[#allocation2 + $0x10] sm:$0xf]  ;;  %v309_v15 = vmul.f32 %v6253_v3, %v6075_v5  ;;  %v343_v24 = vadd.f32 %v6268_v9, %v308_v6  ;;  %v516_v19 = vsel %vm6292_vm9, 0, %v515_v61  ;;  %v778_v26 = vrot.slane %v774_v38, 4 }
  0x66   : > { %v1053_v20 = vld [vmem:[#allocation2 + $0x14] sm:$0x1]  ;;  %v1133_v22 = vshll.u32 %v1052_v13, 16  ;;  %v1137_v25 = vshrl.u32 %v1052_v13, 16  ;;  %v785_v27 = vor.u32 %v783_v43, %v782_v23  ;;  %v787_v32 = vrot.slane %v782_v23, 4 }
  0x67   : > { %v1143_v18 = vshll.u32 %v1053_v20, 16  ;;  %v967_v33 = vld [vmem:[#allocation2 + $0xb0] sm:$0x1]  ;;  %v777_v34 = vor.u32 %v775_v2, %v774_v38  ;;  %v344_v36 = vadd.f32 %v6268_v9, %v309_v15  ;;  %517 = vst [vmem:[#allocation2 + $0x50] sm:$0x1] %v516_v19  ;;  %v375_v42 = vmax.f32 %v343_v24, 0.0 }
  0x68   : > { %v6539_v37 = vrot.slane %v1133_v22, 5  ;;  %v1139_v39 = vrot.slane %v1137_v25, 4  ;;  %v786_v28 = vsel %vm6316_vm11, %v778_v26, %v785_v27  ;;  %v960_v41 = vld [vmem:[#allocation2 + $0xa4] sm:$0x1]  ;;  %v968_v47 = vsel %vm6239_vm3, %v787_v32, %v967_v33  ;;  %v6572_v24 = vld [vmem:[%s8370_s2] ss:$0 sm:$0xff] }
  0x69   : > { %v1145_v46 = vrot.slane %v1143_v18, 5  ;;  %966 = vst.msk [vmem:[#allocation2 + $0xac] sm:$0xf] %vm437_vm0, %v786_v28  ;;  %v961_v17 = vsel %vm6239_vm3, %v770_v54, %v960_v41  ;;  %v963_v48 = vld [vmem:[#allocation2 + $0xa8] sm:$0xf]  ;;  %v376_v49 = vmax.f32 %v344_v36, 0.0  ;;  %v407_v52 = vpack.c.bf16 %v375_v42, %v375_v42 }
  0x6a   : > { %v1140_v51 = vor.u32 %v1139_v39, %v6539_v37  ;;  %969 = vst [vmem:[#allocation2 + $0xb0] sm:$0x1] %v968_v47  ;;  %v964_v0 = vsel %vm6310_vm10, %v777_v34, %v963_v48  ;;  %v316_v53 = vmul.f32 %v6253_v3, %v6090_v8  ;;  %v317_v56 = vmul.f32 %v6253_v3, %v6091_v12 }
  0x6b   : > { %962 = vst [vmem:[#allocation2 + $0xa4] sm:$0x1] %v961_v17  ;;  %v408_v55 = vpack.c.bf16 %v376_v49, %v376_v49  ;;  %v451_v57 = vsel %vm6239_vm3, 0, %v450_v30  ;;  %v554_v54 = vshll.u32 %v6483_v29, 16  ;;  %v568_v60 = vshrl.u32 %v407_v52, 16 }
  0x6c   : > { %v1141_v59 = vrot.slane %v1140_v51, 4  ;;  %965 = vst [vmem:[#allocation2 + $0xa8] sm:$0xf] %v964_v0  ;;  %v571_v61 = vshll.u32 %v407_v52, 16  ;;  %v351_v62 = vadd.f32 %v6268_v9, %v316_v53  ;;  %v352_v2 = vadd.f32 %v6268_v9, %v317_v56  ;;  %v879_v38 = vld [vmem:[#allocation2 + $0x18] sm:$0xf] }
  0x6d   : > { %v576_v63 = vshrl.u32 %v408_v55, 16  ;;  %v579_v43 = vshll.u32 %v408_v55, 16  ;;  %452 = vst [vmem:[#allocation2 + $0xc] sm:$0x1] %v451_v57  ;;  %v556_v4 = vor.u32 %v554_v54, %v6488_v10  ;;  %v570_v5 = vrot.slane %v568_v60, 7 }
  0x6e   : > { %v1146_v3 = vsel %vm6282_vm8, %v1141_v59, %v1145_v46  ;;  %v383_v6 = vmax.f32 %v351_v62, 0.0  ;;  %v6110_v29 = vunpack.c.l.bf16 %v6141_v45  ;;  %v384_v23 = vmax.f32 %v352_v2, 0.0  ;;  %v480_v46 = vld [vmem:[#allocation2 + $0x84] sm:$0x1]  ;;  %v527_v51 = vld [vmem:[#allocation2 + $0x80] sm:$0x1] }
  0x6f   : > { %1489 = vrot.lane.b32.xlu0 %v1146_v3, %s6196_s28  ;;  %v6563_v7 = vrot.slane %v576_v63, 7  ;;  %v6111_v8 = vunpack.c.h.bf16 %v6141_v45  ;;  %v531_v12 = vsel %vm6292_vm9, 0, %v530_v58  ;;  %v573_v13 = vor.u32 %v571_v61, %v570_v5  ;;  %v6589_v58 = vld [vmem:[%s8371_s3] ss:$0 sm:$0xff]  ;;  %v911_v2 = vld [vmem:[#allocation2 + $0x50] sm:$0x1] }
  0x70   : > { %v1091_v9 = vld [vmem:[#allocation2 + $0xac] sm:$0xf]  ;;  %v574_v15 = vrot.slane %v570_v5, 4  ;;  %v6567_v10 = vpack.c.bf16 %v383_v6, %v383_v6  ;;  %v326_v19 = vmul.f32 %v6572_v24, %v6110_v29  ;;  %532 = vst [vmem:[#allocation2 + $0x8c] sm:$0x1] %v531_v12  ;;  %v416_v27 = vpack.c.bf16 %v384_v23, %v384_v23 }
  0x71   : > { %v1092_v20 = vld [vmem:[#allocation2 + $0xb0] sm:$0x1]  ;;  %v1445_v22 = vshll.u32 %v1091_v9, 16  ;;  %v1449_v25 = vshrl.u32 %v1091_v9, 16  ;;  %v581_v26 = vor.u32 %v579_v43, %v6563_v7  ;;  %v880_v32 = vsel %vm6310_vm10, %v573_v13, %v879_v38 }
  0x72   : > { %v1455_v30 = vshll.u32 %v1092_v20, 16  ;;  %v1089_v18 = vld [vmem:[#allocation2 + $0xa4] sm:$0x1]  ;;  %v636_v33 = vshrl.u32 %v6567_v10, 16  ;;  %v327_v34 = vmul.f32 %v6572_v24, %v6111_v8  ;;  %881 = vst [vmem:[#allocation2 + $0x18] sm:$0xf] %v880_v32  ;;  %v361_v59 = vadd.f32 %v6589_v58, %v326_v19 }
  0x73   : > { %v1447_v36 = vrot.slane %v1445_v22, 5  ;;  %v1451_v39 = vrot.slane %v1449_v25, 4  ;;  %v1431_v28 = vshll.u32 %v1089_v18, 16  ;;  %v1090_v41 = vld [vmem:[#allocation2 + $0xa8] sm:$0xf]  ;;  %v582_v42 = vsel %vm6316_vm11, %v574_v15, %v581_v26  ;;  %v6137_v9 = vld [vmem:[%s6262_s25 + $0x30] sm:$0xff]  }
  0x74   : > { %v1457_v47 = vrot.slane %v1455_v30, 5  ;;  %v1436_v17 = vshrl.u32 %v1090_v41, 16  ;;  %v1439_v48 = vshll.u32 %v1090_v41, 16  ;;  %v6582_v49 = vrot.slane %v636_v33, 7  ;;  %882 = vst.msk [vmem:[#allocation2 + $0x1c] sm:$0xf] %vm437_vm0, %v582_v42 }
  0x75   : > { %v1452_v0 = vor.u32 %v1451_v39, %v1447_v36  ;;  %v1433_v52 = vrot.slane %v1431_v28, 5  ;;  %v644_v53 = vshrl.u32 %v416_v27, 16  ;;  %v647_v45 = vshll.u32 %v416_v27, 16  ;;  %v872_v54 = vld [vmem:[#allocation2 + $0xc] sm:$0xf] }
  0x76   : > { %v1438_v55 = vrot.slane %v1436_v17, 4  ;;  %v1441_v56 = vrot.slane %v1439_v48, 5  ;;  %v642_v57 = vrot.slane %v6582_v49, 4  ;;  %v873_v63 = vsel %vm6310_vm10, %v556_v4, %v872_v54 }
  0x77   : > { %v1453_v60 = vrot.slane %v1452_v0, 4  ;;  %v1434_v61 = vsel %vm6282_vm8, %v6532_v14, %v1433_v52  ;;  %v646_v62 = vrot.slane %v644_v53, 7  ;;  %874 = vst [vmem:[#allocation2 + $0xc] sm:$0xf] %v873_v63  ;;  %v362_v3 = vadd.f32 %v6589_v58, %v327_v34 }
  0x78   : > { %1537 = vrot.lane.b32.xlu2 %v1434_v61, %s6196_s28  ;;  %v1442_v43 = vor.u32 %v1441_v56, %v1438_v55  ;;  %v393_v5 = vmax.f32 %v361_v59, 0.0  ;;  %v481_v6 = vsel %vm6239_vm3, 0, %v480_v46  ;;  %v528_v4 = vsel %vm6292_vm9, 0, %v527_v51 }
  0x79   : > { %v1458_v29 = vsel %vm6282_vm8, %v1453_v60, %v1457_v47  ;;  %v649_v14 = vor.u32 %v647_v45, %v646_v62  ;;  %v651_v38 = vrot.slane %v646_v62, 4  ;;  %482 = vst [vmem:[#allocation2 + $0x84] sm:$0x1] %v481_v6  ;;  %v394_v8 = vmax.f32 %v362_v3, 0.0  ;;  %v1054_v13 = vld [vmem:[#allocation2 + $0x18] sm:$0xf] }
  0x7a   : > { %1541 = vrot.lane.b32.xlu1 %v1458_v29, %s6196_s28  ;;  %v1443_v23 = vrot.slane %v1442_v43, 4  ;;  %v425_v12 = vpack.c.bf16 %v393_v5, %v393_v5  ;;  %529 = vst [vmem:[#allocation2 + $0x80] sm:$0x1] %v528_v4  ;;  %v719_v20 = vrot.slane %v6464_v21, 4  ;;  %v1355_v22 = vrot.slane %v1353_v40, 4  ;;  %v6145_v6 = vld [vmem:[%s6262_s25 + $0x70] sm:$0xff]  }
  0x7b   : > { %v650_v15 = vsel %vm6316_vm11, %v642_v57, %v649_v14  ;;  %v912_v19 = vsel %vm6239_vm3, %v651_v38, %v911_v2  ;;  %v6616_v26 = vld [vmem:[#allocation2 + $0x1c] sm:$0xf]  ;;  %v1148_v27 = vshrl.u32 %v1054_v13, 16  ;;  %v1151_v30 = vshll.u32 %v1054_v13, 16  ;;  %v946_v62 = vld [vmem:[#allocation2 + $0x8c] sm:$0x1] }
  0x7c   : > { %v1448_v25 = vsel %vm6282_vm8, %v1443_v23, %v1447_v36  ;;  %910 = vst.msk [vmem:[#allocation2 + $0x4c] sm:$0xf] %vm437_vm0, %v650_v15  ;;  %v426_v18 = vpack.c.bf16 %v394_v8, %v394_v8  ;;  %v1157_v32 = vshll.u32 %v6616_v26, 16  ;;  %v721_v33 = vshrl.u32 %v425_v12, 16  ;;  %v468_v5 = vld [vmem:[#allocation2 + $0x54] sm:$0x1] }
  0x7d   : > { %1539 = vrot.lane.b32.xlu0 %v1448_v25, %s6196_s28  ;;  %913 = vst [vmem:[#allocation2 + $0x50] sm:$0x1] %v912_v19  ;;  %v724_v21 = vshll.u32 %v425_v12, 16  ;;  %v6094_v34 = vunpack.c.l.bf16 %v6137_v9  ;;  %v1150_v31 = vrot.slane %v1148_v27, 4  ;;  %v1153_v40 = vrot.slane %v1151_v30, 5 }
  0x7e   : > { %v729_v39 = vshrl.u32 %v426_v18, 16  ;;  %v732_v28 = vshll.u32 %v426_v18, 16  ;;  %v6621_v36 = vrot.slane %v1157_v32, 5  ;;  %v1051_v41 = vld [vmem:[#allocation2 + $0xc] sm:$0xf]  ;;  %v723_v42 = vrot.slane %v721_v33, 7 }
  0x7f   : > { %v1356_v46 = vor.u32 %v1355_v22, %v6508_v50  ;;  %v6095_v47 = vunpack.c.h.bf16 %v6137_v9  ;;  %v1154_v17 = vor.u32 %v1153_v40, %v1150_v31  ;;  %v1124_v48 = vshrl.u32 %v1051_v41, 16  ;;  %v465_v8 = vld [vmem:[#allocation2 + $0x48] sm:$0x1]  ;;  %v542_v19 = vld [vmem:[#allocation2 + $0xbc] sm:$0x1] }
  0x80   : > { %v1127_v51 = vshll.u32 %v1051_v41, 16  ;;  %v731_v0 = vrot.slane %v729_v39, 7  ;;  %v942_v52 = vld [vmem:[#allocation2 + $0x84] sm:$0xf]  ;;  %v727_v53 = vrot.slane %v723_v42, 4  ;;  %v726_v45 = vor.u32 %v724_v21, %v723_v42  ;;  %v6653_v39 = vld [vmem:[%s6262_s25 + $0x10] sm:$0xff]  }
  0x81   : > { %v939_v55 = vld [vmem:[#allocation2 + $0x80] sm:$0x1]  ;;  %v6624_v56 = vrot.slane %v1356_v46, 4  ;;  %v318_v57 = vmul.f32 %v6572_v24, %v6094_v34  ;;  %v1155_v54 = vrot.slane %v1154_v17, 4  ;;  %v1126_v59 = vrot.slane %v1124_v48, 4 }
  0x82   : > { %v1129_v60 = vrot.slane %v1127_v51, 5  ;;  %v734_v61 = vor.u32 %v732_v28, %v731_v0  ;;  %v736_v63 = vrot.slane %v731_v0, 4  ;;  %v943_v43 = vsel %vm6310_vm10, %v726_v45, %v942_v52 }
  0x83   : > { %v1067_v50 = vld [vmem:[#allocation2 + $0x4c] sm:$0xf]  ;;  %v940_v2 = vsel %vm6239_vm3, %v719_v20, %v939_v55  ;;  %v319_v3 = vmul.f32 %v6572_v24, %v6095_v47  ;;  %v1160_v29 = vsel %vm6282_vm8, %v1155_v54, %v6621_v36  ;;  %944 = vst [vmem:[#allocation2 + $0x84] sm:$0xf] %v943_v43  ;;  %v353_v15 = vadd.f32 %v6589_v58, %v318_v57 }
  0x84   : > { %v1068_v14 = vld [vmem:[#allocation2 + $0x50] sm:$0x1]  ;;  %v1253_v38 = vshll.u32 %v1067_v50, 16  ;;  %v1257_v4 = vshrl.u32 %v1067_v50, 16  ;;  %v1130_v23 = vor.u32 %v1129_v60, %v1126_v59  ;;  %1491 = vrot.lane.b32.xlu1 %v1160_v29, %s6196_s28  ;;  %v735_v9 = vsel %vm6316_vm11, %v727_v53, %v734_v61  ;;  %941 = vst [vmem:[#allocation2 + $0x80] sm:$0x1] %v940_v2 }
  0x85   : > { %v1263_v12 = vshll.u32 %v1068_v14, 16  ;;  %v947_v13 = vsel %vm6239_vm3, %v736_v63, %v946_v62  ;;  %945 = vst.msk [vmem:[#allocation2 + $0x88] sm:$0xf] %vm437_vm0, %v735_v9  ;;  %v354_v27 = vadd.f32 %v6589_v58, %v319_v3  ;;  %v385_v18 = vmax.f32 %v353_v15, 0.0 }
  0x86   : > { %v6642_v20 = vrot.slane %v1253_v38, 5  ;;  %v1259_v22 = vrot.slane %v1257_v4, 4  ;;  %v1131_v25 = vrot.slane %v1130_v23, 4  ;;  %948 = vst [vmem:[#allocation2 + $0x8c] sm:$0x1] %v947_v13  ;;  %v469_v32 = vsel %vm6239_vm3, 0, %v468_v5 }
  0x87   : > { %v1265_v30 = vrot.slane %v1263_v12, 5  ;;  %v6126_v33 = vunpack.c.l.bf16 %v6145_v6  ;;  %v386_v31 = vmax.f32 %v354_v27, 0.0  ;;  %470 = vst [vmem:[#allocation2 + $0x54] sm:$0x1] %v469_v32  ;;  %v6127_v40 = vunpack.c.h.bf16 %v6145_v6 }
  0x88   : > { %v1260_v21 = vor.u32 %v1259_v22, %v6642_v20  ;;  %v1136_v34 = vsel %vm6282_vm8, %v1131_v25, %v6539_v37  ;;  %v417_v28 = vpack.c.bf16 %v385_v18, %v385_v18  ;;  %v543_v42 = vsel %vm6292_vm9, 0, %v542_v19 }
  0x89   : > { %1487 = vrot.lane.b32.xlu2 %v1136_v34, %s6196_s28  ;;  %v334_v41 = vmul.f32 %v6572_v24, %v6126_v33  ;;  %v466_v46 = vsel %vm6239_vm3, 0, %v465_v8  ;;  %v418_v17 = vpack.c.bf16 %v386_v31, %v386_v31  ;;  %v335_v37 = vmul.f32 %v6572_v24, %v6127_v40  ;;  %544 = vst [vmem:[#allocation2 + $0xbc] sm:$0x1] %v543_v42  ;;  %v506_v40 = vld [vmem:[#allocation2 + $0x2c] sm:$0x1] }
  0x8a   : > { %v1261_v47 = vrot.slane %v1260_v21, 4  ;;  %v639_v48 = vshll.u32 %v6567_v10, 16  ;;  %v1081_v51 = vld [vmem:[#allocation2 + $0x84] sm:$0xf]  ;;  %v653_v0 = vshrl.u32 %v417_v28, 16  ;;  %v656_v52 = vshll.u32 %v417_v28, 16 }
  0x8b   : > { %v369_v53 = vadd.f32 %v6589_v58, %v334_v41  ;;  %467 = vst [vmem:[#allocation2 + $0x48] sm:$0x1] %v466_v46  ;;  %v6078_v45 = vunpack.c.l.bf16 %v6653_v39  ;;  %v1364_v57 = vshrl.u32 %v1081_v51, 16  ;;  %v1367_v54 = vshll.u32 %v1081_v51, 16  ;;  %v1080_v59 = vld [vmem:[#allocation2 + $0x80] sm:$0x1] }
  0x8c   : > { %v1266_v55 = vsel %vm6282_vm8, %v1261_v47, %v1265_v30  ;;  %v661_v60 = vshrl.u32 %v418_v17, 16  ;;  %v1082_v61 = vld [vmem:[#allocation2 + $0x88] sm:$0xf]  ;;  %v1359_v62 = vshll.u32 %v1080_v59, 16  ;;  %v655_v10 = vrot.slane %v653_v0, 7 }
  0x8d   : > { %1509 = vrot.lane.b32.xlu0 %v1266_v55, %s6196_s28  ;;  %v664_v50 = vshll.u32 %v418_v17, 16  ;;  %v370_v63 = vadd.f32 %v6589_v58, %v335_v37  ;;  %v1083_v43 = vld [vmem:[#allocation2 + $0x8c] sm:$0x1]  ;;  %v1373_v2 = vshll.u32 %v1082_v61, 16  ;;  %v1377_v3 = vshrl.u32 %v1082_v61, 16 }
  0x8e   : > { %v1366_v5 = vrot.slane %v1364_v57, 4  ;;  %v1369_v6 = vrot.slane %v1367_v54, 5  ;;  %v1383_v29 = vshll.u32 %v1083_v43, 16  ;;  %v1361_v14 = vrot.slane %v1359_v62, 5  ;;  %v914_v23 = vld [vmem:[#allocation2 + $0x54] sm:$0xf] }
  0x8f   : > { %v658_v38 = vor.u32 %v656_v52, %v655_v10  ;;  %v659_v4 = vrot.slane %v655_v10, 4  ;;  %v1375_v8 = vrot.slane %v1373_v2, 5  ;;  %v1379_v12 = vrot.slane %v1377_v3, 4  ;;  %v456_v47 = vld [vmem:[#allocation2 + $0x24] sm:$0x1]  ;;  %v6039_v54 = vld [vmem:[%s8369_s1 + $0x38] sm:$0xff] }
  0x90   : > { %v1370_v9 = vor.u32 %v1369_v6, %v1366_v5  ;;  %v6669_v13 = vrot.slane %v661_v60, 7  ;;  %v1385_v15 = vrot.slane %v1383_v29, 5  ;;  %v1362_v19 = vsel %vm6282_vm8, %v6624_v56, %v1361_v14  ;;  %v974_v60 = vld [vmem:[#allocation2 + $0xbc] sm:$0x1]  ;;  %4641 = vmatpush.bf16.msra.mxu0 %v6039_v54  ;;  %6147 = vmatpush.bf16.msra.mxu1 %v6039_v54 }
  0x91   : > { %v915_v22 = vsel %vm6310_vm10, %v658_v38, %v914_v23  ;;  %v401_v25 = vmax.f32 %v369_v53, 0.0  ;;  %v1380_v27 = vor.u32 %v1379_v12, %v1375_v8  ;;  %1525 = vrot.lane.b32.xlu2 %v1362_v19, %s6196_s28  ;;  %v402_v32 = vmax.f32 %v370_v63, 0.0  ;;  %6148 = vmatpush.bf16.msra.mxu2 %v6039_v54 }
  0x92   : > { %v1371_v30 = vrot.slane %v1370_v9, 4  ;;  %v666_v18 = vor.u32 %v664_v50, %v6669_v13  ;;  %916 = vst [vmem:[#allocation2 + $0x54] sm:$0xf] %v915_v22  ;;  %v907_v33 = vld [vmem:[#allocation2 + $0x48] sm:$0xf]  ;;  %v641_v34 = vor.u32 %v639_v48, %v6582_v49  ;;  %v6079_v31 = vunpack.c.h.bf16 %v6653_v39  ;;  %6149 = vmatpush.bf16.msra.mxu3 %v6039_v54 }
  0x93   : > { %v6678_v21 = vpack.c.bf16 %v401_v25, %v401_v25  ;;  %v310_v56 = vmul.f32 %v6572_v24, %v6078_v45  ;;  %v1381_v28 = vrot.slane %v1380_v27, 4  ;;  %v434_v46 = vpack.c.bf16 %v402_v32, %v402_v32  ;;  %v503_v48 = vld [vmem:[#allocation2 + $0x20] sm:$0x1] }
  0x94   : > { %v1376_v41 = vsel %vm6282_vm8, %v1371_v30, %v1375_v8  ;;  %v667_v42 = vsel %vm6316_vm11, %v659_v4, %v666_v18  ;;  %v908_v39 = vsel %vm6310_vm10, %v641_v34, %v907_v33  ;;  %v311_v17 = vmul.f32 %v6572_v24, %v6079_v31 }
  0x95   : > { %1527 = vrot.lane.b32.xlu0 %v1376_v41, %s6196_s28  ;;  %917 = vst.msk [vmem:[#allocation2 + $0x58] sm:$0xf] %vm437_vm0, %v667_v42  ;;  %v789_v49 = vshrl.u32 %v6678_v21, 16  ;;  %v345_v37 = vadd.f32 %v6589_v58, %v310_v56  ;;  %v1386_v51 = vsel %vm6282_vm8, %v1381_v28, %v1385_v15  ;;  %v797_v0 = vshrl.u32 %v434_v46, 16 }
  0x96   : > { %v800_v52 = vshll.u32 %v434_v46, 16  ;;  %909 = vst [vmem:[#allocation2 + $0x48] sm:$0xf] %v908_v39  ;;  %v507_v53 = vsel %vm6292_vm9, 0, %v506_v40  ;;  %1529 = vrot.lane.b32.xlu1 %v1386_v51, %s6196_s28  ;;  %v346_v55 = vadd.f32 %v6589_v58, %v311_v17  ;;  %v457_v24 = vsel %vm6239_vm3, 0, %v456_v47 }
  0x97   : > { %v6699_v45 = vrot.slane %v789_v49, 7  ;;  %v377_v57 = vmax.f32 %v345_v37, 0.0  ;;  %508 = vst [vmem:[#allocation2 + $0x2c] sm:$0x1] %v507_v53  ;;  %v799_v59 = vrot.slane %v797_v0, 7  ;;  %v504_v61 = vsel %vm6292_vm9, 0, %v503_v48 }
  0x98   : > { %458 = vst [vmem:[#allocation2 + $0x24] sm:$0x1] %v457_v24  ;;  %v378_v50 = vmax.f32 %v346_v55, 0.0  ;;  %v1161_v5 = vshrl.u32 %v6616_v26, 16  ;;  %v583_v14 = vrot.slane %v6563_v7, 4  ;;  %vm1708_vm13 = vcmask 1042432  }
  0x99   : > { %v1069_v62 = vld [vmem:[#allocation2 + $0x54] sm:$0xf]  ;;  %v795_v10 = vrot.slane %v6699_v45, 4  ;;  %v409_v58 = vpack.c.bf16 %v377_v57, %v377_v57  ;;  %505 = vst [vmem:[#allocation2 + $0x20] sm:$0x1] %v504_v61  ;;  %v802_v2 = vor.u32 %v800_v52, %v799_v59  ;;  %v804_v3 = vrot.slane %v799_v59, 4 }
  0x9a   : > { %v1268_v63 = vshrl.u32 %v1069_v62, 16  ;;  %v1271_v43 = vshll.u32 %v1069_v62, 16  ;;  %v410_v6 = vpack.c.bf16 %v378_v50, %v378_v50  ;;  %v1163_v56 = vrot.slane %v1161_v5, 4  ;;  %v2976_v51 = vld [vmem:[#allocation2 + $0x18] sm:$0xf]  ;;  %v6038_v61 = vld [vmem:[%s8369_s1 + $0x30] sm:$0xff] }
  0x9b   : > { %v585_v29 = vshrl.u32 %v409_v58, 16  ;;  %v803_v8 = vsel %vm6316_vm11, %v795_v10, %v802_v2  ;;  %v975_v12 = vsel %vm6239_vm3, %v804_v3, %v974_v60  ;;  %v588_v26 = vshll.u32 %v409_v58, 16  ;;  %v492_v55 = vld [vmem:[#allocation2 + $0xb4] sm:$0x1]  ;;  %4642 = vmatpush.bf16.msra.mxu0 %v6038_v61  ;;  %6150 = vmatpush.bf16.msra.mxu1 %v6038_v61 }
  0x9c   : > { %v6712_v38 = vld [vmem:[#allocation2 + $0x58] sm:$0xf]  ;;  %v1270_v4 = vrot.slane %v1268_v63, 4  ;;  %v1273_v23 = vrot.slane %v1271_v43, 5  ;;  %973 = vst.msk [vmem:[#allocation2 + $0xb8] sm:$0xf] %vm437_vm0, %v803_v8  ;;  %v1164_v53 = vor.u32 %v1163_v56, %v6621_v36  ;;  %6151 = vmatpush.bf16.msra.mxu2 %v6038_v61  ;;  %6152 = vmatpush.bf16.msra.mxu3 %v6038_v61  ;;  %v1486_v61 = vpop.permute.xlu1 %1485 }
  0x9d   : > { %v1277_v9 = vshll.u32 %v6712_v38, 16  ;;  %v1066_v15 = vld [vmem:[#allocation2 + $0x48] sm:$0xf]  ;;  %976 = vst [vmem:[#allocation2 + $0xbc] sm:$0x1] %v975_v12  ;;  %v587_v25 = vrot.slane %v585_v29, 7 }
  0x9e   : > { %v1274_v19 = vor.u32 %v1273_v23, %v1270_v4  ;;  %v1244_v22 = vshrl.u32 %v1066_v15, 16  ;;  %v1247_v7 = vshll.u32 %v1066_v15, 16  ;;  %v593_v30 = vshrl.u32 %v410_v6, 16  ;;  %v890_v49 = vld [vmem:[#allocation2 + $0x2c] sm:$0x1] }
  0x9f   : > { %v6720_v27 = vrot.slane %v1277_v9, 5  ;;  %v596_v18 = vshll.u32 %v410_v6, 16  ;;  %v886_v31 = vld [vmem:[#allocation2 + $0x24] sm:$0xf]  ;;  %v591_v40 = vrot.slane %v587_v25, 4  ;;  %v590_v41 = vor.u32 %v588_v26, %v587_v25  ;;  %v6037_v63 = vld [vmem:[%s8369_s1 + $0x28] sm:$0xff] }
  0xa0   : > { %v1275_v32 = vrot.slane %v1274_v19, 4  ;;  %v1246_v33 = vrot.slane %v1244_v22, 4  ;;  %v1249_v34 = vrot.slane %v1247_v7, 5  ;;  %v595_v28 = vrot.slane %v593_v30, 7  ;;  %v883_v42 = vld [vmem:[#allocation2 + $0x20] sm:$0x1]  ;;  %4643 = vmatpush.bf16.msra.mxu0 %v6037_v63  ;;  %6153 = vmatpush.bf16.msra.mxu1 %v6037_v63 }
  0xa1   : > { %v884_v39 = vsel %vm6239_vm3, %v583_v14, %v883_v42  ;;  %v887_v48 = vsel %vm6310_vm10, %v590_v41, %v886_v31  ;;  %v518_v36 = vld [vmem:[#allocation2 + $0x5c] sm:$0x1]  ;;  %v1165_v43 = vrot.slane %v1164_v53, 4  ;;  %v3025_v2 = vshrl.u32 %v2976_v51, 16  ;;  %v6036_v26 = vld [vmem:[%s8369_s1 + $0x20] sm:$0xff]  ;;  %6154 = vmatpush.bf16.msra.mxu2 %v6037_v63  ;;  %6155 = vmatpush.bf16.msra.mxu3 %v6037_v63 }
  0xa2   : > { %v1280_v46 = vsel %vm6282_vm8, %v1275_v32, %v6720_v27  ;;  %v1250_v47 = vor.u32 %v1249_v34, %v1246_v33  ;;  %v598_v17 = vor.u32 %v596_v18, %v595_v28  ;;  %v600_v37 = vrot.slane %v595_v28, 4  ;;  %885 = vst [vmem:[#allocation2 + $0x20] sm:$0x1] %v884_v39  ;;  %v6763_v31 = vld [vmem:[#allocation2 + $0x1c] sm:$0xf] }
  0xa3   : > { %1511 = vrot.lane.b32.xlu1 %v1280_v46, %s6196_s28  ;;  %v1094_v0 = vld [vmem:[#allocation2 + $0xb8] sm:$0xf]  ;;  %888 = vst [vmem:[#allocation2 + $0x24] sm:$0xf] %v887_v48  ;;  %v493_v5 = vsel %vm6239_vm3, 0, %v492_v55  ;;  %v792_v6 = vshll.u32 %v6678_v21, 16  ;;  %v1500_v46 = vpop.permute.xlu2 %1499 }
  0xa4   : > { %v1251_v52 = vrot.slane %v1250_v47, 4  ;;  %v1095_v57 = vld [vmem:[#allocation2 + $0xbc] sm:$0x1]  ;;  %v1469_v24 = vshll.u32 %v1094_v0, 16  ;;  %v1473_v54 = vshrl.u32 %v1094_v0, 16  ;;  %v599_v59 = vsel %vm6316_vm11, %v591_v40, %v598_v17  ;;  %4644 = vmatpush.bf16.msra.mxu0 %v6036_v26  ;;  %6156 = vmatpush.bf16.msra.mxu1 %v6036_v26 }
  0xa5   : > { %v891_v60 = vsel %vm6239_vm3, %v600_v37, %v890_v49  ;;  %v1479_v62 = vshll.u32 %v1095_v57, 16  ;;  %889 = vst.msk [vmem:[#allocation2 + $0x28] sm:$0xf] %vm437_vm0, %v599_v59  ;;  %v3028_v14 = vshll.u32 %v2976_v51, 16  ;;  %v519_v4 = vsel %vm6292_vm9, 0, %v518_v36  ;;  %6157 = vmatpush.bf16.msra.mxu2 %v6036_v26  ;;  %6158 = vmatpush.bf16.msra.mxu3 %v6036_v26 }
  0xa6   : > { %v1256_v10 = vsel %vm6282_vm8, %v1251_v52, %v6642_v20  ;;  %v6742_v50 = vrot.slane %v1469_v24, 5  ;;  %v1475_v58 = vrot.slane %v1473_v54, 4  ;;  %892 = vst [vmem:[#allocation2 + $0x2c] sm:$0x1] %v891_v60  ;;  %v6759_v7 = vrot.slane %v3025_v2, 4 }
  0xa7   : > { %1507 = vrot.lane.b32.xlu2 %v1256_v10, %s6196_s28  ;;  %v1481_v3 = vrot.slane %v1479_v62, 5  ;;  %494 = vst [vmem:[#allocation2 + $0xb4] sm:$0x1] %v493_v5  ;;  %v794_v25 = vor.u32 %v792_v6, %v6699_v45  ;;  %v6765_v56 = vld [vmem:[#allocation2 + $0x10] sm:$0xf]  ;;  %v3030_v41 = vrot.slane %v3028_v14, 5 }
  0xa8   : > { %v1476_v20 = vor.u32 %v1475_v58, %v6742_v50  ;;  %520 = vst [vmem:[#allocation2 + $0x5c] sm:$0x1] %v519_v4  ;;  %v668_v42 = vrot.slane %v6669_v13, 4  ;;  %v6035_v45 = vld [vmem:[%s8369_s1 + $0x18] sm:$0xff]  ;;  %v992_v47 = vld [vmem:[#allocation2 + $0x30] sm:$0xf] }
  0xa9   : > { %v1056_v29 = vld [vmem:[#allocation2 + $0x20] sm:$0x1]  ;;  %1024 = vst.msk [vmem:[#allocation3 + $0xa0] sm:$0xf] %vm437_vm0, %v992_v47  ;;  %v3034_v53 = vshll.u32 %v6763_v31, 16  ;;  %v2673_v55 = vrot.slane %v6765_v56, 5  ;;  %4645 = vmatpush.bf16.msra.mxu0 %v6035_v45  ;;  %v3031_v59 = vor.u32 %v3030_v41, %v6759_v7  ;;  %6159 = vmatpush.bf16.msra.mxu1 %v6035_v45 }
  0xaa   : > { %v1477_v23 = vrot.slane %v1476_v20, 4  ;;  %v1057_v8 = vld [vmem:[#allocation2 + $0x24] sm:$0xf]  ;;  %v1167_v12 = vshll.u32 %v1056_v29, 16  ;;  %1588 = vst.msk [vmem:[#allocation3 + $0xa0] sm:$0xf] %vm1579_vm12, %v1500_v46  ;;  %6160 = vmatpush.bf16.msra.mxu2 %v6035_v45  ;;  %6161 = vmatpush.bf16.msra.mxu3 %v6035_v45 }
  0xab   : > { %v1172_v9 = vshrl.u32 %v1057_v8, 16  ;;  %v1175_v15 = vshll.u32 %v1057_v8, 16  ;;  %v2577_v60 = vld [vmem:[#allocation2 + $0x14] sm:$0x1]  ;;  %vm1709_vm14 = vcmask 1046532   ;;  %v1281_v63 = vshrl.u32 %v6712_v38, 16  ;;  %v1502_v4 = vpop.permute.xlu2 %1501 }
  0xac   : > { %v1482_v21 = vsel %vm6282_vm8, %v1477_v23, %v1481_v3  ;;  %v1058_v19 = vld [vmem:[#allocation2 + $0x28] sm:$0xf]  ;;  %v1169_v22 = vrot.slane %v1167_v12, 5  ;;  %v6034_v10 = vld [vmem:[%s8369_s1 + $0x10] sm:$0xff]  ;;  %v985_v36 = vld [vmem:[#allocation2 + $0x4] sm:$0xf]  ;;  %v1484_v3 = vpop.permute.xlu0 %1483 }
  0xad   : > { %1545 = vrot.lane.b32.xlu0 %v1482_v21, %s6196_s28  ;;  %v1059_v30 = vld [vmem:[#allocation2 + $0x2c] sm:$0x1]  ;;  %v1181_v18 = vshll.u32 %v1058_v19, 16  ;;  %v1185_v32 = vshrl.u32 %v1058_v19, 16  ;;  %v1174_v33 = vrot.slane %v1172_v9, 4  ;;  %v1177_v34 = vrot.slane %v1175_v15, 5  ;;  %vm6800_vm15 = vmor %vm1708_vm13, %vm1709_vm14  ;;  %4646 = vmatpush.bf16.msra.mxu0 %v6034_v10 }
  0xae   : > { %v1191_v40 = vshll.u32 %v1059_v30, 16  ;;  %v1170_v28 = vsel %vm6282_vm8, %v1165_v43, %v1169_v22  ;;  %v970_v37 = vld [vmem:[#allocation2 + $0xb4] sm:$0xf]  ;;  %v984_v58 = vld [vmem:[#allocation2] sm:$0xf]  ;;  %v6793_v43 = vrot.slane %v3034_v53, 5  ;;  %6162 = vmatpush.bf16.msra.mxu1 %v6034_v10  ;;  %6163 = vmatpush.bf16.msra.mxu2 %v6034_v10 }
  0xaf   : > { %v1183_v49 = vrot.slane %v1181_v18, 5  ;;  %v1187_v39 = vrot.slane %v1185_v32, 4  ;;  %v1178_v17 = vor.u32 %v1177_v34, %v1174_v33  ;;  %1493 = vrot.lane.b32.xlu2 %v1170_v28, %s6196_s28  ;;  %v971_v0 = vsel %vm6310_vm10, %v794_v25, %v970_v37  ;;  %v918_v52 = vld [vmem:[#allocation2 + $0x5c] sm:$0x1]  ;;  %1017 = vst.msk [vmem:[#allocation3 + $0x14] sm:$0xf] %vm437_vm0, %v985_v36  ;;  %6164 = vmatpush.bf16.msra.mxu3 %v6034_v10 }
  0xb0   : > { %v1193_v48 = vrot.slane %v1191_v40, 5  ;;  %972 = vst [vmem:[#allocation2 + $0xb4] sm:$0xf] %v971_v0  ;;  %v919_v57 = vsel %vm6239_vm3, %v668_v42, %v918_v52  ;;  %v2675_v2 = vrot.slane %v2673_v55, 4  ;;  %v2676_v20 = vrot.slane %v2577_v60, 5  ;;  %v6033_v38 = vld [vmem:[%s8369_s1 + $0x8] sm:$0xff]  ;;  %v1532_v52 = vpop.permute.xlu1 %1531 }
  0xb1   : > { %v1188_v13 = vor.u32 %v1187_v39, %v1183_v49  ;;  %v1179_v51 = vrot.slane %v1178_v17, 4  ;;  %920 = vst [vmem:[#allocation2 + $0x5c] sm:$0x1] %v919_v57  ;;  %v3032_v5 = vrot.slane %v3031_v59, 4  ;;  %v993_v29 = vld [vmem:[#allocation2 + $0x34] sm:$0xf]  ;;  %4647 = vmatpush.bf16.msra.mxu0 %v6033_v38 }
  0xb2   : > { %1581 = vst.msk [vmem:[#allocation3 + $0x14] sm:$0xf] %vm1579_vm12, %v1486_v61  ;;  %v2979_v14 = vld [vmem:[#allocation2 + $0x24] sm:$0xf]  ;;  %v2677_v8 = vsel %vm6800_vm15, %v2675_v2, %v2676_v20  ;;  %v1283_v15 = vrot.slane %v1281_v63, 4  ;;  %6165 = vmatpush.bf16.msra.mxu1 %v6033_v38  ;;  %6166 = vmatpush.bf16.msra.mxu2 %v6033_v38  ;;  %v3038_v60 = vshrl.u32 %v6763_v31, 16 }
  0xb3   : > { %v1189_v24 = vrot.slane %v1188_v13, 4  ;;  %v1184_v54 = vsel %vm6282_vm8, %v1179_v51, %v1183_v49  ;;  %1016 = vst.msk [vmem:[#allocation3] sm:$0xf] %vm437_vm0, %v984_v58  ;;  %v3037_v26 = vsel %vm6282_vm8, %v3032_v5, %v6793_v43  ;;  %v3049_v21 = vshrl.u32 %v2979_v14, 16  ;;  %v6032_v22 = vld [vmem:[%s8369_s1] sm:$0xff]  ;;  %6167 = vmatpush.bf16.msra.mxu3 %v6033_v38 }
  0xb4   : > { %1580 = vst.msk [vmem:[#allocation3] sm:$0xf] %vm1579_vm12, %v1484_v3  ;;  %v3052_v19 = vshll.u32 %v2979_v14, 16  ;;  %v1284_v32 = vor.u32 %v1283_v15, %v6720_v27  ;;  %v6823_v41 = vld [vmem:[#allocation2 + $0x1c] sm:$0xf]  ;;  %v1516_v57 = vpop.permute.xlu0 %1515  ;;  %v3040_v3 = vrot.slane %v3038_v60, 4 }
  0xb5   : > { %v1194_v62 = vsel %vm6282_vm8, %v1189_v24, %v1193_v48  ;;  %1495 = vrot.lane.b32.xlu0 %v1184_v54, %s6196_s28  ;;  %1025 = vst.msk [vmem:[#allocation3 + $0xb4] sm:$0xf] %vm437_vm0, %v993_v29  ;;  %v3051_v40 = vrot.slane %v3049_v21, 4  ;;  %4648 = vmatpush.bf16.msra.mxu0 %v6032_v22  ;;  %v6825_v45 = vld [vmem:[#allocation2 + $0x28] sm:$0xf]  ;;  %v2680_v13 = vrot.slane %v6823_v41, 5 }
  0xb6   : > { %1497 = vrot.lane.b32.xlu1 %v1194_v62, %s6196_s28  ;;  %1589 = vst.msk [vmem:[#allocation3 + $0xb4] sm:$0xf] %vm1579_vm12, %v1502_v4  ;;  %v3054_v28 = vrot.slane %v3052_v19, 5  ;;  %6168 = vmatpush.bf16.msra.mxu1 %v6032_v22  ;;  %v1888_v47 = vld [vmem:[#allocation2 + $0x10] sm:$0xf]  ;;  %v1285_v17 = vrot.slane %v1284_v32, 4  ;;  %v3041_v21 = vor.u32 %v3040_v3, %v6793_v43 }
  0xb7   : > { %v1093_v23 = vld [vmem:[#allocation2 + $0xb4] sm:$0xf]  ;;  %6169 = vmatpush.bf16.msra.mxu2 %v6032_v22  ;;  %6170 = vmatpush.bf16.msra.mxu3 %v6032_v22  ;;  %v1887_v39 = vld [vmem:[#allocation2 + $0xc] sm:$0xf]  ;;  %v2580_v37 = vld [vmem:[#allocation2 + $0x20] sm:$0x1] }
  0xb8   : > { %v1460_v12 = vshrl.u32 %v1093_v23, 16  ;;  %v1463_v9 = vshll.u32 %v1093_v23, 16  ;;  %v1071_v30 = vld [vmem:[#allocation2 + $0x5c] sm:$0x1]  ;;  %v3055_v51 = vor.u32 %v3054_v28, %v3051_v40  ;;  %v3058_v0 = vshll.u32 %v6825_v45, 16  ;;  %v1534_v4 = vpop.permute.xlu1 %1533 }
  0xb9   : > { %v5954_v33 = vld [vmem:[#allocation3 + $0x10] sm:$0xf0]  ;;  %v1287_v34 = vshll.u32 %v1071_v30, 16  ;;  %v1008_v53 = vld [vmem:[#allocation2 + $0x90] sm:$0xf]  ;;  %v2682_v61 = vrot.slane %v2680_v13, 4 }
  0xba   : > { %v1462_v7 = vrot.slane %v1460_v12, 4  ;;  %v1465_v25 = vrot.slane %v1463_v9, 5  ;;  %v1000_v24 = vld [vmem:[#allocation2 + $0x60] sm:$0xf]  ;;  %1040 = vst.msk [vmem:[#allocation3 + $0x1e0] sm:$0xf] %vm437_vm0, %v1008_v53 }
  0xbb   : > { %v5470_v46 = vld [vmem:[#allocation3] sm:$0xf]  ;;  %v1289_v48 = vrot.slane %v1287_v34, 5  ;;  %1604 = vst.msk [vmem:[#allocation3 + $0x1e0] sm:$0xf] %vm1579_vm12, %v1532_v52  ;;  %v2683_v62 = vrot.slane %v2580_v37, 5  ;;  %v1520_v15 = vpop.permute.xlu2 %1519 }
  0xbc   : > { %v1466_v18 = vor.u32 %v1465_v25, %v1462_v7  ;;  %v5471_v49 = vor.u32 %v5954_v33, %v5470_v46  ;;  %v5550_v54 = vld [vmem:[#allocation3 + $0xa0] sm:$0xf]  ;;  %1032 = vst.msk [vmem:[#allocation3 + $0x140] sm:$0xf] %vm437_vm0, %v1000_v24  ;;  %v3056_v10 = vrot.slane %v3055_v51, 4  ;;  %v6841_v36 = vrot.slane %v3058_v0, 5 }
  0xbd   : > { %2785 = vrot.lane.b32.xlu0 %v2677_v8, %s6196_s28  ;;  %1596 = vst.msk [vmem:[#allocation3 + $0x140] sm:$0xf] %vm1579_vm12, %v1516_v57  ;;  %v1290_v58 = vsel %vm6282_vm8, %v1285_v17, %v1289_v48  ;;  %v2982_v63 = vld [vmem:[#allocation2 + $0x30] sm:$0xf]  ;;  %v2575_v2 = vld [vmem:[#allocation2 + $0xc] sm:$0xe]  ;;  %v2684_v31 = vsel %vm6800_vm15, %v2682_v61, %v2683_v62  ;;  %v1518_v8 = vpop.permute.xlu0 %1517 }
  0xbe   : > { %3408 = vrot.lane.b32.xlu1 %v3037_v26, %s6196_s28  ;;  %v1467_v42 = vrot.slane %v1466_v18, 4  ;;  %4649 = vmatmul.bf16.vlgmr.msra.gmra.mxu0 %v5471_v49  ;;  %v2978_v20 = vld [vmem:[#allocation2 + $0x20] sm:$0x1]  ;;  %v3061_v5 = vsel %vm6282_vm8, %v3056_v10, %v6841_v36  ;;  %v3073_v38 = vshrl.u32 %v2982_v63, 16  ;;  %v3076_v29 = vshll.u32 %v2982_v63, 16 }
  0xbf   : > { %v1009_v14 = vld [vmem:[#allocation2 + $0x94] sm:$0xf]  ;;  %v1001_v23 = vld [vmem:[#allocation2 + $0x64] sm:$0xf]  ;;  %v5436_v12 = vrot.slane %v2575_v2, 9  ;;  %v3044_v19 = vshll.u32 %v2978_v20, 16 }
  0xc0   : > { %v1472_v27 = vsel %vm6282_vm8, %v1467_v42, %v6742_v50  ;;  %v5974_v50 = vld [vmem:[#allocation3 + $0xb0] sm:$0xf0]  ;;  %v6852_v9 = vld [vmem:[#allocation2 + $0x28] sm:$0xf]  ;;  %1041 = vst.msk [vmem:[#allocation3 + $0x1f4] sm:$0xf] %vm437_vm0, %v1009_v14 }
  0xc1   : > { %1543 = vrot.lane.b32.xlu2 %v1472_v27, %s6196_s28  ;;  %v5551_v59 = vor.u32 %v5974_v50, %v5550_v54  ;;  %1605 = vst.msk [vmem:[#allocation3 + $0x1f4] sm:$0xf] %vm1579_vm12, %v1534_v4  ;;  %v1002_v26 = vld [vmem:[#allocation2 + $0x6c] sm:$0xf]  ;;  %v6859_v22 = vld [vmem:[#allocation2 + $0x34] sm:$0xf]  ;;  %v2674_v18 = vsel %vm6800_vm15, %v5436_v12, %v2673_v55  ;;  %v1536_v27 = vpop.permute.xlu1 %1535 }
  0xc2   : > { %1033 = vst.msk [vmem:[#allocation3 + $0x154] sm:$0xf] %vm437_vm0, %v1001_v23  ;;  %v3075_v7 = vrot.slane %v3073_v38, 4  ;;  %v3078_v25 = vrot.slane %v3076_v29, 5  ;;  %v2687_v30 = vrot.slane %v6852_v9, 5  ;;  %v3062_v34 = vshrl.u32 %v6825_v45, 16 }
  0xc3   : > { %4669 = vmatmul.bf16.vlgmr.msra.gmra.mxu1 %v5551_v59  ;;  %1597 = vst.msk [vmem:[#allocation3 + $0x154] sm:$0xf] %vm1579_vm12, %v1518_v8  ;;  %v2583_v32 = vld [vmem:[#allocation2 + $0x2c] sm:$0x1]  ;;  %v1890_v43 = vld [vmem:[#allocation2 + $0x1c] sm:$0xf] }
  0xc4   : > { %1034 = vst.msk [vmem:[#allocation3 + $0x168] sm:$0xf] %vm437_vm0, %v1002_v26  ;;  %v1889_v33 = vld [vmem:[#allocation2 + $0x18] sm:$0xf]  ;;  %v3042_v40 = vrot.slane %v3041_v21, 4  ;;  %v3046_v28 = vrot.slane %v3044_v19, 5  ;;  %v3079_v56 = vor.u32 %v3078_v25, %v3075_v7 }
  0xc5   : > { %1951 = vrot.lane.b32.xlu0 %v1887_v39, %s6196_s28  ;;  %1598 = vst.msk [vmem:[#allocation3 + $0x168] sm:$0xf] %vm1579_vm12, %v1520_v15  ;;  %v3082_v42 = vshll.u32 %v6859_v22, 16  ;;  %v2985_v46 = vld [vmem:[#allocation2 + $0x3c] sm:$0xf]  ;;  %v2689_v55 = vrot.slane %v2687_v30, 4 }
  0xc6   : > { %1953 = vrot.lane.b32.xlu1 %v1888_v47, %s6196_s28  ;;  %v2690_v47 = vrot.slane %v2583_v32, 5  ;;  %v1010_v49 = vld [vmem:[#allocation2 + $0x9c] sm:$0xf]  ;;  %v1003_v39 = vld [vmem:[#allocation2 + $0x70] sm:$0xf]  ;;  %v3097_v48 = vshrl.u32 %v2985_v46, 16  ;;  %v3047_v60 = vsel %vm6282_vm8, %v3042_v40, %v3046_v28 }
  0xc7   : > { %1042 = vst.msk [vmem:[#allocation3 + $0x208] sm:$0xf] %vm437_vm0, %v1010_v49  ;;  %v5710_v37 = vld [vmem:[#allocation3 + $0x1e0] sm:$0xf]  ;;  %v3100_v51 = vshll.u32 %v2985_v46, 16  ;;  %v3080_v54 = vrot.slane %v3079_v56, 4 }
  0xc8   : > { %v1522_v17 = vpop.permute.xlu0 %1521  ;;  %v6014_v45 = vld [vmem:[#allocation3 + $0x1f0] sm:$0xf0]  ;;  %1606 = vst.msk [vmem:[#allocation3 + $0x208] sm:$0xf] %vm1579_vm12, %v1536_v27  ;;  %v1011_v0 = vld [vmem:[#allocation2 + $0xa0] sm:$0xf]  ;;  %v2691_v2 = vsel %vm6800_vm15, %v2689_v55, %v2690_v47 }
  0xc9   : > { %1513 = vrot.lane.b32.xlu2 %v1290_v58, %s6196_s28  ;;  %v5711_v52 = vor.u32 %v6014_v45, %v5710_v37  ;;  %1035 = vst.msk [vmem:[#allocation3 + $0x17c] sm:$0xf] %vm437_vm0, %v1003_v39  ;;  %v5630_v57 = vld [vmem:[#allocation3 + $0x140] sm:$0xf]  ;;  %v6880_v50 = vrot.slane %v3082_v42, 5  ;;  %v3064_v62 = vrot.slane %v3062_v34, 4 }
  0xca   : > { %v5994_v24 = vld [vmem:[#allocation3 + $0x150] sm:$0xf0]  ;;  %1599 = vst.msk [vmem:[#allocation3 + $0x17c] sm:$0xf] %vm1579_vm12, %v1522_v17  ;;  %v2578_v61 = vld [vmem:[#allocation2 + $0x18] sm:$0xe] }
  0xcb   : > { %v5631_v59 = vor.u32 %v5994_v24, %v5630_v57  ;;  %4709 = vmatmul.bf16.vlgmr.msra.gmra.mxu3 %v5711_v52  ;;  %1043 = vst.msk [vmem:[#allocation3 + $0x21c] sm:$0xf] %vm437_vm0, %v1011_v0  ;;  %v2981_v10 = vld [vmem:[#allocation2 + $0x2c] sm:$0x1]  ;;  %v3099_v58 = vrot.slane %v3097_v48, 4  ;;  %v3102_v63 = vrot.slane %v3100_v51, 5  ;;  %v3085_v20 = vsel %vm6282_vm8, %v3080_v54, %v6880_v50 }
  0xcc   : > { %v994_v29 = vld [vmem:[#allocation2 + $0x3c] sm:$0xf]  ;;  %v5437_v14 = vrot.slane %v2578_v61, 9  ;;  %v3065_v4 = vor.u32 %v3064_v62, %v6841_v36  ;;  %v3068_v23 = vshll.u32 %v2981_v10, 16  ;;  %v986_v15 = vld [vmem:[#allocation2 + $0xc] sm:$0xf] }
  0xcd   : > { %2789 = vrot.lane.b32.xlu0 %v2684_v31, %s6196_s28  ;;  %4689 = vmatmul.bf16.vlgmr.msra.gmra.mxu2 %v5631_v59  ;;  %v6889_v31 = vld [vmem:[#allocation2 + $0x40] sm:$0xf]  ;;  %v3103_v8 = vor.u32 %v3102_v63, %v3099_v58  ;;  %v6901_v26 = vld [vmem:[#allocation2 + $0x34] sm:$0xf]  ;;  %v2586_v21 = vld [vmem:[#allocation2 + $0x38] sm:$0x1] }
  0xce   : > { %3412 = vrot.lane.b32.xlu1 %v3061_v5, %s6196_s28  ;;  %v995_v5 = vld [vmem:[#allocation2 + $0x40] sm:$0xf]  ;;  %v3106_v12 = vshll.u32 %v6889_v31, 16  ;;  %1026 = vst.msk [vmem:[#allocation3 + $0xc8] sm:$0xf] %vm437_vm0, %v994_v29  ;;  %v3086_v36 = vshrl.u32 %v6859_v22, 16  ;;  %v2681_v19 = vsel %vm6800_vm15, %v5437_v14, %v2680_v13 }
  0xcf   : > { %v1506_v3 = vpop.permute.xlu1 %1505  ;;  %1027 = vst.msk [vmem:[#allocation3 + $0xdc] sm:$0xf] %vm437_vm0, %v995_v5  ;;  %v3066_v7 = vrot.slane %v3065_v4, 4  ;;  %v3070_v25 = vrot.slane %v3068_v23, 5  ;;  %v1891_v32 = vld [vmem:[#allocation2 + $0x24] sm:$0xf] }
  0xd0   : > { %v1504_v38 = vpop.permute.xlu0 %1503  ;;  %1591 = vst.msk [vmem:[#allocation3 + $0xdc] sm:$0xf] %vm1579_vm12, %v1506_v3  ;;  %v2694_v34 = vrot.slane %v6901_v26, 5  ;;  %v2697_v40 = vrot.slane %v2586_v21, 5  ;;  %v2988_v22 = vld [vmem:[#allocation2 + $0x48] sm:$0xf] }
  0xd1   : > { %2783 = vrot.lane.b32.xlu2 %v2674_v18, %s6196_s28  ;;  %1590 = vst.msk [vmem:[#allocation3 + $0xc8] sm:$0xf] %vm1579_vm12, %v1504_v38  ;;  %v1892_v18 = vld [vmem:[#allocation2 + $0x28] sm:$0xf]  ;;  %v5999_v42 = vld [vmem:[#allocation3 + $0x178] sm:$0xf0]  ;;  %v3071_v59 = vsel %vm6282_vm8, %v3066_v7, %v3070_v25 }
  0xd2   : > { %v1538_v53 = vpop.permute.xlu2 %1537  ;;  %1018 = vst.msk [vmem:[#allocation3 + $0x28] sm:$0xf] %vm437_vm0, %v986_v15  ;;  %v5730_v41 = vld [vmem:[#allocation3 + $0x208] sm:$0xf]  ;;  %v6055_v13 = vld [vmem:[%s8369_s1 + $0xb8] sm:$0xff]  ;;  %v2696_v17 = vrot.slane %v2694_v34, 4 }
  0xd3   : > { %1607 = vst.msk [vmem:[#allocation3 + $0x21c] sm:$0xf] %vm1579_vm12, %v1538_v53  ;;  %v1004_v56 = vld [vmem:[#allocation2 + $0x78] sm:$0xf]  ;;  %v987_v27 = vld [vmem:[#allocation2 + $0x10] sm:$0xf]  ;;  %4819 = vmatpush.bf16.msrb.mxu2 %v6055_v13 }
  0xd4   : > { %v6063_v47 = vld [vmem:[%s8369_s1 + $0xf8] sm:$0xff]  ;;  %1036 = vst.msk [vmem:[#allocation3 + $0x190] sm:$0xf] %vm437_vm0, %v1004_v56  ;;  %v5650_v0 = vld [vmem:[#allocation3 + $0x168] sm:$0xf]  ;;  %v3121_v53 = vshrl.u32 %v2988_v22, 16  ;;  %v2698_v62 = vsel %vm6800_vm15, %v2696_v17, %v2697_v40 }
  0xd5   : > { %1955 = vrot.lane.b32.xlu0 %v1889_v33, %s6196_s28  ;;  %v6913_v33 = vrot.slane %v3106_v12, 5  ;;  %v1005_v39 = vld [vmem:[#allocation2 + $0x7c] sm:$0xf]  ;;  %1019 = vst.msk [vmem:[#allocation3 + $0x3c] sm:$0xf] %vm437_vm0, %v987_v27  ;;  %4908 = vmatpush.bf16.msrb.mxu3 %v6063_v47  ;;  %v3124_v57 = vshll.u32 %v2988_v22, 16  ;;  %v5651_v54 = vor.u32 %v5999_v42, %v5650_v0 }
  0xd6   : > { %1957 = vrot.lane.b32.xlu1 %v1890_v43, %s6196_s28  ;;  %v6911_v43 = vrot.slane %v3103_v8, 4  ;;  %v6047_v48 = vld [vmem:[%s8369_s1 + $0x78] sm:$0xff]  ;;  %v2581_v52 = vld [vmem:[#allocation2 + $0x24] sm:$0xe]  ;;  %1037 = vst.msk [vmem:[#allocation3 + $0x1a4] sm:$0xf] %vm437_vm0, %v1005_v39 }
  0xd7   : > { %v1524_v55 = vpop.permute.xlu1 %1523  ;;  %v5979_v37 = vld [vmem:[#allocation3 + $0xd8] sm:$0xf0]  ;;  %4730 = vmatpush.bf16.msrb.mxu1 %v6047_v48  ;;  %v3088_v61 = vrot.slane %v3086_v36, 4  ;;  %v5438_v10 = vrot.slane %v2581_v52, 9  ;;  %v6940_v58 = vld [vmem:[#allocation2 + $0x4c] sm:$0xf] }
  0xd8   : > { %1600 = vst.msk [vmem:[#allocation3 + $0x190] sm:$0xf] %vm1579_vm12, %v1524_v55  ;;  %v5570_v51 = vld [vmem:[#allocation3 + $0xc8] sm:$0xf]  ;;  %v3109_v63 = vsel %vm6282_vm8, %v6911_v43, %v6913_v33  ;;  %v3126_v3 = vrot.slane %v3124_v57, 5  ;;  %v6054_v38 = vld [vmem:[%s8369_s1 + $0xb0] sm:$0xff] }
  0xd9   : > { %3410 = vrot.lane.b32.xlu2 %v3047_v60, %s6196_s28  ;;  %v5571_v24 = vor.u32 %v5979_v37, %v5570_v51  ;;  %v2984_v60 = vld [vmem:[#allocation2 + $0x38] sm:$0x1]  ;;  %v1013_v29 = vld [vmem:[#allocation2 + $0xac] sm:$0xf]  ;;  %v1012_v4 = vld [vmem:[#allocation2 + $0xa8] sm:$0xf]  ;;  %v3089_v12 = vor.u32 %v3088_v61, %v6880_v50  ;;  %4820 = vmatpush.bf16.msrb.mxu2 %v6054_v38 }
  0xda   : > { %v6019_v46 = vld [vmem:[#allocation3 + $0x218] sm:$0xf0]  ;;  %v6067_v8 = vld [vmem:[%s8369_s1 + $0x118] sm:$0xff]  ;;  %v3130_v15 = vshll.u32 %v6940_v58, 16  ;;  %1045 = vst.msk [vmem:[#allocation3 + $0x244] sm:$0xf] %vm437_vm0, %v1013_v29 }
  0xdb   : > { %v5731_v45 = vor.u32 %v6019_v46, %v5730_v41  ;;  %4674 = vmatmul.bf16.gmra.mxu1 %v5571_v24  ;;  %v6062_v23 = vld [vmem:[%s8369_s1 + $0xf0] sm:$0xff]  ;;  %v996_v21 = vld [vmem:[#allocation2 + $0x48] sm:$0xf]  ;;  %1044 = vst.msk [vmem:[#allocation3 + $0x230] sm:$0xf] %vm437_vm0, %v1012_v4  ;;  %5001 = vmatpush.bf16.msrb.mxu0 %v6067_v8  ;;  %v3110_v57 = vshrl.u32 %v6889_v31, 16 }
  0xdc   : > { %v6046_v36 = vld [vmem:[%s8369_s1 + $0x70] sm:$0xff]  ;;  %4909 = vmatpush.bf16.msrb.mxu3 %v6062_v23  ;;  %v2589_v43 = vld [vmem:[#allocation2 + $0x44] sm:$0x1]  ;;  %1028 = vst.msk [vmem:[#allocation3 + $0xf0] sm:$0xf] %vm437_vm0, %v996_v21  ;;  %v6975_v46 = vrot.slane %v3130_v15, 5 }
  0xdd   : > { %2793 = vrot.lane.b32.xlu0 %v2691_v2, %s6196_s28  ;;  %4714 = vmatmul.bf16.gmra.mxu3 %v5731_v45  ;;  %v3092_v2 = vshll.u32 %v2984_v60, 16  ;;  %v1894_v40 = vld [vmem:[#allocation2 + $0x34] sm:$0xf]  ;;  %v1893_v22 = vld [vmem:[#allocation2 + $0x30] sm:$0xf]  ;;  %v2704_v9 = vrot.slane %v2589_v43, 5 }
  0xde   : > { %3416 = vrot.lane.b32.xlu1 %v3085_v20, %s6196_s28  ;;  %4694 = vmatmul.bf16.gmra.mxu2 %v5651_v54  ;;  %v3123_v20 = vrot.slane %v3121_v53, 4  ;;  %v988_v56 = vld [vmem:[#allocation2 + $0x18] sm:$0xf]  ;;  %v997_v47 = vld [vmem:[#allocation2 + $0x4c] sm:$0xf]  ;;  %v6052_v31 = vld [vmem:[%s8369_s1 + $0xa0] sm:$0xff] }
  0xdf   : > { %4731 = vmatpush.bf16.msrb.mxu1 %v6046_v36  ;;  %v3094_v42 = vrot.slane %v3092_v2, 5  ;;  %v5670_v55 = vld [vmem:[#allocation3 + $0x190] sm:$0xf]  ;;  %1020 = vst.msk [vmem:[#allocation3 + $0x50] sm:$0xf] %vm437_vm0, %v988_v56  ;;  %v6060_v4 = vld [vmem:[%s8369_s1 + $0xe0] sm:$0xff] }
  0xe0   : > { %v3127_v41 = vor.u32 %v3126_v3, %v3123_v20  ;;  %1029 = vst.msk [vmem:[#allocation3 + $0x104] sm:$0xf] %vm437_vm0, %v997_v47  ;;  %v6061_v27 = vld [vmem:[%s8369_s1 + $0xe8] sm:$0xff]  ;;  %v2991_v0 = vld [vmem:[#allocation2 + $0x54] sm:$0xf]  ;;  %v3112_v3 = vrot.slane %v3110_v57, 4 }
  0xe1   : > { %2787 = vrot.lane.b32.xlu2 %v2681_v19, %s6196_s28  ;;  %v1490_v49 = vpop.permute.xlu0 %1489  ;;  %v6045_v17 = vld [vmem:[%s8369_s1 + $0x68] sm:$0xff]  ;;  %4910 = vmatpush.bf16.msrb.mxu3 %v6061_v27  ;;  %v3145_v61 = vshrl.u32 %v2991_v0, 16  ;;  %v1006_v2 = vld [vmem:[#allocation2 + $0x84] sm:$0xf]  ;;  %v6066_v23 = vld [vmem:[%s8369_s1 + $0x110] sm:$0xff]  ;;  %vm4592_vm1 = vcmask 523264  }
  0xe2   : > { %1583 = vst.msk [vmem:[#allocation3 + $0x3c] sm:$0xf] %vm1579_vm12, %v1490_v49  ;;  %v989_v49 = vld [vmem:[#allocation2 + $0x1c] sm:$0xf]  ;;  %v3128_v37 = vrot.slane %v3127_v41, 4  ;;  %v6044_v15 = vld [vmem:[%s8369_s1 + $0x60] sm:$0xff]  ;;  %v3113_v36 = vor.u32 %v3112_v3, %v6913_v33  ;;  %5002 = vmatpush.bf16.msrb.mxu0 %v6066_v23 }
  0xe3   : > { %v1488_v28 = vpop.permute.xlu2 %1487  ;;  %1021 = vst.msk [vmem:[#allocation3 + $0x64] sm:$0xf] %vm437_vm0, %v989_v49  ;;  %4732 = vmatpush.bf16.msrb.mxu1 %v6045_v17  ;;  %v2987_v38 = vld [vmem:[#allocation2 + $0x44] sm:$0x1]  ;;  %v7012_v29 = vld [vmem:[#allocation2 + $0x4c] sm:$0xf] }
  0xe4   : > { %1582 = vst.msk [vmem:[#allocation3 + $0x28] sm:$0xf] %vm1579_vm12, %v1488_v28  ;;  %v3090_v28 = vrot.slane %v3089_v12, 4  ;;  %v3147_v8 = vrot.slane %v3145_v61, 4  ;;  %v1895_v43 = vld [vmem:[#allocation2 + $0x3c] sm:$0xf] }
  0xe5   : > { %1959 = vrot.lane.b32.xlu0 %v1891_v32, %s6196_s28  ;;  %v2688_v32 = vsel %vm6800_vm15, %v5438_v10, %v2687_v30  ;;  %v6053_v30 = vld [vmem:[%s8369_s1 + $0xa8] sm:$0xff]  ;;  %v3148_v10 = vshll.u32 %v2991_v0, 16  ;;  %1038 = vst.msk [vmem:[#allocation3 + $0x1b8] sm:$0xf] %vm437_vm0, %v1006_v2  ;;  %4911 = vmatpush.bf16.msrb.mxu3 %v6060_v4  ;;  %v6051_v33 = vld [vmem:[%s8369_s1 + $0x98] sm:$0xff]  ;;  %vm5320_vm2 = vcmask 1040384  }
  0xe6   : > { %1961 = vrot.lane.b32.xlu1 %v1892_v18, %s6196_s28  ;;  %v6966_v18 = vld [vmem:[#allocation2 + $0x40] sm:$0xf]  ;;  %4821 = vmatpush.bf16.msrb.mxu2 %v6053_v30  ;;  %v3095_v24 = vsel %vm6282_vm8, %v3090_v28, %v3094_v42  ;;  %v998_v28 = vld [vmem:[#allocation2 + $0x54] sm:$0xf]  ;;  %v3114_v42 = vrot.slane %v3113_v36, 4  ;;  %v3134_v30 = vshrl.u32 %v6940_v58, 16 }
  0xe7   : > { %v2701_v13 = vrot.slane %v6966_v18, 5  ;;  %v3150_v12 = vrot.slane %v3148_v10, 5  ;;  %4733 = vmatpush.bf16.msrb.mxu1 %v6044_v15  ;;  %1030 = vst.msk [vmem:[#allocation3 + $0x118] sm:$0xf] %vm437_vm0, %v998_v28  ;;  %v6059_v27 = vld [vmem:[%s8369_s1 + $0xd8] sm:$0xff] }
  0xe8   : > { %v6043_v58 = vld [vmem:[%s8369_s1 + $0x58] sm:$0xff]  ;;  %v991_v3 = vld [vmem:[#allocation2 + $0x28] sm:$0xf] }
  0xe9   : > { %3414 = vrot.lane.b32.xlu2 %v3071_v59, %s6196_s28  ;;  %v5959_v25 = vld [vmem:[#allocation3 + $0x38] sm:$0xf0]  ;;  %v2703_v45 = vrot.slane %v2701_v13, 4  ;;  %v2584_v59 = vld [vmem:[#allocation2 + $0x30] sm:$0xe]  ;;  %v3151_v26 = vor.u32 %v3150_v12, %v3147_v8  ;;  %4912 = vmatpush.bf16.msrb.mxu3 %v6059_v27 }
  0xea   : > { %v5439_v20 = vrot.slane %v2584_v59, 9  ;;  %4822 = vmatpush.bf16.msrb.mxu2 %v6052_v31  ;;  %1023 = vst.msk [vmem:[#allocation3 + $0x8c] sm:$0xf] %vm437_vm0, %v991_v3  ;;  %v7073_v12 = vld [vmem:[#allocation2 + $0x64] sm:$0xf]  ;;  %v6057_v3 = vld [vmem:[%s8369_s1 + $0xc8] sm:$0xff] }
  0xeb   : > { %v1526_v5 = vpop.permute.xlu2 %1525  ;;  %v5490_v7 = vld [vmem:[#allocation3 + $0x28] sm:$0xf]  ;;  %v2705_v60 = vsel %vm6800_vm15, %v2703_v45, %v2704_v9  ;;  %v999_v9 = vld [vmem:[#allocation2 + $0x58] sm:$0xf]  ;;  %4734 = vmatpush.bf16.msrb.mxu1 %v6043_v58  ;;  %v1897_v28 = vld [vmem:[#allocation2 + $0x48] sm:$0xf] }
  0xec   : > { %v1542_v14 = vpop.permute.xlu1 %1541  ;;  %1601 = vst.msk [vmem:[#allocation3 + $0x1a4] sm:$0xf] %vm1579_vm12, %v1526_v5  ;;  %v5491_v50 = vor.u32 %v5959_v25, %v5490_v7  ;;  %v1014_v5 = vld [vmem:[#allocation2 + $0xb4] sm:$0xf]  ;;  %v2695_v21 = vsel %vm6800_vm15, %v5439_v20, %v2694_v34  ;;  %v7030_v25 = vld [vmem:[#allocation2 + $0x58] sm:$0xf] }
  0xed   : > { %2797 = vrot.lane.b32.xlu0 %v2698_v62, %s6196_s28  ;;  %1609 = vst.msk [vmem:[#allocation3 + $0x244] sm:$0xf] %vm1579_vm12, %v1542_v14  ;;  %v3133_v62 = vsel %vm6282_vm8, %v3128_v37, %v6975_v46  ;;  %v3154_v34 = vshll.u32 %v7030_v25, 16  ;;  %v2994_v37 = vld [vmem:[#allocation2 + $0x60] sm:$0xf]  ;;  %v6050_v20 = vld [vmem:[%s8369_s1 + $0x90] sm:$0xff] }
  0xee   : > { %3420 = vrot.lane.b32.xlu1 %v3109_v63, %s6196_s28  ;;  %4654 = vmatmul.bf16.gmra.mxu0 %v5491_v50  ;;  %v1007_v63 = vld [vmem:[#allocation2 + $0x88] sm:$0xf]  ;;  %1046 = vst.msk [vmem:[#allocation3 + $0x258] sm:$0xf] %vm437_vm0, %v1014_v5  ;;  %v2708_v50 = vrot.slane %v7012_v29, 5  ;;  %v3169_v61 = vshrl.u32 %v2994_v37, 16 }
  0xef   : > { %v1540_v19 = vpop.permute.xlu0 %1539  ;;  %1039 = vst.msk [vmem:[#allocation3 + $0x1cc] sm:$0xf] %vm437_vm0, %v1007_v63  ;;  %4823 = vmatpush.bf16.msrb.mxu2 %v6051_v33  ;;  %v7053_v17 = vrot.slane %v3154_v34, 5  ;;  %v990_v5 = vld [vmem:[#allocation2 + $0x24] sm:$0xf] }
  0xf0   : > { %1608 = vst.msk [vmem:[#allocation3 + $0x230] sm:$0xf] %vm1579_vm12, %v1540_v19  ;;  %v3116_v19 = vshll.u32 %v2987_v38, 16  ;;  %v2710_v56 = vrot.slane %v2708_v50, 4  ;;  %v2080_v38 = vld [vmem:[#allocation2 + $0x10] sm:$0xf] }
  0xf1   : > { %2791 = vrot.lane.b32.xlu2 %v2688_v32, %s6196_s28  ;;  %v1896_v32 = vld [vmem:[#allocation2 + $0x40] sm:$0xf]  ;;  %1031 = vst.msk [vmem:[#allocation3 + $0x12c] sm:$0xf] %vm437_vm0, %v999_v9  ;;  %v7075_v15 = vld [vmem:[#allocation2 + $0x58] sm:$0xf] }
  0xf2   : > { %v3118_v41 = vrot.slane %v3116_v19, 5  ;;  %1022 = vst.msk [vmem:[#allocation3 + $0x78] sm:$0xf] %vm437_vm0, %v990_v5  ;;  %v3171_v36 = vrot.slane %v3169_v61, 4  ;;  %v7087_v34 = vld [vmem:[#allocation2 + $0x6c] sm:$0xf] }
  0xf3   : > { %v6004_v39 = vld [vmem:[#allocation3 + $0x1a0] sm:$0xf0]  ;;  %4824 = vmatpush.bf16.msrb.mxu2 %v6050_v20  ;;  %v2141_v9 = vshrl.u32 %v2080_v38, 16  ;;  %v2715_v18 = vrot.slane %v7075_v15, 5  ;;  %v6041_v5 = vld [vmem:[%s8369_s1 + $0x48] sm:$0xff] }
  0xf4   : > { %v6024_v51 = vld [vmem:[#allocation3 + $0x240] sm:$0xf0]  ;;  %v5671_v52 = vor.u32 %v6004_v39, %v5670_v55  ;;  %v3152_v39 = vrot.slane %v3151_v26, 4  ;;  %v3119_v45 = vsel %vm6282_vm8, %v3114_v42, %v3118_v41 }
  0xf5   : > { %1963 = vrot.lane.b32.xlu0 %v1893_v22, %s6196_s28  ;;  %v1015_v22 = vld [vmem:[#allocation2 + $0xb8] sm:$0xf]  ;;  %v7085_v26 = vld [vmem:[#allocation2 + $0x5c] sm:$0x1] }
  0xf6   : > { %1965 = vrot.lane.b32.xlu1 %v1894_v40, %s6196_s28  ;;  %v1492_v48 = vpop.permute.xlu1 %1491  ;;  %4699 = vmatmul.bf16.gmra.mxu2 %v5671_v52  ;;  %v2592_v40 = vld [vmem:[#allocation2 + $0x50] sm:$0x1]  ;;  %1047 = vst.msk [vmem:[#allocation3 + $0x26c] sm:$0xf] %vm437_vm0, %v1015_v22  ;;  %v3157_v63 = vsel %vm6282_vm8, %v3152_v39, %v7053_v17  ;;  %v2718_v39 = vrot.slane %v7085_v26, 5 }
  0xf7   : > { %1584 = vst.msk [vmem:[#allocation3 + $0x50] sm:$0xf] %vm1579_vm12, %v1492_v48  ;;  %v5750_v53 = vld [vmem:[#allocation3 + $0x230] sm:$0xf]  ;;  %v2711_v55 = vrot.slane %v2592_v40, 5 }
  0xf8   : > { %v5751_v54 = vor.u32 %v6024_v51, %v5750_v53  ;;  %v2587_v48 = vld [vmem:[#allocation2 + $0x3c] sm:$0xe]  ;;  %v2990_v51 = vld [vmem:[#allocation2 + $0x50] sm:$0x1]  ;;  %v3158_v53 = vshrl.u32 %v7030_v25, 16 }
  0xf9   : > { %3418 = vrot.lane.b32.xlu2 %v3095_v24, %s6196_s28  ;;  %v2712_v57 = vsel %vm6800_vm15, %v2710_v56, %v2711_v55  ;;  %v5440_v2 = vrot.slane %v2587_v48, 9  ;;  %v3140_v8 = vshll.u32 %v2990_v51, 16  ;;  %v1898_v56 = vld [vmem:[#allocation2 + $0x4c] sm:$0xf]  ;;  %v2081_v48 = vld [vmem:[#allocation2 + $0x14] sm:$0x1] }
  0xfa   : > { %4719 = vmatmul.bf16.gmra.mxu3 %v5751_v54  ;;  %v3136_v54 = vrot.slane %v3134_v30, 4  ;;  %v6042_v30 = vld [vmem:[%s8369_s1 + $0x50] sm:$0xff]  ;;  %v2913_v61 = vld [vmem:[#allocation2 + $0x1c] sm:$0xf]  ;;  %v1612_v26 = vld [vmem:[#allocation2] sm:$0xe] }
  0xfb   : > { %v2702_v33 = vsel %vm6800_vm15, %v5440_v2, %v2701_v13  ;;  %v3178_v13 = vshll.u32 %v7073_v12, 16  ;;  %4735 = vmatpush.bf16.msrb.mxu1 %v6042_v30  ;;  %2945 = vst.msk [vmem:[#allocation3 + $0x20] sm:$0xf] %vm437_vm0, %v2913_v61  ;;  %v7153_v30 = vld [vmem:[#allocation2 + $0x64] sm:$0xf] }
  0xfc   : > { %v3137_v23 = vor.u32 %v3136_v54, %v6975_v46  ;;  %v6065_v46 = vld [vmem:[%s8369_s1 + $0x108] sm:$0xff] }
  0xfd   : > { %2801 = vrot.lane.b32.xlu0 %v2705_v60, %s6196_s28  ;;  %v2079_v60 = vld [vmem:[#allocation2 + $0xc] sm:$0xf]  ;;  %5003 = vmatpush.bf16.msrb.mxu0 %v6065_v46 }
  0xfe   : > { %3424 = vrot.lane.b32.xlu1 %v3133_v62, %s6196_s28  ;;  %v3172_v62 = vshll.u32 %v2994_v37, 16  ;;  %v2128_v10 = vshrl.u32 %v2079_v60, 16  ;;  %v2131_v31 = vshll.u32 %v2079_v60, 16  ;;  %v5510_v40 = vld [vmem:[#allocation3 + $0x50] sm:$0xf]  ;;  %v3138_v55 = vrot.slane %v3137_v23, 4 }
  0xff   : > { %v1510_v14 = vpop.permute.xlu0 %1509  ;;  %v7099_v37 = vld [vmem:[#allocation2 + $0x48] sm:$0xe]  ;;  %v2147_v60 = vshll.u32 %v2081_v48, 16  ;;  %v3160_v23 = vrot.slane %v3158_v53, 4  ;;  %4736 = vmatpush.bf16.msrb.mxu1 %v6041_v5 }
 0x100   : > { %1593 = vst.msk [vmem:[#allocation3 + $0x104] sm:$0xf] %vm1579_vm12, %v1510_v14  ;;  %v2130_v14 = vrot.slane %v2128_v10, 4  ;;  %v2133_v4 = vrot.slane %v2131_v31, 5  ;;  %v3174_v19 = vrot.slane %v3172_v62, 5  ;;  %v2717_v62 = vrot.slane %v2715_v18, 4 }
 0x101   : > { %v1508_v7 = vpop.permute.xlu2 %1507  ;;  %2795 = vrot.lane.b32.xlu2 %v2695_v21, %s6196_s28  ;;  %v2137_v21 = vshll.u32 %v2080_v38, 16  ;;  %v7116_v10 = vld [vmem:[#allocation2 + $0x70] sm:$0xf]  ;;  %v3196_v31 = vshll.u32 %v7087_v34, 16  ;;  %v2149_v20 = vrot.slane %v2147_v60, 5  ;;  %v2722_v60 = vrot.slane %v7153_v30, 5 }
 0x102   : > { %1592 = vst.msk [vmem:[#allocation3 + $0xf0] sm:$0xf] %vm1579_vm12, %v1508_v7  ;;  %v3175_v51 = vor.u32 %v3174_v19, %v3171_v36  ;;  %v3202_v46 = vshll.u32 %v7116_v10, 16 }
 0x103   : > { %v2139_v41 = vrot.slane %v2137_v21, 5 }
 0x104   : > { %v3176_v38 = vrot.slane %v3175_v51, 4  ;;  %v6064_v51 = vld [vmem:[%s8369_s1 + $0x100] sm:$0xff]  ;;  %v7185_v29 = vrot.slane %v3202_v46, 5 }
 0x105   : > { %1967 = vrot.lane.b32.xlu0 %v1895_v43, %s6196_s28  ;;  %v6058_v43 = vld [vmem:[%s8369_s1 + $0xd0] sm:$0xff]  ;;  %5004 = vmatpush.bf16.msrb.mxu0 %v6064_v51 }
 0x106   : > { %1969 = vrot.lane.b32.xlu1 %v1896_v32, %s6196_s28  ;;  %v2134_v32 = vor.u32 %v2133_v4, %v2130_v14  ;;  %4913 = vmatpush.bf16.msrb.mxu3 %v6058_v43  ;;  %v7129_v14 = vrot.slane %v3178_v13, 5  ;;  %v5441_v4 = vrot.slane %v7099_v37, 9  ;;  %v3198_v43 = vrot.slane %v3196_v31, 5  ;;  %v7162_v37 = vld [vmem:[#allocation2 + $0x1c] sm:$0xf] }
 0x107   : > { %v1528_v47 = vpop.permute.xlu0 %1527  ;;  %v5984_v49 = vld [vmem:[#allocation3 + $0x100] sm:$0xf0]  ;;  %v1899_v31 = vld [vmem:[#allocation2 + $0x54] sm:$0xf] }
 0x108   : > { %1602 = vst.msk [vmem:[#allocation3 + $0x1b8] sm:$0xf] %vm1579_vm12, %v1528_v47  ;;  %v1530_v0 = vpop.permute.xlu1 %1529  ;;  %v2135_v42 = vrot.slane %v2134_v32, 4  ;;  %v3142_v47 = vrot.slane %v3140_v8, 5  ;;  %v1613_v8 = vld [vmem:[#allocation2 + $0x4] sm:$0xf]  ;;  %v2719_v32 = vsel %vm6800_vm15, %v2717_v62, %v2718_v39 }
 0x109   : > { %v5590_v52 = vld [vmem:[#allocation3 + $0xf0] sm:$0xf]  ;;  %v1494_v24 = vpop.permute.xlu2 %1493  ;;  %1603 = vst.msk [vmem:[#allocation3 + $0x1cc] sm:$0xf] %vm1579_vm12, %v1530_v0  ;;  %3422 = vrot.lane.b32.xlu2 %v3119_v45, %s6196_s28  ;;  %v7104_v0 = vld [vmem:[#allocation2 + $0x5c] sm:$0x1] }
 0x10a   : > { %v5591_v59 = vor.u32 %v5984_v49, %v5590_v52  ;;  %1585 = vst.msk [vmem:[#allocation3 + $0x64] sm:$0xf] %vm1579_vm12, %v1494_v24  ;;  %v2140_v45 = vsel %vm6282_vm8, %v2135_v42, %v2139_v41  ;;  %v3193_v52 = vshrl.u32 %v7087_v34, 16  ;;  %v2912_v24 = vld [vmem:[#allocation2 + $0x18] sm:$0xf]  ;;  %v3164_v21 = vshll.u32 %v7104_v0, 16  ;;  %4914 = vmatpush.bf16.msrb.mxu3 %v6057_v3 }
 0x10b   : > { %2543 = vst.msk [vmem:[#allocation3 + $0x8] sm:$0xf] %vm437_vm0, %v2140_v45  ;;  %v6048_v42 = vld [vmem:[%s8369_s1 + $0x80] sm:$0xff]  ;;  %v3182_v0 = vshrl.u32 %v7073_v12, 16  ;;  %v1900_v62 = vld [vmem:[#allocation2 + $0x58] sm:$0xf] }
 0x10c   : > { %4679 = vmatmul.bf16.gmra.mxu1 %v5591_v59  ;;  %2944 = vst.msk [vmem:[#allocation3 + $0xc] sm:$0xf] %vm437_vm0, %v2912_v24  ;;  %v2143_v59 = vrot.slane %v2141_v9, 4  ;;  %v7135_v36 = vrot.slane %v3193_v52, 4  ;;  %v2083_v9 = vld [vmem:[#allocation2 + $0x1c] sm:$0xf] }
 0x10d   : > { %2805 = vrot.lane.b32.xlu0 %v2712_v57, %s6196_s28  ;;  %v6049_v57 = vld [vmem:[%s8369_s1 + $0x88] sm:$0xff]  ;;  %v2161_v13 = vshll.u32 %v2083_v9, 16  ;;  %v2165_v39 = vshrl.u32 %v2083_v9, 16  ;;  %v3634_v3 = vrot.slane %v7162_v37, 5 }
 0x10e   : > { %3428 = vrot.lane.b32.xlu1 %v3157_v63, %s6196_s28  ;;  %4825 = vmatpush.bf16.msrb.mxu2 %v6049_v57  ;;  %v3143_v63 = vsel %vm6282_vm8, %v3138_v55, %v3142_v47  ;;  %v2144_v2 = vor.u32 %v2143_v59, %v2139_v41  ;;  %v6056_v41 = vld [vmem:[%s8369_s1 + $0xc0] sm:$0xff]  ;;  %v3199_v57 = vor.u32 %v3198_v43, %v7135_v36  ;;  %v7174_v24 = vld [vmem:[#allocation2 + $0x68] sm:$0x1]  ;;  %v3000_v36 = vld [vmem:[#allocation2 + $0x78] sm:$0xf] }
 0x10f   : > { %v5690_v7 = vld [vmem:[#allocation3 + $0x1b8] sm:$0xf]  ;;  %4915 = vmatpush.bf16.msrb.mxu3 %v6056_v41  ;;  %v2709_v59 = vsel %vm6800_vm15, %v5441_v4, %v2708_v50  ;;  %v2167_v12 = vrot.slane %v2165_v39, 4  ;;  %v2725_v50 = vrot.slane %v7174_v24, 5  ;;  %v3184_v39 = vrot.slane %v3182_v0, 4 }
 0x110   : > { %v6009_v22 = vld [vmem:[#allocation3 + $0x1c8] sm:$0xf0]  ;;  %v2145_v19 = vrot.slane %v2144_v2, 4  ;;  %v3166_v2 = vrot.slane %v3164_v21, 5  ;;  %v2724_v21 = vrot.slane %v2722_v60, 4 }
 0x111   : > { %v5964_v49 = vld [vmem:[#allocation3 + $0x60] sm:$0xf0]  ;;  %v5691_v27 = vor.u32 %v6009_v22, %v5690_v7  ;;  %2799 = vrot.lane.b32.xlu2 %v2702_v33, %s6196_s28  ;;  %v1713_v7 = vrot.slane %v1613_v8, 5  ;;  %v5420_v33 = vrot.slane %v1612_v26, 9  ;;  %v3181_v22 = vsel %vm6282_vm8, %v3176_v38, %v7129_v14  ;;  %v2084_v38 = vld [vmem:[#allocation2 + $0x20] sm:$0x1] }
 0x112   : > { %v5511_v58 = vor.u32 %v5964_v49, %v5510_v40  ;;  %v1614_v40 = vld [vmem:[#allocation2 + $0x8] sm:$0x1]  ;;  %v2150_v25 = vsel %vm6282_vm8, %v2145_v19, %v2149_v20  ;;  %4826 = vmatpush.bf16.msrb.mxu2 %v6048_v42  ;;  %v3206_v20 = vshrl.u32 %v7116_v10, 16  ;;  %v7189_v8 = vld [vmem:[#allocation2 + $0x54] sm:$0xe] }
 0x113   : > { %4704 = vmatmul.bf16.gmra.mxu2 %v5691_v27  ;;  %v1715_v53 = vrot.slane %v1713_v7, 4  ;;  %v1716_v34 = vrot.slane %v1614_v40, 5  ;;  %2544 = vst.msk [vmem:[#allocation3 + $0x1c] sm:$0xf] %vm437_vm0, %v2150_v25  ;;  %v1714_v55 = vsel %vm6800_vm15, %v5420_v33, %v1713_v7  ;;  %v2914_v19 = vld [vmem:[#allocation2 + $0x24] sm:$0xf] }
 0x114   : > { %4659 = vmatmul.bf16.gmra.mxu0 %v5511_v58  ;;  %v3161_v58 = vor.u32 %v3160_v23, %v7053_v17  ;;  %v6040_v17 = vld [vmem:[%s8369_s1 + $0x40] sm:$0xff]  ;;  %1855 = vst.msk [vmem:[#allocation3 + $0x4] sm:$0xf] %vm437_vm0, %v1714_v55  ;;  %v3200_v23 = vrot.slane %v3199_v57, 4  ;;  %v2171_v7 = vshll.u32 %v2084_v38, 16 }
 0x115   : > { %v1512_v54 = vpop.permute.xlu1 %1511  ;;  %1971 = vrot.lane.b32.xlu0 %v1897_v28, %s6196_s28  ;;  %v2082_v28 = vld [vmem:[#allocation2 + $0x18] sm:$0xf]  ;;  %4737 = vmatpush.bf16.msrb.mxu1 %v6040_v17  ;;  %2946 = vst.msk [vmem:[#allocation3 + $0x34] sm:$0xf] %vm437_vm0, %v2914_v19  ;;  %v2915_v40 = vld [vmem:[#allocation2 + $0x28] sm:$0xf]  ;;  %v2726_v17 = vsel %vm6800_vm15, %v2724_v21, %v2725_v50  ;;  %v3185_v19 = vor.u32 %v3184_v39, %v7129_v14 }
 0x116   : > { %1594 = vst.msk [vmem:[#allocation3 + $0x118] sm:$0xf] %vm1579_vm12, %v1512_v54  ;;  %1973 = vrot.lane.b32.xlu1 %v1898_v56, %s6196_s28  ;;  %v1717_v56 = vsel %vm6800_vm15, %v1715_v53, %v1716_v34  ;;  %v2152_v47 = vshrl.u32 %v2082_v28, 16  ;;  %v2155_v49 = vshll.u32 %v2082_v28, 16  ;;  %v2163_v54 = vrot.slane %v2161_v13, 5 }
 0x117   : > { %1856 = vst.msk [vmem:[#allocation3 + $0x18] sm:$0xf] %vm437_vm0, %v1717_v56  ;;  %v2173_v53 = vrot.slane %v2171_v7, 5  ;;  %v3636_v34 = vrot.slane %v3634_v3, 4  ;;  %v3536_v33 = vld [vmem:[#allocation2 + $0x18] sm:$0xe]  ;;  %v3205_v0 = vsel %vm6282_vm8, %v3200_v23, %v7185_v29 }
 0x118   : > { %v2154_v45 = vrot.slane %v2152_v47, 4  ;;  %v2157_v48 = vrot.slane %v2155_v49, 5  ;;  %v2168_v4 = vor.u32 %v2167_v12, %v2163_v54  ;;  %v3538_v28 = vld [vmem:[#allocation2 + $0x20] sm:$0x1]  ;;  %2947 = vst.msk [vmem:[#allocation3 + $0x48] sm:$0xf] %vm437_vm0, %v2915_v40 }
 0x119   : > { %3426 = vrot.lane.b32.xlu2 %v3143_v63, %s6196_s28  ;;  %v3162_v63 = vrot.slane %v3161_v58, 4  ;;  %v5452_v56 = vrot.slane %v3536_v33, 9  ;;  %v3637_v55 = vrot.slane %v3538_v28, 5  ;;  %v3217_v58 = vshrl.u32 %v3000_v36, 16  ;;  %v7222_v57 = vld [vmem:[#allocation2 + $0x7c] sm:$0xf] }
 0x11a   : > { %v2158_v61 = vor.u32 %v2157_v48, %v2154_v45  ;;  %v2169_v46 = vrot.slane %v2168_v4, 4  ;;  %v3220_v13 = vshll.u32 %v3000_v36, 16  ;;  %v7224_v24 = vld [vmem:[#allocation2 + $0x70] sm:$0xf]  ;;  %v2086_v4 = vld [vmem:[#allocation2 + $0x28] sm:$0xf] }
 0x11b   : > { %v1544_v27 = vpop.permute.xlu2 %1543  ;;  %v3635_v45 = vsel %vm6800_vm15, %v5452_v56, %v3634_v3  ;;  %v3638_v48 = vsel %vm6800_vm15, %v3636_v34, %v3637_v55  ;;  %v2085_v3 = vld [vmem:[#allocation2 + $0x24] sm:$0xf]  ;;  %v2601_v7 = vld [vmem:[#allocation2 + $0x74] sm:$0x1]  ;;  %v3226_v40 = vshll.u32 %v7222_v57, 16  ;;  %v2185_v34 = vshll.u32 %v2086_v4, 16 }
 0x11c   : > { %1610 = vst.msk [vmem:[#allocation3 + $0x258] sm:$0xf] %vm1579_vm12, %v1544_v27  ;;  %v2159_v5 = vrot.slane %v2158_v61, 4  ;;  %v2174_v9 = vsel %vm6282_vm8, %v2169_v46, %v2173_v53  ;;  %v5442_v27 = vrot.slane %v7189_v8, 9  ;;  %v7229_v61 = vrot.slane %v3220_v13, 5 }
 0x11d   : > { %2809 = vrot.lane.b32.xlu0 %v2719_v32, %s6196_s28  ;;  %v7193_v32 = vld [vmem:[#allocation2 + $0x68] sm:$0x1]  ;;  %v5610_v51 = vld [vmem:[#allocation3 + $0x118] sm:$0xf]  ;;  %2546 = vst.msk [vmem:[#allocation3 + $0x44] sm:$0xf] %vm437_vm0, %v2174_v9 }
 0x11e   : > { %3432 = vrot.lane.b32.xlu1 %v3181_v22, %s6196_s28  ;;  %v2164_v43 = vsel %vm6282_vm8, %v2159_v5, %v2163_v54  ;;  %v3167_v22 = vsel %vm6282_vm8, %v3162_v63, %v3166_v2  ;;  %v3188_v37 = vshll.u32 %v7193_v32, 16  ;;  %3776 = vst.msk [vmem:[#allocation3 + $0x10] sm:$0xf] %vm437_vm0, %v3635_v45  ;;  %v1616_v54 = vld [vmem:[#allocation2 + $0x10] sm:$0xf]  ;;  %v2716_v23 = vsel %vm6800_vm15, %v5442_v27, %v2715_v18 }
 0x11f   : > { %v1546_v52 = vpop.permute.xlu0 %1545  ;;  %2545 = vst.msk [vmem:[#allocation3 + $0x30] sm:$0xf] %vm437_vm0, %v2164_v43  ;;  %v1615_v2 = vld [vmem:[#allocation2 + $0xc] sm:$0xe]  ;;  %v2176_v21 = vshrl.u32 %v2085_v3, 16  ;;  %v2179_v32 = vshll.u32 %v2085_v3, 16 }
 0x120   : > { %1611 = vst.msk [vmem:[#allocation3 + $0x26c] sm:$0xf] %vm1579_vm12, %v1546_v52  ;;  %v1617_v52 = vld [vmem:[#allocation2 + $0x14] sm:$0x1]  ;;  %v5421_v38 = vrot.slane %v1615_v2, 9  ;;  %v3186_v56 = vrot.slane %v3185_v19, 4 }
 0x121   : > { %2803 = vrot.lane.b32.xlu2 %v2709_v59, %s6196_s28  ;;  %v7227_v59 = vrot.slane %v3217_v58, 4  ;;  %3777 = vst.msk [vmem:[#allocation3 + $0x24] sm:$0xf] %vm437_vm0, %v3638_v48  ;;  %v1723_v12 = vrot.slane %v1617_v52, 5  ;;  %v2181_v53 = vrot.slane %v2179_v32, 5  ;;  %v7255_v55 = vrot.slane %v3226_v40, 5 }
 0x122   : > { %v1902_v33 = vld [vmem:[#allocation2 + $0x64] sm:$0xf]  ;;  %v1901_v28 = vld [vmem:[#allocation2 + $0x60] sm:$0xf]  ;;  %v2189_v45 = vshrl.u32 %v2086_v4, 16 }
 0x123   : > { %v1514_v26 = vpop.permute.xlu2 %1513  ;;  %v5770_v25 = vld [vmem:[#allocation3 + $0x258] sm:$0xf]  ;;  %v3003_v27 = vld [vmem:[#allocation2 + $0x84] sm:$0xf]  ;;  %v2087_v3 = vld [vmem:[#allocation2 + $0x2c] sm:$0x1] }
 0x124   : > { %1595 = vst.msk [vmem:[#allocation3 + $0x12c] sm:$0xf] %vm1579_vm12, %v1514_v26  ;;  %v2729_v26 = vrot.slane %v7224_v24, 5  ;;  %v2916_v2 = vld [vmem:[#allocation2 + $0x30] sm:$0xf] }
 0x125   : > { %1975 = vrot.lane.b32.xlu0 %v1899_v31, %s6196_s28  ;;  %v3539_v19 = vld [vmem:[#allocation2 + $0x24] sm:$0xe]  ;;  %2948 = vst.msk [vmem:[#allocation3 + $0x5c] sm:$0xf] %vm437_vm0, %v2916_v2  ;;  %v3541_v40 = vld [vmem:[#allocation2 + $0x2c] sm:$0x1] }
 0x126   : > { %1977 = vrot.lane.b32.xlu1 %v1900_v62, %s6196_s28  ;;  %v1720_v62 = vrot.slane %v1616_v54, 5  ;;  %v2731_v13 = vrot.slane %v2729_v26, 4 }
 0x127   : > { %v1496_v42 = vpop.permute.xlu0 %1495  ;;  %v6029_v41 = vld [vmem:[#allocation3 + $0x268] sm:$0xf0] }
 0x128   : > { %v1498_v47 = vpop.permute.xlu1 %1497  ;;  %1586 = vst.msk [vmem:[#allocation3 + $0x78] sm:$0xf] %vm1579_vm12, %v1496_v42  ;;  %v5771_v49 = vor.u32 %v6029_v41, %v5770_v25  ;;  %v1722_v5 = vrot.slane %v1720_v62, 4  ;;  %v1721_v18 = vsel %vm6800_vm15, %v5421_v38, %v1720_v62  ;;  %v2178_v25 = vrot.slane %v2176_v21, 4  ;;  %v7252_v41 = vld [vmem:[#allocation2 + $0x60] sm:$0xe] }
 0x129   : > { %1587 = vst.msk [vmem:[#allocation3 + $0x8c] sm:$0xf] %vm1579_vm12, %v1498_v47  ;;  %3430 = vrot.lane.b32.xlu2 %v3167_v22, %s6196_s28  ;;  %v3190_v22 = vrot.slane %v3188_v37, 5  ;;  %v3223_v42 = vor.u32 %v7229_v61, %v7227_v59  ;;  %v3230_v47 = vshrl.u32 %v7222_v57, 16  ;;  %v2187_v37 = vrot.slane %v2185_v34, 5 }
 0x12a   : > { %4724 = vmatmul.bf16.gmra.mxu3 %v5771_v49  ;;  %v1724_v15 = vsel %vm6800_vm15, %v1722_v5, %v1723_v12  ;;  %1857 = vst.msk [vmem:[#allocation3 + $0x2c] sm:$0xf] %vm437_vm0, %v1721_v18  ;;  %v2182_v9 = vor.u32 %v2181_v53, %v2178_v25  ;;  %v2732_v49 = vrot.slane %v2601_v7, 5  ;;  %v5443_v48 = vrot.slane %v7252_v41, 9  ;;  %v2917_v5 = vld [vmem:[#allocation2 + $0x34] sm:$0xf] }
 0x12b   : > { %v2784_v31 = vpop.permute.xlu2 %2783  ;;  %v5989_v63 = vld [vmem:[#allocation3 + $0x128] sm:$0xf0]  ;;  %1858 = vst.msk [vmem:[#allocation3 + $0x40] sm:$0xf] %vm437_vm0, %v1724_v15  ;;  %v3224_v59 = vrot.slane %v3223_v42, 4  ;;  %v3241_v12 = vshrl.u32 %v3003_v27, 16  ;;  %v3191_v62 = vsel %vm6282_vm8, %v3186_v56, %v3190_v22 }
 0x12c   : > { %2879 = vst.msk [vmem:[#allocation3 + $0x8] sm:$0xf] %vm1579_vm12, %v2784_v31  ;;  %v5611_v50 = vor.u32 %v5989_v63, %v5610_v51  ;;  %v2183_v39 = vrot.slane %v2182_v9, 4  ;;  %v2999_v51 = vld [vmem:[#allocation2 + $0x74] sm:$0x1]  ;;  %v2733_v38 = vsel %vm6800_vm15, %v2731_v13, %v2732_v49  ;;  %v5453_v18 = vrot.slane %v3539_v19, 9 }
 0x12d   : > { %2813 = vrot.lane.b32.xlu0 %v2726_v17, %s6196_s28  ;;  %v3208_v17 = vrot.slane %v3206_v20, 4  ;;  %v3244_v20 = vshll.u32 %v3003_v27, 16  ;;  %v3229_v7 = vsel %vm6282_vm8, %v3224_v59, %v7255_v55  ;;  %v5486_v21 = vld [vmem:[#allocation3 + $0x10] sm:$0xf]  ;;  %v5956_v32 = vld [vmem:[#allocation3 + $0x20] sm:$0xf0]  ;;  %v2723_v49 = vsel %vm6800_vm15, %v5443_v48, %v2722_v60 }
 0x12e   : > { %3436 = vrot.lane.b32.xlu1 %v3205_v0, %s6196_s28  ;;  %4684 = vmatmul.bf16.gmra.mxu1 %v5611_v50  ;;  %v2188_v61 = vsel %vm6282_vm8, %v2183_v39, %v2187_v37  ;;  %v2191_v50 = vrot.slane %v2189_v45, 4  ;;  %2949 = vst.msk [vmem:[#allocation3 + $0x70] sm:$0xf] %vm437_vm0, %v2917_v5  ;;  %v3644_v25 = vrot.slane %v3541_v40, 5  ;;  %v5487_v30 = vor.u32 %v5956_v32, %v5486_v21  ;;  %v1904_v59 = vld [vmem:[#allocation2 + $0x70] sm:$0xf] }
 0x12f   : > { %v2786_v8 = vpop.permute.xlu0 %2785  ;;  %v5530_v36 = vld [vmem:[#allocation3 + $0x78] sm:$0xf]  ;;  %v3209_v4 = vor.u32 %v3208_v17, %v7185_v29  ;;  %2547 = vst.msk [vmem:[#allocation3 + $0x58] sm:$0xf] %vm437_vm0, %v2188_v61  ;;  %v1903_v17 = vld [vmem:[#allocation2 + $0x6c] sm:$0xf] }
 0x130   : > { %v3409_v43 = vpop.permute.xlu1 %3408  ;;  %2880 = vst.msk [vmem:[#allocation3 + $0x1c] sm:$0xf] %vm1579_vm12, %v2786_v8  ;;  %v5969_v46 = vld [vmem:[#allocation3 + $0x88] sm:$0xf0]  ;;  %v7276_v8 = vld [vmem:[#allocation2 + $0x88] sm:$0xf]  ;;  %v2192_v29 = vor.u32 %v2191_v50, %v2187_v37 }
 0x131   : > { %3504 = vst.msk [vmem:[#allocation3 + $0xc] sm:$0xf] %vm1579_vm12, %v3409_v43  ;;  %v5531_v14 = vor.u32 %v5969_v46, %v5530_v36  ;;  %2807 = vrot.lane.b32.xlu2 %v2716_v23, %s6196_s28  ;;  %v3212_v23 = vshll.u32 %v2999_v51, 16  ;;  %v2195_v36 = vshll.u32 %v2087_v3, 16  ;;  %v7282_v43 = vld [vmem:[#allocation2 + $0x7c] sm:$0xf] }
 0x132   : > { %v3540_v46 = vld [vmem:[#allocation2 + $0x28] sm:$0xf]  ;;  %v2193_v22 = vrot.slane %v2192_v29, 4  ;;  %v7289_v41 = vrot.slane %v3209_v4, 4  ;;  %v3250_v39 = vshll.u32 %v7276_v8, 16  ;;  %v2736_v60 = vrot.slane %v7282_v43, 5 }
 0x133   : > { %4664 = vmatmul.bf16.gmra.mxu0 %v5531_v14  ;;  %v3411_v58 = vpop.permute.xlu2 %3410  ;;  %v5478_v0 = vld [vmem:[#allocation3 + $0x8] sm:$0xf]  ;;  %v2197_v15 = vrot.slane %v2195_v36, 5  ;;  %v3641_v14 = vrot.slane %v3540_v46, 5  ;;  %v7297_v13 = vrot.slane %v3212_v23, 5 }
 0x134   : > { %3505 = vst.msk [vmem:[#allocation3 + $0x20] sm:$0xf] %vm1579_vm12, %v3411_v58  ;;  %v1618_v3 = vld [vmem:[#allocation2 + $0x18] sm:$0xe]  ;;  %v2088_v57 = vld [vmem:[#allocation2 + $0x30] sm:$0xf] }
 0x135   : > { %1979 = vrot.lane.b32.xlu0 %v1901_v28, %s6196_s28  ;;  %v3246_v28 = vrot.slane %v3244_v20, 5  ;;  %v3642_v9 = vsel %vm6800_vm15, %v5453_v18, %v3641_v14  ;;  %v3643_v56 = vrot.slane %v3641_v14, 4  ;;  %v2198_v37 = vsel %vm6282_vm8, %v2193_v22, %v2197_v15  ;;  %v2089_v50 = vld [vmem:[#allocation2 + $0x34] sm:$0xf]  ;;  %v7319_v19 = vld [vmem:[#allocation2 + $0x6c] sm:$0xe] }
 0x136   : > { %1981 = vrot.lane.b32.xlu1 %v1902_v33, %s6196_s28  ;;  %v3243_v33 = vrot.slane %v3241_v12, 4  ;;  %3778 = vst.msk [vmem:[#allocation3 + $0x38] sm:$0xf] %vm437_vm0, %v3642_v9  ;;  %v1619_v12 = vld [vmem:[#allocation2 + $0x1c] sm:$0xf]  ;;  %v5422_v20 = vrot.slane %v1618_v3, 9 }
 0x137   : > { %v1952_v52 = vpop.permute.xlu0 %1951  ;;  %v5955_v54 = vld [vmem:[#allocation3 + $0x18] sm:$0xf0]  ;;  %v3645_v48 = vsel %vm6800_vm15, %v3643_v56, %v3644_v25  ;;  %2548 = vst.msk [vmem:[#allocation3 + $0x6c] sm:$0xf] %vm437_vm0, %v2198_v37  ;;  %v2200_v5 = vshrl.u32 %v2088_v57, 16  ;;  %v2738_v23 = vrot.slane %v2736_v60, 4 }
 0x138   : > { %v1954_v31 = vpop.permute.xlu1 %1953  ;;  %2047 = vst.msk [vmem:[#allocation3 + $0x4] sm:$0xf] %vm1579_vm12, %v1952_v52  ;;  %v5479_v63 = vor.u32 %v5955_v54, %v5478_v0  ;;  %v5953_v10 = vld [vmem:[#allocation3 + $0xc] sm:$0xf]  ;;  %v2604_v52 = vld [vmem:[#allocation2 + $0x80] sm:$0x1]  ;;  %v3247_v61 = vor.u32 %v3246_v28, %v3243_v33 }
 0x139   : > { %2048 = vst.msk [vmem:[#allocation3 + $0x18] sm:$0xf] %vm1579_vm12, %v1954_v31  ;;  %3434 = vrot.lane.b32.xlu2 %v3191_v62, %s6196_s28  ;;  %v3232_v0 = vrot.slane %v3230_v47, 4  ;;  %v1620_v62 = vld [vmem:[#allocation2 + $0x20] sm:$0x1]  ;;  %v7314_v47 = vrot.slane %v3250_v39, 5 }
 0x13a   : > { %4827 = vmatmul.bf16.vlgmr.msrb.gmra.mxu2 %v5479_v63  ;;  %v3002_v31 = vld [vmem:[#allocation2 + $0x80] sm:$0x1]  ;;  %v1727_v63 = vrot.slane %v1619_v12, 5  ;;  %v1730_v2 = vrot.slane %v1620_v62, 5  ;;  %3779 = vst.msk [vmem:[#allocation3 + $0x4c] sm:$0xf] %vm437_vm0, %v3645_v48 }
 0x13b   : > { %v2788_v53 = vpop.permute.xlu2 %2787  ;;  %v5480_v34 = vld [vmem:[#allocation3 + $0x1c] sm:$0xf0]  ;;  %v3248_v4 = vrot.slane %v3247_v61, 4  ;;  %v2739_v36 = vrot.slane %v2604_v52, 5  ;;  %v3233_v32 = vor.u32 %v3232_v0, %v7255_v55  ;;  %v3236_v29 = vshll.u32 %v3002_v31, 16 }
 0x13c   : > { %2881 = vst.msk [vmem:[#allocation3 + $0x30] sm:$0xf] %vm1579_vm12, %v2788_v53  ;;  %v5483_v42 = vor.u32 %v5953_v10, %v5480_v34  ;;  %v1729_v10 = vrot.slane %v1727_v63, 4  ;;  %v2202_v40 = vrot.slane %v2200_v5, 4  ;;  %v1728_v14 = vsel %vm6800_vm15, %v5422_v20, %v1727_v63  ;;  %v3006_v22 = vld [vmem:[#allocation2 + $0x90] sm:$0xf] }
 0x13d   : > { %2817 = vrot.lane.b32.xlu0 %v2733_v38, %s6196_s28  ;;  %v2209_v53 = vshll.u32 %v2089_v50, 16  ;;  %v3215_v34 = vsel %vm6282_vm8, %v7289_v41, %v7297_v13  ;;  %v3254_v28 = vshrl.u32 %v7276_v8, 16  ;;  %v5444_v9 = vrot.slane %v7319_v19, 9  ;;  %1859 = vst.msk [vmem:[#allocation3 + $0x54] sm:$0xf] %vm437_vm0, %v1728_v14 }
 0x13e   : > { %3440 = vrot.lane.b32.xlu1 %v3229_v7, %s6196_s28  ;;  %4916 = vmatmul.bf16.vlgmr.msrb.gmra.mxu3 %v5483_v42  ;;  %v2203_v7 = vshll.u32 %v2088_v57, 16  ;;  %v1731_v46 = vsel %vm6800_vm15, %v1729_v10, %v1730_v2  ;;  %v2740_v42 = vsel %vm6800_vm15, %v2738_v23, %v2739_v36  ;;  %v3253_v41 = vsel %vm6282_vm8, %v3248_v4, %v7314_v47  ;;  %v7356_v61 = vld [vmem:[#allocation2 + $0x88] sm:$0xf]  ;;  %v2918_v12 = vld [vmem:[#allocation2 + $0x3c] sm:$0xf] }
 0x13f   : > { %v2790_v27 = vpop.permute.xlu0 %2789  ;;  %v5952_v58 = vld [vmem:[#allocation3 + $0x4] sm:$0xf]  ;;  %1860 = vst.msk [vmem:[#allocation3 + $0x68] sm:$0xf] %vm437_vm0, %v1731_v46  ;;  %v2213_v8 = vshrl.u32 %v2089_v50, 16  ;;  %v7348_v39 = vrot.slane %v3236_v29, 5  ;;  %v2730_v5 = vsel %vm6800_vm15, %v5444_v9, %v2729_v26 }
 0x140   : > { %v3413_v45 = vpop.permute.xlu1 %3412  ;;  %2882 = vst.msk [vmem:[#allocation3 + $0x44] sm:$0xf] %vm1579_vm12, %v2790_v27  ;;  %v5472_v51 = vld [vmem:[#allocation3 + $0x14] sm:$0xf0]  ;;  %v2205_v25 = vrot.slane %v2203_v7, 5  ;;  %v7344_v27 = vrot.slane %v3233_v32, 4 }
 0x141   : > { %3506 = vst.msk [vmem:[#allocation3 + $0x34] sm:$0xf] %vm1579_vm12, %v3413_v45  ;;  %v5475_v54 = vor.u32 %v5952_v58, %v5472_v51  ;;  %2811 = vrot.lane.b32.xlu2 %v2723_v49, %s6196_s28  ;;  %v7339_v49 = vld [vmem:[#allocation2 + $0x94] sm:$0xf]  ;;  %v3265_v58 = vshrl.u32 %v3006_v22, 16  ;;  %v2211_v45 = vrot.slane %v2209_v53, 5 }
 0x142   : > { %v2206_v56 = vor.u32 %v2205_v25, %v2202_v40  ;;  %v3268_v51 = vshll.u32 %v3006_v22, 16  ;;  %v3274_v52 = vshll.u32 %v7339_v49, 16  ;;  %v7351_v48 = vrot.slane %v3254_v28, 4  ;;  %v2090_v63 = vld [vmem:[#allocation2 + $0x38] sm:$0x1] }
 0x143   : > { %4738 = vmatmul.bf16.vlgmr.msrb.gmra.mxu1 %v5475_v54  ;;  %5932 = vmatmul.msk.bf16.vlgmr.msrb.gmra.mxu0 %vm4592_vm1, %v5487_v30  ;;  %v3415_v38 = vpop.permute.xlu2 %3414  ;;  %v5498_v21 = vld [vmem:[#allocation3 + $0x30] sm:$0xf]  ;;  %v5506_v30 = vld [vmem:[#allocation3 + $0x38] sm:$0xf]  ;;  %v3267_v31 = vrot.slane %v3265_v58, 4  ;;  %v2215_v2 = vrot.slane %v2213_v8, 4 }
 0x144   : > { %3507 = vst.msk [vmem:[#allocation3 + $0x48] sm:$0xf] %vm1579_vm12, %v3415_v38  ;;  %v2207_v37 = vrot.slane %v2206_v56, 4  ;;  %v3270_v10 = vrot.slane %v3268_v51, 5  ;;  %v7361_v20 = vld [vmem:[#allocation2 + $0x8c] sm:$0x1] }
 0x145   : > { %1983 = vrot.lane.b32.xlu0 %v1903_v17, %s6196_s28  ;;  %v5961_v17 = vld [vmem:[#allocation3 + $0x48] sm:$0xf0]  ;;  %v2219_v50 = vshll.u32 %v2090_v63, 16  ;;  %v1905_v36 = vld [vmem:[#allocation2 + $0x78] sm:$0xf]  ;;  %v2216_v7 = vor.u32 %v2215_v2, %v2211_v45  ;;  %v2743_v46 = vrot.slane %v7356_v61, 5 }
 0x146   : > { %1985 = vrot.lane.b32.xlu1 %v1904_v59, %s6196_s28  ;;  %v2212_v59 = vsel %vm6282_vm8, %v2207_v37, %v2211_v45  ;;  %v5507_v23 = vor.u32 %v5961_v17, %v5506_v30  ;;  %v7368_v19 = vld [vmem:[#allocation2 + $0x78] sm:$0xe]  ;;  %v1906_v29 = vld [vmem:[#allocation2 + $0x7c] sm:$0xf]  ;;  %v3542_v40 = vld [vmem:[#allocation2 + $0x30] sm:$0xe]  ;;  %v3271_v14 = vor.u32 %v3270_v10, %v3267_v31  ;;  %v3239_v17 = vsel %vm6282_vm8, %v7344_v27, %v7348_v39 }
 0x147   : > { %v1956_v15 = vpop.permute.xlu0 %1955  ;;  %v5960_v18 = vld [vmem:[#allocation3 + $0x40] sm:$0xf0]  ;;  %2549 = vst.msk [vmem:[#allocation3 + $0x80] sm:$0xf] %vm437_vm0, %v2212_v59  ;;  %v2221_v24 = vrot.slane %v2219_v50, 5  ;;  %v2217_v26 = vrot.slane %v2216_v7, 4 }
 0x148   : > { %v1958_v55 = vpop.permute.xlu1 %1957  ;;  %2049 = vst.msk [vmem:[#allocation3 + $0x2c] sm:$0xf] %vm1579_vm12, %v1956_v15  ;;  %v5499_v33 = vor.u32 %v5960_v18, %v5498_v21  ;;  %v5958_v13 = vld [vmem:[#allocation3 + $0x34] sm:$0xf]  ;;  %v2919_v21 = vld [vmem:[#allocation2 + $0x40] sm:$0xf] }
 0x149   : > { %2050 = vst.msk [vmem:[#allocation3 + $0x40] sm:$0xf] %vm1579_vm12, %v1958_v55  ;;  %3438 = vrot.lane.b32.xlu2 %v3215_v34, %s6196_s28  ;;  %v3543_v15 = vld [vmem:[#allocation2 + $0x34] sm:$0xf]  ;;  %v5454_v18 = vrot.slane %v3542_v40, 9  ;;  %v3278_v25 = vshrl.u32 %v7339_v49, 16  ;;  %v2222_v28 = vsel %vm6282_vm8, %v2217_v26, %v2221_v24 }
 0x14a   : > { %4832 = vmatmul.bf16.gmra.mxu2 %v5499_v33  ;;  %2950 = vst.msk [vmem:[#allocation3 + $0x84] sm:$0xf] %vm437_vm0, %v2918_v12  ;;  %v3544_v53 = vld [vmem:[#allocation2 + $0x38] sm:$0x1]  ;;  %v3648_v34 = vrot.slane %v3543_v15, 5  ;;  %v7377_v55 = vrot.slane %v3274_v52, 5 }
 0x14b   : > { %v2792_v0 = vpop.permute.xlu2 %2791  ;;  %v5500_v54 = vld [vmem:[#allocation3 + $0x44] sm:$0xf0]  ;;  %2951 = vst.msk [vmem:[#allocation3 + $0x98] sm:$0xf] %vm437_vm0, %v2919_v21  ;;  %v2746_v33 = vrot.slane %v7361_v20, 5  ;;  %v3651_v22 = vrot.slane %v3544_v53, 5 }
 0x14c   : > { %2883 = vst.msk [vmem:[#allocation3 + $0x58] sm:$0xf] %vm1579_vm12, %v2792_v0  ;;  %v5503_v62 = vor.u32 %v5958_v13, %v5500_v54  ;;  %v2745_v9 = vrot.slane %v2743_v46, 4  ;;  %v5445_v56 = vrot.slane %v7368_v19, 9  ;;  %v3649_v49 = vsel %vm6800_vm15, %v5454_v18, %v3648_v34  ;;  %v1622_v58 = vld [vmem:[#allocation2 + $0x28] sm:$0xf] }
 0x14d   : > { %2821 = vrot.lane.b32.xlu0 %v2740_v42, %s6196_s28  ;;  %2550 = vst.msk [vmem:[#allocation3 + $0x94] sm:$0xf] %vm437_vm0, %v2222_v28  ;;  %v3272_v45 = vrot.slane %v3271_v14, 4  ;;  %v1734_v30 = vrot.slane %v1622_v58, 5  ;;  %v7399_v54 = vld [vmem:[#allocation2 + $0x8c] sm:$0x1] }
 0x14e   : > { %3444 = vrot.lane.b32.xlu1 %v3253_v41, %s6196_s28  ;;  %4921 = vmatmul.bf16.gmra.mxu3 %v5503_v62  ;;  %v3650_v41 = vrot.slane %v3648_v34, 4  ;;  %3780 = vst.msk [vmem:[#allocation3 + $0x60] sm:$0xf] %vm437_vm0, %v3649_v49  ;;  %v1623_v59 = vld [vmem:[#allocation2 + $0x2c] sm:$0x1]  ;;  %v2747_v63 = vsel %vm6800_vm15, %v2745_v9, %v2746_v33  ;;  %v2737_v33 = vsel %vm6800_vm15, %v5445_v56, %v2736_v60 }
 0x14f   : > { %v2794_v3 = vpop.permute.xlu0 %2793  ;;  %v5957_v57 = vld [vmem:[#allocation3 + $0x2c] sm:$0xf]  ;;  %v1736_v62 = vrot.slane %v1734_v30, 4  ;;  %v1737_v31 = vrot.slane %v1623_v59, 5  ;;  %v2091_v27 = vld [vmem:[#allocation2 + $0x3c] sm:$0xf]  ;;  %v3277_v39 = vsel %vm6282_vm8, %v3272_v45, %v7377_v55 }
 0x150   : > { %v3417_v38 = vpop.permute.xlu1 %3416  ;;  %2884 = vst.msk [vmem:[#allocation3 + $0x6c] sm:$0xf] %vm1579_vm12, %v2794_v3  ;;  %v5492_v4 = vld [vmem:[#allocation3 + $0x3c] sm:$0xf0]  ;;  %v3652_v51 = vsel %vm6800_vm15, %v3650_v41, %v3651_v22  ;;  %v1621_v2 = vld [vmem:[#allocation2 + $0x24] sm:$0xe] }
 0x151   : > { %3508 = vst.msk [vmem:[#allocation3 + $0x5c] sm:$0xf] %vm1579_vm12, %v3417_v38  ;;  %v5495_v32 = vor.u32 %v5957_v57, %v5492_v4  ;;  %2815 = vrot.lane.b32.xlu2 %v2730_v5, %s6196_s28  ;;  %v1738_v3 = vsel %vm6800_vm15, %v1736_v62, %v1737_v31  ;;  %v5423_v57 = vrot.slane %v1621_v2, 9  ;;  %v7411_v10 = vld [vmem:[#allocation2 + $0x40] sm:$0xf]  ;;  %v2224_v20 = vshrl.u32 %v2091_v27, 16 }
 0x152   : > { %3781 = vst.msk [vmem:[#allocation3 + $0x74] sm:$0xf] %vm437_vm0, %v3652_v51  ;;  %v3009_v50 = vld [vmem:[#allocation2 + $0x9c] sm:$0xf]  ;;  %v3260_v5 = vshll.u32 %v7399_v54, 16  ;;  %v2227_v38 = vshll.u32 %v2091_v27, 16 }
 0x153   : > { %4743 = vmatmul.bf16.gmra.mxu1 %v5495_v32  ;;  %5933 = vmatmul.msk.bf16.gmra.mxu0 %vm4592_vm1, %v5507_v23  ;;  %v3419_v42 = vpop.permute.xlu2 %3418  ;;  %v5518_v8 = vld [vmem:[#allocation3 + $0x58] sm:$0xf]  ;;  %1862 = vst.msk [vmem:[#allocation3 + $0x90] sm:$0xf] %vm437_vm0, %v1738_v3  ;;  %v3289_v4 = vshrl.u32 %v3009_v50, 16  ;;  %v7415_v23 = vrot.slane %v3278_v25, 4  ;;  %v1735_v7 = vsel %vm6800_vm15, %v5423_v57, %v1734_v30  ;;  %v3257_v25 = vor.u32 %v7351_v48, %v7314_v47 }
 0x154   : > { %3509 = vst.msk [vmem:[#allocation3 + $0x70] sm:$0xf] %vm1579_vm12, %v3419_v42  ;;  %v2226_v21 = vrot.slane %v2224_v20, 4  ;;  %v7420_v32 = vld [vmem:[#allocation2 + $0xa0] sm:$0xf]  ;;  %v2229_v26 = vrot.slane %v2227_v38, 5 }
 0x155   : > { %1987 = vrot.lane.b32.xlu0 %v1905_v36, %s6196_s28  ;;  %v5526_v40 = vld [vmem:[#allocation3 + $0x60] sm:$0xf]  ;;  %v2233_v15 = vshll.u32 %v7411_v10, 16  ;;  %1861 = vst.msk [vmem:[#allocation3 + $0x7c] sm:$0xf] %vm437_vm0, %v1735_v7  ;;  %v3291_v53 = vrot.slane %v3289_v4, 4 }
 0x156   : > { %1989 = vrot.lane.b32.xlu1 %v1906_v29, %s6196_s28  ;;  %v3292_v29 = vshll.u32 %v3009_v50, 16  ;;  %v1907_v42 = vld [vmem:[#allocation2 + $0x84] sm:$0xf]  ;;  %v2230_v9 = vor.u32 %v2229_v26, %v2226_v21  ;;  %v2237_v49 = vshrl.u32 %v7411_v10, 16  ;;  %v3298_v47 = vshll.u32 %v7420_v32, 16 }
 0x157   : > { %v1960_v13 = vpop.permute.xlu0 %1959  ;;  %v5965_v37 = vld [vmem:[#allocation3 + $0x68] sm:$0xf0]  ;;  %v7436_v43 = vld [vmem:[#allocation2 + $0x94] sm:$0xf]  ;;  %v2235_v56 = vrot.slane %v2233_v15, 5  ;;  %v3258_v51 = vrot.slane %v3257_v25, 4  ;;  %v3281_v10 = vor.u32 %v7415_v23, %v7377_v55 }
 0x158   : > { %v1962_v52 = vpop.permute.xlu1 %1961  ;;  %2051 = vst.msk [vmem:[#allocation3 + $0x54] sm:$0xf] %vm1579_vm12, %v1960_v13  ;;  %v5519_v0 = vor.u32 %v5965_v37, %v5518_v8  ;;  %v5963_v12 = vld [vmem:[#allocation3 + $0x5c] sm:$0xf]  ;;  %v3294_v34 = vrot.slane %v3292_v29, 5  ;;  %v2231_v60 = vrot.slane %v2230_v9, 4 }
 0x159   : > { %2052 = vst.msk [vmem:[#allocation3 + $0x68] sm:$0xf] %vm1579_vm12, %v1962_v52  ;;  %3442 = vrot.lane.b32.xlu2 %v3239_v17, %s6196_s28  ;;  %v5966_v41 = vld [vmem:[#allocation3 + $0x70] sm:$0xf0]  ;;  %v1908_v8 = vld [vmem:[#allocation2 + $0x88] sm:$0xf] }
 0x15a   : > { %4837 = vmatmul.bf16.gmra.mxu2 %v5519_v0  ;;  %v3295_v58 = vor.u32 %v3294_v34, %v3291_v53  ;;  %v5527_v13 = vor.u32 %v5966_v41, %v5526_v40  ;;  %v2610_v37 = vld [vmem:[#allocation2 + $0x98] sm:$0x1]  ;;  %v2750_v45 = vrot.slane %v7436_v43, 5  ;;  %v3262_v30 = vrot.slane %v3260_v5, 5  ;;  %v2920_v0 = vld [vmem:[#allocation2 + $0x48] sm:$0xf] }
 0x15b   : > { %v2796_v36 = vpop.permute.xlu2 %2795  ;;  %v5520_v19 = vld [vmem:[#allocation3 + $0x6c] sm:$0xf0]  ;;  %v7440_v52 = vrot.slane %v3298_v47, 5  ;;  %v2236_v54 = vsel %vm6282_vm8, %v2231_v60, %v2235_v56  ;;  %2952 = vst.msk [vmem:[#allocation3 + $0xac] sm:$0xf] %vm437_vm0, %v2920_v0  ;;  %v2239_v27 = vrot.slane %v2237_v49, 4 }
 0x15c   : > { %2885 = vst.msk [vmem:[#allocation3 + $0x80] sm:$0xf] %vm1579_vm12, %v2796_v36  ;;  %v5523_v24 = vor.u32 %v5963_v12, %v5520_v19  ;;  %v3296_v17 = vrot.slane %v3295_v58, 4  ;;  %v2752_v59 = vrot.slane %v2750_v45, 4  ;;  %v2753_v12 = vrot.slane %v2610_v37, 5 }
 0x15d   : > { %2825 = vrot.lane.b32.xlu0 %v2747_v63, %s6196_s28  ;;  %v2093_v62 = vld [vmem:[#allocation2 + $0x44] sm:$0x1]  ;;  %2551 = vst.msk [vmem:[#allocation3 + $0xa8] sm:$0xf] %vm437_vm0, %v2236_v54  ;;  %v2605_v2 = vld [vmem:[#allocation2 + $0x84] sm:$0xe]  ;;  %v2240_v5 = vor.u32 %v2239_v27, %v2235_v56  ;;  %v3263_v36 = vsel %vm6282_vm8, %v3258_v51, %v3262_v30 }
 0x15e   : > { %3448 = vrot.lane.b32.xlu1 %v3277_v39, %s6196_s28  ;;  %4926 = vmatmul.bf16.gmra.mxu3 %v5523_v24  ;;  %v2243_v39 = vshll.u32 %v2093_v62, 16  ;;  %v2921_v3 = vld [vmem:[#allocation2 + $0x4c] sm:$0xf]  ;;  %v3545_v57 = vld [vmem:[#allocation2 + $0x3c] sm:$0xe]  ;;  %v2754_v40 = vsel %vm6800_vm15, %v2752_v59, %v2753_v12  ;;  %v5446_v26 = vrot.slane %v2605_v2, 9 }
 0x15f   : > { %v2798_v18 = vpop.permute.xlu0 %2797  ;;  %v5962_v14 = vld [vmem:[#allocation3 + $0x54] sm:$0xf]  ;;  %2953 = vst.msk [vmem:[#allocation3 + $0xc0] sm:$0xf] %vm437_vm0, %v2921_v3  ;;  %v5455_v4 = vrot.slane %v3545_v57, 9  ;;  %v2241_v29 = vrot.slane %v2240_v5, 4 }
 0x160   : > { %v3421_v28 = vpop.permute.xlu1 %3420  ;;  %2886 = vst.msk [vmem:[#allocation3 + $0x94] sm:$0xf] %vm1579_vm12, %v2798_v18  ;;  %v5512_v22 = vld [vmem:[#allocation3 + $0x64] sm:$0xf0]  ;;  %v2245_v38 = vrot.slane %v2243_v39, 5  ;;  %v7461_v18 = vrot.slane %v3281_v10, 4  ;;  %v2744_v0 = vsel %vm6800_vm15, %v5446_v26, %v2743_v46 }
 0x161   : > { %3510 = vst.msk [vmem:[#allocation3 + $0x84] sm:$0xf] %vm1579_vm12, %v3421_v28  ;;  %v5515_v48 = vor.u32 %v5962_v14, %v5512_v22  ;;  %2819 = vrot.lane.b32.xlu2 %v2737_v33, %s6196_s28  ;;  %v3546_v21 = vld [vmem:[#allocation2 + $0x40] sm:$0xf]  ;;  %v3547_v24 = vld [vmem:[#allocation2 + $0x44] sm:$0x1]  ;;  %v3301_v14 = vsel %vm6282_vm8, %v3296_v17, %v7440_v52 }
 0x162   : > { %v3655_v55 = vrot.slane %v3546_v21, 5  ;;  %v3658_v15 = vrot.slane %v3547_v24, 5  ;;  %v2246_v25 = vsel %vm6282_vm8, %v2241_v29, %v2245_v38  ;;  %v3008_v33 = vld [vmem:[#allocation2 + $0x98] sm:$0x1]  ;;  %v1625_v28 = vld [vmem:[#allocation2 + $0x34] sm:$0xf] }
 0x163   : > { %4748 = vmatmul.bf16.gmra.mxu1 %v5515_v48  ;;  %5934 = vmatmul.msk.bf16.gmra.mxu0 %vm4592_vm1, %v5527_v13  ;;  %v3423_v31 = vpop.permute.xlu2 %3422  ;;  %v5538_v63 = vld [vmem:[#allocation3 + $0x80] sm:$0xf]  ;;  %2552 = vst.msk [vmem:[#allocation3 + $0xbc] sm:$0xf] %vm437_vm0, %v2246_v25  ;;  %v3284_v22 = vshll.u32 %v3008_v33, 16  ;;  %v1741_v9 = vrot.slane %v1625_v28, 5 }
 0x164   : > { %3511 = vst.msk [vmem:[#allocation3 + $0x98] sm:$0xf] %vm1579_vm12, %v3423_v31  ;;  %v3656_v53 = vsel %vm6800_vm15, %v5455_v4, %v3655_v55  ;;  %v3657_v34 = vrot.slane %v3655_v55, 4  ;;  %v3302_v48 = vshrl.u32 %v7420_v32, 16  ;;  %v1624_v60 = vld [vmem:[#allocation2 + $0x30] sm:$0xe]  ;;  %v7483_v32 = vpop.f32.mrf.mxu2  ;;  %v7503_v4 = vpop.f32.mrf.mxu1 }
 0x165   : > { %1991 = vrot.lane.b32.xlu0 %v1907_v42, %s6196_s28  ;;  %v1626_v42 = vld [vmem:[#allocation2 + $0x38] sm:$0x1]  ;;  %3782 = vst.msk [vmem:[#allocation3 + $0x88] sm:$0xf] %vm437_vm0, %v3656_v53  ;;  %v1743_v13 = vrot.slane %v1741_v9, 4  ;;  %v7485_v30 = vrot.slane %v3284_v22, 5  ;;  %v7506_v55 = vpop.f32.mrf.mxu3 }
 0x166   : > { %1993 = vrot.lane.b32.xlu1 %v1908_v8, %s6196_s28  ;;  %v3659_v41 = vsel %vm6800_vm15, %v3657_v34, %v3658_v15  ;;  %v1744_v8 = vrot.slane %v1626_v42, 5  ;;  %v7480_v56 = vld [vmem:[%s6262_s25 + $0x78] sm:$0xff]   ;;  %v5424_v17 = vrot.slane %v1624_v60, 9  ;;  %v1909_v12 = vld [vmem:[#allocation2 + $0x90] sm:$0xf] }
 0x167   : > { %v1964_v20 = vpop.permute.xlu0 %1963  ;;  %v5970_v50 = vld [vmem:[#allocation3 + $0x90] sm:$0xf0]  ;;  %3783 = vst.msk [vmem:[#allocation3 + $0x9c] sm:$0xf] %vm437_vm0, %v3659_v41  ;;  %v2094_v31 = vld [vmem:[#allocation2 + $0x48] sm:$0xf]  ;;  %v3287_v53 = vsel %vm6282_vm8, %v7461_v18, %v7485_v30 }
 0x168   : > { %v1966_v19 = vpop.permute.xlu1 %1965  ;;  %2053 = vst.msk [vmem:[#allocation3 + $0x7c] sm:$0xf] %vm1579_vm12, %v1964_v20  ;;  %v5539_v7 = vor.u32 %v5970_v50, %v5538_v63  ;;  %v5968_v23 = vld [vmem:[#allocation3 + $0x84] sm:$0xf]  ;;  %v1745_v62 = vsel %vm6800_vm15, %v1743_v13, %v1744_v8  ;;  %v1910_v2 = vld [vmem:[#allocation2 + $0x94] sm:$0xf]  ;;  %v1742_v27 = vsel %vm6800_vm15, %v5424_v17, %v1741_v9  ;;  %v6130_v20 = vunpack.c.l.bf16 %v7480_v56 }
 0x169   : > { %2054 = vst.msk [vmem:[#allocation3 + $0x90] sm:$0xf] %vm1579_vm12, %v1966_v19  ;;  %3446 = vrot.lane.b32.xlu2 %v3263_v36, %s6196_s28  ;;  %v2095_v61 = vld [vmem:[#allocation2 + $0x4c] sm:$0xf]  ;;  %v2248_v39 = vshrl.u32 %v2094_v31, 16  ;;  %v2251_v3 = vshll.u32 %v2094_v31, 16 }
 0x16a   : > { %4842 = vmatmul.bf16.gmra.mxu2 %v5539_v7  ;;  %1864 = vst.msk [vmem:[#allocation3 + $0xb8] sm:$0xf] %vm437_vm0, %v1745_v62  ;;  %v2257_v46 = vshll.u32 %v2095_v61, 16  ;;  %v2261_v57 = vshrl.u32 %v2095_v61, 16  ;;  %v3012_v10 = vld [vmem:[#allocation2 + $0xa8] sm:$0xf]  ;;  %v6131_v61 = vunpack.c.h.bf16 %v7480_v56 }
 0x16b   : > { %v2800_v49 = vpop.permute.xlu2 %2799  ;;  %v5540_v47 = vld [vmem:[#allocation3 + $0x94] sm:$0xf0]  ;;  %1863 = vst.msk [vmem:[#allocation3 + $0xa4] sm:$0xf] %vm437_vm0, %v1742_v27  ;;  %v2250_v50 = vrot.slane %v2248_v39, 4  ;;  %v2253_v5 = vrot.slane %v2251_v3, 5 }
 0x16c   : > { %2887 = vst.msk [vmem:[#allocation3 + $0xa8] sm:$0xf] %vm1579_vm12, %v2800_v49  ;;  %v5543_v58 = vor.u32 %v5968_v23, %v5540_v47  ;;  %v7501_v38 = vld [vmem:[#allocation2 + $0xac] sm:$0xf]  ;;  %v5546_v36 = vld [vmem:[#allocation3 + $0x88] sm:$0xf] }
 0x16d   : > { %2829 = vrot.lane.b32.xlu0 %v2754_v40, %s6196_s28  ;;  %v2259_v19 = vrot.slane %v2257_v46, 5  ;;  %v3313_v7 = vshrl.u32 %v3012_v10, 16  ;;  %v3316_v21 = vshll.u32 %v3012_v10, 16  ;;  %v3322_v29 = vshll.u32 %v7501_v38, 16  ;;  %v7509_v26 = vld [vmem:[#allocation2 + $0xa0] sm:$0xf] }
 0x16e   : > { %3452 = vrot.lane.b32.xlu1 %v3301_v14, %s6196_s28  ;;  %4931 = vmatmul.bf16.gmra.mxu3 %v5543_v58  ;;  %v2254_v23 = vor.u32 %v2253_v5, %v2250_v50  ;;  %v2263_v15 = vrot.slane %v2261_v57, 4  ;;  %v7511_v14 = vrot.slane %v3302_v48, 4  ;;  %v5971_v25 = vld [vmem:[#allocation3 + $0x98] sm:$0xf0]  ;;  %v6185_v28 = vld [vmem:[%s8370_s2] ss:$0 sm:$0xff]  ;;  %v7524_v58 = vpop.f32.mrf.mxu0 }
 0x16f   : > { %v2802_v37 = vpop.permute.xlu0 %2801  ;;  %v5967_v51 = vld [vmem:[#allocation3 + $0x7c] sm:$0xf]  ;;  %v3315_v34 = vrot.slane %v3313_v7, 4  ;;  %v3318_v33 = vrot.slane %v3316_v21, 5  ;;  %v336_v22 = vmul.f32 %v6185_v28, %v6130_v20  ;;  %v5547_v42 = vor.u32 %v5971_v25, %v5546_v36  ;;  %v2613_v41 = vld [vmem:[#allocation2 + $0xa4] sm:$0x1] }
 0x170   : > { %v3425_v54 = vpop.permute.xlu1 %3424  ;;  %2888 = vst.msk [vmem:[#allocation3 + $0xbc] sm:$0xf] %vm1579_vm12, %v2802_v37  ;;  %v5532_v59 = vld [vmem:[#allocation3 + $0x8c] sm:$0xf0]  ;;  %v2255_v49 = vrot.slane %v2254_v23, 4  ;;  %v7522_v48 = vrot.slane %v3322_v29, 5  ;;  %v2264_v8 = vor.u32 %v2263_v15, %v2259_v19  ;;  %v7555_v23 = vpop.f32.mrf.mxu3 }
 0x171   : > { %3512 = vst.msk [vmem:[#allocation3 + $0xac] sm:$0xf] %vm1579_vm12, %v3425_v54  ;;  %v5535_v63 = vor.u32 %v5967_v51, %v5532_v59  ;;  %2823 = vrot.lane.b32.xlu2 %v2744_v0, %s6196_s28  ;;  %v3319_v60 = vor.u32 %v3318_v33, %v3315_v34  ;;  %v2757_v37 = vrot.slane %v7509_v26, 5  ;;  %v2760_v51 = vrot.slane %v2613_v41, 5  ;;  %v7532_v0 = vpop.f32.mrf.mxu2  ;;  %v2608_v54 = vld [vmem:[#allocation2 + $0x90] sm:$0xe] }
 0x172   : > { %v2260_v30 = vsel %vm6282_vm8, %v2255_v49, %v2259_v19  ;;  %v2922_v59 = vld [vmem:[#allocation2 + $0x54] sm:$0xf]  ;;  %v3326_v62 = vshrl.u32 %v7501_v38, 16  ;;  %v2923_v27 = vld [vmem:[#allocation2 + $0x58] sm:$0xf]  ;;  %v2265_v10 = vrot.slane %v2264_v8, 4  ;;  %v7551_v19 = vpop.f32.mrf.mxu1  ;;  %v337_v34 = vmul.f32 %v6185_v28, %v6131_v61 }
 0x173   : > { %4753 = vmatmul.bf16.gmra.mxu1 %v5535_v63  ;;  %v3427_v24 = vpop.permute.xlu2 %3426  ;;  %v5558_v40 = vld [vmem:[#allocation3 + $0xa8] sm:$0xf]  ;;  %5935 = vmatmul.msk.bf16.gmra.mxu0 %vm4592_vm1, %v5547_v42  ;;  %2553 = vst.msk [vmem:[#allocation3 + $0xd0] sm:$0xf] %vm437_vm0, %v2260_v30  ;;  %v2759_v31 = vrot.slane %v2757_v37, 4  ;;  %v5447_v63 = vrot.slane %v2608_v54, 9 }
 0x174   : > { %3513 = vst.msk [vmem:[#allocation3 + $0xc0] sm:$0xf] %vm1579_vm12, %v3427_v24  ;;  %v6186_v39 = vld [vmem:[%s8371_s3] ss:$0 sm:$0xff]  ;;  %v3548_v50 = vld [vmem:[#allocation2 + $0x48] sm:$0xe] }
 0x175   : > { %1995 = vrot.lane.b32.xlu0 %v1909_v12, %s6196_s28  ;;  %v3320_v12 = vrot.slane %v3319_v60, 4  ;;  %2954 = vst.msk [vmem:[#allocation3 + $0xd4] sm:$0xf] %vm437_vm0, %v2922_v59  ;;  %v371_v3 = vadd.f32 %v6186_v39, %v336_v22  ;;  %v2761_v57 = vsel %vm6800_vm15, %v2759_v31, %v2760_v51  ;;  %v3549_v56 = vld [vmem:[#allocation2 + $0x4c] sm:$0xf]  ;;  %v5456_v29 = vrot.slane %v3548_v50, 9 }
 0x176   : > { %1997 = vrot.lane.b32.xlu1 %v1910_v2, %s6196_s28  ;;  %v2096_v2 = vld [vmem:[#allocation2 + $0x50] sm:$0x1]  ;;  %2955 = vst.msk [vmem:[#allocation3 + $0xe8] sm:$0xf] %vm437_vm0, %v2923_v27  ;;  %v3662_v24 = vrot.slane %v3549_v56, 5  ;;  %v2751_v22 = vsel %vm6800_vm15, %v5447_v63, %v2750_v45  ;;  %v3328_v8 = vrot.slane %v3326_v62, 4  ;;  %v372_v31 = vadd.f32 %v6186_v39, %v337_v34 }
 0x177   : > { %v1968_v9 = vpop.permute.xlu0 %1967  ;;  %v5975_v47 = vld [vmem:[#allocation3 + $0xb8] sm:$0xf0]  ;;  %v3325_v46 = vsel %vm6282_vm8, %v3320_v12, %v7522_v48  ;;  %v2267_v20 = vshll.u32 %v2096_v2, 16  ;;  %v3550_v36 = vld [vmem:[#allocation2 + $0x50] sm:$0x1]  ;;  %v403_v33 = vmax.f32 %v371_v3, 0.0 }
 0x178   : > { %v1970_v13 = vpop.permute.xlu1 %1969  ;;  %2055 = vst.msk [vmem:[#allocation3 + $0xa4] sm:$0xf] %vm1579_vm12, %v1968_v9  ;;  %v5559_v18 = vor.u32 %v5975_v47, %v5558_v40  ;;  %v5973_v17 = vld [vmem:[#allocation3 + $0xac] sm:$0xf]  ;;  %v3665_v25 = vrot.slane %v3550_v36, 5  ;;  %v3664_v47 = vrot.slane %v3662_v24, 4  ;;  %v3329_v62 = vor.u32 %v3328_v8, %v7522_v48 }
 0x179   : > { %2056 = vst.msk [vmem:[#allocation3 + $0xb8] sm:$0xf] %vm1579_vm12, %v1970_v13  ;;  %3450 = vrot.lane.b32.xlu2 %v3287_v53, %s6196_s28  ;;  %v2269_v21 = vrot.slane %v2267_v20, 5  ;;  %v3305_v53 = vor.u32 %v7511_v14, %v7440_v52  ;;  %v1911_v41 = vld [vmem:[#allocation2 + $0x9c] sm:$0xf]  ;;  %v3663_v52 = vsel %vm6800_vm15, %v5456_v29, %v3662_v24  ;;  %v7579_v61 = vpack.c.bf16 %v403_v33, %v403_v33 }
 0x17a   : > { %4847 = vmatmul.bf16.gmra.mxu2 %v5559_v18  ;;  %v1912_v14 = vld [vmem:[#allocation2 + $0xa0] sm:$0xf]  ;;  %v3011_v28 = vld [vmem:[#allocation2 + $0xa4] sm:$0x1]  ;;  %v7568_v18 = vpop.f32.mrf.mxu0  ;;  %v3666_v45 = vsel %vm6800_vm15, %v3664_v47, %v3665_v25  ;;  %v1627_v12 = vld [vmem:[#allocation2 + $0x3c] sm:$0xe]  ;;  %v7589_v20 = vpop.f32.mrf.mxu1 }
 0x17b   : > { %v2804_v5 = vpop.permute.xlu2 %2803  ;;  %v5560_v38 = vld [vmem:[#allocation3 + $0xbc] sm:$0xf0]  ;;  %v2270_v9 = vsel %vm6282_vm8, %v2265_v10, %v2269_v21  ;;  %v1628_v43 = vld [vmem:[#allocation2 + $0x40] sm:$0xf]  ;;  %v3308_v60 = vshll.u32 %v3011_v28, 16  ;;  %v3306_v54 = vrot.slane %v3305_v53, 4  ;;  %v7598_v25 = vpop.f32.mrf.mxu3 }
 0x17c   : > { %2889 = vst.msk [vmem:[#allocation3 + $0xd0] sm:$0xf] %vm1579_vm12, %v2804_v5  ;;  %v5563_v7 = vor.u32 %v5973_v17, %v5560_v38  ;;  %v1629_v51 = vld [vmem:[#allocation2 + $0x44] sm:$0x1]  ;;  %v1748_v30 = vrot.slane %v1628_v43, 5  ;;  %v7575_v17 = vpop.f32.mrf.mxu2  ;;  %v5425_v27 = vrot.slane %v1627_v12, 9 }
 0x17d   : > { %2833 = vrot.lane.b32.xlu0 %v2761_v57, %s6196_s28  ;;  %2554 = vst.msk [vmem:[#allocation3 + $0xe4] sm:$0xf] %vm437_vm0, %v2270_v9  ;;  %v1751_v59 = vrot.slane %v1629_v51, 5  ;;  %v3310_v63 = vrot.slane %v3308_v60, 5  ;;  %v2098_v57 = vld [vmem:[#allocation2 + $0x58] sm:$0xf] }
 0x17e   : > { %3456 = vrot.lane.b32.xlu1 %v3325_v46, %s6196_s28  ;;  %4936 = vmatmul.bf16.gmra.mxu3 %v5563_v7  ;;  %3784 = vst.msk [vmem:[#allocation3 + $0xb0] sm:$0xf] %vm437_vm0, %v3663_v52  ;;  %v1750_v2 = vrot.slane %v1748_v30, 4  ;;  %v2097_v46 = vld [vmem:[#allocation2 + $0x54] sm:$0xf]  ;;  %v1749_v39 = vsel %vm6800_vm15, %v5425_v27, %v1748_v30  ;;  %v7594_v56 = vrot.slane %v3329_v62, 4 }
 0x17f   : > { %v2806_v40 = vpop.permute.xlu0 %2805  ;;  %v5972_v15 = vld [vmem:[#allocation3 + $0xa4] sm:$0xf]  ;;  %3785 = vst.msk [vmem:[#allocation3 + $0xc4] sm:$0xf] %vm437_vm0, %v3666_v45  ;;  %v2272_v10 = vshrl.u32 %v2097_v46, 16  ;;  %v3311_v50 = vsel %vm6282_vm8, %v3306_v54, %v3310_v63  ;;  %v2275_v38 = vshll.u32 %v2097_v46, 16 }
 0x180   : > { %v3429_v42 = vpop.permute.xlu1 %3428  ;;  %v5552_v49 = vld [vmem:[#allocation3 + $0xb4] sm:$0xf0]  ;;  %2890 = vst.msk [vmem:[#allocation3 + $0xe4] sm:$0xf] %vm1579_vm12, %v2806_v40  ;;  %v1752_v48 = vsel %vm6800_vm15, %v1750_v2, %v1751_v59  ;;  %v404_v36 = vmax.f32 %v372_v31, 0.0  ;;  %v2281_v29 = vshll.u32 %v2098_v57, 16 }
 0x181   : > { %3514 = vst.msk [vmem:[#allocation3 + $0xd4] sm:$0xf] %vm1579_vm12, %v3429_v42  ;;  %v5555_v13 = vor.u32 %v5972_v15, %v5552_v49  ;;  %2827 = vrot.lane.b32.xlu2 %v2751_v22, %s6196_s28  ;;  %v2274_v21 = vrot.slane %v2272_v10, 4  ;;  %v2285_v24 = vshrl.u32 %v2098_v57, 16  ;;  %v806_v15 = vshrl.u32 %v7579_v61, 16 }
 0x182   : > { %1866 = vst.msk [vmem:[#allocation3 + $0xe0] sm:$0xf] %vm437_vm0, %v1752_v48  ;;  %v2277_v53 = vrot.slane %v2275_v38, 5  ;;  %v3015_v33 = vld [vmem:[#allocation2 + $0xb4] sm:$0xf]  ;;  %v809_v22 = vshll.u32 %v7579_v61, 16  ;;  %v7603_v42 = vpop.f32.mrf.mxu0  ;;  %v7611_v51 = vpack.c.bf16 %v404_v36, %v404_v36 }
 0x183   : > { %4758 = vmatmul.bf16.gmra.mxu1 %v5555_v13  ;;  %v3431_v3 = vpop.permute.xlu2 %3430  ;;  %1865 = vst.msk [vmem:[#allocation3 + $0xcc] sm:$0xf] %vm437_vm0, %v1749_v39  ;;  %v5578_v40 = vld [vmem:[#allocation3 + $0xd0] sm:$0xf]  ;;  %v7605_v49 = vld [vmem:[#allocation2 + $0xb8] sm:$0xf] }
 0x184   : > { %3515 = vst.msk [vmem:[#allocation3 + $0xe8] sm:$0xf] %vm1579_vm12, %v3431_v3  ;;  %v3337_v13 = vshrl.u32 %v3015_v33, 16  ;;  %v3340_v52 = vshll.u32 %v3015_v33, 16  ;;  %v2283_v43 = vrot.slane %v2281_v29, 5  ;;  %v3346_v45 = vshll.u32 %v7605_v49, 16  ;;  %v7613_v62 = vpop.f32.mrf.mxu2 }
 0x185   : > { %1999 = vrot.lane.b32.xlu0 %v1911_v41, %s6196_s28  ;;  %8388 = vst [vmem:[#allocation4_spill] sm:$0xff] %v7598_v25  ;;  %v5566_v47 = vld [vmem:[#allocation3 + $0xb0] sm:$0xf]  ;;  %v2278_v41 = vor.u32 %v2277_v53, %v2274_v21  ;;  %v2616_v60 = vld [vmem:[#allocation2 + $0xb0] sm:$0x1]  ;;  %v2287_v38 = vrot.slane %v2285_v24, 4  ;;  %v7624_v53 = vpop.f32.mrf.mxu1 }
 0x186   : > { %2001 = vrot.lane.b32.xlu1 %v1912_v14, %s6196_s28  ;;  %v7608_v14 = vld [vmem:[#allocation2 + $0xac] sm:$0xf]  ;;  %v5976_v28 = vld [vmem:[#allocation3 + $0xc0] sm:$0xf0]  ;;  %v3339_v31 = vrot.slane %v3337_v13, 4  ;;  %v3342_v63 = vrot.slane %v3340_v52, 5 }
 0x187   : > { %v1972_v5 = vpop.permute.xlu0 %1971  ;;  %v5980_v9 = vld [vmem:[#allocation3 + $0xe0] sm:$0xf0]  ;;  %v5567_v30 = vor.u32 %v5976_v28, %v5566_v47  ;;  %v2279_v54 = vrot.slane %v2278_v41, 4  ;;  %v7615_v27 = vrot.slane %v3346_v45, 5  ;;  %v2764_v3 = vrot.slane %v7608_v14, 5  ;;  %v7637_v28 = vpop.f32.mrf.mxu3 }
 0x188   : > { %v1974_v7 = vpop.permute.xlu1 %1973  ;;  %v5978_v34 = vld [vmem:[#allocation3 + $0xd4] sm:$0xf]  ;;  %2057 = vst.msk [vmem:[#allocation3 + $0xcc] sm:$0xf] %vm1579_vm12, %v1972_v5  ;;  %v5579_v8 = vor.u32 %v5980_v9, %v5578_v40  ;;  %v2767_v46 = vrot.slane %v2616_v60, 5  ;;  %v3343_v39 = vor.u32 %v3342_v63, %v3339_v31  ;;  %v3350_v33 = vshrl.u32 %v7605_v49, 16 }
 0x189   : > { %2058 = vst.msk [vmem:[#allocation3 + $0xe0] sm:$0xf] %vm1579_vm12, %v1974_v7  ;;  %3454 = vrot.lane.b32.xlu2 %v3311_v50, %s6196_s28  ;;  %v2611_v57 = vld [vmem:[#allocation2 + $0x9c] sm:$0xe]  ;;  %5936 = vmatmul.msk.bf16.gmra.mxu0 %vm4592_vm1, %v5567_v30  ;;  %v2284_v48 = vsel %vm6282_vm8, %v2279_v54, %v2283_v43  ;;  %v2924_v50 = vld [vmem:[#allocation2 + $0x60] sm:$0xf]  ;;  %v2288_v9 = vor.u32 %v2287_v38, %v2283_v43 }
 0x18a   : > { %4852 = vmatmul.bf16.gmra.mxu2 %v5579_v8  ;;  %v5448_v10 = vrot.slane %v2611_v57, 9  ;;  %v2099_v5 = vld [vmem:[#allocation2 + $0x5c] sm:$0x1]  ;;  %2555 = vst.msk [vmem:[#allocation3 + $0xf8] sm:$0xf] %vm437_vm0, %v2284_v48  ;;  %v2766_v7 = vrot.slane %v2764_v3, 4 }
 0x18b   : > { %v2808_v59 = vpop.permute.xlu2 %2807  ;;  %v5580_v12 = vld [vmem:[#allocation3 + $0xe4] sm:$0xf0]  ;;  %v2291_v29 = vshll.u32 %v2099_v5, 16  ;;  %v2925_v40 = vld [vmem:[#allocation2 + $0x64] sm:$0xf]  ;;  %v7635_v52 = vrot.slane %v806_v15, 7  ;;  %v7648_v15 = vpop.f32.mrf.mxu0 }
 0x18c   : > { %v5583_v2 = vor.u32 %v5978_v34, %v5580_v12  ;;  %2891 = vst.msk [vmem:[#allocation3 + $0xf8] sm:$0xf] %vm1579_vm12, %v2808_v59  ;;  %v3344_v34 = vrot.slane %v3343_v39, 4  ;;  %v2758_v24 = vsel %vm6800_vm15, %v5448_v10, %v2757_v37  ;;  %v2768_v41 = vsel %vm6800_vm15, %v2766_v7, %v2767_v46  ;;  %v3551_v45 = vld [vmem:[#allocation2 + $0x54] sm:$0xe]  ;;  %v7656_v5 = vpop.f32.mrf.mxu2 }
 0x18d   : > { %2956 = vst.msk [vmem:[#allocation3 + $0xfc] sm:$0xf] %vm437_vm0, %v2924_v50  ;;  %v2293_v8 = vrot.slane %v2291_v29, 5  ;;  %2837 = vrot.lane.b32.xlu0 %v2768_v41, %s6196_s28  ;;  %v2289_v37 = vrot.slane %v2288_v9, 4  ;;  %v814_v60 = vshrl.u32 %v7611_v51, 16  ;;  %v5457_v31 = vrot.slane %v3551_v45, 9  ;;  %v7663_v41 = vpop.f32.mrf.mxu1 }
 0x18e   : > { %4941 = vmatmul.bf16.gmra.mxu3 %v5583_v2  ;;  %8389 = vst [vmem:[#allocation5_spill] sm:$0xff] %v7637_v28  ;;  %v3349_v26 = vsel %vm6282_vm8, %v3344_v34, %v7615_v27  ;;  %v3552_v30 = vld [vmem:[#allocation2 + $0x58] sm:$0xf]  ;;  %v3553_v54 = vld [vmem:[#allocation2 + $0x5c] sm:$0x1]  ;;  %v812_v34 = vrot.slane %v7635_v52, 4 }
 0x18f   : > { %v2810_v36 = vpop.permute.xlu0 %2809  ;;  %v5977_v47 = vld [vmem:[#allocation3 + $0xcc] sm:$0xf]  ;;  %3460 = vrot.lane.b32.xlu1 %v3349_v26, %s6196_s28  ;;  %2957 = vst.msk [vmem:[#allocation3 + $0x110] sm:$0xf] %vm437_vm0, %v2925_v40  ;;  %v2294_v59 = vsel %vm6282_vm8, %v2289_v37, %v2293_v8  ;;  %v3669_v63 = vrot.slane %v3552_v30, 5  ;;  %v3672_v2 = vrot.slane %v3553_v54, 5 }
 0x190   : > { %v3433_v21 = vpop.permute.xlu1 %3432  ;;  %v5572_v13 = vld [vmem:[#allocation3 + $0xdc] sm:$0xf0]  ;;  %2556 = vst.msk [vmem:[#allocation3 + $0x10c] sm:$0xf] %vm437_vm0, %v2294_v59  ;;  %v1913_v46 = vld [vmem:[#allocation2 + $0xa8] sm:$0xf] }
 0x191   : > { %2831 = vrot.lane.b32.xlu2 %v2758_v24, %s6196_s28  ;;  %3516 = vst.msk [vmem:[#allocation3 + $0xfc] sm:$0xf] %vm1579_vm12, %v3433_v21  ;;  %v5575_v43 = vor.u32 %v5977_v47, %v5572_v13  ;;  %v3014_v57 = vld [vmem:[#allocation2 + $0xb0] sm:$0x1]  ;;  %v3670_v48 = vsel %vm6800_vm15, %v5457_v31, %v3669_v63  ;;  %v3671_v39 = vrot.slane %v3669_v63, 4  ;;  %v7670_v54 = vrot.slane %v814_v60, 7 }
 0x192   : > { %2892 = vst.msk [vmem:[#allocation3 + $0x10c] sm:$0xf] %vm1579_vm12, %v2810_v36  ;;  %v1914_v10 = vld [vmem:[#allocation2 + $0xac] sm:$0xf]  ;;  %v3332_v50 = vshll.u32 %v3014_v57, 16  ;;  %v7678_v57 = vpop.f32.mrf.mxu3 }
 0x193   : > { %v3435_v12 = vpop.permute.xlu2 %3434  ;;  %4763 = vmatmul.bf16.gmra.mxu1 %v5575_v43  ;;  %v1631_v38 = vld [vmem:[#allocation2 + $0x4c] sm:$0xf]  ;;  %v1632_v21 = vld [vmem:[#allocation2 + $0x50] sm:$0x1]  ;;  %v3673_v36 = vsel %vm6800_vm15, %v3671_v39, %v3672_v2  ;;  %3786 = vst.msk [vmem:[#allocation3 + $0xd8] sm:$0xf] %vm437_vm0, %v3670_v48 }
 0x194   : > { %3517 = vst.msk [vmem:[#allocation3 + $0x110] sm:$0xf] %vm1579_vm12, %v3435_v12  ;;  %v1755_v29 = vrot.slane %v1631_v38, 5  ;;  %v3334_v24 = vrot.slane %v3332_v50, 5  ;;  %v1758_v9 = vrot.slane %v1632_v21, 5  ;;  %v817_v50 = vshll.u32 %v7611_v51, 16  ;;  %v7685_v21 = vpop.f32.mrf.mxu0 }
 0x195   : > { %v1630_v47 = vld [vmem:[#allocation2 + $0x48] sm:$0xe]  ;;  %3787 = vst.msk [vmem:[#allocation3 + $0xec] sm:$0xf] %vm437_vm0, %v3673_v36  ;;  %v2100_v26 = vld [vmem:[#allocation2 + $0x60] sm:$0xf]  ;;  %2003 = vrot.lane.b32.xlu0 %v1913_v46, %s6196_s28 }
 0x196   : > { %v1757_v8 = vrot.slane %v1755_v29, 4  ;;  %v5426_v13 = vrot.slane %v1630_v47, 9  ;;  %v3335_v37 = vsel %vm6282_vm8, %v7594_v56, %v3334_v24  ;;  %v2101_v43 = vld [vmem:[#allocation2 + $0x64] sm:$0xf]  ;;  %v2296_v45 = vshrl.u32 %v2100_v26, 16  ;;  %8390 = vst [vmem:[#allocation6_spill] sm:$0xff] %v7678_v57 }
 0x197   : > { %v1976_v7 = vpop.permute.xlu0 %1975  ;;  %v2299_v30 = vshll.u32 %v2100_v26, 16  ;;  %2005 = vrot.lane.b32.xlu1 %v1914_v10, %s6196_s28  ;;  %v2305_v31 = vshll.u32 %v2101_v43, 16  ;;  %v2309_v63 = vshrl.u32 %v2101_v43, 16  ;;  %v5598_v2 = vld [vmem:[#allocation3 + $0xf8] sm:$0xf] }
 0x198   : > { %v1978_v40 = vpop.permute.xlu1 %1977  ;;  %v1759_v59 = vsel %vm6800_vm15, %v1757_v8, %v1758_v9  ;;  %v1756_v12 = vsel %vm6800_vm15, %v5426_v13, %v1755_v29  ;;  %v5983_v46 = vld [vmem:[#allocation3 + $0xfc] sm:$0xf]  ;;  %v495_v56 = vld [vmem:[#allocation2 + $0xc0] sm:$0x1]  ;;  %v2298_v60 = vrot.slane %v2296_v45, 4  ;;  %v819_v8 = vor.u32 %v817_v50, %v7670_v54  ;;  %v7704_v50 = vpop.f32.mrf.mxu1 }
 0x199   : > { %3458 = vrot.lane.b32.xlu2 %v3335_v37, %s6196_s28  ;;  %1868 = vst.msk [vmem:[#allocation3 + $0x108] sm:$0xf] %vm437_vm0, %v1759_v59  ;;  %v2301_v48 = vrot.slane %v2299_v30, 5  ;;  %v496_v10 = vsel %vm6239_vm3, 0, %v495_v56  ;;  %v2307_v38 = vrot.slane %v2305_v31, 5  ;;  %v2311_v36 = vrot.slane %v2309_v63, 4  ;;  %v7697_v63 = vpop.f32.mrf.mxu2 }
 0x19a   : > { %2060 = vst.msk [vmem:[#allocation3 + $0x108] sm:$0xf] %vm1579_vm12, %v1978_v40  ;;  %v5985_v29 = vld [vmem:[#allocation3 + $0x108] sm:$0xf0]  ;;  %v7689_v13 = vld [vmem:[#allocation2 + $0xb8] sm:$0xf] }
 0x19b   : > { %v2812_v39 = vpop.permute.xlu2 %2811  ;;  %1867 = vst.msk [vmem:[#allocation3 + $0xf4] sm:$0xf] %vm437_vm0, %v1756_v12  ;;  %v2302_v24 = vor.u32 %v2301_v48, %v2298_v60  ;;  %v5599_v9 = vor.u32 %v5985_v29, %v5598_v2  ;;  %v5600_v47 = vld [vmem:[#allocation3 + $0x10c] sm:$0xf0]  ;;  %v5586_v37 = vld [vmem:[#allocation3 + $0xd8] sm:$0xf]  ;;  %v2312_v45 = vor.u32 %v2311_v36, %v2307_v38  ;;  %v820_v12 = vsel %vm6316_vm11, %v812_v34, %v819_v8 }
 0x19c   : > { %2059 = vst.msk [vmem:[#allocation3 + $0xf4] sm:$0xf] %vm1579_vm12, %v1976_v7  ;;  %v5603_v51 = vor.u32 %v5983_v46, %v5600_v47  ;;  %v2619_v40 = vld [vmem:[#allocation2 + $0xbc] sm:$0x1]  ;;  %v5981_v30 = vld [vmem:[#allocation3 + $0xe8] sm:$0xf0] }
 0x19d   : > { %v2303_v59 = vrot.slane %v2302_v24, 4  ;;  %4857 = vmatmul.bf16.gmra.mxu2 %v5599_v9  ;;  %497 = vst [vmem:[#allocation2 + $0xc0] sm:$0x1] %v496_v10  ;;  %v8374_v31 = vrot.slane %v7689_v13, 5  ;;  %v5587_v2 = vor.u32 %v5981_v30, %v5586_v37  ;;  %v2774_v7 = vrot.slane %v2619_v40, 5  ;;  %v7732_v30 = vpop.f32.mrf.mxu0 }
 0x19e   : > { %4946 = vmatmul.bf16.gmra.mxu3 %v5603_v51  ;;  %980 = vst.msk [vmem:[#allocation2 + $0xc4] sm:$0xf] %vm437_vm0, %v820_v12  ;;  %v2614_v46 = vld [vmem:[#allocation2 + $0xa8] sm:$0xe]  ;;  %v2313_v56 = vrot.slane %v2312_v45, 4  ;;  %v3352_v24 = vrot.slane %v3350_v33, 4  ;;  %v7723_v33 = vpop.f32.mrf.mxu3 }
 0x19f   : > { %v7691_v26 = vpop.permute.xlu0 %2813  ;;  %v2308_v60 = vsel %vm6282_vm8, %v2303_v59, %v2307_v38  ;;  %v2773_v48 = vrot.slane %v8374_v31, 4  ;;  %v5449_v10 = vrot.slane %v2614_v46, 9  ;;  %v2102_v34 = vld [vmem:[#allocation2 + $0x68] sm:$0x1]  ;;  %5937 = vmatmul.msk.bf16.gmra.mxu0 %vm4592_vm1, %v5587_v2  ;;  %v2927_v36 = vld [vmem:[#allocation2 + $0x70] sm:$0xf]  ;;  %v811_v38 = vor.u32 %v809_v22, %v7635_v52 }
 0x1a0   : > { %v3437_v43 = vpop.permute.xlu1 %3436  ;;  %2557 = vst.msk [vmem:[#allocation3 + $0x120] sm:$0xf] %vm437_vm0, %v2308_v60  ;;  %v2315_v29 = vshll.u32 %v2102_v34, 16  ;;  %v3554_v51 = vld [vmem:[#allocation2 + $0x60] sm:$0xe] }
 0x1a1   : > { %2893 = vst.msk [vmem:[#allocation3 + $0x120] sm:$0xf] %vm1579_vm12, %v2812_v39  ;;  %v2775_v9 = vsel %vm6800_vm15, %v2773_v48, %v2774_v7  ;;  %v2765_v47 = vsel %vm6800_vm15, %v5449_v10, %v2764_v3  ;;  %v5592_v37 = vld [vmem:[#allocation3 + $0x104] sm:$0xf0]  ;;  %v3555_v61 = vld [vmem:[#allocation2 + $0x64] sm:$0xf]  ;;  %v3353_v3 = vor.u32 %v3352_v24, %v7615_v27  ;;  %v7741_v16 = vpop.f32.mrf.mxu2 }
 0x1a2   : > { %2841 = vrot.lane.b32.xlu0 %v2775_v9, %s6196_s28  ;;  %2835 = vrot.lane.b32.xlu2 %v2765_v47, %s6196_s28  ;;  %v2317_v49 = vrot.slane %v2315_v29, 5  ;;  %v5458_v22 = vrot.slane %v3554_v51, 9  ;;  %8391 = vst [vmem:[#allocation7_spill] sm:$0xff] %v7723_v33  ;;  %v3556_v52 = vld [vmem:[#allocation2 + $0x68] sm:$0x1]  ;;  %v3676_v12 = vrot.slane %v3555_v61, 5 }
 0x1a3   : > { %v3439_v8 = vpop.permute.xlu2 %3438  ;;  %3518 = vst.msk [vmem:[#allocation3 + $0x124] sm:$0xf] %vm1579_vm12, %v3437_v43  ;;  %v5982_v14 = vld [vmem:[#allocation3 + $0xf4] sm:$0xf]  ;;  %v3679_v2 = vrot.slane %v3556_v52, 5  ;;  %v3354_v29 = vrot.slane %v3353_v3, 4 }
 0x1a4   : > { %v977_v40 = vld [vmem:[#allocation2 + $0xc0] sm:$0xf]  ;;  %v2318_v45 = vsel %vm6282_vm8, %v2313_v56, %v2317_v49  ;;  %2959 = vst.msk [vmem:[#allocation3 + $0x138] sm:$0xf] %vm437_vm0, %v2927_v36  ;;  %v5595_v59 = vor.u32 %v5982_v14, %v5592_v37  ;;  %v3677_v56 = vsel %vm6800_vm15, %v5458_v22, %v3676_v12  ;;  %v3678_v60 = vrot.slane %v3676_v12, 4 }
 0x1a5   : > { %v978_v43 = vsel %vm6310_vm10, %v811_v38, %v977_v40  ;;  %v3019_v46 = vld [vmem:[#allocation2 + $0xc4] sm:$0xf]  ;;  %2558 = vst.msk [vmem:[#allocation3 + $0x134] sm:$0xf] %vm437_vm0, %v2318_v45  ;;  %v1915_v48 = vld [vmem:[#allocation2 + $0xb4] sm:$0xf] }
 0x1a6   : > { %979 = vst [vmem:[#allocation2 + $0xc0] sm:$0xf] %v978_v43  ;;  %v3370_v27 = vshll.u32 %v3019_v46, 16  ;;  %4768 = vmatmul.bf16.gmra.mxu1 %v5595_v59  ;;  %v3017_v10 = vld [vmem:[#allocation2 + $0xbc] sm:$0x1]  ;;  %v3374_v34 = vshrl.u32 %v3019_v46, 16  ;;  %v3680_v11 = vsel %vm6800_vm15, %v3678_v60, %v3679_v2 }
 0x1a7   : > { %v7727_v39 = vpop.permute.xlu0 %1979  ;;  %2894 = vst.msk [vmem:[#allocation3 + $0x134] sm:$0xf] %vm1579_vm12, %v7691_v26  ;;  %v3356_v36 = vshll.u32 %v3017_v10, 16  ;;  %v1634_v24 = vld [vmem:[#allocation2 + $0x58] sm:$0xf] }
 0x1a8   : > { %v1982_v7 = vpop.permute.xlu1 %1981  ;;  %3519 = vst.msk [vmem:[#allocation3 + $0x138] sm:$0xf] %vm1579_vm12, %v3439_v8  ;;  %v1635_v38 = vld [vmem:[#allocation2 + $0x5c] sm:$0x1]  ;;  %v7751_v26 = vrot.slane %v3370_v27, 5  ;;  %v1762_v37 = vrot.slane %v1634_v24, 5 }
 0x1a9   : > { %3788 = vst.msk [vmem:[#allocation3 + $0x100] sm:$0xf] %vm437_vm0, %v3677_v56  ;;  %v3358_v8 = vrot.slane %v3356_v36, 5  ;;  %v1765_v51 = vrot.slane %v1635_v38, 5  ;;  %v1633_v49 = vld [vmem:[#allocation2 + $0x54] sm:$0xe] }
 0x1aa   : > { %3789 = vst.msk [vmem:[#allocation3 + $0x114] sm:$0xf] %vm437_vm0, %v3680_v11  ;;  %2007 = vrot.lane.b32.xlu0 %v1915_v48, %s6196_s28  ;;  %v2103_v61 = vld [vmem:[#allocation2 + $0x6c] sm:$0xf]  ;;  %v2104_v22 = vld [vmem:[#allocation2 + $0x70] sm:$0xf] }
 0x1ab   : > { %v7747_v9 = vpop.f32.mrf.mxu1  ;;  %v7749_v47 = vpop.permute.xlu2 %2815  ;;  %v3359_v3 = vsel %vm6282_vm8, %v3354_v29, %v3358_v8  ;;  %v1764_v40 = vrot.slane %v1762_v37, 4  ;;  %v5427_v45 = vrot.slane %v1633_v49, 9  ;;  %v2320_v59 = vshrl.u32 %v2103_v61, 16  ;;  %v5618_v12 = vld [vmem:[#allocation3 + $0x120] sm:$0xf] }
 0x1ac   : > { %3462 = vrot.lane.b32.xlu2 %v3359_v3, %s6196_s28  ;;  %v2323_v27 = vshll.u32 %v2103_v61, 16  ;;  %v2329_v56 = vshll.u32 %v2104_v22, 16  ;;  %v2333_v60 = vshrl.u32 %v2104_v22, 16  ;;  %v7766_v48 = vrot.slane %v3374_v34, 4  ;;  %v5988_v38 = vld [vmem:[#allocation3 + $0x124] sm:$0xf] }
 0x1ad   : > { %v7755_v14 = vpop.f32.mrf.mxu3  ;;  %v3018_v46 = vld [vmem:[#allocation2 + $0xc0] sm:$0xf]  ;;  %v1766_v29 = vsel %vm6800_vm15, %v1764_v40, %v1765_v51  ;;  %v1763_v36 = vsel %vm6800_vm15, %v5427_v45, %v1762_v37  ;;  %v2322_v8 = vrot.slane %v2320_v59, 4  ;;  %v7775_v37 = vpop.f32.mrf.mxu2 }
 0x1ae   : > { %8392 = vst [vmem:[#allocation8_spill] sm:$0xff] %v7755_v14  ;;  %v3361_v10 = vshrl.u32 %v3018_v46, 16  ;;  %v3364_v11 = vshll.u32 %v3018_v46, 16  ;;  %v5990_v24 = vld [vmem:[#allocation3 + $0x130] sm:$0xf0]  ;;  %v2325_v49 = vrot.slane %v2323_v27, 5 }
 0x1af   : > { %v7757_v52 = vpop.permute.xlu0 %2817  ;;  %1870 = vst.msk [vmem:[#allocation3 + $0x130] sm:$0xf] %vm437_vm0, %v1766_v29  ;;  %v2331_v3 = vrot.slane %v2329_v56, 5  ;;  %v5619_v61 = vor.u32 %v5990_v24, %v5618_v12  ;;  %v5620_v40 = vld [vmem:[#allocation3 + $0x134] sm:$0xf0]  ;;  %v3377_v24 = vor.u32 %v7766_v48, %v7751_v26 }
 0x1b0   : > { %v7761_v2 = vpop.permute.xlu1 %3440  ;;  %v7763_v43 = vpop.f32.mrf.mxu0  ;;  %v3363_v31 = vrot.slane %v3361_v10, 4  ;;  %v3366_v22 = vrot.slane %v3364_v11, 5  ;;  %v5606_v34 = vld [vmem:[#allocation3 + $0x100] sm:$0xf]  ;;  %2062 = vst.msk [vmem:[#allocation3 + $0x130] sm:$0xf] %vm1579_vm12, %v1982_v7  ;;  %v2326_v51 = vor.u32 %v2325_v49, %v2322_v8  ;;  %v5623_v59 = vor.u32 %v5988_v38, %v5620_v40 }
 0x1b1   : > { %v5986_v46 = vld [vmem:[#allocation3 + $0x110] sm:$0xf0]  ;;  %1869 = vst.msk [vmem:[#allocation3 + $0x11c] sm:$0xf] %vm437_vm0, %v1763_v36  ;;  %4862 = vmatmul.bf16.gmra.mxu2 %v5619_v61  ;;  %v7779_v27 = vld [vmem:[#allocation2 + $0xd0] sm:$0xf] }
 0x1b2   : > { %v3367_v14 = vor.u32 %v3366_v22, %v3363_v31  ;;  %v5607_v29 = vor.u32 %v5986_v46, %v5606_v34  ;;  %2061 = vst.msk [vmem:[#allocation3 + $0x11c] sm:$0xf] %vm1579_vm12, %v7727_v39  ;;  %v3021_v12 = vld [vmem:[#allocation2 + $0xcc] sm:$0xf]  ;;  %v2327_v56 = vrot.slane %v2326_v51, 4  ;;  %4951 = vmatmul.bf16.gmra.mxu3 %v5623_v59  ;;  %v3394_v39 = vshll.u32 %v7779_v27, 16 }
 0x1b3   : > { %v3443_v45 = vpop.permute.xlu2 %3442  ;;  %v3385_v7 = vshrl.u32 %v3021_v12, 16  ;;  %v3388_v10 = vshll.u32 %v3021_v12, 16  ;;  %v545_v11 = vld [vmem:[#allocation2 + $0xc8] sm:$0x1]  ;;  %v7781_v36 = vpop.f32.mrf.mxu1  ;;  %v7791_v49 = vld [vmem:[#allocation2 + $0xc4] sm:$0xf] }
 0x1b4   : > { %v3368_v31 = vrot.slane %v3367_v14, 4  ;;  %5938 = vmatmul.msk.bf16.gmra.mxu0 %vm4592_vm1, %v5607_v29  ;;  %v546_v38 = vsel %vm6292_vm9, 0, %v545_v11  ;;  %v2335_v61 = vrot.slane %v2333_v60, 4  ;;  %v2332_v48 = vsel %vm6282_vm8, %v2327_v56, %v2331_v3  ;;  %v2617_v29 = vld [vmem:[#allocation2 + $0xb4] sm:$0xe] }
 0x1b5   : > { %547 = vst [vmem:[#allocation2 + $0xc8] sm:$0x1] %v546_v38  ;;  %v821_v46 = vrot.slane %v7670_v54, 4  ;;  %v7801_v51 = vpop.f32.mrf.mxu3  ;;  %v3387_v60 = vrot.slane %v3385_v7, 4  ;;  %v3390_v40 = vrot.slane %v3388_v10, 5  ;;  %v8375_v12 = vrot.slane %v7791_v49, 5 }
 0x1b6   : > { %8393 = vst [vmem:[#allocation9_spill] sm:$0xff] %v7801_v51  ;;  %v3373_v44 = vsel %vm6282_vm8, %v3368_v31, %v7751_v26  ;;  %v2336_v59 = vor.u32 %v2335_v61, %v2331_v3  ;;  %v5450_v54 = vrot.slane %v2617_v29, 9  ;;  %v2928_v56 = vld [vmem:[#allocation2 + $0x78] sm:$0xf]  ;;  %v7811_v11 = vrot.slane %v3394_v39, 5 }
 0x1b7   : > { %v7785_v8 = vpop.permute.xlu0 %1983  ;;  %2559 = vst.msk [vmem:[#allocation3 + $0x148] sm:$0xf] %vm437_vm0, %v2332_v48  ;;  %3464 = vrot.lane.b32.xlu1 %v3373_v44, %s6196_s28  ;;  %v2105_v26 = vld [vmem:[#allocation2 + $0x74] sm:$0x1]  ;;  %v7814_v31 = vrot.slane %v3377_v24, 4  ;;  %v8394_v7 = vrot.slane %v7689_v13, 5  ;;  %v3391_v44 = vor.u32 %v3390_v40, %v3387_v60 }
 0x1b8   : > { %v7793_v22 = vpop.permute.xlu1 %1985  ;;  %v7795_v34 = vpop.f32.mrf.mxu0  ;;  %2895 = vst.msk [vmem:[#allocation3 + $0x148] sm:$0xf] %vm1579_vm12, %v7749_v47  ;;  %v2337_v47 = vrot.slane %v2336_v59, 4  ;;  %v2339_v10 = vshll.u32 %v2105_v26, 16  ;;  %v2929_v38 = vld [vmem:[#allocation2 + $0x7c] sm:$0xf] }
 0x1b9   : > { %2960 = vst.msk [vmem:[#allocation3 + $0x14c] sm:$0xf] %vm437_vm0, %v2928_v56  ;;  %v2772_v3 = vsel %vm6800_vm15, %v5450_v54, %v8394_v7  ;;  %v1916_v48 = vld [vmem:[#allocation2 + $0xb8] sm:$0xf]  ;;  %v5987_v24 = vld [vmem:[#allocation3 + $0x11c] sm:$0xf] }
 0x1ba   : > { %3520 = vst.msk [vmem:[#allocation3 + $0x14c] sm:$0xf] %vm1579_vm12, %v7761_v2  ;;  %2839 = vrot.lane.b32.xlu2 %v2772_v3, %s6196_s28  ;;  %v5612_v13 = vld [vmem:[#allocation3 + $0x12c] sm:$0xf0]  ;;  %v7828_v29 = vrot.slane %v8375_v12, 4  ;;  %v2341_v54 = vrot.slane %v2339_v10, 5 }
 0x1bb   : > { %v7822_v61 = vpop.permute.xlu2 %2819  ;;  %2961 = vst.msk [vmem:[#allocation3 + $0x160] sm:$0xf] %vm437_vm0, %v2929_v38  ;;  %v5615_v2 = vor.u32 %v5987_v24, %v5612_v13  ;;  %v3557_v59 = vld [vmem:[#allocation2 + $0x6c] sm:$0xe]  ;;  %v3558_v7 = vld [vmem:[#allocation2 + $0x70] sm:$0xf] }
 0x1bc   : > { %3521 = vst.msk [vmem:[#allocation3 + $0x160] sm:$0xf] %vm1579_vm12, %v3443_v45  ;;  %v981_v26 = vld [vmem:[#allocation2 + $0xc8] sm:$0x1]  ;;  %v3559_v60 = vld [vmem:[#allocation2 + $0x74] sm:$0x1]  ;;  %v2342_v12 = vsel %vm6282_vm8, %v2337_v47, %v2341_v54 }
 0x1bd   : > { %v4828_v39 = vpop.f32.mrf.mxu2  ;;  %v982_v38 = vsel %vm6239_vm3, %v821_v46, %v981_v26  ;;  %4773 = vmatmul.bf16.gmra.mxu1 %v5615_v2  ;;  %v5459_v10 = vrot.slane %v3557_v59, 9  ;;  %v3683_v14 = vrot.slane %v3558_v7, 5  ;;  %v3392_v24 = vrot.slane %v3391_v44, 4  ;;  %v1637_v51 = vld [vmem:[#allocation2 + $0x64] sm:$0xf] }
 0x1be   : > { %983 = vst [vmem:[#allocation2 + $0xc8] sm:$0x1] %v982_v38  ;;  %v3686_v13 = vrot.slane %v3559_v60, 5  ;;  %v1638_v26 = vld [vmem:[#allocation2 + $0x68] sm:$0x1]  ;;  %v1769_v47 = vrot.slane %v1637_v51, 5 }
 0x1bf   : > { %v7831_v56 = vpop.permute.xlu0 %2821  ;;  %2009 = vrot.lane.b32.xlu1 %v1916_v48, %s6196_s28  ;;  %2560 = vst.msk [vmem:[#allocation3 + $0x15c] sm:$0xf] %vm437_vm0, %v2342_v12  ;;  %v3684_v1 = vsel %vm6800_vm15, %v5459_v10, %v3683_v14  ;;  %v3685_v46 = vrot.slane %v3683_v14, 4  ;;  %v1772_v44 = vrot.slane %v1638_v26, 5  ;;  %v1636_v2 = vld [vmem:[#allocation2 + $0x60] sm:$0xe] }
 0x1c0   : > { %v7833_v40 = vpop.permute.xlu1 %3444  ;;  %v4739_v3 = vpop.f32.mrf.mxu1  ;;  %2896 = vst.msk [vmem:[#allocation3 + $0x15c] sm:$0xf] %vm1579_vm12, %v7757_v52  ;;  %v8395_v7 = vshrl.u32 %v7779_v27, 16  ;;  %v1771_v48 = vrot.slane %v1769_v47, 4  ;;  %v5428_v14 = vrot.slane %v1636_v2, 9  ;;  %v3397_v2 = vsel %vm6282_vm8, %v3392_v24, %v7811_v11 }
 0x1c1   : > { %v5006_v45 = vpop.f32.mrf.mxu0  ;;  %v4740_v33 = vadd.f32 %v4739_v3, %v7524_v58  ;;  %v4917_v54 = vpop.f32.mrf.mxu3  ;;  %v3687_v12 = vsel %vm6800_vm15, %v3685_v46, %v3686_v13  ;;  %3790 = vst.msk [vmem:[#allocation3 + $0x128] sm:$0xf] %vm437_vm0, %v3684_v1  ;;  %v2106_v60 = vld [vmem:[#allocation2 + $0x78] sm:$0xf]  ;;  %v2107_v52 = vld [vmem:[#allocation2 + $0x7c] sm:$0xf] }
 0x1c2   : > { %v7848_v58 = vrot.slane %v8395_v7, 4  ;;  %3791 = vst.msk [vmem:[#allocation3 + $0x13c] sm:$0xf] %vm437_vm0, %v3687_v12  ;;  %v2344_v38 = vshrl.u32 %v2106_v60, 16  ;;  %v1773_v27 = vsel %vm6800_vm15, %v1771_v48, %v1772_v44  ;;  %v1770_v10 = vsel %vm6800_vm15, %v5428_v14, %v1769_v47  ;;  %v5993_v46 = vld [vmem:[#allocation3 + $0x14c] sm:$0xf] }
 0x1c3   : > { %v4829_v59 = vadd.f32 %v4828_v39, %v4740_v33  ;;  %v7853_v51 = vpop.permute.xlu2 %3446  ;;  %v2347_v33 = vshll.u32 %v2106_v60, 16  ;;  %v2353_v13 = vshll.u32 %v2107_v52, 16  ;;  %v2357_v1 = vshrl.u32 %v2107_v52, 16  ;;  %1872 = vst.msk [vmem:[#allocation3 + $0x158] sm:$0xf] %vm437_vm0, %v1773_v27 }
 0x1c4   : > { %v2346_v7 = vrot.slane %v2344_v38, 4  ;;  %2064 = vst.msk [vmem:[#allocation3 + $0x158] sm:$0xf] %vm1579_vm12, %v7793_v22  ;;  %v5638_v47 = vld [vmem:[#allocation3 + $0x148] sm:$0xf] }
 0x1c5   : > { %v4830_v3 = vpop.f32.mrf.mxu2  ;;  %v4918_v39 = vadd.f32 %v4917_v54, %v4829_v59  ;;  %v2349_v12 = vrot.slane %v2347_v33, 5  ;;  %v5640_v54 = vld [vmem:[#allocation3 + $0x15c] sm:$0xf0]  ;;  %v2622_v48 = vld [vmem:[#allocation2 + $0xc8] sm:$0x1]  ;;  %v2355_v33 = vrot.slane %v2353_v13, 5 }
 0x1c6   : > { %v3020_v60 = vld [vmem:[#allocation2 + $0xc8] sm:$0x1]  ;;  %v5643_v14 = vor.u32 %v5993_v46, %v5640_v54  ;;  %v2781_v28 = vrot.slane %v2622_v48, 5  ;;  %1871 = vst.msk [vmem:[#allocation3 + $0x144] sm:$0xf] %vm437_vm0, %v1770_v10  ;;  %v3401_v46 = vor.u32 %v7848_v58, %v7811_v11 }
 0x1c7   : > { %v7860_v26 = vpop.permute.xlu0 %1987  ;;  %v3380_v24 = vshll.u32 %v3020_v60, 16  ;;  %v2350_v38 = vor.u32 %v2349_v12, %v2346_v7  ;;  %3468 = vrot.lane.b32.xlu1 %v3397_v2, %s6196_s28  ;;  %2063 = vst.msk [vmem:[#allocation3 + $0x144] sm:$0xf] %vm1579_vm12, %v7785_v8  ;;  %v5995_v27 = vld [vmem:[#allocation3 + $0x158] sm:$0xf0]  ;;  %v5007_v22 = vadd.f32 %v5006_v45, %v4918_v39  ;;  %v2359_v45 = vrot.slane %v2357_v1, 4 }
 0x1c8   : > { %v7866_v59 = vpop.permute.xlu1 %1989  ;;  %v4741_v44 = vpop.f32.mrf.mxu1  ;;  %4956 = vmatmul.bf16.gmra.mxu3 %v5643_v14  ;;  %v2620_v25 = vld [vmem:[#allocation2 + $0xc0] sm:$0xe]  ;;  %v2782_v10 = vsel %vm6800_vm15, %v7828_v29, %v2781_v28  ;;  %v5639_v2 = vor.u32 %v5995_v27, %v5638_v47  ;;  %v1918_v60 = vld [vmem:[#allocation2 + $0xc4] sm:$0xf]  ;;  %v2931_v1 = vld [vmem:[#allocation2 + $0x88] sm:$0xf] }
 0x1c9   : > { %v4742_v52 = vadd.f32 %v4741_v44, %v7568_v18  ;;  %v5008_v57 = vpop.f32.mrf.mxu0  ;;  %v4919_v18 = vpop.f32.mrf.mxu3  ;;  %v5626_v7 = vld [vmem:[#allocation3 + $0x128] sm:$0xf]  ;;  %v3382_v13 = vrot.slane %v3380_v24, 5  ;;  %v2351_v12 = vrot.slane %v2350_v38, 4  ;;  %v2930_v44 = vld [vmem:[#allocation2 + $0x84] sm:$0xf]  ;;  %2845 = vrot.lane.b32.xlu0 %v2782_v10, %s6196_s28  ;;  %v2360_v47 = vor.u32 %v2359_v45, %v2355_v33 }
 0x1ca   : > { %v5991_v8 = vld [vmem:[#allocation3 + $0x138] sm:$0xf0]  ;;  %v5451_v48 = vrot.slane %v2620_v25, 9  ;;  %2962 = vst.msk [vmem:[#allocation3 + $0x174] sm:$0xf] %vm437_vm0, %v2930_v44  ;;  %4867 = vmatmul.bf16.gmra.mxu2 %v5639_v2  ;;  %v7893_v38 = vrot.slane %v3401_v46, 4 }
 0x1cb   : > { %v4831_v54 = vadd.f32 %v4830_v3, %v4742_v52  ;;  %v7882_v39 = vpop.permute.xlu2 %2823  ;;  %v5627_v3 = vor.u32 %v5991_v8, %v5626_v7  ;;  %v3383_v28 = vsel %vm6282_vm8, %v7814_v31, %v3382_v13  ;;  %v2356_v29 = vsel %vm6282_vm8, %v2351_v12, %v2355_v33  ;;  %3522 = vst.msk [vmem:[#allocation3 + $0x174] sm:$0xf] %vm1579_vm12, %v7833_v40  ;;  %v2108_v25 = vld [vmem:[#allocation2 + $0x80] sm:$0x1]  ;;  %v3560_v24 = vld [vmem:[#allocation2 + $0x78] sm:$0xe] }
 0x1cc   : > { %3466 = vrot.lane.b32.xlu2 %v3383_v28, %s6196_s28  ;;  %2561 = vst.msk [vmem:[#allocation3 + $0x170] sm:$0xf] %vm437_vm0, %v2356_v29  ;;  %v2363_v14 = vshll.u32 %v2108_v25, 16  ;;  %v5086_v52 = vpack.c.bf16 %v5007_v22, %v5007_v22  ;;  %v1917_v40 = vld [vmem:[#allocation2 + $0xc0] sm:$0xf]  ;;  %v5150_v33 = vsel %vm4592_vm1, %v5007_v22, 0.0 }
 0x1cd   : > { %v4920_v11 = vadd.f32 %v4919_v18, %v4831_v54  ;;  %v4833_v58 = vpop.f32.mrf.mxu2  ;;  %5939 = vmatmul.msk.bf16.gmra.mxu0 %vm4592_vm1, %v5627_v3  ;;  %2897 = vst.msk [vmem:[#allocation3 + $0x170] sm:$0xf] %vm1579_vm12, %v7822_v61  ;;  %v5632_v27 = vld [vmem:[#allocation3 + $0x154] sm:$0xf0]  ;;  %v5460_v18 = vrot.slane %v3560_v24, 9  ;;  %v2361_v7 = vrot.slane %v2360_v47, 4 }
 0x1ce   : > { %v2365_v13 = vrot.slane %v2363_v14, 5  ;;  %2963 = vst.msk [vmem:[#allocation3 + $0x188] sm:$0xf] %vm437_vm0, %v2931_v1  ;;  %v3561_v12 = vld [vmem:[#allocation2 + $0x7c] sm:$0xf]  ;;  %v8396_v61 = vrot.slane %v7791_v49, 5 }
 0x1cf   : > { %v7895_v31 = vpop.permute.xlu0 %2825  ;;  %v5009_v46 = vadd.f32 %v5008_v57, %v4920_v11  ;;  %3523 = vst.msk [vmem:[#allocation3 + $0x188] sm:$0xf] %vm1579_vm12, %v7853_v51  ;;  %v5219_v57 = vmul.f32 %v5007_v22, %v5007_v22  ;;  %v5992_v45 = vld [vmem:[#allocation3 + $0x144] sm:$0xf]  ;;  %v3562_v11 = vld [vmem:[#allocation2 + $0x80] sm:$0x1]  ;;  %2013 = vrot.lane.b32.xlu1 %v1918_v60, %s6196_s28 }
 0x1d0   : > { %v7908_v54 = vpop.permute.xlu1 %3448  ;;  %v4744_v10 = vpop.f32.mrf.mxu1  ;;  %v2779_v8 = vsel %vm6800_vm15, %v5451_v48, %v8396_v61  ;;  %v2366_v28 = vsel %vm6282_vm8, %v2361_v7, %v2365_v13  ;;  %5118 = vst.msk [vmem:[%s7902_s30] sm:$0xf] %vm437_vm0, %v5086_v52  ;;  %v3690_v29 = vrot.slane %v3561_v12, 5  ;;  %v3693_v49 = vrot.slane %v3562_v11, 5  ;;  %v3023_v25 = vld [vmem:[#allocation2 + $0xd4] sm:$0x1] }
 0x1d1   : > { %v4745_v2 = vadd.f32 %v4744_v10, %v7603_v42  ;;  %v7912_v44 = vpop.f32.mrf.mxu0  ;;  %v5087_v3 = vpack.c.bf16 %v5009_v46, %v5009_v46  ;;  %v5635_v42 = vor.u32 %v5992_v45, %v5632_v27  ;;  %v4922_v1 = vpop.f32.mrf.mxu3  ;;  %2562 = vst.msk [vmem:[#allocation3 + $0x184] sm:$0xf] %vm437_vm0, %v2366_v28  ;;  %v3404_v48 = vshll.u32 %v3023_v25, 16  ;;  %v1640_v51 = vld [vmem:[#allocation2 + $0x70] sm:$0xf]  ;;  %2011 = vrot.lane.b32.xlu0 %v1917_v40, %s6196_s28 }
 0x1d2   : > { %v5151_v22 = vsel %vm4592_vm1, %v5009_v46, 0.0  ;;  %v5220_v47 = vmul.f32 %v5009_v46, %v5009_v46  ;;  %2898 = vst.msk [vmem:[#allocation3 + $0x184] sm:$0xf] %vm1579_vm12, %v7831_v56  ;;  %v3691_v60 = vsel %vm6800_vm15, %v5460_v18, %v3690_v29  ;;  %v3692_v52 = vrot.slane %v3690_v29, 4  ;;  %v1641_v24 = vld [vmem:[#allocation2 + $0x74] sm:$0x1] }
 0x1d3   : > { %v4834_v14 = vadd.f32 %v4833_v58, %v4745_v2  ;;  %4778 = vmatmul.bf16.gmra.mxu1 %v5635_v42  ;;  %v1776_v27 = vrot.slane %v1640_v51, 5  ;;  %v7932_v10 = vadd.f32 %v5151_v22, %v5150_v33  ;;  %v5251_v13 = vsel %vm4592_vm1, %v5219_v57, 0.0  ;;  %3792 = vst.msk [vmem:[#allocation3 + $0x150] sm:$0xf] %vm437_vm0, %v3691_v60  ;;  %v1639_v46 = vld [vmem:[#allocation2 + $0x6c] sm:$0xe]  ;;  %v7939_v61 = vpop.permute.xlu2 %3450 }
 0x1d4   : > { %v1779_v58 = vrot.slane %v1641_v24, 5  ;;  %2843 = vrot.lane.b32.xlu2 %v2779_v8, %s6196_s28  ;;  %v3694_v56 = vsel %vm6800_vm15, %v3692_v52, %v3693_v49  ;;  %v5429_v18 = vrot.slane %v1639_v46, 9  ;;  %v2109_v12 = vld [vmem:[#allocation2 + $0x84] sm:$0xf]  ;;  %v2110_v2 = vld [vmem:[#allocation2 + $0x88] sm:$0xf] }
 0x1d5   : > { %v4835_v7 = vpop.f32.mrf.mxu2  ;;  %v1778_v40 = vrot.slane %v1776_v27, 4  ;;  %v4923_v33 = vadd.f32 %v4922_v1, %v4834_v14  ;;  %3793 = vst.msk [vmem:[#allocation3 + $0x164] sm:$0xf] %vm437_vm0, %v3694_v56  ;;  %v3406_v57 = vrot.slane %v3404_v48, 5  ;;  %v2368_v45 = vshrl.u32 %v2109_v12, 16 }
 0x1d6   : > { %v2371_v11 = vshll.u32 %v2109_v12, 16  ;;  %v2377_v28 = vshll.u32 %v2110_v2, 16  ;;  %v1777_v29 = vsel %vm6800_vm15, %v5429_v18, %v1776_v27  ;;  %v2381_v49 = vshrl.u32 %v2110_v2, 16  ;;  %5119 = vst.msk [vmem:[%s7902_s30 + $0x4] sm:$0xf] %vm437_vm0, %v5087_v3 }
 0x1d7   : > { %v1780_v8 = vsel %vm6800_vm15, %v1778_v40, %v1779_v58  ;;  %v5252_v25 = vsel %vm4592_vm1, %v5220_v47, 0.0  ;;  %v7949_v51 = vpop.permute.xlu0 %1991  ;;  %v2370_v48 = vrot.slane %v2368_v45, 4  ;;  %v5658_v52 = vld [vmem:[#allocation3 + $0x170] sm:$0xf]  ;;  %v5998_v27 = vld [vmem:[#allocation3 + $0x174] sm:$0xf]  ;;  %v5012_v3 = vadd.f32 %v7912_v44, %v4923_v33 }
 0x1d8   : > { %v4746_v42 = vpop.f32.mrf.mxu1  ;;  %1874 = vst.msk [vmem:[#allocation3 + $0x180] sm:$0xf] %vm437_vm0, %v1780_v8  ;;  %v2373_v22 = vrot.slane %v2371_v11, 5  ;;  %v2379_v14 = vrot.slane %v2377_v28, 5  ;;  %v5253_v60 = vadd.f32 %v5252_v25, %v5251_v13  ;;  %v7952_v24 = vpop.permute.xlu1 %1993  ;;  %v5660_v58 = vld [vmem:[#allocation3 + $0x184] sm:$0xf0]  ;;  %v3407_v56 = vsel %vm6282_vm8, %v7893_v38, %v3406_v57 }
 0x1d9   : > { %v5013_v1 = vpop.f32.mrf.mxu0  ;;  %2066 = vst.msk [vmem:[#allocation3 + $0x180] sm:$0xf] %vm1579_vm12, %v7866_v59  ;;  %v4924_v47 = vpop.f32.mrf.mxu3  ;;  %v4747_v46 = vadd.f32 %v4746_v42, %v7648_v15  ;;  %v6000_v40 = vld [vmem:[#allocation3 + $0x180] sm:$0xf0]  ;;  %v5663_v18 = vor.u32 %v5998_v27, %v5660_v58  ;;  %v2932_v12 = vld [vmem:[#allocation2 + $0x90] sm:$0xf]  ;;  %v5221_v44 = vmul.f32 %v5012_v3, %v5012_v3  ;;  %v5088_v8 = vpack.c.bf16 %v5012_v3, %v5012_v3 }
 0x1da   : > { %1873 = vst.msk [vmem:[#allocation3 + $0x16c] sm:$0xf] %vm437_vm0, %v1777_v29  ;;  %v2374_v13 = vor.u32 %v2373_v22, %v2370_v48  ;;  %v5646_v2 = vld [vmem:[#allocation3 + $0x150] sm:$0xf]  ;;  %v5659_v59 = vor.u32 %v6000_v40, %v5658_v52  ;;  %v2111_v45 = vld [vmem:[#allocation2 + $0x8c] sm:$0x1] }
 0x1db   : > { %2065 = vst.msk [vmem:[#allocation3 + $0x16c] sm:$0xf] %vm1579_vm12, %v7860_v26  ;;  %v4836_v33 = vadd.f32 %v4835_v7, %v4747_v46  ;;  %4961 = vmatmul.bf16.gmra.mxu3 %v5663_v18  ;;  %v2383_v38 = vrot.slane %v2381_v49, 4  ;;  %v2387_v57 = vshll.u32 %v2111_v45, 16  ;;  %v5153_v28 = vsel %vm4592_vm1, %v5012_v3, 0.0  ;;  %v7975_v3 = vpop.permute.xlu2 %2827 }
 0x1dc   : > { %v2375_v15 = vrot.slane %v2374_v13, 4  ;;  %2964 = vst.msk [vmem:[#allocation3 + $0x19c] sm:$0xf] %vm437_vm0, %v2932_v12  ;;  %v5996_v42 = vld [vmem:[#allocation3 + $0x160] sm:$0xf0]  ;;  %3470 = vrot.lane.b32.xlu2 %v3407_v56, %s6196_s28  ;;  %4872 = vmatmul.bf16.gmra.mxu2 %v5659_v59  ;;  %v5154_v7 = vadd.f32 %v5153_v28, %v7932_v10  ;;  %v5254_v58 = vsel %vm4592_vm1, %v5221_v44, 0.0 }
 0x1dd   : > { %v4838_v11 = vpop.f32.mrf.mxu2  ;;  %3524 = vst.msk [vmem:[#allocation3 + $0x19c] sm:$0xf] %vm1579_vm12, %v7908_v54  ;;  %v2933_v26 = vld [vmem:[#allocation2 + $0x94] sm:$0xf]  ;;  %v4925_v29 = vadd.f32 %v4924_v47, %v4836_v33  ;;  %v5647_v25 = vor.u32 %v5996_v42, %v5646_v2  ;;  %v2384_v49 = vor.u32 %v2383_v38, %v2379_v14  ;;  %v2389_v22 = vrot.slane %v2387_v57, 5 }
 0x1de   : > { %v2380_v48 = vsel %vm6282_vm8, %v2375_v15, %v2379_v14  ;;  %2965 = vst.msk [vmem:[#allocation3 + $0x1b0] sm:$0xf] %vm437_vm0, %v2933_v26  ;;  %v3563_v52 = vld [vmem:[#allocation2 + $0x84] sm:$0xe]  ;;  %v3564_v54 = vld [vmem:[#allocation2 + $0x88] sm:$0xf]  ;;  %v5255_v56 = vadd.f32 %v5254_v58, %v5253_v60 }
 0x1df   : > { %2563 = vst.msk [vmem:[#allocation3 + $0x198] sm:$0xf] %vm437_vm0, %v2380_v48  ;;  %v5461_v46 = vrot.slane %v3563_v52, 9  ;;  %v5014_v10 = vadd.f32 %v5013_v1, %v4925_v29  ;;  %5940 = vmatmul.msk.bf16.gmra.mxu0 %vm4592_vm1, %v5647_v25  ;;  %v2385_v14 = vrot.slane %v2384_v49, 4  ;;  %v3697_v40 = vrot.slane %v3564_v54, 5 }
 0x1e0   : > { %v4749_v27 = vpop.f32.mrf.mxu1  ;;  %2899 = vst.msk [vmem:[#allocation3 + $0x198] sm:$0xf] %vm1579_vm12, %v7882_v39  ;;  %v5652_v13 = vld [vmem:[#allocation3 + $0x17c] sm:$0xf0]  ;;  %v3565_v12 = vld [vmem:[#allocation2 + $0x8c] sm:$0x1] }
 0x1e1   : > { %v4750_v47 = vadd.f32 %v4749_v27, %v7685_v21  ;;  %v5016_v18 = vpop.f32.mrf.mxu0  ;;  %3525 = vst.msk [vmem:[#allocation3 + $0x1b0] sm:$0xf] %vm1579_vm12, %v7939_v61  ;;  %v1643_v2 = vld [vmem:[#allocation2 + $0x7c] sm:$0xf]  ;;  %v5089_v59 = vpack.c.bf16 %v5014_v10, %v5014_v10  ;;  %v5222_v1 = vmul.f32 %v5014_v10, %v5014_v10  ;;  %v4927_v45 = vpop.f32.mrf.mxu3  ;;  %v2390_v33 = vsel %vm6282_vm8, %v2385_v14, %v2389_v22  ;;  %v1644_v28 = vld [vmem:[#allocation2 + $0x80] sm:$0x1] }
 0x1e2   : > { %v7983_v21 = vpop.permute.xlu0 %2829  ;;  %5120 = vst.msk [vmem:[%s7902_s30 + $0x8] sm:$0xf] %vm437_vm0, %v5088_v8  ;;  %v5997_v39 = vld [vmem:[#allocation3 + $0x16c] sm:$0xf]  ;;  %v3698_v60 = vsel %vm6800_vm15, %v5461_v46, %v3697_v40  ;;  %v3699_v15 = vrot.slane %v3697_v40, 4  ;;  %v3700_v38 = vrot.slane %v3565_v12, 5  ;;  %v7991_v61 = vpop.permute.xlu1 %3452 }
 0x1e3   : > { %v4839_v44 = vadd.f32 %v4838_v11, %v4750_v47  ;;  %2564 = vst.msk [vmem:[#allocation3 + $0x1ac] sm:$0xf] %vm437_vm0, %v2390_v33  ;;  %v5655_v57 = vor.u32 %v5997_v39, %v5652_v13  ;;  %v1783_v42 = vrot.slane %v1643_v2, 5  ;;  %v5155_v11 = vsel %vm4592_vm1, %v5014_v10, 0.0  ;;  %v1642_v48 = vld [vmem:[#allocation2 + $0x78] sm:$0xe] }
 0x1e4   : > { %2900 = vst.msk [vmem:[#allocation3 + $0x1ac] sm:$0xf] %vm1579_vm12, %v7895_v31  ;;  %v3701_v8 = vsel %vm6800_vm15, %v3699_v15, %v3700_v38  ;;  %v1786_v25 = vrot.slane %v1644_v28, 5  ;;  %v5156_v49 = vadd.f32 %v5155_v11, %v5154_v7  ;;  %v5256_v22 = vsel %vm4592_vm1, %v5222_v1, 0.0  ;;  %v2112_v58 = vld [vmem:[#allocation2 + $0x90] sm:$0xf] }
 0x1e5   : > { %v4928_v26 = vadd.f32 %v4927_v45, %v4839_v44  ;;  %v4840_v29 = vpop.f32.mrf.mxu2  ;;  %4783 = vmatmul.bf16.gmra.mxu1 %v5655_v57  ;;  %3794 = vst.msk [vmem:[#allocation3 + $0x178] sm:$0xf] %vm437_vm0, %v3698_v60  ;;  %v1785_v52 = vrot.slane %v1783_v42, 4  ;;  %v5430_v27 = vrot.slane %v1642_v48, 9  ;;  %v5257_v54 = vadd.f32 %v5256_v22, %v5255_v56  ;;  %v2113_v31 = vld [vmem:[#allocation2 + $0x94] sm:$0xf]  ;;  %v8011_v60 = vpop.permute.xlu2 %3454 }
 0x1e6   : > { %3795 = vst.msk [vmem:[#allocation3 + $0x18c] sm:$0xf] %vm437_vm0, %v3701_v8  ;;  %v2392_v10 = vshrl.u32 %v2112_v58, 16  ;;  %v2395_v47 = vshll.u32 %v2112_v58, 16  ;;  %v2401_v40 = vshll.u32 %v2113_v31, 16  ;;  %v2405_v12 = vshrl.u32 %v2113_v31, 16 }
 0x1e7   : > { %v5017_v46 = vadd.f32 %v5016_v18, %v4928_v26  ;;  %v1787_v7 = vsel %vm6800_vm15, %v1785_v52, %v1786_v25  ;;  %v1784_v13 = vsel %vm6800_vm15, %v5430_v27, %v1783_v42  ;;  %5121 = vst.msk [vmem:[%s7902_s30 + $0xc] sm:$0xf] %vm437_vm0, %v5089_v59  ;;  %v6003_v2 = vld [vmem:[#allocation3 + $0x19c] sm:$0xf]  ;;  %v5678_v44 = vld [vmem:[#allocation3 + $0x198] sm:$0xf] }
 0x1e8   : > { %v4751_v14 = vpop.f32.mrf.mxu1  ;;  %1876 = vst.msk [vmem:[#allocation3 + $0x1a8] sm:$0xf] %vm437_vm0, %v1787_v7  ;;  %v2394_v56 = vrot.slane %v2392_v10, 4  ;;  %v2397_v18 = vrot.slane %v2395_v47, 5  ;;  %v2403_v45 = vrot.slane %v2401_v40, 5  ;;  %v2407_v39 = vrot.slane %v2405_v12, 4 }
 0x1e9   : > { %v5223_v1 = vmul.f32 %v5017_v46, %v5017_v46  ;;  %2068 = vst.msk [vmem:[#allocation3 + $0x1a8] sm:$0xf] %vm1579_vm12, %v7952_v24  ;;  %v5680_v33 = vld [vmem:[#allocation3 + $0x1ac] sm:$0xf0]  ;;  %v4929_v15 = vpop.f32.mrf.mxu3  ;;  %v4752_v38 = vadd.f32 %v4751_v14, %v7732_v30  ;;  %v2934_v28 = vld [vmem:[#allocation2 + $0x9c] sm:$0xf]  ;;  %v5090_v11 = vpack.c.bf16 %v5017_v46, %v5017_v46  ;;  %v5018_v26 = vpop.f32.mrf.mxu0 }
 0x1ea   : > { %1875 = vst.msk [vmem:[#allocation3 + $0x194] sm:$0xf] %vm437_vm0, %v1784_v13  ;;  %v2398_v59 = vor.u32 %v2397_v18, %v2394_v56  ;;  %v5683_v57 = vor.u32 %v6003_v2, %v5680_v33  ;;  %v2114_v42 = vld [vmem:[#allocation2 + $0x98] sm:$0x1]  ;;  %v2408_v8 = vor.u32 %v2407_v39, %v2403_v45  ;;  %v5157_v48 = vsel %vm4592_vm1, %v5017_v46, 0.0  ;;  %v8018_v22 = vpop.permute.xlu0 %1995 }
 0x1eb   : > { %2067 = vst.msk [vmem:[#allocation3 + $0x194] sm:$0xf] %vm1579_vm12, %v7949_v51  ;;  %v6005_v24 = vld [vmem:[#allocation3 + $0x1a8] sm:$0xf0]  ;;  %v2411_v25 = vshll.u32 %v2114_v42, 16  ;;  %v4841_v52 = vadd.f32 %v4840_v29, %v4752_v38  ;;  %v5158_v10 = vadd.f32 %v5157_v48, %v5156_v49  ;;  %v5258_v47 = vsel %vm4592_vm1, %v5223_v1, 0.0  ;;  %v8022_v51 = vpop.permute.xlu1 %1997 }
 0x1ec   : > { %v5666_v27 = vld [vmem:[#allocation3 + $0x178] sm:$0xf]  ;;  %v2399_v58 = vrot.slane %v2398_v59, 4  ;;  %v5679_v31 = vor.u32 %v6005_v24, %v5678_v44  ;;  %4966 = vmatmul.bf16.gmra.mxu3 %v5683_v57  ;;  %2966 = vst.msk [vmem:[#allocation3 + $0x1c4] sm:$0xf] %vm437_vm0, %v2934_v28  ;;  %v2409_v46 = vrot.slane %v2408_v8, 4  ;;  %v8026_v29 = vadd.f32 %v5258_v47, %v5257_v54 }
 0x1ed   : > { %v4843_v30 = vpop.f32.mrf.mxu2  ;;  %v6001_v14 = vld [vmem:[#allocation3 + $0x188] sm:$0xf0]  ;;  %3526 = vst.msk [vmem:[#allocation3 + $0x1c4] sm:$0xf] %vm1579_vm12, %v7991_v61  ;;  %v2413_v7 = vrot.slane %v2411_v25, 5  ;;  %v4930_v13 = vadd.f32 %v4929_v15, %v4841_v52  ;;  %v8051_v25 = vpop.permute.xlu2 %2831 }
 0x1ee   : > { %v5667_v40 = vor.u32 %v6001_v14, %v5666_v27  ;;  %v2404_v12 = vsel %vm6282_vm8, %v2399_v58, %v2403_v45  ;;  %4877 = vmatmul.bf16.gmra.mxu2 %v5679_v31  ;;  %v2935_v56 = vld [vmem:[#allocation2 + $0xa0] sm:$0xf]  ;;  %5122 = vst.msk [vmem:[%s7902_s30 + $0x10] sm:$0xf] %vm437_vm0, %v5090_v11  ;;  %v3566_v49 = vld [vmem:[#allocation2 + $0x90] sm:$0xe] }
 0x1ef   : > { %2565 = vst.msk [vmem:[#allocation3 + $0x1c0] sm:$0xf] %vm437_vm0, %v2404_v12  ;;  %v2414_v61 = vsel %vm6282_vm8, %v2409_v46, %v2413_v7  ;;  %v3567_v2 = vld [vmem:[#allocation2 + $0x94] sm:$0xf]  ;;  %v3568_v1 = vld [vmem:[#allocation2 + $0x98] sm:$0x1]  ;;  %v8035_v54 = vadd.f32 %v5018_v26, %v4930_v13 }
 0x1f0   : > { %v4754_v18 = vpop.f32.mrf.mxu1  ;;  %5941 = vmatmul.msk.bf16.gmra.mxu0 %vm4592_vm1, %v5667_v40  ;;  %2901 = vst.msk [vmem:[#allocation3 + $0x1c0] sm:$0xf] %vm1579_vm12, %v7975_v3  ;;  %v5672_v45 = vld [vmem:[#allocation3 + $0x1a4] sm:$0xf0]  ;;  %v5462_v33 = vrot.slane %v3566_v49, 9  ;;  %v3704_v39 = vrot.slane %v3567_v2, 5 }
 0x1f1   : > { %v4755_v44 = vadd.f32 %v4754_v18, %v7763_v43  ;;  %2566 = vst.msk [vmem:[#allocation3 + $0x1d4] sm:$0xf] %vm437_vm0, %v2414_v61  ;;  %v3707_v15 = vrot.slane %v3568_v1, 5  ;;  %v1646_v38 = vld [vmem:[#allocation2 + $0x88] sm:$0xf]  ;;  %v5159_v59 = vsel %vm4592_vm1, %v8035_v54, 0.0  ;;  %v4932_v57 = vpop.f32.mrf.mxu3  ;;  %v5224_v48 = vmul.f32 %v8035_v54, %v8035_v54  ;;  %v5021_v47 = vpop.f32.mrf.mxu0 }
 0x1f2   : > { %2902 = vst.msk [vmem:[#allocation3 + $0x1d4] sm:$0xf] %vm1579_vm12, %v7983_v21  ;;  %v6002_v43 = vld [vmem:[#allocation3 + $0x194] sm:$0xf]  ;;  %v3705_v28 = vsel %vm6800_vm15, %v5462_v33, %v3704_v39  ;;  %v3706_v42 = vrot.slane %v3704_v39, 4  ;;  %v1790_v3 = vrot.slane %v1646_v38, 5  ;;  %v8048_v11 = vadd.f32 %v5159_v59, %v5158_v10 }
 0x1f3   : > { %2967 = vst.msk [vmem:[#allocation3 + $0x1d8] sm:$0xf] %vm437_vm0, %v2935_v56  ;;  %v5675_v26 = vor.u32 %v6002_v43, %v5672_v45  ;;  %v1647_v24 = vld [vmem:[#allocation2 + $0x8c] sm:$0x1]  ;;  %v1645_v8 = vld [vmem:[#allocation2 + $0x84] sm:$0xe]  ;;  %v4844_v52 = vadd.f32 %v4843_v30, %v4755_v44  ;;  %v5091_v7 = vpack.c.bf16 %v8035_v54, %v8035_v54  ;;  %v8062_v30 = vpop.permute.xlu0 %2833  ;;  %v3457_v49 = vpop.permute.xlu1 %3456 }
 0x1f4   : > { %3527 = vst.msk [vmem:[#allocation3 + $0x1d8] sm:$0xf] %vm1579_vm12, %v8011_v60  ;;  %v3708_v27 = vsel %vm6800_vm15, %v3706_v42, %v3707_v15  ;;  %v1792_v58 = vrot.slane %v1790_v3, 4  ;;  %v1793_v31 = vrot.slane %v1647_v24, 5  ;;  %v5431_v10 = vrot.slane %v1645_v8, 9 }
 0x1f5   : > { %v4845_v21 = vpop.f32.mrf.mxu2  ;;  %4788 = vmatmul.bf16.gmra.mxu1 %v5675_v26  ;;  %3796 = vst.msk [vmem:[#allocation3 + $0x1a0] sm:$0xf] %vm437_vm0, %v3705_v28  ;;  %v2115_v14 = vld [vmem:[#allocation2 + $0x9c] sm:$0xf]  ;;  %v2116_v46 = vld [vmem:[#allocation2 + $0xa0] sm:$0xf]  ;;  %v4933_v13 = vadd.f32 %v4932_v57, %v4844_v52 }
 0x1f6   : > { %3797 = vst.msk [vmem:[#allocation3 + $0x1b4] sm:$0xf] %vm437_vm0, %v3708_v27  ;;  %v1794_v60 = vsel %vm6800_vm15, %v1792_v58, %v1793_v31  ;;  %v1791_v40 = vsel %vm6800_vm15, %v5431_v10, %v1790_v3  ;;  %v2416_v12 = vshrl.u32 %v2115_v14, 16  ;;  %v2419_v56 = vshll.u32 %v2115_v14, 16  ;;  %v6008_v54 = vld [vmem:[#allocation3 + $0x1c4] sm:$0xf] }
 0x1f7   : > { %1878 = vst.msk [vmem:[#allocation3 + $0x1d0] sm:$0xf] %vm437_vm0, %v1794_v60  ;;  %v2425_v61 = vshll.u32 %v2116_v46, 16  ;;  %v2429_v2 = vshrl.u32 %v2116_v46, 16  ;;  %v5260_v1 = vsel %vm4592_vm1, %v5224_v48, 0.0  ;;  %v5022_v44 = vadd.f32 %v5021_v47, %v4933_v13 }
 0x1f8   : > { %v4756_v18 = vpop.f32.mrf.mxu1  ;;  %2070 = vst.msk [vmem:[#allocation3 + $0x1d0] sm:$0xf] %vm1579_vm12, %v8022_v51  ;;  %v2418_v45 = vrot.slane %v2416_v12, 4  ;;  %v2421_v33 = vrot.slane %v2419_v56, 5  ;;  %v5261_v39 = vadd.f32 %v5260_v1, %v8026_v29  ;;  %v5698_v15 = vld [vmem:[#allocation3 + $0x1c0] sm:$0xf] }
 0x1f9   : > { %v4757_v38 = vadd.f32 %v4756_v18, %v7795_v34  ;;  %1877 = vst.msk [vmem:[#allocation3 + $0x1bc] sm:$0xf] %vm437_vm0, %v1791_v40  ;;  %v2427_v59 = vrot.slane %v2425_v61, 5  ;;  %v6010_v57 = vld [vmem:[#allocation3 + $0x1d0] sm:$0xf0]  ;;  %v2431_v43 = vrot.slane %v2429_v2, 4  ;;  %v5225_v28 = vmul.f32 %v5022_v44, %v5022_v44  ;;  %v4934_v42 = vpop.f32.mrf.mxu3  ;;  %v5023_v61 = vpop.f32.mrf.mxu0 }
 0x1fa   : > { %2069 = vst.msk [vmem:[#allocation3 + $0x1bc] sm:$0xf] %vm1579_vm12, %v8018_v22  ;;  %v2422_v3 = vor.u32 %v2421_v33, %v2418_v45  ;;  %v5699_v51 = vor.u32 %v6010_v57, %v5698_v15  ;;  %v2936_v26 = vld [vmem:[#allocation2 + $0xa8] sm:$0xf]  ;;  %v2117_v24 = vld [vmem:[#allocation2 + $0xa4] sm:$0x1]  ;;  %v5092_v8 = vpack.c.bf16 %v5022_v44, %v5022_v44 }
 0x1fb   : > { %v4846_v29 = vadd.f32 %v4845_v21, %v4757_v38  ;;  %5123 = vst.msk [vmem:[%s7902_s30 + $0x14] sm:$0xf] %vm437_vm0, %v5091_v7  ;;  %v5700_v48 = vld [vmem:[#allocation3 + $0x1d4] sm:$0xf0]  ;;  %v2432_v34 = vor.u32 %v2431_v43, %v2427_v59  ;;  %v2435_v52 = vshll.u32 %v2117_v24, 16  ;;  %v5161_v27 = vsel %vm4592_vm1, %v5022_v44, 0.0  ;;  %v3459_v7 = vpop.permute.xlu2 %3458  ;;  %v8092_v44 = vpop.permute.xlu0 %1999 }
 0x1fc   : > { %v5686_v58 = vld [vmem:[#allocation3 + $0x1a0] sm:$0xf]  ;;  %v2423_v31 = vrot.slane %v2422_v3, 4  ;;  %v5703_v10 = vor.u32 %v6008_v54, %v5700_v48  ;;  %2968 = vst.msk [vmem:[#allocation3 + $0x1ec] sm:$0xf] %vm437_vm0, %v2936_v26  ;;  %v5162_v22 = vadd.f32 %v5161_v27, %v8048_v11  ;;  %v5262_v47 = vsel %vm4592_vm1, %v5225_v28, 0.0 }
 0x1fd   : > { %v6006_v14 = vld [vmem:[#allocation3 + $0x1b0] sm:$0xf0]  ;;  %3528 = vst.msk [vmem:[#allocation3 + $0x1ec] sm:$0xf] %vm1579_vm12, %v3457_v49  ;;  %v2433_v21 = vrot.slane %v2432_v34, 4  ;;  %v2437_v46 = vrot.slane %v2435_v52, 5  ;;  %v5263_v13 = vadd.f32 %v5262_v47, %v5261_v39  ;;  %v4935_v60 = vadd.f32 %v4934_v42, %v4846_v29  ;;  %v4848_v40 = vpop.f32.mrf.mxu2 }
 0x1fe   : > { %v5687_v12 = vor.u32 %v6006_v14, %v5686_v58  ;;  %v2428_v56 = vsel %vm6282_vm8, %v2423_v31, %v2427_v59  ;;  %4882 = vmatmul.bf16.gmra.mxu2 %v5699_v51  ;;  %4971 = vmatmul.bf16.gmra.mxu3 %v5703_v10  ;;  %v2937_v18 = vld [vmem:[#allocation2 + $0xac] sm:$0xf]  ;;  %5124 = vst.msk [vmem:[%s7902_s30 + $0x18] sm:$0xf] %vm437_vm0, %v5092_v8  ;;  %v3569_v11 = vld [vmem:[#allocation2 + $0x9c] sm:$0xe]  ;;  %v2002_v59 = vpop.permute.xlu1 %2001 }
 0x1ff   : > { %2567 = vst.msk [vmem:[#allocation3 + $0x1e8] sm:$0xf] %vm437_vm0, %v2428_v56  ;;  %v2438_v49 = vsel %vm6282_vm8, %v2433_v21, %v2437_v46  ;;  %v5692_v1 = vld [vmem:[#allocation3 + $0x1cc] sm:$0xf0]  ;;  %v3570_v54 = vld [vmem:[#allocation2 + $0xa0] sm:$0xf]  ;;  %v5024_v45 = vadd.f32 %v5023_v61, %v4935_v60 }
 0x200   : > { %v4759_v2 = vpop.f32.mrf.mxu1  ;;  %5942 = vmatmul.msk.bf16.gmra.mxu0 %vm4592_vm1, %v5687_v12  ;;  %2903 = vst.msk [vmem:[#allocation3 + $0x1e8] sm:$0xf] %vm1579_vm12, %v8051_v25  ;;  %v3571_v39 = vld [vmem:[#allocation2 + $0xa4] sm:$0x1]  ;;  %v5463_v15 = vrot.slane %v3569_v11, 9  ;;  %v3711_v38 = vrot.slane %v3570_v54, 5 }
 0x201   : > { %v4760_v33 = vadd.f32 %v4759_v2, %v7503_v4  ;;  %2568 = vst.msk [vmem:[#allocation3 + $0x1fc] sm:$0xf] %vm437_vm0, %v2438_v49  ;;  %v6007_v57 = vld [vmem:[#allocation3 + $0x1bc] sm:$0xf]  ;;  %v3714_v43 = vrot.slane %v3571_v39, 5  ;;  %v5163_v28 = vsel %vm4592_vm1, %v5024_v45, 0.0  ;;  %v5226_v42 = vmul.f32 %v5024_v45, %v5024_v45  ;;  %v4937_v3 = vpop.f32.mrf.mxu3 }
 0x202   : > { %2904 = vst.msk [vmem:[#allocation3 + $0x1fc] sm:$0xf] %vm1579_vm12, %v8062_v30  ;;  %v5695_v4 = vor.u32 %v6007_v57, %v5692_v1  ;;  %v3712_v51 = vsel %vm6800_vm15, %v5463_v15, %v3711_v38  ;;  %v3713_v25 = vrot.slane %v3711_v38, 4  ;;  %v1649_v26 = vld [vmem:[#allocation2 + $0x94] sm:$0xf]  ;;  %v8104_v24 = vadd.f32 %v5163_v28, %v5162_v22 }
 0x203   : > { %2969 = vst.msk [vmem:[#allocation3 + $0x200] sm:$0xf] %vm437_vm0, %v2937_v18  ;;  %v1650_v8 = vld [vmem:[#allocation2 + $0x98] sm:$0x1]  ;;  %v1797_v29 = vrot.slane %v1649_v26, 5  ;;  %v5093_v48 = vpack.c.bf16 %v5024_v45, %v5024_v45  ;;  %v5264_v34 = vsel %vm4592_vm1, %v5226_v42, 0.0  ;;  %v4849_v52 = vadd.f32 %v4848_v40, %v4760_v33  ;;  %v2836_v18 = vpop.permute.xlu2 %2835  ;;  %v2838_v15 = vpop.permute.xlu0 %2837 }
 0x204   : > { %3529 = vst.msk [vmem:[#allocation3 + $0x200] sm:$0xf] %vm1579_vm12, %v3459_v7  ;;  %v3715_v30 = vsel %vm6800_vm15, %v3713_v25, %v3714_v43  ;;  %v1800_v27 = vrot.slane %v1650_v8, 5  ;;  %v1648_v58 = vld [vmem:[#allocation2 + $0x90] sm:$0xe]  ;;  %v8111_v31 = vadd.f32 %v5264_v34, %v5263_v13 }
 0x205   : > { %4793 = vmatmul.bf16.gmra.mxu1 %v5695_v4  ;;  %3798 = vst.msk [vmem:[#allocation3 + $0x1c8] sm:$0xf] %vm437_vm0, %v3712_v51  ;;  %v1799_v10 = vrot.slane %v1797_v29, 4  ;;  %v5432_v22 = vrot.slane %v1648_v58, 9  ;;  %v2118_v47 = vld [vmem:[#allocation2 + $0xa8] sm:$0xf]  ;;  %v4938_v7 = vadd.f32 %v4937_v3, %v4849_v52  ;;  %v4850_v1 = vpop.f32.mrf.mxu2 }
 0x206   : > { %3799 = vst.msk [vmem:[#allocation3 + $0x1dc] sm:$0xf] %vm437_vm0, %v3715_v30  ;;  %v2119_v14 = vld [vmem:[#allocation2 + $0xac] sm:$0xf]  ;;  %v2440_v21 = vshrl.u32 %v2118_v47, 16  ;;  %v2443_v46 = vshll.u32 %v2118_v47, 16  ;;  %v3461_v42 = vpop.permute.xlu1 %3460  ;;  %v5026_v4 = vpop.f32.mrf.mxu0 }
 0x207   : > { %v1801_v40 = vsel %vm6800_vm15, %v1799_v10, %v1800_v27  ;;  %v1798_v13 = vsel %vm6800_vm15, %v5432_v22, %v1797_v29  ;;  %v2449_v12 = vshll.u32 %v2119_v14, 16  ;;  %v2453_v56 = vshrl.u32 %v2119_v14, 16  ;;  %5125 = vst.msk [vmem:[%s7902_s30 + $0x1c] sm:$0xf] %vm437_vm0, %v5093_v48  ;;  %v5718_v11 = vld [vmem:[#allocation3 + $0x1e8] sm:$0xf] }
 0x208   : > { %v4761_v60 = vpop.f32.mrf.mxu1  ;;  %1880 = vst.msk [vmem:[#allocation3 + $0x1f8] sm:$0xf] %vm437_vm0, %v1801_v40  ;;  %v2442_v61 = vrot.slane %v2440_v21, 4  ;;  %v2445_v2 = vrot.slane %v2443_v46, 5  ;;  %v6013_v49 = vld [vmem:[#allocation3 + $0x1ec] sm:$0xf] }
 0x209   : > { %v4762_v54 = vadd.f32 %v4761_v60, %v7551_v19  ;;  %2072 = vst.msk [vmem:[#allocation3 + $0x1f8] sm:$0xf] %vm1579_vm12, %v2002_v59  ;;  %v2451_v45 = vrot.slane %v2449_v12, 5  ;;  %v6015_v33 = vld [vmem:[#allocation3 + $0x1f8] sm:$0xf0]  ;;  %v2455_v39 = vrot.slane %v2453_v56, 4  ;;  %v4939_v38 = vpop.f32.mrf.mxu3  ;;  %v5027_v59 = vadd.f32 %v5026_v4, %v4938_v7 }
 0x20a   : > { %1879 = vst.msk [vmem:[#allocation3 + $0x1e4] sm:$0xf] %vm437_vm0, %v1798_v13  ;;  %v2446_v57 = vor.u32 %v2445_v2, %v2442_v61  ;;  %v5719_v43 = vor.u32 %v6015_v33, %v5718_v11  ;;  %v2938_v28 = vld [vmem:[#allocation2 + $0xb4] sm:$0xf]  ;;  %v2120_v3 = vld [vmem:[#allocation2 + $0xb0] sm:$0x1] }
 0x20b   : > { %2071 = vst.msk [vmem:[#allocation3 + $0x1e4] sm:$0xf] %vm1579_vm12, %v8092_v44  ;;  %v5720_v51 = vld [vmem:[#allocation3 + $0x1fc] sm:$0xf0]  ;;  %v2456_v19 = vor.u32 %v2455_v39, %v2451_v45  ;;  %v2459_v25 = vshll.u32 %v2120_v3, 16  ;;  %v4851_v48 = vadd.f32 %v4850_v1, %v4762_v54  ;;  %v5227_v27 = vmul.f32 %v5027_v59, %v5027_v59  ;;  %v3463_v61 = vpop.permute.xlu2 %3462  ;;  %v2004_v4 = vpop.permute.xlu0 %2003 }
 0x20c   : > { %v5706_v26 = vld [vmem:[#allocation3 + $0x1c8] sm:$0xf]  ;;  %v2447_v8 = vrot.slane %v2446_v57, 4  ;;  %v5723_v29 = vor.u32 %v6013_v49, %v5720_v51  ;;  %2970 = vst.msk [vmem:[#allocation3 + $0x214] sm:$0xf] %vm437_vm0, %v2938_v28  ;;  %v5165_v22 = vsel %vm4592_vm1, %v5027_v59, 0.0  ;;  %v5094_v2 = vpack.c.bf16 %v5027_v59, %v5027_v59 }
 0x20d   : > { %v6011_v34 = vld [vmem:[#allocation3 + $0x1d8] sm:$0xf0]  ;;  %3530 = vst.msk [vmem:[#allocation3 + $0x214] sm:$0xf] %vm1579_vm12, %v3461_v42  ;;  %v2457_v52 = vrot.slane %v2456_v19, 4  ;;  %v2461_v30 = vrot.slane %v2459_v25, 5  ;;  %v5166_v21 = vadd.f32 %v5165_v22, %v8104_v24  ;;  %v4940_v56 = vadd.f32 %v4939_v38, %v4851_v48  ;;  %v4853_v33 = vpop.f32.mrf.mxu2 }
 0x20e   : > { %v5707_v58 = vor.u32 %v6011_v34, %v5706_v26  ;;  %v2452_v44 = vsel %vm6282_vm8, %v2447_v8, %v2451_v45  ;;  %4887 = vmatmul.bf16.gmra.mxu2 %v5719_v43  ;;  %4976 = vmatmul.bf16.gmra.mxu3 %v5723_v29  ;;  %v2939_v10 = vld [vmem:[#allocation2 + $0xb8] sm:$0xf]  ;;  %v3572_v47 = vld [vmem:[#allocation2 + $0xa8] sm:$0xe]  ;;  %v5266_v46 = vsel %vm4592_vm1, %v5227_v27, 0.0  ;;  %v5028_v42 = vpop.f32.mrf.mxu0  ;;  %v2006_v29 = vpop.permute.xlu1 %2005 }
 0x20f   : > { %2569 = vst.msk [vmem:[#allocation3 + $0x210] sm:$0xf] %vm437_vm0, %v2452_v44  ;;  %v2462_v14 = vsel %vm6282_vm8, %v2457_v52, %v2461_v30  ;;  %v3573_v7 = vld [vmem:[#allocation2 + $0xac] sm:$0xf]  ;;  %v5464_v60 = vrot.slane %v3572_v47, 9  ;;  %v8140_v40 = vadd.f32 %v5266_v46, %v8111_v31  ;;  %v5029_v51 = vadd.f32 %v5028_v42, %v4940_v56 }
 0x210   : > { %5943 = vmatmul.msk.bf16.gmra.mxu0 %vm4592_vm1, %v5707_v58  ;;  %2905 = vst.msk [vmem:[#allocation3 + $0x210] sm:$0xf] %vm1579_vm12, %v2836_v18  ;;  %v5712_v13 = vld [vmem:[#allocation3 + $0x1f4] sm:$0xf0]  ;;  %v4764_v11 = vpop.f32.mrf.mxu1  ;;  %v3718_v24 = vrot.slane %v3573_v7, 5 }
 0x211   : > { %v3574_v12 = vld [vmem:[#allocation2 + $0xb0] sm:$0x1]  ;;  %2570 = vst.msk [vmem:[#allocation3 + $0x224] sm:$0xf] %vm437_vm0, %v2462_v14  ;;  %v1652_v1 = vld [vmem:[#allocation2 + $0xa0] sm:$0xf]  ;;  %v4942_v54 = vpop.f32.mrf.mxu3  ;;  %v4765_v45 = vadd.f32 %v4764_v11, %v7589_v20  ;;  %v5095_v44 = vpack.c.bf16 %v5029_v51, %v5029_v51  ;;  %v5228_v7 = vmul.f32 %v5029_v51, %v5029_v51 }
 0x212   : > { %v3721_v49 = vrot.slane %v3574_v12, 5  ;;  %2906 = vst.msk [vmem:[#allocation3 + $0x224] sm:$0xf] %vm1579_vm12, %v2838_v15  ;;  %v6012_v18 = vld [vmem:[#allocation3 + $0x1e4] sm:$0xf]  ;;  %v3719_v38 = vsel %vm6800_vm15, %v5464_v60, %v3718_v24  ;;  %v3720_v57 = vrot.slane %v3718_v24, 4 }
 0x213   : > { %v1653_v31 = vld [vmem:[#allocation2 + $0xa4] sm:$0x1]  ;;  %2971 = vst.msk [vmem:[#allocation3 + $0x228] sm:$0xf] %vm437_vm0, %v2939_v10  ;;  %v5715_v39 = vor.u32 %v6012_v18, %v5712_v13  ;;  %v1804_v43 = vrot.slane %v1652_v1, 5  ;;  %v4854_v8 = vadd.f32 %v4853_v33, %v4765_v45  ;;  %v5167_v10 = vsel %vm4592_vm1, %v5029_v51, 0.0 }
 0x214   : > { %v1651_v28 = vld [vmem:[#allocation2 + $0x9c] sm:$0xe]  ;;  %3531 = vst.msk [vmem:[#allocation3 + $0x228] sm:$0xf] %vm1579_vm12, %v3463_v61  ;;  %v1807_v3 = vrot.slane %v1653_v31, 5  ;;  %v3722_v19 = vsel %vm6800_vm15, %v3720_v57, %v3721_v49  ;;  %v5168_v46 = vadd.f32 %v5167_v10, %v5166_v21  ;;  %v5268_v61 = vsel %vm4592_vm1, %v5228_v7, 0.0 }
 0x215   : > { %v5433_v20 = vrot.slane %v1651_v28, 9  ;;  %v2121_v15 = vld [vmem:[#allocation2 + $0xb4] sm:$0xf]  ;;  %5126 = vst.msk [vmem:[%s7902_s30 + $0x20] sm:$0xf] %vm437_vm0, %v5094_v2  ;;  %4798 = vmatmul.bf16.gmra.mxu1 %v5715_v39  ;;  %v1806_v25 = vrot.slane %v1804_v43, 4  ;;  %v5269_v21 = vadd.f32 %v5268_v61, %v8140_v40  ;;  %v4943_v18 = vadd.f32 %v4942_v54, %v4854_v8 }
 0x216   : > { %v2122_v59 = vld [vmem:[#allocation2 + $0xb8] sm:$0xf]  ;;  %v2464_v26 = vshrl.u32 %v2121_v15, 16  ;;  %3800 = vst.msk [vmem:[#allocation3 + $0x1f0] sm:$0xf] %vm437_vm0, %v3719_v38  ;;  %v2467_v34 = vshll.u32 %v2121_v15, 16  ;;  %v2842_v15 = vpop.permute.xlu0 %2841 }
 0x217   : > { %v1805_v48 = vsel %vm6800_vm15, %v5433_v20, %v1804_v43  ;;  %v2473_v52 = vshll.u32 %v2122_v59, 16  ;;  %v2477_v30 = vshrl.u32 %v2122_v59, 16  ;;  %3801 = vst.msk [vmem:[#allocation3 + $0x204] sm:$0xf] %vm437_vm0, %v3722_v19  ;;  %v1808_v27 = vsel %vm6800_vm15, %v1806_v25, %v1807_v3  ;;  %v5738_v22 = vld [vmem:[#allocation3 + $0x210] sm:$0xf]  ;;  %v4855_v43 = vpop.f32.mrf.mxu2  ;;  %v2840_v3 = vpop.permute.xlu2 %2839 }
 0x218   : > { %v2466_v58 = vrot.slane %v2464_v26, 4  ;;  %1882 = vst.msk [vmem:[#allocation3 + $0x220] sm:$0xf] %vm437_vm0, %v1808_v27  ;;  %v2469_v47 = vrot.slane %v2467_v34, 5  ;;  %v6018_v60 = vld [vmem:[#allocation3 + $0x214] sm:$0xf]  ;;  %v4766_v56 = vpop.f32.mrf.mxu1 }
 0x219   : > { %v2475_v14 = vrot.slane %v2473_v52, 5  ;;  %2074 = vst.msk [vmem:[#allocation3 + $0x220] sm:$0xf] %vm1579_vm12, %v2006_v29  ;;  %v6020_v13 = vld [vmem:[#allocation3 + $0x220] sm:$0xf0]  ;;  %v2479_v49 = vrot.slane %v2477_v30, 4  ;;  %v4944_v31 = vpop.f32.mrf.mxu3  ;;  %v4767_v28 = vadd.f32 %v4766_v56, %v7624_v53 }
 0x21a   : > { %v2940_v12 = vld [vmem:[#allocation2 + $0xc0] sm:$0xf]  ;;  %1881 = vst.msk [vmem:[#allocation3 + $0x20c] sm:$0xf] %vm437_vm0, %v1805_v48  ;;  %v2470_v11 = vor.u32 %v2469_v47, %v2466_v58  ;;  %v5739_v2 = vor.u32 %v6020_v13, %v5738_v22  ;;  %v2123_v24 = vld [vmem:[#allocation2 + $0xbc] sm:$0x1] }
 0x21b   : > { %2073 = vst.msk [vmem:[#allocation3 + $0x20c] sm:$0xf] %vm1579_vm12, %v2004_v4  ;;  %v5740_v1 = vld [vmem:[#allocation3 + $0x224] sm:$0xf0]  ;;  %v2483_v45 = vshll.u32 %v2123_v24, 16  ;;  %v2480_v38 = vor.u32 %v2479_v49, %v2475_v14  ;;  %v4856_v48 = vadd.f32 %v4855_v43, %v4767_v28 }
 0x21c   : > { %v2471_v33 = vrot.slane %v2470_v11, 4  ;;  %5127 = vst.msk [vmem:[%s7902_s30 + $0x24] sm:$0xf] %vm437_vm0, %v5095_v44  ;;  %v5743_v39 = vor.u32 %v6018_v60, %v5740_v1  ;;  %v2941_v57 = vld [vmem:[#allocation2 + $0xc4] sm:$0xf]  ;;  %v5031_v19 = vpop.f32.mrf.mxu0 }
 0x21d   : > { %v5726_v42 = vld [vmem:[#allocation3 + $0x1f0] sm:$0xf]  ;;  %2972 = vst.msk [vmem:[#allocation3 + $0x23c] sm:$0xf] %vm437_vm0, %v2940_v12  ;;  %v2485_v20 = vrot.slane %v2483_v45, 5  ;;  %v2481_v54 = vrot.slane %v2480_v38, 4  ;;  %v5032_v26 = vadd.f32 %v5031_v19, %v4943_v18  ;;  %v4945_v61 = vadd.f32 %v4944_v31, %v4856_v48 }
 0x21e   : > { %v6016_v4 = vld [vmem:[#allocation3 + $0x200] sm:$0xf0]  ;;  %v2476_v40 = vsel %vm6282_vm8, %v2471_v33, %v2475_v14  ;;  %4892 = vmatmul.bf16.gmra.mxu2 %v5739_v2  ;;  %4981 = vmatmul.bf16.gmra.mxu3 %v5743_v39  ;;  %2973 = vst.msk [vmem:[#allocation3 + $0x250] sm:$0xf] %vm437_vm0, %v2941_v57  ;;  %v3575_v53 = vld [vmem:[#allocation2 + $0xb4] sm:$0xe] }
 0x21f   : > { %v5727_v51 = vor.u32 %v6016_v4, %v5726_v42  ;;  %2571 = vst.msk [vmem:[#allocation3 + $0x238] sm:$0xf] %vm437_vm0, %v2476_v40  ;;  %v3576_v25 = vld [vmem:[#allocation2 + $0xb8] sm:$0xf]  ;;  %v2486_v59 = vsel %vm6282_vm8, %v2481_v54, %v2485_v20  ;;  %v3577_v29 = vld [vmem:[#allocation2 + $0xbc] sm:$0x1]  ;;  %v5096_v27 = vpack.c.bf16 %v5032_v26, %v5032_v26  ;;  %v5229_v44 = vmul.f32 %v5032_v26, %v5032_v26  ;;  %v2008_v4 = vpop.permute.xlu0 %2007 }
 0x220   : > { %2907 = vst.msk [vmem:[#allocation3 + $0x238] sm:$0xf] %vm1579_vm12, %v2840_v3  ;;  %v5732_v8 = vld [vmem:[#allocation3 + $0x21c] sm:$0xf0]  ;;  %v5465_v34 = vrot.slane %v3575_v53, 9  ;;  %v3725_v52 = vrot.slane %v3576_v25, 5  ;;  %v4858_v38 = vpop.f32.mrf.mxu2 }
 0x221   : > { %5944 = vmatmul.msk.bf16.gmra.mxu0 %vm4592_vm1, %v5727_v51  ;;  %2572 = vst.msk [vmem:[#allocation3 + $0x24c] sm:$0xf] %vm437_vm0, %v2486_v59  ;;  %v3728_v30 = vrot.slane %v3577_v29, 5  ;;  %v5169_v58 = vsel %vm4592_vm1, %v5032_v26, 0.0  ;;  %v1655_v60 = vld [vmem:[#allocation2 + $0xac] sm:$0xf]  ;;  %v8189_v1 = vpop.f32.mrf.mxu3 }
 0x222   : > { %2908 = vst.msk [vmem:[#allocation3 + $0x24c] sm:$0xf] %vm1579_vm12, %v2842_v15  ;;  %v6017_v10 = vld [vmem:[#allocation3 + $0x20c] sm:$0xf]  ;;  %v5170_v22 = vadd.f32 %v5169_v58, %v5168_v46  ;;  %v3726_v14 = vsel %vm6800_vm15, %v5465_v34, %v3725_v52  ;;  %v3727_v7 = vrot.slane %v3725_v52, 4  ;;  %v5270_v12 = vsel %vm4592_vm1, %v5229_v44, 0.0 }
 0x223   : > { %v5735_v47 = vor.u32 %v6017_v10, %v5732_v8  ;;  %v1656_v13 = vld [vmem:[#allocation2 + $0xb0] sm:$0x1]  ;;  %5128 = vst.msk [vmem:[%s7902_s30 + $0x28] sm:$0xf] %vm437_vm0, %v5096_v27  ;;  %v1811_v56 = vrot.slane %v1655_v60, 5  ;;  %v5271_v2 = vadd.f32 %v5270_v12, %v5269_v21  ;;  %v4769_v45 = vpop.f32.mrf.mxu1 }
 0x224   : > { %v1814_v11 = vrot.slane %v1656_v13, 5  ;;  %v3729_v24 = vsel %vm6800_vm15, %v3727_v7, %v3728_v30  ;;  %3802 = vst.msk [vmem:[#allocation3 + $0x218] sm:$0xf] %vm437_vm0, %v3726_v14  ;;  %v1654_v46 = vld [vmem:[#allocation2 + $0xa8] sm:$0xe]  ;;  %v5033_v42 = vpop.f32.mrf.mxu0  ;;  %v4770_v51 = vadd.f32 %v4769_v45, %v7663_v41 }
 0x225   : > { %4803 = vmatmul.bf16.gmra.mxu1 %v5735_v47  ;;  %v2124_v49 = vld [vmem:[#allocation2 + $0xc0] sm:$0xf]  ;;  %3803 = vst.msk [vmem:[#allocation3 + $0x22c] sm:$0xf] %vm437_vm0, %v3729_v24  ;;  %v1813_v18 = vrot.slane %v1811_v56, 4  ;;  %v5434_v33 = vrot.slane %v1654_v46, 9  ;;  %v5034_v40 = vadd.f32 %v5033_v42, %v4945_v61 }
 0x226   : > { %v2125_v39 = vld [vmem:[#allocation2 + $0xc4] sm:$0xf]  ;;  %v3467_v57 = vpop.permute.xlu2 %3466  ;;  %v2488_v31 = vshrl.u32 %v2124_v49, 16  ;;  %v2491_v21 = vshll.u32 %v2124_v49, 16  ;;  %v2126_v15 = vld [vmem:[#allocation2 + $0xc8] sm:$0x1]  ;;  %v4859_v13 = vadd.f32 %v4858_v38, %v4770_v51 }
 0x227   : > { %v2497_v43 = vshll.u32 %v2125_v39, 16  ;;  %v2501_v28 = vshrl.u32 %v2125_v39, 16  ;;  %3533 = vst.msk [vmem:[#allocation3 + $0x250] sm:$0xf] %vm1579_vm12, %v3467_v57  ;;  %v1815_v3 = vsel %vm6800_vm15, %v1813_v18, %v1814_v11  ;;  %v1812_v20 = vsel %vm6800_vm15, %v5434_v33, %v1811_v56  ;;  %v5758_v54 = vld [vmem:[#allocation3 + $0x238] sm:$0xf] }
 0x228   : > { %1884 = vst.msk [vmem:[#allocation3 + $0x248] sm:$0xf] %vm437_vm0, %v1815_v3  ;;  %v2490_v19 = vrot.slane %v2488_v31, 4  ;;  %v2493_v53 = vrot.slane %v2491_v21, 5  ;;  %v2942_v59 = vld [vmem:[#allocation2 + $0xcc] sm:$0xf]  ;;  %v5097_v8 = vpack.c.bf16 %v5034_v40, %v5034_v40  ;;  %v5230_v48 = vmul.f32 %v5034_v40, %v5034_v40 }
 0x229   : > { %v2499_v25 = vrot.slane %v2497_v43, 5  ;;  %v2503_v26 = vrot.slane %v2501_v28, 4  ;;  %1883 = vst.msk [vmem:[#allocation3 + $0x234] sm:$0xf] %vm437_vm0, %v1812_v20  ;;  %v5171_v29 = vsel %vm4592_vm1, %v5034_v40, 0.0  ;;  %v2507_v52 = vshll.u32 %v2126_v15, 16  ;;  %v3465_v30 = vpop.permute.xlu1 %3464  ;;  %v4949_v57 = vpop.f32.mrf.mxu3 }
 0x22a   : > { %v6025_v34 = vld [vmem:[#allocation3 + $0x248] sm:$0xf0]  ;;  %2075 = vst.msk [vmem:[#allocation3 + $0x234] sm:$0xf] %vm1579_vm12, %v2008_v4  ;;  %v2494_v41 = vor.u32 %v2493_v53, %v2490_v19  ;;  %v8202_v27 = vadd.f32 %v5171_v29, %v5170_v22  ;;  %v2943_v10 = vld [vmem:[#allocation2 + $0xd0] sm:$0xf]  ;;  %v4948_v31 = vadd.f32 %v8189_v1, %v4859_v13  ;;  %v4860_v43 = vpop.f32.mrf.mxu2 }
 0x22b   : > { %v5759_v58 = vor.u32 %v6025_v34, %v5758_v54  ;;  %v2504_v44 = vor.u32 %v2503_v26, %v2499_v25  ;;  %v3578_v47 = vld [vmem:[#allocation2 + $0xc0] sm:$0xe]  ;;  %3532 = vst.msk [vmem:[#allocation3 + $0x23c] sm:$0xf] %vm1579_vm12, %v3465_v30  ;;  %v5746_v14 = vld [vmem:[#allocation3 + $0x218] sm:$0xf]  ;;  %v4771_v22 = vpop.f32.mrf.mxu1 }
 0x22c   : > { %v5272_v7 = vsel %vm4592_vm1, %v5230_v48, 0.0  ;;  %v2509_v60 = vrot.slane %v2507_v52, 5  ;;  %v6021_v12 = vld [vmem:[#allocation3 + $0x228] sm:$0xf0]  ;;  %v2495_v56 = vrot.slane %v2494_v41, 4  ;;  %v4772_v42 = vadd.f32 %v4771_v22, %v7704_v50 }
 0x22d   : > { %5129 = vst.msk [vmem:[%s7902_s30 + $0x2c] sm:$0xf] %vm437_vm0, %v5097_v8  ;;  %v8208_v11 = vadd.f32 %v5272_v7, %v5271_v2  ;;  %v2505_v61 = vrot.slane %v2504_v44, 4  ;;  %v5747_v24 = vor.u32 %v6021_v12, %v5746_v14  ;;  %v3579_v46 = vld [vmem:[#allocation2 + $0xc4] sm:$0xf]  ;;  %v5466_v2 = vrot.slane %v3578_v47, 9 }
 0x22e   : > { %4897 = vmatmul.bf16.gmra.mxu2 %v5759_v58  ;;  %2974 = vst.msk [vmem:[#allocation3 + $0x264] sm:$0xf] %vm437_vm0, %v2942_v59  ;;  %v3580_v49 = vld [vmem:[#allocation2 + $0xc8] sm:$0x1]  ;;  %v2500_v45 = vsel %vm6282_vm8, %v2495_v56, %v2499_v25  ;;  %v2844_v18 = vpop.permute.xlu2 %2843  ;;  %v3732_v38 = vrot.slane %v3579_v46, 5  ;;  %v4861_v59 = vadd.f32 %v4860_v43, %v4772_v42 }
 0x22f   : > { %v5760_v33 = vld [vmem:[#allocation3 + $0x24c] sm:$0xf0]  ;;  %v2510_v39 = vsel %vm6282_vm8, %v2505_v61, %v2509_v60  ;;  %2975 = vst.msk [vmem:[#allocation3 + $0x278] sm:$0xf] %vm437_vm0, %v2943_v10  ;;  %v3735_v21 = vrot.slane %v3580_v49, 5 }
 0x230   : > { %2573 = vst.msk [vmem:[#allocation3 + $0x260] sm:$0xf] %vm437_vm0, %v2500_v45  ;;  %v1658_v28 = vld [vmem:[#allocation2 + $0xb8] sm:$0xf]  ;;  %v3733_v35 = vsel %vm6800_vm15, %v5466_v2, %v3732_v38  ;;  %v3734_v3 = vrot.slane %v3732_v38, 4  ;;  %v4950_v13 = vadd.f32 %v4949_v57, %v4861_v59 }
 0x231   : > { %5945 = vmatmul.msk.bf16.gmra.mxu0 %vm4592_vm1, %v5747_v24  ;;  %2909 = vst.msk [vmem:[#allocation3 + $0x260] sm:$0xf] %vm1579_vm12, %v2844_v18  ;;  %v1659_v20 = vld [vmem:[#allocation2 + $0xbc] sm:$0x1]  ;;  %v1818_v4 = vrot.slane %v1658_v28, 5  ;;  %v2010_v54 = vpop.permute.xlu1 %2009  ;;  %v5036_v15 = vpop.f32.mrf.mxu0 }
 0x232   : > { %2574 = vst.msk [vmem:[#allocation3 + $0x274] sm:$0xf] %vm437_vm0, %v2510_v39  ;;  %v1821_v40 = vrot.slane %v1659_v20, 5  ;;  %v6023_v1 = vld [vmem:[#allocation3 + $0x23c] sm:$0xf]  ;;  %v3736_v51 = vsel %vm6800_vm15, %v3734_v3, %v3735_v21  ;;  %v5037_v53 = vadd.f32 %v5036_v15, %v4948_v31 }
 0x233   : > { %3804 = vst.msk [vmem:[#allocation3 + $0x240] sm:$0xf] %vm437_vm0, %v3733_v35  ;;  %v1820_v50 = vrot.slane %v1818_v4, 4  ;;  %v5763_v19 = vor.u32 %v6023_v1, %v5760_v33  ;;  %v1657_v25 = vld [vmem:[#allocation2 + $0xb4] sm:$0xe] }
 0x234   : > { %2076 = vst.msk [vmem:[#allocation3 + $0x248] sm:$0xf] %vm1579_vm12, %v2010_v54  ;;  %v3581_v26 = vld [vmem:[#allocation2 + $0xcc] sm:$0xe]  ;;  %v5435_v29 = vrot.slane %v1657_v25, 9  ;;  %v5098_v52 = vpack.c.bf16 %v5037_v53, %v5037_v53  ;;  %v5173_v30 = vsel %vm4592_vm1, %v5037_v53, 0.0  ;;  %v5231_v41 = vmul.f32 %v5037_v53, %v5037_v53  ;;  %v4863_v46 = vpop.f32.mrf.mxu2 }
 0x235   : > { %3805 = vst.msk [vmem:[#allocation3 + $0x254] sm:$0xf] %vm437_vm0, %v3736_v51  ;;  %v1822_v8 = vsel %vm6800_vm15, %v1820_v50, %v1821_v40  ;;  %v3582_v48 = vld [vmem:[#allocation2 + $0xd0] sm:$0xf]  ;;  %v5467_v34 = vrot.slane %v3581_v26, 9  ;;  %4986 = vmatmul.bf16.gmra.mxu3 %v5763_v19  ;;  %v5174_v47 = vadd.f32 %v5173_v30, %v8202_v27  ;;  %v4952_v24 = vpop.f32.mrf.mxu3 }
 0x236   : > { %1886 = vst.msk [vmem:[#allocation3 + $0x270] sm:$0xf] %vm437_vm0, %v1822_v8  ;;  %v3583_v58 = vld [vmem:[#allocation2 + $0xd4] sm:$0x1]  ;;  %v3739_v44 = vrot.slane %v3582_v48, 5  ;;  %v3471_v10 = vpop.permute.xlu2 %3470  ;;  %v1819_v14 = vsel %vm6800_vm15, %v5435_v29, %v1818_v4  ;;  %v5274_v60 = vsel %vm4592_vm1, %v5231_v41, 0.0 }
 0x237   : > { %v3742_v7 = vrot.slane %v3583_v58, 5  ;;  %3535 = vst.msk [vmem:[#allocation3 + $0x278] sm:$0xf] %vm1579_vm12, %v3471_v10  ;;  %v5275_v61 = vadd.f32 %v5274_v60, %v8208_v11  ;;  %v6022_v22 = vld [vmem:[#allocation3 + $0x234] sm:$0xf] }
 0x238   : > { %v3740_v12 = vsel %vm6800_vm15, %v5467_v34, %v3739_v44  ;;  %v3741_v56 = vrot.slane %v3739_v44, 4  ;;  %5130 = vst.msk [vmem:[%s7902_s30 + $0x30] sm:$0xf] %vm437_vm0, %v5098_v52  ;;  %v5778_v19 = vld [vmem:[#allocation3 + $0x260] sm:$0xf] }
 0x239   : > { %1885 = vst.msk [vmem:[#allocation3 + $0x25c] sm:$0xf] %vm437_vm0, %v1819_v14  ;;  %v3469_v45 = vpop.permute.xlu1 %3468  ;;  %v5038_v33 = vpop.f32.mrf.mxu0 }
 0x23a   : > { %v5766_v27 = vld [vmem:[#allocation3 + $0x240] sm:$0xf]  ;;  %v3743_v49 = vsel %vm6800_vm15, %v3741_v56, %v3742_v7  ;;  %3806 = vst.msk [vmem:[#allocation3 + $0x268] sm:$0xf] %vm437_vm0, %v3740_v12  ;;  %v5039_v11 = vadd.f32 %v5038_v33, %v4950_v13  ;;  %v4774_v38 = vpop.f32.mrf.mxu1 }
 0x23b   : > { %v5752_v18 = vld [vmem:[#allocation3 + $0x244] sm:$0xf0]  ;;  %3534 = vst.msk [vmem:[#allocation3 + $0x264] sm:$0xf] %vm1579_vm12, %v3469_v45  ;;  %v2846_v57 = vpop.permute.xlu0 %2845  ;;  %v4775_v35 = vadd.f32 %v4774_v38, %v7747_v9 }
 0x23c   : > { %v5755_v39 = vor.u32 %v6022_v22, %v5752_v18  ;;  %v6026_v2 = vld [vmem:[#allocation3 + $0x250] sm:$0xf0]  ;;  %3807 = vst.msk [vmem:[#allocation3 + $0x27c] sm:$0xf] %vm437_vm0, %v3743_v49  ;;  %v5099_v6 = vpack.c.bf16 %v5039_v11, %v5039_v11  ;;  %v5175_v21 = vsel %vm4592_vm1, %v5039_v11, 0.0  ;;  %v5232_v43 = vmul.f32 %v5039_v11, %v5039_v11  ;;  %v4865_v51 = vpop.f32.mrf.mxu2 }
 0x23d   : > { %v5767_v31 = vor.u32 %v6026_v2, %v5766_v27  ;;  %2910 = vst.msk [vmem:[#allocation3 + $0x274] sm:$0xf] %vm1579_vm12, %v2846_v57  ;;  %v5176_v28 = vadd.f32 %v5175_v21, %v5174_v47  ;;  %v4954_v4 = vpop.f32.mrf.mxu3  ;;  %v4864_v15 = vadd.f32 %v4863_v46, %v4775_v35 }
 0x23e   : > { %4808 = vmatmul.bf16.gmra.mxu1 %v5755_v39  ;;  %5131 = vst.msk [vmem:[%s7902_s30 + $0x34] sm:$0xf] %vm437_vm0, %v5099_v6  ;;  %v5276_v42 = vsel %vm4592_vm1, %v5232_v43, 0.0  ;;  %v5780_v20 = vld [vmem:[#allocation3 + $0x274] sm:$0xf0] }
 0x23f   : > { %v5277_v3 = vadd.f32 %v5276_v42, %v5275_v61  ;;  %v4953_v9 = vadd.f32 %v4952_v24, %v4864_v15 }
 0x241   : > { %5946 = vmatmul.msk.bf16.gmra.mxu0 %vm4592_vm1, %v5767_v31  ;;  %v2014_v40 = vpop.permute.xlu1 %2013  ;;  %v5786_v8 = vld [vmem:[#allocation3 + $0x268] sm:$0xf] }
 0x242   : > { %v6028_v54 = vld [vmem:[#allocation3 + $0x264] sm:$0xf]  ;;  %2078 = vst.msk [vmem:[#allocation3 + $0x270] sm:$0xf] %vm1579_vm12, %v2014_v40  ;;  %v4776_v25 = vpop.f32.mrf.mxu1 }
 0x243   : > { %v5783_v1 = vor.u32 %v6028_v54, %v5780_v20  ;;  %v2012_v50 = vpop.permute.xlu0 %2011  ;;  %v4777_v26 = vadd.f32 %v4776_v25, %v7781_v36  ;;  %v6031_v29 = vld [vmem:[#allocation3 + $0x278] sm:$0xf0] }
 0x244   : > { %v6030_v53 = vld [vmem:[#allocation3 + $0x270] sm:$0xf0]  ;;  %2077 = vst.msk [vmem:[#allocation3 + $0x25c] sm:$0xf] %vm1579_vm12, %v2012_v50  ;;  %v5787_v44 = vor.u32 %v6031_v29, %v5786_v8 }
 0x245   : > { %v5779_v59 = vor.u32 %v6030_v53, %v5778_v19  ;;  %4991 = vmatmul.bf16.gmra.mxu3 %v5783_v1  ;;  %v4866_v30 = vadd.f32 %v4865_v51, %v4777_v26 }
 0x247   : > { %4902 = vmatmul.bf16.gmra.mxu2 %v5779_v59  ;;  %v4955_v12 = vadd.f32 %v4954_v4, %v4866_v30 }
 0x249   : > { %v5772_v34 = vld [vmem:[#allocation3 + $0x26c] sm:$0xf0] }
 0x24a   : > { %v5041_v48 = vpop.f32.mrf.mxu0 }
 0x24b   : > { %v5042_v52 = vadd.f32 %v5041_v48, %v4953_v9  ;;  %v4957_v41 = vpop.f32.mrf.mxu3  ;;  %v6027_v58 = vld [vmem:[#allocation3 + $0x25c] sm:$0xf] }
 0x24c   : > { %v5775_v7 = vor.u32 %v6027_v58, %v5772_v34 }
 0x24d   : > { %v5100_v10 = vpack.c.bf16 %v5042_v52, %v5042_v52  ;;  %v5177_v47 = vsel %vm4592_vm1, %v5042_v52, 0.0  ;;  %v5233_v14 = vmul.f32 %v5042_v52, %v5042_v52  ;;  %v4868_v13 = vpop.f32.mrf.mxu2 }
 0x24e   : > { %v5178_v60 = vadd.f32 %v5177_v47, %v5176_v28  ;;  %4813 = vmatmul.bf16.gmra.mxu1 %v5775_v7 }
 0x24f   : > { %5132 = vst.msk [vmem:[%s7902_s30 + $0x38] sm:$0xf] %vm437_vm0, %v5100_v10  ;;  %v5278_v36 = vsel %vm4592_vm1, %v5233_v14, 0.0 }
 0x250   : > { %v4779_v56 = vpop.f32.mrf.mxu1  ;;  %v5279_v61 = vadd.f32 %v5278_v36, %v5277_v3 }
 0x251   : > { %5947 = vmatmul.msk.bf16.gmra.mxu0 %vm4592_vm1, %v5787_v44  ;;  %v4780_v22 = vadd.f32 %v4779_v56, %v7483_v32 }
 0x252   : > { %v5043_v24 = vpop.f32.mrf.mxu0 }
 0x253   : > { %v5044_v27 = vadd.f32 %v5043_v24, %v4955_v12  ;;  %v4959_v46 = vpop.f32.mrf.mxu3  ;;  %v4869_v33 = vadd.f32 %v4868_v13, %v4780_v22 }
 0x255   : > { %v5101_v49 = vpack.c.bf16 %v5044_v27, %v5044_v27  ;;  %v5179_v45 = vsel %vm4592_vm1, %v5044_v27, 0.0  ;;  %v5234_v18 = vmul.f32 %v5044_v27, %v5044_v27  ;;  %v4870_v2 = vpop.f32.mrf.mxu2  ;;  %v4958_v31 = vadd.f32 %v4957_v41, %v4869_v33 }
 0x256   : > { %v5180_v39 = vadd.f32 %v5179_v45, %v5178_v60 }
 0x257   : > { %5133 = vst.msk [vmem:[%s7902_s30 + $0x3c] sm:$0xf] %vm437_vm0, %v5101_v49  ;;  %v5280_v11 = vsel %vm4592_vm1, %v5234_v18, 0.0 }
 0x258   : > { %v4781_v38 = vpop.f32.mrf.mxu1  ;;  %v5281_v57 = vadd.f32 %v5280_v11, %v5279_v61 }
 0x259   : > { %v4782_v32 = vadd.f32 %v4781_v38, %v7532_v0 }
 0x25b   : > { %v4871_v43 = vadd.f32 %v4870_v2, %v4782_v32 }
 0x25c   : > { %v5046_v6 = vpop.f32.mrf.mxu0 }
 0x25d   : > { %v5047_v21 = vadd.f32 %v5046_v6, %v4958_v31  ;;  %v4960_v54 = vadd.f32 %v4959_v46, %v4871_v43 }
 0x25e   : > { %v4962_v28 = vpop.f32.mrf.mxu3 }
 0x25f   : > { %v5102_v42 = vpack.c.bf16 %v5047_v21, %v5047_v21  ;;  %v5181_v35 = vsel %vm4592_vm1, %v5047_v21, 0.0  ;;  %v5235_v3 = vmul.f32 %v5047_v21, %v5047_v21  ;;  %v4873_v20 = vpop.f32.mrf.mxu2 }
 0x260   : > { %v5182_v4 = vadd.f32 %v5181_v35, %v5180_v39 }
 0x261   : > { %5134 = vst.msk [vmem:[%s7902_s30 + $0x40] sm:$0xf] %vm437_vm0, %v5102_v42  ;;  %v5282_v40 = vsel %vm4592_vm1, %v5235_v3, 0.0 }
 0x262   : > { %v4784_v1 = vpop.f32.mrf.mxu1  ;;  %v5283_v15 = vadd.f32 %v5282_v40, %v5281_v57 }
 0x263   : > { %v4785_v0 = vadd.f32 %v4784_v1, %v7575_v17 }
 0x264   : > { %v5048_v51 = vpop.f32.mrf.mxu0 }
 0x265   : > { %v5049_v50 = vadd.f32 %v5048_v51, %v4960_v54  ;;  %v4874_v19 = vadd.f32 %v4873_v20, %v4785_v0 }
 0x266   : > { %v4964_v53 = vpop.f32.mrf.mxu3 }
 0x267   : > { %v5103_v25 = vpack.c.bf16 %v5049_v50, %v5049_v50  ;;  %v5183_v59 = vsel %vm4592_vm1, %v5049_v50, 0.0  ;;  %v5236_v9 = vmul.f32 %v5049_v50, %v5049_v50  ;;  %v4875_v26 = vpop.f32.mrf.mxu2  ;;  %v4963_v48 = vadd.f32 %v4962_v28, %v4874_v19 }
 0x268   : > { %v5184_v8 = vadd.f32 %v5183_v59, %v5182_v4 }
 0x269   : > { %5135 = vst.msk [vmem:[%s7902_s30 + $0x44] sm:$0xf] %vm437_vm0, %v5103_v25  ;;  %v5284_v29 = vsel %vm4592_vm1, %v5236_v9, 0.0 }
 0x26a   : > { %v4786_v34 = vpop.f32.mrf.mxu1  ;;  %v5285_v52 = vadd.f32 %v5284_v29, %v5283_v15 }
 0x26b   : > { %v4787_v17 = vadd.f32 %v4786_v34, %v7613_v62 }
 0x26d   : > { %v5051_v30 = vpop.f32.mrf.mxu0  ;;  %v4876_v58 = vadd.f32 %v4875_v26, %v4787_v17 }
 0x26e   : > { %v5052_v41 = vadd.f32 %v5051_v30, %v4963_v48 }
 0x26f   : > { %v4967_v44 = vpop.f32.mrf.mxu3  ;;  %v4965_v36 = vadd.f32 %v4964_v53, %v4876_v58 }
 0x270   : > { %v5104_v10 = vpack.c.bf16 %v5052_v41, %v5052_v41  ;;  %v5185_v47 = vsel %vm4592_vm1, %v5052_v41, 0.0  ;;  %v5237_v14 = vmul.f32 %v5052_v41, %v5052_v41 }
 0x271   : > { %v5186_v7 = vadd.f32 %v5185_v47, %v5184_v8  ;;  %v4878_v60 = vpop.f32.mrf.mxu2 }
 0x272   : > { %5136 = vst.msk [vmem:[%s7902_s30 + $0x48] sm:$0xf] %vm437_vm0, %v5104_v10  ;;  %v5286_v13 = vsel %vm4592_vm1, %v5237_v14, 0.0  ;;  %v4789_v12 = vpop.f32.mrf.mxu1 }
 0x273   : > { %v5287_v56 = vadd.f32 %v5286_v13, %v5285_v52  ;;  %v4790_v62 = vadd.f32 %v4789_v12, %v7656_v5 }
 0x275   : > { %v5053_v61 = vpop.f32.mrf.mxu0  ;;  %v4879_v24 = vadd.f32 %v4878_v60, %v4790_v62 }
 0x276   : > { %v5054_v22 = vadd.f32 %v5053_v61, %v4965_v36 }
 0x277   : > { %v4969_v27 = vpop.f32.mrf.mxu3  ;;  %v4968_v2 = vadd.f32 %v4967_v44, %v4879_v24 }
 0x278   : > { %v5105_v46 = vpack.c.bf16 %v5054_v22, %v5054_v22  ;;  %v5187_v49 = vsel %vm4592_vm1, %v5054_v22, 0.0  ;;  %v5238_v45 = vmul.f32 %v5054_v22, %v5054_v22 }
 0x279   : > { %v5188_v18 = vadd.f32 %v5187_v49, %v5186_v7  ;;  %v4880_v33 = vpop.f32.mrf.mxu2 }
 0x27a   : > { %5137 = vst.msk [vmem:[%s7902_s30 + $0x4c] sm:$0xf] %vm437_vm0, %v5105_v46  ;;  %v5288_v39 = vsel %vm4592_vm1, %v5238_v45, 0.0  ;;  %v4791_v11 = vpop.f32.mrf.mxu1 }
 0x27b   : > { %v5289_v38 = vadd.f32 %v5288_v39, %v5287_v56  ;;  %v4792_v5 = vadd.f32 %v4791_v11, %v7697_v63 }
 0x27d   : > { %v5056_v57 = vpop.f32.mrf.mxu0  ;;  %v4881_v32 = vadd.f32 %v4880_v33, %v4792_v5 }
 0x27e   : > { %v5057_v31 = vadd.f32 %v5056_v57, %v4968_v2 }
 0x27f   : > { %v4970_v20 = vadd.f32 %v4969_v27, %v4881_v32  ;;  %v8397_v27 = vld [vmem:[#allocation4_spill] sm:$0xff] }
 0x280   : > { %v5106_v6 = vpack.c.bf16 %v5057_v31, %v5057_v31  ;;  %v5189_v21 = vsel %vm4592_vm1, %v5057_v31, 0.0  ;;  %v5239_v43 = vmul.f32 %v5057_v31, %v5057_v31 }
 0x281   : > { %v5190_v28 = vadd.f32 %v5189_v21, %v5188_v18  ;;  %v4883_v42 = vpop.f32.mrf.mxu2  ;;  %v4972_v35 = vpop.f32.mrf.mxu3 }
 0x282   : > { %5138 = vst.msk [vmem:[%s7902_s30 + $0x50] sm:$0xf] %vm437_vm0, %v5106_v6  ;;  %v5290_v3 = vsel %vm4592_vm1, %v5239_v43, 0.0  ;;  %v4794_v4 = vpop.f32.mrf.mxu1 }
 0x283   : > { %v5291_v40 = vadd.f32 %v5290_v3, %v5289_v38  ;;  %v4795_v63 = vadd.f32 %v4794_v4, %v7741_v16  ;;  %v8398_v38 = vld [vmem:[#allocation5_spill] sm:$0xff] }
 0x285   : > { %v5058_v54 = vpop.f32.mrf.mxu0  ;;  %v4884_v15 = vadd.f32 %v4883_v42, %v4795_v63  ;;  %v8399_v63 = vld [vmem:[#allocation6_spill] sm:$0xff] }
 0x286   : > { %v5059_v1 = vadd.f32 %v5058_v54, %v4970_v20 }
 0x287   : > { %v4973_v9 = vadd.f32 %v4972_v35, %v4884_v15 }
 0x288   : > { %v5107_v0 = vpack.c.bf16 %v5059_v1, %v5059_v1  ;;  %v5191_v51 = vsel %vm4592_vm1, %v5059_v1, 0.0  ;;  %v5240_v50 = vmul.f32 %v5059_v1, %v5059_v1 }
 0x289   : > { %v8296_v19 = vadd.f32 %v5191_v51, %v5190_v28  ;;  %v4885_v53 = vpop.f32.mrf.mxu2  ;;  %v4974_v25 = vpop.f32.mrf.mxu3 }
 0x28a   : > { %5139 = vst.msk [vmem:[%s7902_s30 + $0x54] sm:$0xf] %vm437_vm0, %v5107_v0  ;;  %v5292_v59 = vsel %vm4592_vm1, %v5240_v50, 0.0  ;;  %v4796_v26 = vpop.f32.mrf.mxu1 }
 0x28b   : > { %v8301_v8 = vadd.f32 %v5292_v59, %v5291_v40  ;;  %v4797_v16 = vadd.f32 %v4796_v26, %v7775_v37  ;;  %v8400_v59 = vld [vmem:[#allocation7_spill] sm:$0xff] }
 0x28d   : > { %v5061_v29 = vpop.f32.mrf.mxu0  ;;  %v4886_v34 = vadd.f32 %v4885_v53, %v4797_v16 }
 0x28e   : > { %v8304_v48 = vadd.f32 %v5061_v29, %v4973_v9 }
 0x28f   : > { %v4975_v30 = vadd.f32 %v4974_v25, %v4886_v34 }
 0x290   : > { %v5108_v52 = vpack.c.bf16 %v8304_v48, %v8304_v48  ;;  %v5241_v34 = vmul.f32 %v8304_v48, %v8304_v48 }
 0x291   : > { %v4888_v17 = vpop.f32.mrf.mxu2  ;;  %v4977_v58 = vpop.f32.mrf.mxu3 }
 0x292   : > { %5140 = vst.msk [vmem:[%s7902_s30 + $0x58] sm:$0xf] %vm437_vm0, %v5108_v52  ;;  %v4799_v41 = vpop.f32.mrf.mxu1 }
 0x293   : > { %v4800_v44 = vadd.f32 %v4799_v41, %v7506_v55 }
 0x295   : > { %v5063_v10 = vpop.f32.mrf.mxu0  ;;  %v4889_v14 = vadd.f32 %v4888_v17, %v4800_v44  ;;  %v5193_v17 = vsel %vm4592_vm1, %v8304_v48, 0.0  ;;  %v8401_v48 = vld [vmem:[#allocation8_spill] sm:$0xff] }
 0x296   : > { %v5064_v47 = vadd.f32 %v5063_v10, %v4975_v30 }
 0x297   : > { %v4978_v13 = vadd.f32 %v4977_v58, %v4889_v14  ;;  %v5294_v58 = vsel %vm4592_vm1, %v5241_v34, 0.0 }
 0x298   : > { %v5109_v37 = vpack.c.bf16 %v5064_v47, %v5064_v47  ;;  %v5242_v30 = vmul.f32 %v5064_v47, %v5064_v47  ;;  %v5195_v44 = vsel %vm4592_vm1, %v5064_v47, 0.0 }
 0x299   : > { %v4890_v7 = vpop.f32.mrf.mxu2  ;;  %v4979_v12 = vpop.f32.mrf.mxu3 }
 0x29a   : > { %5141 = vst.msk [vmem:[%s7902_s30 + $0x5c] sm:$0xf] %vm437_vm0, %v5109_v37  ;;  %v4801_v60 = vpop.f32.mrf.mxu1  ;;  %v5194_v37 = vadd.f32 %v5193_v17, %v8296_v19 }
 0x29b   : > { %v4802_v36 = vadd.f32 %v4801_v60, %v7555_v23 }
 0x29d   : > { %v4891_v61 = vadd.f32 %v4890_v7, %v4802_v36 }
 0x29e   : > { %v5066_v56 = vpop.f32.mrf.mxu0 }
 0x29f   : > { %v5067_v62 = vadd.f32 %v5066_v56, %v4978_v13  ;;  %v4980_v55 = vadd.f32 %v4979_v12, %v4891_v61  ;;  %v5296_v13 = vsel %vm4592_vm1, %v5242_v30, 0.0  ;;  %v5295_v61 = vadd.f32 %v5294_v58, %v8301_v8 }
 0x2a1   : > { %v5110_v22 = vpack.c.bf16 %v5067_v62, %v5067_v62  ;;  %v4893_v49 = vpop.f32.mrf.mxu2  ;;  %v4982_v33 = vpop.f32.mrf.mxu3  ;;  %v5243_v10 = vmul.f32 %v5067_v62, %v5067_v62  ;;  %v5197_v36 = vsel %vm4592_vm1, %v5067_v62, 0.0 }
 0x2a2   : > { %v4804_v24 = vpop.f32.mrf.mxu1 }
 0x2a3   : > { %5142 = vst.msk [vmem:[%s7902_s30 + $0x60] sm:$0xf] %vm437_vm0, %v5110_v22  ;;  %v4805_v46 = vadd.f32 %v4804_v24, %v8397_v27  ;;  %v5196_v22 = vadd.f32 %v5195_v44, %v5194_v37  ;;  %v5298_v47 = vsel %vm4592_vm1, %v5243_v10, 0.0 }
 0x2a5   : > { %v4894_v39 = vadd.f32 %v4893_v49, %v4805_v46  ;;  %v5297_v46 = vadd.f32 %v5296_v13, %v5295_v61  ;;  %v5198_v49 = vadd.f32 %v5197_v36, %v5196_v22 }
 0x2a6   : > { %v5068_v45 = vpop.f32.mrf.mxu0 }
 0x2a7   : > { %v5069_v18 = vadd.f32 %v5068_v45, %v4980_v55  ;;  %v4983_v11 = vadd.f32 %v4982_v33, %v4894_v39 }
 0x2a9   : > { %v5111_v2 = vpack.c.bf16 %v5069_v18, %v5069_v18  ;;  %v4895_v31 = vpop.f32.mrf.mxu2  ;;  %v4984_v43 = vpop.f32.mrf.mxu3  ;;  %v5244_v12 = vmul.f32 %v5069_v18, %v5069_v18  ;;  %v5199_v55 = vsel %vm4592_vm1, %v5069_v18, 0.0 }
 0x2aa   : > { %v4806_v23 = vpop.f32.mrf.mxu1 }
 0x2ab   : > { %5143 = vst.msk [vmem:[%s7902_s30 + $0x64] sm:$0xf] %vm437_vm0, %v5111_v2  ;;  %v4807_v5 = vadd.f32 %v4806_v23, %v8398_v38  ;;  %v5300_v62 = vsel %vm4592_vm1, %v5244_v12, 0.0  ;;  %v5299_v23 = vadd.f32 %v5298_v47, %v5297_v46 }
 0x2ad   : > { %v4896_v6 = vadd.f32 %v4895_v31, %v4807_v5 }
 0x2ae   : > { %v5071_v57 = vpop.f32.mrf.mxu0 }
 0x2af   : > { %v5072_v32 = vadd.f32 %v5071_v57, %v4983_v11  ;;  %v4985_v28 = vadd.f32 %v4984_v43, %v4896_v6  ;;  %v5200_v11 = vadd.f32 %v5199_v55, %v5198_v49  ;;  %v5301_v57 = vadd.f32 %v5300_v62, %v5299_v23 }
 0x2b1   : > { %v5112_v21 = vpack.c.bf16 %v5072_v32, %v5072_v32  ;;  %v4898_v20 = vpop.f32.mrf.mxu2  ;;  %v5245_v19 = vmul.f32 %v5072_v32, %v5072_v32  ;;  %v5201_v39 = vsel %vm4592_vm1, %v5072_v32, 0.0  ;;  %v8402_v32 = vld [vmem:[#allocation9_spill] sm:$0xff] }
 0x2b2   : > { %v5202_v31 = vadd.f32 %v5201_v39, %v5200_v11 }
 0x2b3   : > { %5144 = vst.msk [vmem:[%s7902_s30 + $0x68] sm:$0xf] %vm437_vm0, %v5112_v21  ;;  %v5302_v8 = vsel %vm4592_vm1, %v5245_v19, 0.0 }
 0x2b6   : > { %v5073_v42 = vpop.f32.mrf.mxu0 }
 0x2b7   : > { %v5074_v35 = vadd.f32 %v5073_v42, %v4985_v28 }
 0x2b8   : > { %v4987_v4 = vpop.f32.mrf.mxu3 }
 0x2b9   : > { %v5113_v3 = vpack.c.bf16 %v5074_v35, %v5074_v35  ;;  %v4900_v50 = vpop.f32.mrf.mxu2  ;;  %v5246_v45 = vmul.f32 %v5074_v35, %v5074_v35  ;;  %v5203_v38 = vsel %vm4592_vm1, %v5074_v35, 0.0 }
 0x2bb   : > { %5145 = vst.msk [vmem:[%s7902_s30 + $0x6c] sm:$0xf] %vm437_vm0, %v5113_v3  ;;  %v4809_v40 = vpop.f32.mrf.mxu1  ;;  %v5304_v6 = vsel %vm4592_vm1, %v5246_v45, 0.0 }
 0x2bc   : > { %v4810_v54 = vadd.f32 %v4809_v40, %v8399_v63 }
 0x2be   : > { %v4899_v1 = vadd.f32 %v4898_v20, %v4810_v54  ;;  %v5076_v15 = vpop.f32.mrf.mxu0  ;;  %v5303_v20 = vadd.f32 %v5302_v8, %v5301_v57 }
 0x2c0   : > { %v4988_v0 = vadd.f32 %v4987_v4, %v4899_v1  ;;  %v4989_v26 = vpop.f32.mrf.mxu3  ;;  %v5204_v4 = vadd.f32 %v5203_v38, %v5202_v31 }
 0x2c2   : > { %v5077_v51 = vadd.f32 %v5076_v15, %v4988_v0  ;;  %v5305_v15 = vadd.f32 %v5304_v6, %v5303_v20 }
 0x2c3   : > { %v4811_v53 = vpop.f32.mrf.mxu1 }
 0x2c4   : > { %v5114_v25 = vpack.c.bf16 %v5077_v51, %v5077_v51  ;;  %v4812_v9 = vadd.f32 %v4811_v53, %v8400_v59  ;;  %v5247_v5 = vmul.f32 %v5077_v51, %v5077_v51  ;;  %v5205_v43 = vsel %vm4592_vm1, %v5077_v51, 0.0 }
 0x2c5   : > { %v5206_v0 = vadd.f32 %v5205_v43, %v5204_v4 }
 0x2c6   : > { %5146 = vst.msk [vmem:[%s7902_s30 + $0x70] sm:$0xf] %vm437_vm0, %v5114_v25  ;;  %v4901_v16 = vadd.f32 %v4900_v50, %v4812_v9  ;;  %v5078_v29 = vpop.f32.mrf.mxu0  ;;  %v5306_v63 = vsel %vm4592_vm1, %v5247_v5, 0.0 }
 0x2c7   : > { %v5307_v59 = vadd.f32 %v5306_v63, %v5305_v15 }
 0x2c8   : > { %v4990_v52 = vadd.f32 %v4989_v26, %v4901_v16  ;;  %v4992_v24 = vpop.f32.mrf.mxu3 }
 0x2ca   : > { %v5079_v41 = vadd.f32 %v5078_v29, %v4990_v52  ;;  %v4903_v7 = vpop.f32.mrf.mxu2 }
 0x2cb   : > { %v4814_v60 = vpop.f32.mrf.mxu1 }
 0x2cc   : > { %v5115_v14 = vpack.c.bf16 %v5079_v41, %v5079_v41  ;;  %v4815_v56 = vadd.f32 %v4814_v60, %v8401_v48  ;;  %v5248_v28 = vmul.f32 %v5079_v41, %v5079_v41  ;;  %v5207_v35 = vsel %vm4592_vm1, %v5079_v41, 0.0 }
 0x2cd   : > { %v5208_v9 = vadd.f32 %v5207_v35, %v5206_v0 }
 0x2ce   : > { %5147 = vst.msk [vmem:[%s7902_s30 + $0x74] sm:$0xf] %vm437_vm0, %v5115_v14  ;;  %v4904_v27 = vadd.f32 %v4903_v7, %v4815_v56  ;;  %v5081_v33 = vpop.f32.mrf.mxu0  ;;  %v5308_v51 = vsel %vm4592_vm1, %v5248_v28, 0.0 }
 0x2cf   : > { %v5309_v34 = vadd.f32 %v5308_v51, %v5307_v59 }
 0x2d0   : > { %v4993_v2 = vadd.f32 %v4992_v24, %v4904_v27  ;;  %v4994_v50 = vpop.f32.mrf.mxu3 }
 0x2d2   : > { %v5082_v18 = vadd.f32 %v5081_v33, %v4993_v2  ;;  %v4905_v40 = vpop.f32.mrf.mxu2 }
 0x2d3   : > { %v4816_v21 = vpop.f32.mrf.mxu1 }
 0x2d4   : > { %v5116_v42 = vpack.c.bf16 %v5082_v18, %v5082_v18  ;;  %v4817_v3 = vadd.f32 %v4816_v21, %v8402_v32  ;;  %v5249_v54 = vmul.f32 %v5082_v18, %v5082_v18  ;;  %v5209_v53 = vsel %vm4592_vm1, %v5082_v18, 0.0 }
 0x2d5   : > { %v5210_v52 = vadd.f32 %v5209_v53, %v5208_v9 }
 0x2d6   : > { %5148 = vst.msk [vmem:[%s7902_s30 + $0x78] sm:$0xf] %vm437_vm0, %v5116_v42  ;;  %v4906_v1 = vadd.f32 %v4905_v40, %v4817_v3  ;;  %v5083_v26 = vpop.f32.mrf.mxu0  ;;  %v5310_v16 = vsel %vm4592_vm1, %v5249_v54, 0.0 }
 0x2d7   : > { %v5311_v58 = vadd.f32 %v5310_v16, %v5309_v34 }
 0x2d8   : > { %v4995_v25 = vadd.f32 %v4994_v50, %v4906_v1 }
 0x2da   : > { %v5084_v29 = vadd.f32 %v5083_v26, %v4995_v25 }
 0x2dc   : > { %v5117_v17 = vpack.c.bf16 %v5084_v29, %v5084_v29  ;;  %v5211_v30 = vsel %vm4592_vm1, %v5084_v29, 0.0  ;;  %v5250_v41 = vmul.f32 %v5084_v29, %v5084_v29 }
 0x2dd   : > { %v5212_v44 = vadd.f32 %v5211_v30, %v5210_v52 }
 0x2de   : > { %5149 = vst.msk [vmem:[%s7902_s30 + $0x7c] sm:$0xf] %vm437_vm0, %v5117_v17  ;;  %v5312_v10 = vsel %vm4592_vm1, %v5250_v41, 0.0  ;;  %vm5322_vm0 = vcmask 517120  }
 0x2df   : > { %v5213_v14 = vrot.slane %v5212_v44, 4  ;;  %v5313_v37 = vadd.f32 %v5312_v10, %v5311_v58 }
 0x2e1   : > { %v5214_v7 = vadd.f32 %v5213_v14, %v5212_v44  ;;  %v5314_v60 = vrot.slane %v5313_v37, 4 }
 0x2e3   : > { %v5215_v13 = vrot.slane %v5214_v7, 2  ;;  %v5315_v36 = vadd.f32 %v5314_v60, %v5313_v37 }
 0x2e5   : > { %v5216_v12 = vadd.f32 %v5215_v13, %v5214_v7  ;;  %v5316_v48 = vrot.slane %v5315_v36, 2 }
 0x2e7   : > { %v5217_v56 = vrot.slane %v5216_v12, 1  ;;  %v5317_v61 = vadd.f32 %v5316_v48, %v5315_v36 }
 0x2e9   : > { %v5318_v22 = vrot.slane %v5317_v61, 1  ;;  %v5218_v24 = vadd.f32 %v5217_v56, %v5216_v12 }
 0x2eb   : > { %v5319_v47 = vadd.f32 %v5318_v22, %v5317_v61 }
 0x2ed   : > { %v5321_v55 = vsel %vm5320_vm2, %v5218_v24, %v5319_v47 }
 0x2ee   : > { %5323 = vst.msk [vmem:[%s235_s7] sm:$0x3] %vm5322_vm0, %v5321_v55 }
 0x2ef PF: > { %s16_s18 = sadd.s32 1, %s6193_s18  }
 0x2f0   : > { %p13_p4 = scmp.ge.s32.totalorder %s16_s18, 4  }
 0x2f2   :  { %15 = sbr.rel (!%p13_p4) target bundleno = 1 (0x1), region = 81 }

</bundles_post_ra>
